<compile_context>
chip_gen: v5e
topology: v5e:2x2
jax: 0.10.0
libtpu: 0.0.40
codegen_flags: <defaults>
</compile_context>

<pallas_src>
import functools

import jax
import jax.numpy as jnp
from jax import lax
from jax.experimental import pallas as pl
from jax.experimental.pallas import tpu as pltpu

IN_CHAN = 2
L_IN = 1024            # fc expects 123*256 flattened features -> L_IN pinned
FC_C, FC_L = 256, 123  # conv4 output: 256 channels x 123 positions
FC_K = FC_C * FC_L     # 31488
FC_H = 48              # fc hidden width


# ---------------------------------------------------------------------------
# Kernel A: fused conv stack (conv1..conv4 + ReLU + MaxPool1d(3,2)).
# One batch element per grid step; all intermediates stay in VMEM scratch.
# ---------------------------------------------------------------------------
def _conv_stack_kernel(x_ref,
                       w1_ref, s1_ref, b1_ref,
                       w2_ref, s2_ref, b2_ref,
                       w3_ref, s3_ref, b3_ref,
                       w4_ref, s4_ref, b4_ref,
                       o_ref,
                       h1_ref, h2_ref, p_ref, h3_ref):
    def conv_relu(src_ref, w_ref, s_ref, b_ref, ksz, stride, lout):
        # y[o, :] = relu((sum_d src[stride*o + d, :] @ W_d) * exp(alpha) + b)
        acc = None
        for d in range(ksz):
            idx = pl.ds(d, lout, stride) if stride > 1 else pl.ds(d, lout)
            a = src_ref[idx, :].astype(jnp.bfloat16)
            y = jnp.dot(a, w_ref[d], preferred_element_type=jnp.float32)
            acc = y if acc is None else acc + y
        return jnp.maximum(acc * s_ref[...] + b_ref[...], 0.0)

    # conv1: k=4 s=2  (1024, 2) -> (511, 64)
    h1_ref[...] = conv_relu(x_ref, w1_ref, s1_ref, b1_ref, 4, 2, 511)
    # conv2: k=3 s=2  (511, 64) -> (255, 96)
    h2_ref[...] = conv_relu(h1_ref, w2_ref, s2_ref, b2_ref, 3, 2, 255)
    # MaxPool1d(3, stride=2): (255, 96) -> (127, 96)
    p_ref[...] = jnp.maximum(
        jnp.maximum(h2_ref[pl.ds(0, 127, 2), :], h2_ref[pl.ds(1, 127, 2), :]),
        h2_ref[pl.ds(2, 127, 2), :])
    # conv3: k=3 s=1  (127, 96) -> (125, 128)
    h3_ref[...] = conv_relu(p_ref, w3_ref, s3_ref, b3_ref, 3, 1, 125)
    # conv4: k=3 s=1  (125, 128) -> (123, 256); emit bf16 to HBM
    h4 = conv_relu(h3_ref, w4_ref, s4_ref, b4_ref, 3, 1, 123)
    o_ref[...] = h4.astype(o_ref.dtype)


def conv_stack(x_blc, prep):
    """x_blc: (B, 1024, 2) f32 channels-last -> (B, 123, 256) bf16."""
    B, L, Cin = x_blc.shape
    assert (L, Cin) == (L_IN, IN_CHAN)
    c1, c2, c3, c4 = prep["conv1"], prep["conv2"], prep["conv3"], prep["conv4"]
    args = (x_blc,
            c1["w"], c1["scale"], c1["b"],
            c2["w"], c2["scale"], c2["b"],
            c3["w"], c3["scale"], c3["b"],
            c4["w"], c4["scale"], c4["b"])

    def rep(a):
        nd = a.ndim
        return pl.BlockSpec(a.shape, lambda b: (0,) * nd)   # same block every step

    in_specs = [pl.BlockSpec((None, L_IN, IN_CHAN), lambda b: (b, 0, 0))]
    in_specs += [rep(a) for a in args[1:]]

    return pl.pallas_call(
        _conv_stack_kernel,
        out_shape=jax.ShapeDtypeStruct((B, FC_L, FC_C), jnp.bfloat16),
        grid_spec=pltpu.PrefetchScalarGridSpec(
            num_scalar_prefetch=0,
            grid=(B,),
            in_specs=in_specs,
            out_specs=pl.BlockSpec((None, FC_L, FC_C), lambda b: (b, 0, 0)),
            scratch_shapes=[
                pltpu.VMEM((511, 64), jnp.float32),    # conv1 output
                pltpu.VMEM((255, 96), jnp.float32),    # conv2 output
                pltpu.VMEM((127, 96), jnp.float32),    # pool output
                pltpu.VMEM((125, 128), jnp.float32),   # conv3 output
            ]),
        compiler_params=pltpu.CompilerParams(
            dimension_semantics=("parallel",)),
    )(*args)


# ---------------------------------------------------------------------------
# Kernel B: fused classifier head.
#   h = relu((X @ W1^T) * s1 + b1)   (fc, lane-dense (48, K) bf16 weight)
#   Y = (h @ W2) * s2 + b2           (out, consumed straight from VMEM)
# ---------------------------------------------------------------------------
def _head_kernel(x_ref, w1_ref, s1_ref, b1_ref, w2_ref, s2_ref, b2_ref,
                 o_ref, acc_ref):
    k = pl.program_id(1)

    @pl.when(k == 0)
    def _():
        acc_ref[...] = jnp.zeros_like(acc_ref)

    # NT matmul: x (bm, tk) bf16 x w1 (48, tk) bf16, contracting on lane-dense K.
    acc_ref[...] += lax.dot_general(
        x_ref[...], w1_ref[...],
        dimension_numbers=(((1,), (1,)), ((), ())),
        preferred_element_type=jnp.float32)

    @pl.when(k == pl.num_programs(1) - 1)
    def _():
        # fc epilogue: orth column scale + bias + ReLU, then the tiny out layer.
        # TODO(synk): nn.Dropout is identity at inference; training-mode RNG
        # dropout is not implemented.
        h = jnp.maximum(acc_ref[...] * s1_ref[...] + b1_ref[...], 0.0)
        y = jnp.dot(h, w2_ref[...], preferred_element_type=jnp.float32)
        o_ref[...] = (y * s2_ref[...] + b2_ref[...]).astype(o_ref.dtype)


def _pick_tk(K, H, itemsize, budget_bytes):
    """Largest K tile that divides K, is a multiple of 128, and whose (H, tk)
    weight block fits the per-buffer budget."""
    if K % 128 != 0:
        return K
    best, t = 128, 128
    while t <= K:
        if K % t == 0 and t * H * itemsize <= budget_bytes:
            best = t
        t += 128
    return best


def fused_head(x, w1_hk, s1, b1, w2, s2, b2):
    """x: (B, K) bf16, w1: (H, K) bf16 lane-dense, w2: (H, C) f32 -> (B, C) f32."""
    M, K = x.shape
    H, K1 = w1_hk.shape
    H2, C = w2.shape
    assert K == K1 and H == H2
    bm = M if (M <= 256 or M % 256 != 0) else 256      # M-tiling for large batch
    tk = _pick_tk(K, H, 2, 1536 * 1024)                # ~1.5 MB per weight buffer
    mt, kt = M // bm, K // tk
    return pl.pallas_call(
        _head_kernel,
        out_shape=jax.ShapeDtypeStruct((M, C), jnp.float32),
        grid_spec=pltpu.PrefetchScalarGridSpec(
            num_scalar_prefetch=0,
            grid=(mt, kt),
            in_specs=[
                pl.BlockSpec((bm, tk), lambda m, k: (m, k)),
                pl.BlockSpec((H, tk), lambda m, k: (0, k)),
                pl.BlockSpec((1, H), lambda m, k: (0, 0)),
                pl.BlockSpec((1, H), lambda m, k: (0, 0)),
                pl.BlockSpec((H, C), lambda m, k: (0, 0)),
                pl.BlockSpec((1, C), lambda m, k: (0, 0)),
                pl.BlockSpec((1, C), lambda m, k: (0, 0)),
            ],
            out_specs=pl.BlockSpec((bm, C), lambda m, k: (m, 0)),
            scratch_shapes=[pltpu.VMEM((bm, H), jnp.float32)],
        ),
        compiler_params=pltpu.CompilerParams(
            dimension_semantics=("parallel", "arbitrary"),
            vmem_limit_bytes=64 * 1024 * 1024),
    )(x, w1_hk, s1, b1, w2, s2, b2)


# ---------------------------------------------------------------------------
# Parameters: PyTorch-layout synthetic init + one-time kernel-layout prep.
# ---------------------------------------------------------------------------
def init_params(key, classes):
    ks = jax.random.split(key, 12)

    def conv_p(k1, k2, cout, cin, ksz):
        fan_in = cin * ksz
        return dict(
            w=jax.random.normal(k1, (cout, cin, ksz), jnp.float32) / jnp.sqrt(fan_in),
            b=jax.random.normal(k2, (cout,), jnp.float32) * 0.01,
            alpha=jnp.zeros((cout,), jnp.float32),
        )

    def lin_p(k1, k2, out_f, in_f):
        return dict(
            w=jax.random.normal(k1, (out_f, in_f), jnp.float32) / jnp.sqrt(in_f),
            b=jax.random.normal(k2, (out_f,), jnp.float32) * 0.01,
            alpha=jnp.zeros((out_f,), jnp.float32),
        )

    return dict(
        conv1=conv_p(ks[0], ks[1], 64, IN_CHAN, 4),
        conv2=conv_p(ks[2], ks[3], 96, 64, 3),
        conv3=conv_p(ks[4], ks[5], 128, 96, 3),
        conv4=conv_p(ks[6], ks[7], 256, 128, 3),
        fc=lin_p(ks[8], ks[9], FC_H, FC_L * FC_C),
        out=lin_p(ks[10], ks[11], classes, FC_H),
    )


def prepare_params(params):
    """One-time layout prep (runs once, OUTSIDE the jitted forward):
    conv weights -> (ksz, Cin, Cout) bf16 tap stacks; fc weight kept (H, K)
    lane-dense bf16 with its K axis permuted from PyTorch's (C, L) flatten
    order to our channels-last (L, C) order; exp(alpha) orth scales and biases
    as (1, N) f32 rows.  geoopt proj_ is a no-op for the Euclidean manifold."""
    prep = {}
    for name in ("conv1", "conv2", "conv3", "conv4"):
        p = params[name]
        cout, cin, ksz = p["w"].shape
        prep[name] = dict(
            w=jnp.transpose(p["w"], (2, 1, 0)).astype(jnp.bfloat16),  # (ksz,Cin,Cout)
            scale=jnp.exp(p["alpha"]).reshape(1, cout).astype(jnp.float32),
            b=p["b"].reshape(1, cout).astype(jnp.float32),
        )
    p = params["fc"]
    w = p["w"].reshape(FC_H, FC_C, FC_L)                  # [h, c, l] (PyTorch c*L+l)
    w = jnp.transpose(w, (0, 2, 1)).reshape(FC_H, FC_K)   # [h, l*C+c], lane-dense
    prep["fc"] = dict(
        w=w.astype(jnp.bfloat16),                          # (48, 31488) bf16
        scale=jnp.exp(p["alpha"]).reshape(1, -1).astype(jnp.float32),
        b=p["b"].reshape(1, -1).astype(jnp.float32),
    )
    p = params["out"]
    prep["out"] = dict(
        w=jnp.transpose(p["w"]).astype(jnp.float32),       # (48, classes), tiny
        scale=jnp.exp(p["alpha"]).reshape(1, -1).astype(jnp.float32),
        b=p["b"].reshape(1, -1).astype(jnp.float32),
    )
    return prep


# ---------------------------------------------------------------------------
# Forward pass (matches net.forward, inference mode)
# ---------------------------------------------------------------------------
def net_forward(prep, x_ncl):
    # x_ncl: (B, IN_CHAN, 1024) NCL, same as PyTorch.
    x = jnp.transpose(x_ncl, (0, 2, 1))                    # (B, 1024, 2) channels-last
    h4 = conv_stack(x, prep)                               # (B, 123, 256) bf16
    B = h4.shape[0]
    xf = h4.reshape(B, FC_K)                               # channels-last flatten (l*C+c)
    p, q = prep["fc"], prep["out"]
    return fused_head(xf, p["w"], p["scale"], p["b"],
                      q["w"], q["scale"], q["b"])          # (B, classes) f32


# ---------------------------------------------------------------------------
# Pure-JAX reference (PyTorch layouts) for a correctness sanity check.
# ---------------------------------------------------------------------------
def net_forward_ref(params, x_ncl):
    def conv(p, x, stride):
        w = jnp.exp(p["alpha"])[:, None, None] * p["w"]    # (Cout, Cin, k)
        y = lax.conv_general_dilated(x, w, window_strides=(stride,),
                                     padding="VALID",
                                     dimension_numbers=("NCH", "OIH", "NCH"))
        return y + p["b"][None, :, None]

    x = jax.nn.relu(conv(params["conv1"], x_ncl, 2))
    x = jax.nn.relu(conv(params["conv2"], x, 2))
    x = lax.reduce_window(x, -jnp.inf, lax.max, (1, 1, 3), (1, 1, 2), "VALID")
    x = jax.nn.relu(conv(params["conv3"], x, 1))
    x = jax.nn.relu(conv(params["conv4"], x, 1))
    B = x.shape[0]
    xf = x.reshape(B, -1)                                  # PyTorch (C, L) flatten
    wfc = jnp.exp(params["fc"]["alpha"])[:, None] * params["fc"]["w"]
    h = jax.nn.relu(xf @ wfc.T + params["fc"]["b"])        # dropout = identity (eval)
    wout = jnp.exp(params["out"]["alpha"])[:, None] * params["out"]["w"]
    return h @ wout.T + params["out"]["b"]


if __name__ == "__main__":
    classes = 10
    batch = 2
    key = jax.random.PRNGKey(0)
    kx, kp = jax.random.split(key)
    x = jax.random.normal(kx, (batch, IN_CHAN, L_IN), jnp.float32)
    params = init_params(kp, classes)
    prep = prepare_params(params)        # one-time weight layout/scale prep

    y = jax.jit(net_forward)(prep, x)
    y = jax.block_until_ready(y)
    assert y.shape == (batch, classes), y.shape
    assert bool(jnp.all(jnp.isfinite(y)))

    # Sanity check against a pure-JAX f32 reference (bf16 activations/weights
    # in the kernels -> loose tolerance).
    y_ref = jax.block_until_ready(jax.jit(net_forward_ref)(params, x))
    err = float(jnp.max(jnp.abs(y - y_ref)))
    ref_mag = float(jnp.max(jnp.abs(y_ref)))
    assert err <= 0.1 * max(1.0, ref_mag), (err, ref_mag)

    print("KERNEL_OK")
</pallas_src>

<mosaic_0001>
module attributes {stable_mosaic.version = 11 : i64} {
  func.func @_conv_stack_kernel(%arg0: i32, %arg1: memref<1x1024x2xf32, #tpu.memory_space<vmem>>, %arg2: memref<4x2x64xbf16, #tpu.memory_space<vmem>>, %arg3: memref<1x64xf32, #tpu.memory_space<vmem>>, %arg4: memref<1x64xf32, #tpu.memory_space<vmem>>, %arg5: memref<3x64x96xbf16, #tpu.memory_space<vmem>>, %arg6: memref<1x96xf32, #tpu.memory_space<vmem>>, %arg7: memref<1x96xf32, #tpu.memory_space<vmem>>, %arg8: memref<3x96x128xbf16, #tpu.memory_space<vmem>>, %arg9: memref<1x128xf32, #tpu.memory_space<vmem>>, %arg10: memref<1x128xf32, #tpu.memory_space<vmem>>, %arg11: memref<3x128x256xbf16, #tpu.memory_space<vmem>>, %arg12: memref<1x256xf32, #tpu.memory_space<vmem>>, %arg13: memref<1x256xf32, #tpu.memory_space<vmem>>, %arg14: memref<1x123x256xbf16, #tpu.memory_space<vmem>>, %arg15: memref<511x64xf32, #tpu.memory_space<vmem>>, %arg16: memref<255x96xf32, #tpu.memory_space<vmem>>, %arg17: memref<127x96xf32, #tpu.memory_space<vmem>>, %arg18: memref<125x128xf32, #tpu.memory_space<vmem>>) attributes {dimension_semantics = [#tpu.dimension_semantics<parallel>], iteration_bounds = array<i64: 2>, scalar_prefetch = 0 : i64, scratch_operands = 4 : i64, tpu.core_type = #tpu.core_type<tc>, window_params = [{transform_indices = @transform_0, window_bounds = array<i64: 1, 1024, 2>}, {pipeline_mode = #tpu.pipeline_mode<synchronous>, transform_indices = @transform_1, window_bounds = array<i64: 4, 2, 64>}, {pipeline_mode = #tpu.pipeline_mode<synchronous>, transform_indices = @transform_2, window_bounds = array<i64: 1, 64>}, {pipeline_mode = #tpu.pipeline_mode<synchronous>, transform_indices = @transform_3, window_bounds = array<i64: 1, 64>}, {pipeline_mode = #tpu.pipeline_mode<synchronous>, transform_indices = @transform_4, window_bounds = array<i64: 3, 64, 96>}, {pipeline_mode = #tpu.pipeline_mode<synchronous>, transform_indices = @transform_5, window_bounds = array<i64: 1, 96>}, {pipeline_mode = #tpu.pipeline_mode<synchronous>, transform_indices = @transform_6, window_bounds = array<i64: 1, 96>}, {pipeline_mode = #tpu.pipeline_mode<synchronous>, transform_indices = @transform_7, window_bounds = array<i64: 3, 96, 128>}, {pipeline_mode = #tpu.pipeline_mode<synchronous>, transform_indices = @transform_8, window_bounds = array<i64: 1, 128>}, {pipeline_mode = #tpu.pipeline_mode<synchronous>, transform_indices = @transform_9, window_bounds = array<i64: 1, 128>}, {pipeline_mode = #tpu.pipeline_mode<synchronous>, transform_indices = @transform_10, window_bounds = array<i64: 3, 128, 256>}, {pipeline_mode = #tpu.pipeline_mode<synchronous>, transform_indices = @transform_11, window_bounds = array<i64: 1, 256>}, {pipeline_mode = #tpu.pipeline_mode<synchronous>, transform_indices = @transform_12, window_bounds = array<i64: 1, 256>}, {transform_indices = @transform_13, window_bounds = array<i64: 1, 123, 256>}]} {
    %c0 = arith.constant 0 : index
    %c0_0 = arith.constant 0 : index
    %c0_1 = arith.constant 0 : index
    %0 = tpu.strided_load %arg1[%c0, %c0_0, %c0_1] {strides = array<i32: 1, 2, 1>} : memref<1x1024x2xf32, #tpu.memory_space<vmem>>, vector<1x511x2xf32>
    %1 = vector.shape_cast %0 : vector<1x511x2xf32> to vector<511x2xf32>
    %2 = arith.truncf %1 : vector<511x2xf32> to vector<511x2xbf16>
    %c0_2 = arith.constant 0 : index
    %c0_3 = arith.constant 0 : index
    %c0_4 = arith.constant 0 : index
    %3 = vector.load %arg2[%c0_2, %c0_3, %c0_4] : memref<4x2x64xbf16, #tpu.memory_space<vmem>>, vector<1x2x64xbf16>
    %4 = vector.shape_cast %3 : vector<1x2x64xbf16> to vector<2x64xbf16>
    %cst = arith.constant dense<0.000000e+00> : vector<511x64xf32>
    %5 = tpu.matmul %2, %4, %cst {dimension_numbers = #tpu.dot_dimension_numbers<[1], [0], [0], [1], [0, 0, 1, 1], [], []>} : vector<511x2xbf16>, vector<2x64xbf16>, vector<511x64xf32> -> vector<511x64xf32>
    %c0_5 = arith.constant 0 : index
    %c1 = arith.constant 1 : index
    %c0_6 = arith.constant 0 : index
    %6 = tpu.strided_load %arg1[%c0_5, %c1, %c0_6] {strides = array<i32: 1, 2, 1>} : memref<1x1024x2xf32, #tpu.memory_space<vmem>>, vector<1x511x2xf32>
    %7 = vector.shape_cast %6 : vector<1x511x2xf32> to vector<511x2xf32>
    %8 = arith.truncf %7 : vector<511x2xf32> to vector<511x2xbf16>
    %c1_7 = arith.constant 1 : index
    %c0_8 = arith.constant 0 : index
    %c0_9 = arith.constant 0 : index
    %9 = vector.load %arg2[%c1_7, %c0_8, %c0_9] : memref<4x2x64xbf16, #tpu.memory_space<vmem>>, vector<1x2x64xbf16>
    %10 = vector.shape_cast %9 : vector<1x2x64xbf16> to vector<2x64xbf16>
    %cst_10 = arith.constant dense<0.000000e+00> : vector<511x64xf32>
    %11 = tpu.matmul %8, %10, %cst_10 {dimension_numbers = #tpu.dot_dimension_numbers<[1], [0], [0], [1], [0, 0, 1, 1], [], []>} : vector<511x2xbf16>, vector<2x64xbf16>, vector<511x64xf32> -> vector<511x64xf32>
    %12 = arith.addf %5, %11 : vector<511x64xf32>
    %c0_11 = arith.constant 0 : index
    %c2 = arith.constant 2 : index
    %c0_12 = arith.constant 0 : index
    %13 = tpu.strided_load %arg1[%c0_11, %c2, %c0_12] {strides = array<i32: 1, 2, 1>} : memref<1x1024x2xf32, #tpu.memory_space<vmem>>, vector<1x511x2xf32>
    %14 = vector.shape_cast %13 : vector<1x511x2xf32> to vector<511x2xf32>
    %15 = arith.truncf %14 : vector<511x2xf32> to vector<511x2xbf16>
    %c2_13 = arith.constant 2 : index
    %c0_14 = arith.constant 0 : index
    %c0_15 = arith.constant 0 : index
    %16 = vector.load %arg2[%c2_13, %c0_14, %c0_15] : memref<4x2x64xbf16, #tpu.memory_space<vmem>>, vector<1x2x64xbf16>
    %17 = vector.shape_cast %16 : vector<1x2x64xbf16> to vector<2x64xbf16>
    %cst_16 = arith.constant dense<0.000000e+00> : vector<511x64xf32>
    %18 = tpu.matmul %15, %17, %cst_16 {dimension_numbers = #tpu.dot_dimension_numbers<[1], [0], [0], [1], [0, 0, 1, 1], [], []>} : vector<511x2xbf16>, vector<2x64xbf16>, vector<511x64xf32> -> vector<511x64xf32>
    %19 = arith.addf %12, %18 : vector<511x64xf32>
    %c0_17 = arith.constant 0 : index
    %c3 = arith.constant 3 : index
    %c0_18 = arith.constant 0 : index
    %20 = tpu.strided_load %arg1[%c0_17, %c3, %c0_18] {strides = array<i32: 1, 2, 1>} : memref<1x1024x2xf32, #tpu.memory_space<vmem>>, vector<1x511x2xf32>
    %21 = vector.shape_cast %20 : vector<1x511x2xf32> to vector<511x2xf32>
    %22 = arith.truncf %21 : vector<511x2xf32> to vector<511x2xbf16>
    %c3_19 = arith.constant 3 : index
    %c0_20 = arith.constant 0 : index
    %c0_21 = arith.constant 0 : index
    %23 = vector.load %arg2[%c3_19, %c0_20, %c0_21] : memref<4x2x64xbf16, #tpu.memory_space<vmem>>, vector<1x2x64xbf16>
    %24 = vector.shape_cast %23 : vector<1x2x64xbf16> to vector<2x64xbf16>
    %cst_22 = arith.constant dense<0.000000e+00> : vector<511x64xf32>
    %25 = tpu.matmul %22, %24, %cst_22 {dimension_numbers = #tpu.dot_dimension_numbers<[1], [0], [0], [1], [0, 0, 1, 1], [], []>} : vector<511x2xbf16>, vector<2x64xbf16>, vector<511x64xf32> -> vector<511x64xf32>
    %26 = arith.addf %19, %25 : vector<511x64xf32>
    %c0_23 = arith.constant 0 : index
    %c0_24 = arith.constant 0 : index
    %27 = vector.load %arg3[%c0_23, %c0_24] : memref<1x64xf32, #tpu.memory_space<vmem>>, vector<1x64xf32>
    %28 = vector.broadcast %27 : vector<1x64xf32> to vector<511x64xf32>
    %29 = arith.mulf %26, %28 : vector<511x64xf32>
    %c0_25 = arith.constant 0 : index
    %c0_26 = arith.constant 0 : index
    %30 = vector.load %arg4[%c0_25, %c0_26] : memref<1x64xf32, #tpu.memory_space<vmem>>, vector<1x64xf32>
    %31 = vector.broadcast %30 : vector<1x64xf32> to vector<511x64xf32>
    %32 = arith.addf %29, %31 : vector<511x64xf32>
    %cst_27 = arith.constant 0.000000e+00 : f32
    %33 = vector.broadcast %cst_27 : f32 to vector<511x64xf32>
    %34 = arith.maximumf %32, %33 : vector<511x64xf32>
    %c0_28 = arith.constant 0 : index
    %c0_29 = arith.constant 0 : index
    %35 = vector.load %arg15[%c0_28, %c0_29] : memref<511x64xf32, #tpu.memory_space<vmem>>, vector<511x64xf32>
    tpu.vector_store %arg15[%c0_28, %c0_29], %34 {strides = array<i32>} : memref<511x64xf32, #tpu.memory_space<vmem>>, vector<511x64xf32>,
    %c0_30 = arith.constant 0 : index
    %c0_31 = arith.constant 0 : index
    %36 = tpu.strided_load %arg15[%c0_30, %c0_31] {strides = array<i32: 2, 1>} : memref<511x64xf32, #tpu.memory_space<vmem>>, vector<255x64xf32>
    %37 = arith.truncf %36 : vector<255x64xf32> to vector<255x64xbf16>
    %c0_32 = arith.constant 0 : index
    %c0_33 = arith.constant 0 : index
    %c0_34 = arith.constant 0 : index
    %38 = vector.load %arg5[%c0_32, %c0_33, %c0_34] : memref<3x64x96xbf16, #tpu.memory_space<vmem>>, vector<1x64x96xbf16>
    %39 = vector.shape_cast %38 : vector<1x64x96xbf16> to vector<64x96xbf16>
    %cst_35 = arith.constant dense<0.000000e+00> : vector<255x96xf32>
    %40 = tpu.matmul %37, %39, %cst_35 {dimension_numbers = #tpu.dot_dimension_numbers<[1], [0], [0], [1], [0, 0, 1, 1], [], []>} : vector<255x64xbf16>, vector<64x96xbf16>, vector<255x96xf32> -> vector<255x96xf32>
    %c1_36 = arith.constant 1 : index
    %c0_37 = arith.constant 0 : index
    %41 = tpu.strided_load %arg15[%c1_36, %c0_37] {strides = array<i32: 2, 1>} : memref<511x64xf32, #tpu.memory_space<vmem>>, vector<255x64xf32>
    %42 = arith.truncf %41 : vector<255x64xf32> to vector<255x64xbf16>
    %c1_38 = arith.constant 1 : index
    %c0_39 = arith.constant 0 : index
    %c0_40 = arith.constant 0 : index
    %43 = vector.load %arg5[%c1_38, %c0_39, %c0_40] : memref<3x64x96xbf16, #tpu.memory_space<vmem>>, vector<1x64x96xbf16>
    %44 = vector.shape_cast %43 : vector<1x64x96xbf16> to vector<64x96xbf16>
    %cst_41 = arith.constant dense<0.000000e+00> : vector<255x96xf32>
    %45 = tpu.matmul %42, %44, %cst_41 {dimension_numbers = #tpu.dot_dimension_numbers<[1], [0], [0], [1], [0, 0, 1, 1], [], []>} : vector<255x64xbf16>, vector<64x96xbf16>, vector<255x96xf32> -> vector<255x96xf32>
    %46 = arith.addf %40, %45 : vector<255x96xf32>
    %c2_42 = arith.constant 2 : index
    %c0_43 = arith.constant 0 : index
    %47 = tpu.strided_load %arg15[%c2_42, %c0_43] {strides = array<i32: 2, 1>} : memref<511x64xf32, #tpu.memory_space<vmem>>, vector<255x64xf32>
    %48 = arith.truncf %47 : vector<255x64xf32> to vector<255x64xbf16>
    %c2_44 = arith.constant 2 : index
    %c0_45 = arith.constant 0 : index
    %c0_46 = arith.constant 0 : index
    %49 = vector.load %arg5[%c2_44, %c0_45, %c0_46] : memref<3x64x96xbf16, #tpu.memory_space<vmem>>, vector<1x64x96xbf16>
    %50 = vector.shape_cast %49 : vector<1x64x96xbf16> to vector<64x96xbf16>
    %cst_47 = arith.constant dense<0.000000e+00> : vector<255x96xf32>
    %51 = tpu.matmul %48, %50, %cst_47 {dimension_numbers = #tpu.dot_dimension_numbers<[1], [0], [0], [1], [0, 0, 1, 1], [], []>} : vector<255x64xbf16>, vector<64x96xbf16>, vector<255x96xf32> -> vector<255x96xf32>
    %52 = arith.addf %46, %51 : vector<255x96xf32>
    %c0_48 = arith.constant 0 : index
    %c0_49 = arith.constant 0 : index
    %53 = vector.load %arg6[%c0_48, %c0_49] : memref<1x96xf32, #tpu.memory_space<vmem>>, vector<1x96xf32>
    %54 = vector.broadcast %53 : vector<1x96xf32> to vector<255x96xf32>
    %55 = arith.mulf %52, %54 : vector<255x96xf32>
    %c0_50 = arith.constant 0 : index
    %c0_51 = arith.constant 0 : index
    %56 = vector.load %arg7[%c0_50, %c0_51] : memref<1x96xf32, #tpu.memory_space<vmem>>, vector<1x96xf32>
    %57 = vector.broadcast %56 : vector<1x96xf32> to vector<255x96xf32>
    %58 = arith.addf %55, %57 : vector<255x96xf32>
    %cst_52 = arith.constant 0.000000e+00 : f32
    %59 = vector.broadcast %cst_52 : f32 to vector<255x96xf32>
    %60 = arith.maximumf %58, %59 : vector<255x96xf32>
    %c0_53 = arith.constant 0 : index
    %c0_54 = arith.constant 0 : index
    %61 = vector.load %arg16[%c0_53, %c0_54] : memref<255x96xf32, #tpu.memory_space<vmem>>, vector<255x96xf32>
    tpu.vector_store %arg16[%c0_53, %c0_54], %60 {strides = array<i32>} : memref<255x96xf32, #tpu.memory_space<vmem>>, vector<255x96xf32>,
    %c0_55 = arith.constant 0 : index
    %c0_56 = arith.constant 0 : index
    %62 = tpu.strided_load %arg16[%c0_55, %c0_56] {strides = array<i32: 2, 1>} : memref<255x96xf32, #tpu.memory_space<vmem>>, vector<127x96xf32>
    %c1_57 = arith.constant 1 : index
    %c0_58 = arith.constant 0 : index
    %63 = tpu.strided_load %arg16[%c1_57, %c0_58] {strides = array<i32: 2, 1>} : memref<255x96xf32, #tpu.memory_space<vmem>>, vector<127x96xf32>
    %64 = arith.maximumf %62, %63 : vector<127x96xf32>
    %c2_59 = arith.constant 2 : index
    %c0_60 = arith.constant 0 : index
    %65 = tpu.strided_load %arg16[%c2_59, %c0_60] {strides = array<i32: 2, 1>} : memref<255x96xf32, #tpu.memory_space<vmem>>, vector<127x96xf32>
    %66 = arith.maximumf %64, %65 : vector<127x96xf32>
    %c0_61 = arith.constant 0 : index
    %c0_62 = arith.constant 0 : index
    %67 = vector.load %arg17[%c0_61, %c0_62] : memref<127x96xf32, #tpu.memory_space<vmem>>, vector<127x96xf32>
    tpu.vector_store %arg17[%c0_61, %c0_62], %66 {strides = array<i32>} : memref<127x96xf32, #tpu.memory_space<vmem>>, vector<127x96xf32>,
    %c0_63 = arith.constant 0 : index
    %c0_64 = arith.constant 0 : index
    %68 = vector.load %arg17[%c0_63, %c0_64] : memref<127x96xf32, #tpu.memory_space<vmem>>, vector<125x96xf32>
    %69 = arith.truncf %68 : vector<125x96xf32> to vector<125x96xbf16>
    %c0_65 = arith.constant 0 : index
    %c0_66 = arith.constant 0 : index
    %c0_67 = arith.constant 0 : index
    %70 = vector.load %arg8[%c0_65, %c0_66, %c0_67] : memref<3x96x128xbf16, #tpu.memory_space<vmem>>, vector<1x96x128xbf16>
    %71 = vector.shape_cast %70 : vector<1x96x128xbf16> to vector<96x128xbf16>
    %cst_68 = arith.constant dense<0.000000e+00> : vector<125x128xf32>
    %72 = tpu.matmul %69, %71, %cst_68 {dimension_numbers = #tpu.dot_dimension_numbers<[1], [0], [0], [1], [0, 0, 1, 1], [], []>} : vector<125x96xbf16>, vector<96x128xbf16>, vector<125x128xf32> -> vector<125x128xf32>
    %c1_69 = arith.constant 1 : index
    %c0_70 = arith.constant 0 : index
    %73 = vector.load %arg17[%c1_69, %c0_70] : memref<127x96xf32, #tpu.memory_space<vmem>>, vector<125x96xf32>
    %74 = arith.truncf %73 : vector<125x96xf32> to vector<125x96xbf16>
    %c1_71 = arith.constant 1 : index
    %c0_72 = arith.constant 0 : index
    %c0_73 = arith.constant 0 : index
    %75 = vector.load %arg8[%c1_71, %c0_72, %c0_73] : memref<3x96x128xbf16, #tpu.memory_space<vmem>>, vector<1x96x128xbf16>
    %76 = vector.shape_cast %75 : vector<1x96x128xbf16> to vector<96x128xbf16>
    %cst_74 = arith.constant dense<0.000000e+00> : vector<125x128xf32>
    %77 = tpu.matmul %74, %76, %cst_74 {dimension_numbers = #tpu.dot_dimension_numbers<[1], [0], [0], [1], [0, 0, 1, 1], [], []>} : vector<125x96xbf16>, vector<96x128xbf16>, vector<125x128xf32> -> vector<125x128xf32>
    %78 = arith.addf %72, %77 : vector<125x128xf32>
    %c2_75 = arith.constant 2 : index
    %c0_76 = arith.constant 0 : index
    %79 = vector.load %arg17[%c2_75, %c0_76] : memref<127x96xf32, #tpu.memory_space<vmem>>, vector<125x96xf32>
    %80 = arith.truncf %79 : vector<125x96xf32> to vector<125x96xbf16>
    %c2_77 = arith.constant 2 : index
    %c0_78 = arith.constant 0 : index
    %c0_79 = arith.constant 0 : index
    %81 = vector.load %arg8[%c2_77, %c0_78, %c0_79] : memref<3x96x128xbf16, #tpu.memory_space<vmem>>, vector<1x96x128xbf16>
    %82 = vector.shape_cast %81 : vector<1x96x128xbf16> to vector<96x128xbf16>
    %cst_80 = arith.constant dense<0.000000e+00> : vector<125x128xf32>
    %83 = tpu.matmul %80, %82, %cst_80 {dimension_numbers = #tpu.dot_dimension_numbers<[1], [0], [0], [1], [0, 0, 1, 1], [], []>} : vector<125x96xbf16>, vector<96x128xbf16>, vector<125x128xf32> -> vector<125x128xf32>
    %84 = arith.addf %78, %83 : vector<125x128xf32>
    %c0_81 = arith.constant 0 : index
    %c0_82 = arith.constant 0 : index
    %85 = vector.load %arg9[%c0_81, %c0_82] : memref<1x128xf32, #tpu.memory_space<vmem>>, vector<1x128xf32>
    %86 = vector.broadcast %85 : vector<1x128xf32> to vector<125x128xf32>
    %87 = arith.mulf %84, %86 : vector<125x128xf32>
    %c0_83 = arith.constant 0 : index
    %c0_84 = arith.constant 0 : index
    %88 = vector.load %arg10[%c0_83, %c0_84] : memref<1x128xf32, #tpu.memory_space<vmem>>, vector<1x128xf32>
    %89 = vector.broadcast %88 : vector<1x128xf32> to vector<125x128xf32>
    %90 = arith.addf %87, %89 : vector<125x128xf32>
    %cst_85 = arith.constant 0.000000e+00 : f32
    %91 = vector.broadcast %cst_85 : f32 to vector<125x128xf32>
    %92 = arith.maximumf %90, %91 : vector<125x128xf32>
    %c0_86 = arith.constant 0 : index
    %c0_87 = arith.constant 0 : index
    %93 = vector.load %arg18[%c0_86, %c0_87] : memref<125x128xf32, #tpu.memory_space<vmem>>, vector<125x128xf32>
    tpu.vector_store %arg18[%c0_86, %c0_87], %92 {strides = array<i32>} : memref<125x128xf32, #tpu.memory_space<vmem>>, vector<125x128xf32>,
    %c0_88 = arith.constant 0 : index
    %c0_89 = arith.constant 0 : index
    %94 = vector.load %arg18[%c0_88, %c0_89] : memref<125x128xf32, #tpu.memory_space<vmem>>, vector<123x128xf32>
    %95 = arith.truncf %94 : vector<123x128xf32> to vector<123x128xbf16>
    %c0_90 = arith.constant 0 : index
    %c0_91 = arith.constant 0 : index
    %c0_92 = arith.constant 0 : index
    %96 = vector.load %arg11[%c0_90, %c0_91, %c0_92] : memref<3x128x256xbf16, #tpu.memory_space<vmem>>, vector<1x128x256xbf16>
    %97 = vector.shape_cast %96 : vector<1x128x256xbf16> to vector<128x256xbf16>
    %cst_93 = arith.constant dense<0.000000e+00> : vector<123x256xf32>
    %98 = tpu.matmul %95, %97, %cst_93 {dimension_numbers = #tpu.dot_dimension_numbers<[1], [0], [0], [1], [0, 0, 1, 1], [], []>} : vector<123x128xbf16>, vector<128x256xbf16>, vector<123x256xf32> -> vector<123x256xf32>
    %c1_94 = arith.constant 1 : index
    %c0_95 = arith.constant 0 : index
    %99 = vector.load %arg18[%c1_94, %c0_95] : memref<125x128xf32, #tpu.memory_space<vmem>>, vector<123x128xf32>
    %100 = arith.truncf %99 : vector<123x128xf32> to vector<123x128xbf16>
    %c1_96 = arith.constant 1 : index
    %c0_97 = arith.constant 0 : index
    %c0_98 = arith.constant 0 : index
    %101 = vector.load %arg11[%c1_96, %c0_97, %c0_98] : memref<3x128x256xbf16, #tpu.memory_space<vmem>>, vector<1x128x256xbf16>
    %102 = vector.shape_cast %101 : vector<1x128x256xbf16> to vector<128x256xbf16>
    %cst_99 = arith.constant dense<0.000000e+00> : vector<123x256xf32>
    %103 = tpu.matmul %100, %102, %cst_99 {dimension_numbers = #tpu.dot_dimension_numbers<[1], [0], [0], [1], [0, 0, 1, 1], [], []>} : vector<123x128xbf16>, vector<128x256xbf16>, vector<123x256xf32> -> vector<123x256xf32>
    %104 = arith.addf %98, %103 : vector<123x256xf32>
    %c2_100 = arith.constant 2 : index
    %c0_101 = arith.constant 0 : index
    %105 = vector.load %arg18[%c2_100, %c0_101] : memref<125x128xf32, #tpu.memory_space<vmem>>, vector<123x128xf32>
    %106 = arith.truncf %105 : vector<123x128xf32> to vector<123x128xbf16>
    %c2_102 = arith.constant 2 : index
    %c0_103 = arith.constant 0 : index
    %c0_104 = arith.constant 0 : index
    %107 = vector.load %arg11[%c2_102, %c0_103, %c0_104] : memref<3x128x256xbf16, #tpu.memory_space<vmem>>, vector<1x128x256xbf16>
    %108 = vector.shape_cast %107 : vector<1x128x256xbf16> to vector<128x256xbf16>
    %cst_105 = arith.constant dense<0.000000e+00> : vector<123x256xf32>
    %109 = tpu.matmul %106, %108, %cst_105 {dimension_numbers = #tpu.dot_dimension_numbers<[1], [0], [0], [1], [0, 0, 1, 1], [], []>} : vector<123x128xbf16>, vector<128x256xbf16>, vector<123x256xf32> -> vector<123x256xf32>
    %110 = arith.addf %104, %109 : vector<123x256xf32>
    %c0_106 = arith.constant 0 : index
    %c0_107 = arith.constant 0 : index
    %111 = vector.load %arg12[%c0_106, %c0_107] : memref<1x256xf32, #tpu.memory_space<vmem>>, vector<1x256xf32>
    %112 = vector.broadcast %111 : vector<1x256xf32> to vector<123x256xf32>
    %113 = arith.mulf %110, %112 : vector<123x256xf32>
    %c0_108 = arith.constant 0 : index
    %c0_109 = arith.constant 0 : index
    %114 = vector.load %arg13[%c0_108, %c0_109] : memref<1x256xf32, #tpu.memory_space<vmem>>, vector<1x256xf32>
    %115 = vector.broadcast %114 : vector<1x256xf32> to vector<123x256xf32>
    %116 = arith.addf %113, %115 : vector<123x256xf32>
    %cst_110 = arith.constant 0.000000e+00 : f32
    %117 = vector.broadcast %cst_110 : f32 to vector<123x256xf32>
    %118 = arith.maximumf %116, %117 : vector<123x256xf32>
    %119 = arith.truncf %118 : vector<123x256xf32> to vector<123x256xbf16>
    %c0_111 = arith.constant 0 : index
    %c0_112 = arith.constant 0 : index
    %c0_113 = arith.constant 0 : index
    %120 = vector.load %arg14[%c0_111, %c0_112, %c0_113] : memref<1x123x256xbf16, #tpu.memory_space<vmem>>, vector<1x123x256xbf16>
    %121 = vector.shape_cast %120 : vector<1x123x256xbf16> to vector<123x256xbf16>
    %122 = vector.shape_cast %119 : vector<123x256xbf16> to vector<1x123x256xbf16>
    tpu.vector_store %arg14[%c0_111, %c0_112, %c0_113], %122 {strides = array<i32>} : memref<1x123x256xbf16, #tpu.memory_space<vmem>>, vector<1x123x256xbf16>,
    return
  }
  func.func @transform_0(%arg0: i32) -> (i32, i32, i32) {
    %c0_i32 = arith.constant 0 : i32
    %c0_i32_0 = arith.constant 0 : i32
    %c0_i32_1 = arith.constant 0 : i32
    return %arg0, %c0_i32, %c0_i32_0 : i32, i32, i32
  }
  func.func @transform_1(%arg0: i32) -> (i32, i32, i32) {
    %c0_i32 = arith.constant 0 : i32
    %c0_i32_0 = arith.constant 0 : i32
    %c0_i32_1 = arith.constant 0 : i32
    %c0_i32_2 = arith.constant 0 : i32
    return %c0_i32, %c0_i32_0, %c0_i32_1 : i32, i32, i32
  }
  func.func @transform_2(%arg0: i32) -> (i32, i32) {
    %c0_i32 = arith.constant 0 : i32
    %c0_i32_0 = arith.constant 0 : i32
    %c0_i32_1 = arith.constant 0 : i32
    return %c0_i32, %c0_i32_0 : i32, i32
  }
  func.func @transform_3(%arg0: i32) -> (i32, i32) {
    %c0_i32 = arith.constant 0 : i32
    %c0_i32_0 = arith.constant 0 : i32
    %c0_i32_1 = arith.constant 0 : i32
    return %c0_i32, %c0_i32_0 : i32, i32
  }
  func.func @transform_4(%arg0: i32) -> (i32, i32, i32) {
    %c0_i32 = arith.constant 0 : i32
    %c0_i32_0 = arith.constant 0 : i32
    %c0_i32_1 = arith.constant 0 : i32
    %c0_i32_2 = arith.constant 0 : i32
    return %c0_i32, %c0_i32_0, %c0_i32_1 : i32, i32, i32
  }
  func.func @transform_5(%arg0: i32) -> (i32, i32) {
    %c0_i32 = arith.constant 0 : i32
    %c0_i32_0 = arith.constant 0 : i32
    %c0_i32_1 = arith.constant 0 : i32
    return %c0_i32, %c0_i32_0 : i32, i32
  }
  func.func @transform_6(%arg0: i32) -> (i32, i32) {
    %c0_i32 = arith.constant 0 : i32
    %c0_i32_0 = arith.constant 0 : i32
    %c0_i32_1 = arith.constant 0 : i32
    return %c0_i32, %c0_i32_0 : i32, i32
  }
  func.func @transform_7(%arg0: i32) -> (i32, i32, i32) {
    %c0_i32 = arith.constant 0 : i32
    %c0_i32_0 = arith.constant 0 : i32
    %c0_i32_1 = arith.constant 0 : i32
    %c0_i32_2 = arith.constant 0 : i32
    return %c0_i32, %c0_i32_0, %c0_i32_1 : i32, i32, i32
  }
  func.func @transform_8(%arg0: i32) -> (i32, i32) {
    %c0_i32 = arith.constant 0 : i32
    %c0_i32_0 = arith.constant 0 : i32
    %c0_i32_1 = arith.constant 0 : i32
    return %c0_i32, %c0_i32_0 : i32, i32
  }
  func.func @transform_9(%arg0: i32) -> (i32, i32) {
    %c0_i32 = arith.constant 0 : i32
    %c0_i32_0 = arith.constant 0 : i32
    %c0_i32_1 = arith.constant 0 : i32
    return %c0_i32, %c0_i32_0 : i32, i32
  }
  func.func @transform_10(%arg0: i32) -> (i32, i32, i32) {
    %c0_i32 = arith.constant 0 : i32
    %c0_i32_0 = arith.constant 0 : i32
    %c0_i32_1 = arith.constant 0 : i32
    %c0_i32_2 = arith.constant 0 : i32
    return %c0_i32, %c0_i32_0, %c0_i32_1 : i32, i32, i32
  }
  func.func @transform_11(%arg0: i32) -> (i32, i32) {
    %c0_i32 = arith.constant 0 : i32
    %c0_i32_0 = arith.constant 0 : i32
    %c0_i32_1 = arith.constant 0 : i32
    return %c0_i32, %c0_i32_0 : i32, i32
  }
  func.func @transform_12(%arg0: i32) -> (i32, i32) {
    %c0_i32 = arith.constant 0 : i32
    %c0_i32_0 = arith.constant 0 : i32
    %c0_i32_1 = arith.constant 0 : i32
    return %c0_i32, %c0_i32_0 : i32, i32
  }
  func.func @transform_13(%arg0: i32) -> (i32, i32, i32) {
    %c0_i32 = arith.constant 0 : i32
    %c0_i32_0 = arith.constant 0 : i32
    %c0_i32_1 = arith.constant 0 : i32
    return %arg0, %c0_i32, %c0_i32_0 : i32, i32, i32
  }
}

module attributes {stable_mosaic.version = 11 : i64} {
  func.func @_head_kernel(%arg0: i32, %arg1: i32, %arg2: memref<2x15744xbf16, #tpu.memory_space<vmem>>, %arg3: memref<48x15744xbf16, #tpu.memory_space<vmem>>, %arg4: memref<1x48xf32, #tpu.memory_space<vmem>>, %arg5: memref<1x48xf32, #tpu.memory_space<vmem>>, %arg6: memref<48x10xf32, #tpu.memory_space<vmem>>, %arg7: memref<1x10xf32, #tpu.memory_space<vmem>>, %arg8: memref<1x10xf32, #tpu.memory_space<vmem>>, %arg9: memref<2x10xf32, #tpu.memory_space<vmem>>, %arg10: memref<2x48xf32, #tpu.memory_space<vmem>>) attributes {dimension_semantics = [#tpu.dimension_semantics<parallel>, #tpu.dimension_semantics<arbitrary>], iteration_bounds = array<i64: 1, 2>, scalar_prefetch = 0 : i64, scratch_operands = 1 : i64, tpu.core_type = #tpu.core_type<tc>, window_params = [{transform_indices = @transform_0, window_bounds = array<i64: 2, 15744>}, {transform_indices = @transform_1, window_bounds = array<i64: 48, 15744>}, {pipeline_mode = #tpu.pipeline_mode<synchronous>, transform_indices = @transform_2, window_bounds = array<i64: 1, 48>}, {pipeline_mode = #tpu.pipeline_mode<synchronous>, transform_indices = @transform_3, window_bounds = array<i64: 1, 48>}, {pipeline_mode = #tpu.pipeline_mode<synchronous>, transform_indices = @transform_4, window_bounds = array<i64: 48, 10>}, {pipeline_mode = #tpu.pipeline_mode<synchronous>, transform_indices = @transform_5, window_bounds = array<i64: 1, 10>}, {pipeline_mode = #tpu.pipeline_mode<synchronous>, transform_indices = @transform_6, window_bounds = array<i64: 1, 10>}, {transform_indices = @transform_7, window_bounds = array<i64: 2, 10>}]} {
    %c0_i32 = arith.constant 0 : i32
    %0 = arith.cmpi eq, %arg1, %c0_i32 : i32
    %1 = arith.extui %0 : i1 to i32
    %c0_i32_0 = arith.constant 0 : i32
    %2 = arith.cmpi ne, %1, %c0_i32_0 : i32
    scf.if %2 {
      %cst_9 = arith.constant 0.000000e+00 : f32
      %12 = vector.broadcast %cst_9 : f32 to vector<2x48xf32>
      %c0_10 = arith.constant 0 : index
      %c0_11 = arith.constant 0 : index
      %13 = vector.load %arg10[%c0_10, %c0_11] : memref<2x48xf32, #tpu.memory_space<vmem>>, vector<2x48xf32>
      tpu.vector_store %arg10[%c0_10, %c0_11], %12 {strides = array<i32>} : memref<2x48xf32, #tpu.memory_space<vmem>>, vector<2x48xf32>,
    } else {
    }
    %c0 = arith.constant 0 : index
    %c0_1 = arith.constant 0 : index
    %3 = vector.load %arg10[%c0, %c0_1] : memref<2x48xf32, #tpu.memory_space<vmem>>, vector<2x48xf32>
    %c0_2 = arith.constant 0 : index
    %c0_3 = arith.constant 0 : index
    %4 = vector.load %arg2[%c0_2, %c0_3] : memref<2x15744xbf16, #tpu.memory_space<vmem>>, vector<2x15744xbf16>
    %c0_4 = arith.constant 0 : index
    %c0_5 = arith.constant 0 : index
    %5 = vector.load %arg3[%c0_4, %c0_5] : memref<48x15744xbf16, #tpu.memory_space<vmem>>, vector<48x15744xbf16>
    %cst = arith.constant dense<0.000000e+00> : vector<2x48xf32>
    %6 = tpu.matmul %4, %5, %cst {dimension_numbers = #tpu.dot_dimension_numbers<[1], [1], [0], [0], [0, 0, 1, 0], [], []>} : vector<2x15744xbf16>, vector<48x15744xbf16>, vector<2x48xf32> -> vector<2x48xf32>
    %7 = arith.addf %3, %6 : vector<2x48xf32>
    %c0_6 = arith.constant 0 : index
    %c0_7 = arith.constant 0 : index
    %8 = vector.load %arg10[%c0_6, %c0_7] : memref<2x48xf32, #tpu.memory_space<vmem>>, vector<2x48xf32>
    tpu.vector_store %arg10[%c0_6, %c0_7], %7 {strides = array<i32>} : memref<2x48xf32, #tpu.memory_space<vmem>>, vector<2x48xf32>,
    %c1_i32 = arith.constant 1 : i32
    %9 = arith.cmpi eq, %arg1, %c1_i32 : i32
    %10 = arith.extui %9 : i1 to i32
    %c0_i32_8 = arith.constant 0 : i32
    %11 = arith.cmpi ne, %10, %c0_i32_8 : i32
    scf.if %11 {
      %c0_9 = arith.constant 0 : index
      %c0_10 = arith.constant 0 : index
      %12 = vector.load %arg10[%c0_9, %c0_10] : memref<2x48xf32, #tpu.memory_space<vmem>>, vector<2x48xf32>
      %c0_11 = arith.constant 0 : index
      %c0_12 = arith.constant 0 : index
      %13 = vector.load %arg4[%c0_11, %c0_12] : memref<1x48xf32, #tpu.memory_space<vmem>>, vector<1x48xf32>
      %14 = vector.broadcast %13 : vector<1x48xf32> to vector<2x48xf32>
      %15 = arith.mulf %12, %14 : vector<2x48xf32>
      %c0_13 = arith.constant 0 : index
      %c0_14 = arith.constant 0 : index
      %16 = vector.load %arg5[%c0_13, %c0_14] : memref<1x48xf32, #tpu.memory_space<vmem>>, vector<1x48xf32>
      %17 = vector.broadcast %16 : vector<1x48xf32> to vector<2x48xf32>
      %18 = arith.addf %15, %17 : vector<2x48xf32>
      %cst_15 = arith.constant 0.000000e+00 : f32
      %19 = vector.broadcast %cst_15 : f32 to vector<2x48xf32>
      %20 = arith.maximumf %18, %19 : vector<2x48xf32>
      %c0_16 = arith.constant 0 : index
      %c0_17 = arith.constant 0 : index
      %21 = vector.load %arg6[%c0_16, %c0_17] : memref<48x10xf32, #tpu.memory_space<vmem>>, vector<48x10xf32>
      %cst_18 = arith.constant dense<0.000000e+00> : vector<2x10xf32>
      %22 = tpu.matmul %20, %21, %cst_18 {dimension_numbers = #tpu.dot_dimension_numbers<[1], [0], [0], [1], [0, 0, 1, 1], [], []>} : vector<2x48xf32>, vector<48x10xf32>, vector<2x10xf32> -> vector<2x10xf32>
      %c0_19 = arith.constant 0 : index
      %c0_20 = arith.constant 0 : index
      %23 = vector.load %arg7[%c0_19, %c0_20] : memref<1x10xf32, #tpu.memory_space<vmem>>, vector<1x10xf32>
      %24 = vector.broadcast %23 : vector<1x10xf32> to vector<2x10xf32>
      %25 = arith.mulf %22, %24 : vector<2x10xf32>
      %c0_21 = arith.constant 0 : index
      %c0_22 = arith.constant 0 : index
      %26 = vector.load %arg8[%c0_21, %c0_22] : memref<1x10xf32, #tpu.memory_space<vmem>>, vector<1x10xf32>
      %27 = vector.broadcast %26 : vector<1x10xf32> to vector<2x10xf32>
      %28 = arith.addf %25, %27 : vector<2x10xf32>
      %c0_23 = arith.constant 0 : index
      %c0_24 = arith.constant 0 : index
      %29 = vector.load %arg9[%c0_23, %c0_24] : memref<2x10xf32, #tpu.memory_space<vmem>>, vector<2x10xf32>
      tpu.vector_store %arg9[%c0_23, %c0_24], %28 {strides = array<i32>} : memref<2x10xf32, #tpu.memory_space<vmem>>, vector<2x10xf32>,
    } else {
    }
    return
  }
  func.func @transform_0(%arg0: i32, %arg1: i32) -> (i32, i32) {
    %c0_i32 = arith.constant 0 : i32
    return %arg0, %arg1 : i32, i32
  }
  func.func @transform_1(%arg0: i32, %arg1: i32) -> (i32, i32) {
    %c0_i32 = arith.constant 0 : i32
    %c0_i32_0 = arith.constant 0 : i32
    return %c0_i32, %arg1 : i32, i32
  }
  func.func @transform_2(%arg0: i32, %arg1: i32) -> (i32, i32) {
    %c0_i32 = arith.constant 0 : i32
    %c0_i32_0 = arith.constant 0 : i32
    %c0_i32_1 = arith.constant 0 : i32
    return %c0_i32, %c0_i32_0 : i32, i32
  }
  func.func @transform_3(%arg0: i32, %arg1: i32) -> (i32, i32) {
    %c0_i32 = arith.constant 0 : i32
    %c0_i32_0 = arith.constant 0 : i32
    %c0_i32_1 = arith.constant 0 : i32
    return %c0_i32, %c0_i32_0 : i32, i32
  }
  func.func @transform_4(%arg0: i32, %arg1: i32) -> (i32, i32) {
    %c0_i32 = arith.constant 0 : i32
    %c0_i32_0 = arith.constant 0 : i32
    %c0_i32_1 = arith.constant 0 : i32
    return %c0_i32, %c0_i32_0 : i32, i32
  }
  func.func @transform_5(%arg0: i32, %arg1: i32) -> (i32, i32) {
    %c0_i32 = arith.constant 0 : i32
    %c0_i32_0 = arith.constant 0 : i32
    %c0_i32_1 = arith.constant 0 : i32
    return %c0_i32, %c0_i32_0 : i32, i32
  }
  func.func @transform_6(%arg0: i32, %arg1: i32) -> (i32, i32) {
    %c0_i32 = arith.constant 0 : i32
    %c0_i32_0 = arith.constant 0 : i32
    %c0_i32_1 = arith.constant 0 : i32
    return %c0_i32, %c0_i32_0 : i32, i32
  }
  func.func @transform_7(%arg0: i32, %arg1: i32) -> (i32, i32) {
    %c0_i32 = arith.constant 0 : i32
    %c0_i32_0 = arith.constant 0 : i32
    return %arg0, %c0_i32 : i32, i32
  }
}

</mosaic_0001>

<bundles_post_ra>
// kernel: net_forward.2
= control target key start
LH: loop header
LB: loop body
LE: loop exit
PB: predicated region body
PF: predicated region fallthrough
CT: control target
= control target key end

     0   :  { %s8232_s0 = inlined_call_operand.vmem [shape: f32[2,1024,2], index: 0, kind: input, shape index: {}]   ;;  %s8233_s1 = inlined_call_operand.hbm [shape: bf16[4,2,64], index: 1, kind: input, shape index: {}]   ;;  %s8234_s2 = inlined_call_operand.hbm [shape: f32[1,64], index: 2, kind: input, shape index: {}]   ;;  %s8235_s3 = inlined_call_operand.hbm [shape: f32[1,64], index: 3, kind: input, shape index: {}]   ;;  %s8236_s4 = inlined_call_operand.hbm [shape: bf16[3,64,96], index: 4, kind: input, shape index: {}]   ;;  %s8237_s5 = inlined_call_operand.hbm [shape: f32[1,96], index: 5, kind: input, shape index: {}]   ;;  %s8238_s6 = inlined_call_operand.hbm [shape: f32[1,96], index: 6, kind: input, shape index: {}]   ;;  %s8239_s7 = inlined_call_operand.hbm [shape: bf16[3,96,128], index: 7, kind: input, shape index: {}]   ;;  %s8240_s8 = inlined_call_operand.hbm [shape: f32[1,128], index: 8, kind: input, shape index: {}]   ;;  %s8241_s9 = inlined_call_operand.hbm [shape: f32[1,128], index: 9, kind: input, shape index: {}]   ;;  %s8242_s10 = inlined_call_operand.hbm [shape: bf16[3,128,256], index: 10, kind: input, shape index: {}]   ;;  %s8243_s11 = inlined_call_operand.hbm [shape: f32[1,256], index: 11, kind: input, shape index: {}]   ;;  %s8244_s12 = inlined_call_operand.hbm [shape: f32[1,256], index: 12, kind: input, shape index: {}]   ;;  %s8245_s13 = inlined_call_operand.vmem [shape: bf16[2,123,256], index: 13, kind: output, shape index: {}]  }
   0x1   :  { %8248 = sst [smem:[#allocation32_spill]] %s8234_s2 }
   0x2   :  { %8249 = sst [smem:[#allocation33_spill]] %s8236_s4 }
   0x3   :  { %18 = vsyncpa [#allocation7], 0 }
   0x4   :  { %19 = vsyncpa [#allocation9], 0 }
   0x5   :  { %20 = vsyncpa [#allocation12], 0 }
   0x6   :  { %21 = vsyncpa [#allocation15], 0 }
   0x7   :  { %22 = vsyncpa [#allocation18], 0 }
   0x8   :  { %23 = vsyncpa [#allocation21], 0 }
   0x9   :  { %24 = vsyncpa [#allocation24], 0  ;;  %s6850_s25 = smov 0  }
   0xa LB: > { %s8250_s2 = sld [smem:[#allocation32_spill]]  ;;  %s6859_s29 = sadd.s32 4294967295, %s6760_s25   ;;  %s6760_s25 = sphi %s6850_s25, %s30_s25  }
   0xb   : > { %p5336_p0 = scmp.ge.s32.totalorder %s6760_s25, 1  ;;  %p339_p1 = scmp.lt.s32.totalorder %s6760_s25, 3 }
   0xc   : > { %p6304_p2 = scmp.eq.s32.totalorder %s6859_s29, 0  ;;  %s6762_s14 = smov [#allocation8]  }
   0xd   : > { %p6864_p3 = pnand %p5336_p0, %p339_p1  ;;  %s367_s15 = sshll.u32 %s6762_s14, 4  ;;  %s368_s15 = int_to_ptr.vmem [resolvable:$true] %s367_s15 }
   0xe   : > { %s8252_s4 = sld [smem:[#allocation33_spill]]  ;;  %s6763_s20 = smov [#allocation11]  }
   0xf   : > { %p6267_p4 = pneg %p6864_p3  ;;  %s390_s21 = sshll.u32 %s6763_s20, 4  ;;  %s391_s21 = int_to_ptr.vmem [resolvable:$true] %s390_s21 }
  0x10   : > { %s365_s28 = sshll.u32 %s8250_s2, 4  ;;  %s415_s24 = sshll.u32 %s8238_s6, 4  ;;  %s366_s28 = int_to_ptr.hbm [resolvable:$true] %s365_s28  ;;  %s416_s24 = int_to_ptr.hbm [resolvable:$true] %s415_s24 }
  0x11   : > { %p6875_p5 = pnand %p6304_p2, %p6267_p4  ;;  %s8246_s26 = smov 64  }
  0x12   : > { %s8247_s27 = smov 4   ;;  %s6766_s14 = smov [#allocation14]  }
  0x13   : > { %6273 = dma.hbm_to_vmem [thread:$0]  (!%p6875_p5), %s366_s28, 16, %s368_s15, [#allocation9]  }
  0x14   : > { %s388_s18 = sshll.u32 %s8252_s4, 4  ;;  %s417_s16 = sshll.u32 %s6766_s14, 4  ;;  %s389_s18 = int_to_ptr.hbm [resolvable:$true] %s388_s18  ;;  %s418_s16 = int_to_ptr.vmem [resolvable:$true] %s417_s16 }
  0x15   : > { %6279 = dma.hbm_to_vmem [thread:$0]  (!%p6875_p5), %s389_s18, 1536, %s391_s21, [#allocation12], %s8246_s26, %s8246_s26, %s8247_s27  }
  0x16   : > { %s441_s2 = sshll.u32 %s8240_s8, 4  ;;  %s464_s22 = sshll.u32 %s8242_s10, 4  ;;  %s442_s2 = int_to_ptr.hbm [resolvable:$true] %s441_s2  ;;  %s465_s22 = int_to_ptr.hbm [resolvable:$true] %s464_s22 }
  0x17   : > { %6285 = dma.hbm_to_vmem [thread:$0]  (!%p6875_p5), %s416_s24, 16, %s418_s16, [#allocation15]  }
  0x18   : > { %s6767_s23 = smov [#allocation17]   ;;  %s6768_s18 = smov [#allocation20]  }
  0x19   : > { %s443_s4 = sshll.u32 %s6767_s23, 4  ;;  %s466_s21 = sshll.u32 %s6768_s18, 4  ;;  %s444_s4 = int_to_ptr.vmem [resolvable:$true] %s443_s4  ;;  %s467_s21 = int_to_ptr.vmem [resolvable:$true] %s466_s21 }
  0x1a   : > { %6291 = dma.hbm_to_vmem [thread:$0]  (!%p6875_p5), %s442_s2, 16, %s444_s4, [#allocation18]  }
  0x1b   : > { %s6769_s14 = smov 128   ;;  %s6770_s17 = smov 8  }
  0x1c   : > { %6297 = dma.hbm_to_vmem [thread:$0]  (!%p6875_p5), %s465_s22, 6144, %s467_s21, [#allocation21], %s6769_s14, %s6769_s14, %s6770_s17  }
  0x1d   : > { %s350_s16 = sshll.u32 %s8233_s1, 4  ;;  %s6771_s28 = smov [#allocation6]   ;;  %s351_s16 = int_to_ptr.hbm [resolvable:$true] %s350_s16 }
  0x1e   : > { %s352_s15 = sshll.u32 %s6771_s28, 4  ;;  %s377_s2 = sshll.u32 %s8235_s3, 4  ;;  %s353_s15 = int_to_ptr.vmem [resolvable:$true] %s352_s15  ;;  %s378_s2 = int_to_ptr.hbm [resolvable:$true] %s377_s2 }
  0x1f   : > { %s6772_s4 = smov 16   ;;  %s6773_s18 = smov 1  }
  0x20   : > { %6270 = dma.hbm_to_vmem [thread:$0]  (!%p6875_p5), %s351_s16, 64, %s353_s15, [#allocation7], %s6772_s4, %s6772_s4, %s6773_s18  }
  0x21   : > { %s6774_s22 = smov [#allocation10]   ;;  %s403_s20 = sshll.u32 %s8237_s5, 4  ;;  %s404_s20 = int_to_ptr.hbm [resolvable:$true] %s403_s20 }
  0x22   : > { %s379_s21 = sshll.u32 %s6774_s22, 4  ;;  %s426_s28 = sshll.u32 %s8239_s7, 4  ;;  %s380_s21 = int_to_ptr.vmem [resolvable:$true] %s379_s21  ;;  %s427_s28 = int_to_ptr.hbm [resolvable:$true] %s426_s28 }
  0x23   : > { %6276 = dma.hbm_to_vmem [thread:$0]  (!%p6875_p5), %s378_s2, 16, %s380_s21, [#allocation9]  }
  0x24   : > { %s6775_s23 = smov [#allocation13]   ;;  %s6776_s16 = smov [#allocation16]  }
  0x25   : > { %s405_s27 = sshll.u32 %s6775_s23, 4  ;;  %s428_s15 = sshll.u32 %s6776_s16, 4  ;;  %s406_s27 = int_to_ptr.vmem [resolvable:$true] %s405_s27  ;;  %s429_s15 = int_to_ptr.vmem [resolvable:$true] %s428_s15 }
  0x26   : > { %6282 = dma.hbm_to_vmem [thread:$0]  (!%p6875_p5), %s404_s20, 16, %s406_s27, [#allocation12]  }
  0x27   : > { %s453_s22 = sshll.u32 %s8241_s9, 4  ;;  %s8254_s2 = smov 4   ;;  %s454_s22 = int_to_ptr.hbm [resolvable:$true] %s453_s22 }
  0x28   : > { %s8255_s21 = smov 64   ;;  %s479_s24 = sshll.u32 %s8243_s11, 4  ;;  %s480_s24 = int_to_ptr.hbm [resolvable:$true] %s479_s24 }
  0x29   : > { %6288 = dma.hbm_to_vmem [thread:$0]  (!%p6875_p5), %s427_s28, 2304, %s429_s15, [#allocation15], %s8255_s21, %s8255_s21, %s8254_s2  }
  0x2a   : > { %s6777_s27 = smov [#allocation19]   ;;  %s6778_s26 = smov [#allocation22]  }
  0x2b   : > { %s455_s20 = sshll.u32 %s6777_s27, 4  ;;  %s481_s23 = sshll.u32 %s6778_s26, 4  ;;  %s456_s20 = int_to_ptr.vmem [resolvable:$true] %s455_s20  ;;  %s482_s23 = int_to_ptr.vmem [resolvable:$true] %s481_s23 }
  0x2c   : > { %6294 = dma.hbm_to_vmem [thread:$0]  (!%p6875_p5), %s454_s22, 16, %s456_s20, [#allocation18]  }
  0x2d   : > { %s491_s18 = sshll.u32 %s8244_s12, 4  ;;  %s6779_s28 = smov [#allocation23]   ;;  %s492_s18 = int_to_ptr.hbm [resolvable:$true] %s491_s18 }
  0x2e   : > { %6300 = dma.hbm_to_vmem [thread:$0]  (!%p6875_p5), %s480_s24, 32, %s482_s23, [#allocation21]  }
  0x2f   : > { %s493_s15 = sshll.u32 %s6779_s28, 4  ;;  %514 = sbr.rel (%p6864_p3) target bundleno = 1577 (0x629), region = 72  ;;  %s494_s15 = int_to_ptr.vmem [resolvable:$true] %s493_s15 }
  0x30   : > { %6303 = dma.hbm_to_vmem [thread:$0]  (!%p6875_p5), %s492_s18, 32, %s494_s15, [#allocation24]  }
  0x34   : > { %6731 = dma.done.wait (%p6304_p2), [#allocation7], 64  }
  0x35   : > { %6733 = vsyncadd (%p6304_p2), [#allocation7], 4294967232 }
  0x36   : > { %6735 = dma.done.wait (%p6304_p2), [#allocation9], 32  }
  0x37   : > { %6737 = vsyncadd (%p6304_p2), [#allocation9], 4294967264 }
  0x38   : > { %6739 = dma.done.wait (%p6304_p2), [#allocation12], 1552  }
  0x39   : > { %6741 = vsyncadd (%p6304_p2), [#allocation12], 4294965744 }
  0x3a   : > { %6743 = dma.done.wait (%p6304_p2), [#allocation15], 2320  }
  0x3b   : > { %6745 = vsyncadd (%p6304_p2), [#allocation15], 4294964976 }
  0x3c   : > { %6747 = dma.done.wait (%p6304_p2), [#allocation18], 32  }
  0x3d   : > { %6749 = vsyncadd (%p6304_p2), [#allocation18], 4294967264 }
  0x3e   : > { %6751 = dma.done.wait (%p6304_p2), [#allocation21], 6176  }
  0x3f   : > { %6753 = vsyncadd (%p6304_p2), [#allocation21], 4294961120 }
  0x40   : > { %6755 = dma.done.wait (%p6304_p2), [#allocation24], 32  }
  0x41   : > { %6757 = vsyncadd (%p6304_p2), [#allocation24], 4294967264  ;;  %p614_p6 = scmp.lt.s32.totalorder %s6859_s29, 1  ;;  %vm1044_vm0 = vcmask 1040384   ;;  %vm947_vm1 = vcmask 15360   ;;  %v6149_v7 = vld [vmem:[#allocation11 + $0x58] sm:$0xff] }
  0x42   : > { %v946_v0 = vld [vmem:[#allocation6 + $0x1] sm:$0x1]  ;;  %v784_v1 = vld [vmem:[#allocation6] sm:$0x1]  ;;  %v1646_v2 = vld [vmem:[#allocation6 + $0x2] sm:$0x1] }
  0x43   : > { %s8257_s29 = smov (!%p614_p6, %s6859_s29), 1  ;;  %v1046_v3 = vsel %vm1044_vm0, %v946_v0, 0  ;;  %v1314_v4 = vsel %vm1044_vm0, %v784_v1, 0  ;;  %v1744_v5 = vsel %vm1044_vm0, %v1646_v2, 0  ;;  %v6145_v19 = vld [vmem:[#allocation11 + $0x38] sm:$0xff]  ;;  %vm2673_vm2 = vcmask 523264  }
  0x44   : > { %s6136_s30 = sshll.u32 %s8257_s29, 10  ;;  %1055 = vmatpush.bf16.msra.mxu0 %v1046_v3  ;;  %6216 = vmatpush.bf16.msra.mxu3 %v1046_v3  ;;  %v6141_v20 = vld [vmem:[#allocation11 + $0x18] sm:$0xff]  ;;  %vm3623_vm3 = vcmask 785408   ;;  %vm2737_vm4 = vcmask 522240   ;;  %vm3655_vm5 = vcmask 784384   ;;  %s6137_s21 = sshll.u32 %s8257_s29, 7 }
  0x45   : > { %s6977_s2 = scalar_lea.vmem %s8232_s0, %s6136_s30  ;;  %1323 = vmatpush.bf16.msra.mxu1 %v1314_v4  ;;  %1753 = vmatpush.bf16.msra.mxu2 %v1744_v5  ;;  %v2140_v45 = vld [vmem:[#allocation6 + $0x3] sm:$0x1]  ;;  %s8123_s24 = scalar_lea.vmem %s8245_s13, %s6137_s21  ;;  %vm5152_vm6 = vcmask 1041408   ;;  %vm5153_vm7 = vsmask.f32 1280  ;;  %vm5155_vm8 = vcmask 1045508  }
  0x46   : > { %v5430_v6 = vld [vmem:[%s6977_s2 + $0x1] ss:$2 sm:$0xff]  ;;  %v5431_v8 = vld [vmem:[%s6977_s2 + $0x11] ss:$2 sm:$0xff]  ;;  %v625_v13 = vld [vmem:[%s6977_s2] ss:$2 sm:$0xff] }
  0x47   : > { %v5490_v9 = vld [vmem:[%s6977_s2 + $0x3c1] ss:$2 sm:$0xff]  ;;  %v5491_v10 = vld [vmem:[%s6977_s2 + $0x3d1] ss:$2 sm:$0xff]  ;;  %v913_v11 = vpack.c.bf16 %v5431_v8, %v5430_v6  ;;  %v5367_v14 = vld [vmem:[%s6977_s2 + $0x10] ss:$2 sm:$0xff] }
  0x48   : > { %v943_v12 = vpack.c.bf16 %v5491_v10, %v5490_v9  ;;  %v5558_v15 = vld [vmem:[%s6977_s2 + $0x2] ss:$2 sm:$0xff]  ;;  %6217 = vmatpush.bf16.msrb.mxu3 %v1314_v4  ;;  %v752_v16 = vpack.c.bf16 %v5367_v14, %v625_v13  ;;  %v5559_v17 = vld [vmem:[%s6977_s2 + $0x12] ss:$2 sm:$0xff]  ;;  %2991 = vmatpush.bf16.msrb.mxu0 %v6145_v19  ;;  %v5432_v21 = vld [vmem:[%s6977_s2 + $0x21] ss:$2 sm:$0xff] }
  0x49   : > { %3402 = vmatpush.bf16.msrb.mxu2 %v6149_v7  ;;  %5494 = vmatmul.msk.bf16.vlgmr.msra.gmra.mxu0 %vm947_vm1, %v913_v11  ;;  %v1613_v18 = vpack.c.bf16 %v5559_v17, %v5558_v15  ;;  %v5433_v22 = vld [vmem:[%s6977_s2 + $0x31] ss:$2 sm:$0xff]  ;;  %v5492_v23 = vld [vmem:[%s6977_s2 + $0x3e1] ss:$2 sm:$0xff]  ;;  %v5368_v25 = vld [vmem:[%s6977_s2 + $0x20] ss:$2 sm:$0xff] }
  0x4a   : > { %5524 = vmatmul.msk.bf16.vlgmr.msra.gmra.mxu3 %vm947_vm1, %v943_v12  ;;  %5526 = vmatmul.msk.bf16.vlgmr.msra.gmra.mxu1 %vm947_vm1, %v752_v16  ;;  %v5493_v24 = vld [vmem:[%s6977_s2 + $0x3f1] ss:$2 sm:$0x7f]  ;;  %v5369_v26 = vld [vmem:[%s6977_s2 + $0x30] ss:$2 sm:$0xff]  ;;  %v914_v29 = vpack.c.bf16 %v5433_v22, %v5432_v21  ;;  %v2238_v46 = vsel %vm1044_vm0, %v2140_v45, 0  ;;  %vm5154_vm10 = vmand %vm5152_vm6, %vm5153_vm7 }
  0x4b   : > { %5622 = vmatmul.msk.bf16.vlgmr.msra.gmra.mxu2 %vm947_vm1, %v1613_v18  ;;  %3152 = vmatpush.bf16.msrb.mxu1 %v6141_v20  ;;  %v5560_v27 = vld [vmem:[%s6977_s2 + $0x22] ss:$2 sm:$0xff]  ;;  %v5561_v28 = vld [vmem:[%s6977_s2 + $0x32] ss:$2 sm:$0xff]  ;;  %v944_v30 = vpack.c.bf16 %v5493_v24, %v5492_v23  ;;  %v753_v31 = vpack.c.bf16 %v5369_v26, %v5368_v25  ;;  %v5434_v33 = vld [vmem:[%s6977_s2 + $0x41] ss:$2 sm:$0xff] }
  0x4c   : > { %6218 = vmatpush.bf16.msra.mxu3 %v1744_v5  ;;  %v1614_v32 = vpack.c.bf16 %v5561_v28, %v5560_v27  ;;  %v5435_v34 = vld [vmem:[%s6977_s2 + $0x51] ss:$2 sm:$0xff]  ;;  %v5426_v35 = vld [vmem:[%s6977_s2 + $0x3c0] ss:$2 sm:$0xff]  ;;  %v5427_v36 = vld [vmem:[%s6977_s2 + $0x3d0] ss:$2 sm:$0xff] }
  0x4d   : > { %v5370_v37 = vld [vmem:[%s6977_s2 + $0x40] ss:$2 sm:$0xff]  ;;  %v5371_v38 = vld [vmem:[%s6977_s2 + $0x50] ss:$2 sm:$0xff]  ;;  %v915_v41 = vpack.c.bf16 %v5435_v34, %v5434_v33  ;;  %v782_v42 = vpack.c.bf16 %v5427_v36, %v5426_v35  ;;  %v5436_v47 = vld [vmem:[%s6977_s2 + $0x61] ss:$2 sm:$0xff] }
  0x4e   : > { %v5562_v39 = vld [vmem:[%s6977_s2 + $0x42] ss:$2 sm:$0xff]  ;;  %v5563_v40 = vld [vmem:[%s6977_s2 + $0x52] ss:$2 sm:$0xff]  ;;  %v754_v43 = vpack.c.bf16 %v5371_v38, %v5370_v37  ;;  %v5437_v48 = vld [vmem:[%s6977_s2 + $0x71] ss:$2 sm:$0xff] }
  0x4f   : > { %v1615_v44 = vpack.c.bf16 %v5563_v40, %v5562_v39  ;;  %v5428_v49 = vld [vmem:[%s6977_s2 + $0x3e0] ss:$2 sm:$0xff]  ;;  %v5429_v50 = vld [vmem:[%s6977_s2 + $0x3f0] ss:$2 sm:$0x7f]  ;;  %v916_v55 = vpack.c.bf16 %v5437_v48, %v5436_v47 }
  0x50   : > { %v5372_v51 = vld [vmem:[%s6977_s2 + $0x60] ss:$2 sm:$0xff]  ;;  %v5373_v52 = vld [vmem:[%s6977_s2 + $0x70] ss:$2 sm:$0xff]  ;;  %v783_v56 = vpack.c.bf16 %v5429_v50, %v5428_v49  ;;  %v5438_v59 = vld [vmem:[%s6977_s2 + $0x81] ss:$2 sm:$0xff] }
  0x51   : > { %v5564_v53 = vld [vmem:[%s6977_s2 + $0x62] ss:$2 sm:$0xff]  ;;  %v5565_v54 = vld [vmem:[%s6977_s2 + $0x72] ss:$2 sm:$0xff]  ;;  %v755_v57 = vpack.c.bf16 %v5373_v52, %v5372_v51  ;;  %v5439_v60 = vld [vmem:[%s6977_s2 + $0x91] ss:$2 sm:$0xff] }
  0x52   : > { %v1616_v58 = vpack.c.bf16 %v5565_v54, %v5564_v53  ;;  %v5618_v61 = vld [vmem:[%s6977_s2 + $0x3c2] ss:$2 sm:$0xff]  ;;  %v5619_v62 = vld [vmem:[%s6977_s2 + $0x3d2] ss:$2 sm:$0xff]  ;;  %v917_v3 = vpack.c.bf16 %v5439_v60, %v5438_v59  ;;  %v5440_v7 = vld [vmem:[%s6977_s2 + $0xa1] ss:$2 sm:$0xff] }
  0x53   : > { %v5374_v63 = vld [vmem:[%s6977_s2 + $0x80] ss:$2 sm:$0xff]  ;;  %v5375_v0 = vld [vmem:[%s6977_s2 + $0x90] ss:$2 sm:$0xff]  ;;  %v1643_v4 = vpack.c.bf16 %v5619_v62, %v5618_v61  ;;  %v5441_v8 = vld [vmem:[%s6977_s2 + $0xb1] ss:$2 sm:$0xff] }
  0x54   : > { %v5566_v1 = vld [vmem:[%s6977_s2 + $0x82] ss:$2 sm:$0xff]  ;;  %v5567_v2 = vld [vmem:[%s6977_s2 + $0x92] ss:$2 sm:$0xff]  ;;  %v756_v5 = vpack.c.bf16 %v5375_v0, %v5374_v63  ;;  %v918_v15 = vpack.c.bf16 %v5441_v8, %v5440_v7  ;;  %v5442_v19 = vld [vmem:[%s6977_s2 + $0xc1] ss:$2 sm:$0xff] }
  0x55   : > { %v1617_v6 = vpack.c.bf16 %v5567_v2, %v5566_v1  ;;  %v5620_v9 = vld [vmem:[%s6977_s2 + $0x3e2] ss:$2 sm:$0xff]  ;;  %v5621_v10 = vld [vmem:[%s6977_s2 + $0x3f2] ss:$2 sm:$0x7f] }
  0x56   : > { %v5376_v11 = vld [vmem:[%s6977_s2 + $0xa0] ss:$2 sm:$0xff]  ;;  %v5377_v12 = vld [vmem:[%s6977_s2 + $0xb0] ss:$2 sm:$0xff]  ;;  %v1644_v16 = vpack.c.bf16 %v5621_v10, %v5620_v9  ;;  %v5443_v20 = vld [vmem:[%s6977_s2 + $0xd1] ss:$2 sm:$0xff] }
  0x57   : > { %v5568_v13 = vld [vmem:[%s6977_s2 + $0xa2] ss:$2 sm:$0xff]  ;;  %v5569_v14 = vld [vmem:[%s6977_s2 + $0xb2] ss:$2 sm:$0xff]  ;;  %v757_v17 = vpack.c.bf16 %v5377_v12, %v5376_v11  ;;  %v5654_v21 = vld [vmem:[%s6977_s2 + $0x3] ss:$2 sm:$0xff]  ;;  %v919_v27 = vpack.c.bf16 %v5443_v20, %v5442_v19 }
  0x58   : > { %v1618_v18 = vpack.c.bf16 %v5569_v14, %v5568_v13  ;;  %v5655_v22 = vld [vmem:[%s6977_s2 + $0x13] ss:$2 sm:$0xff]  ;;  %v5378_v23 = vld [vmem:[%s6977_s2 + $0xc0] ss:$2 sm:$0xff]  ;;  %v5379_v24 = vld [vmem:[%s6977_s2 + $0xd0] ss:$2 sm:$0xff] }
  0x59   : > { %5495 = vmatmul.msk.bf16.gmra.mxu0 %vm947_vm1, %v914_v29  ;;  %v5570_v25 = vld [vmem:[%s6977_s2 + $0xc2] ss:$2 sm:$0xff]  ;;  %v5571_v26 = vld [vmem:[%s6977_s2 + $0xd2] ss:$2 sm:$0xff]  ;;  %v2107_v28 = vpack.c.bf16 %v5655_v22, %v5654_v21  ;;  %v758_v29 = vpack.c.bf16 %v5379_v24, %v5378_v23  ;;  %v5656_v33 = vld [vmem:[%s6977_s2 + $0x23] ss:$2 sm:$0xff] }
  0x5a   : > { %5525 = vmatmul.msk.bf16.gmra.mxu3 %vm947_vm1, %v944_v30  ;;  %5527 = vmatmul.msk.bf16.gmra.mxu1 %vm947_vm1, %v753_v31  ;;  %v1619_v30 = vpack.c.bf16 %v5571_v26, %v5570_v25  ;;  %v5444_v31 = vld [vmem:[%s6977_s2 + $0xe1] ss:$2 sm:$0xff]  ;;  %v5380_v35 = vld [vmem:[%s6977_s2 + $0xe0] ss:$2 sm:$0xff]  ;;  %v5381_v36 = vld [vmem:[%s6977_s2 + $0xf0] ss:$2 sm:$0xff] }
  0x5b   : > { %5623 = vmatmul.msk.bf16.gmra.mxu2 %vm947_vm1, %v1614_v32  ;;  %v5445_v32 = vld [vmem:[%s6977_s2 + $0xf1] ss:$2 sm:$0xff]  ;;  %v5572_v37 = vld [vmem:[%s6977_s2 + $0xe2] ss:$2 sm:$0xff]  ;;  %v5573_v38 = vld [vmem:[%s6977_s2 + $0xf2] ss:$2 sm:$0xff] }
  0x5c   : > { %v5657_v34 = vld [vmem:[%s6977_s2 + $0x33] ss:$2 sm:$0xff]  ;;  %v920_v39 = vpack.c.bf16 %v5445_v32, %v5444_v31  ;;  %v5658_v48 = vld [vmem:[%s6977_s2 + $0x43] ss:$2 sm:$0xff]  ;;  %v5382_v50 = vld [vmem:[%s6977_s2 + $0x100] ss:$2 sm:$0xff] }
  0x5d   : > { %v2108_v40 = vpack.c.bf16 %v5657_v34, %v5656_v33  ;;  %v6140_v45 = vld [vmem:[#allocation11 + $0x10] sm:$0xff]  ;;  %v5574_v52 = vld [vmem:[%s6977_s2 + $0x102] ss:$2 sm:$0xff]  ;;  %vm5156_vm9 = vsmask.f32 5376 }
  0x5e   : > { %v5447_v47 = vld [vmem:[%s6977_s2 + $0x111] ss:$2 sm:$0xff]  ;;  %v5383_v51 = vld [vmem:[%s6977_s2 + $0x110] ss:$2 sm:$0xff]  ;;  %3153 = vmatpush.bf16.msrb.mxu1 %v6140_v45  ;;  %v5384_v7 = vld [vmem:[%s6977_s2 + $0x120] ss:$2 sm:$0xff] }
  0x5f   : > { %v5659_v49 = vld [vmem:[%s6977_s2 + $0x53] ss:$2 sm:$0xff]  ;;  %v5575_v53 = vld [vmem:[%s6977_s2 + $0x112] ss:$2 sm:$0xff]  ;;  %v5576_v10 = vld [vmem:[%s6977_s2 + $0x122] ss:$2 sm:$0xff] }
  0x60   : > { %v1621_v59 = vpack.c.bf16 %v5575_v53, %v5574_v52  ;;  %v5385_v8 = vld [vmem:[%s6977_s2 + $0x130] ss:$2 sm:$0xff]  ;;  %v5386_v31 = vld [vmem:[%s6977_s2 + $0x140] ss:$2 sm:$0xff]  ;;  %v5452_v52 = vld [vmem:[%s6977_s2 + $0x161] ss:$2 sm:$0xff] }
  0x61   : > { %v5577_v11 = vld [vmem:[%s6977_s2 + $0x132] ss:$2 sm:$0xff]  ;;  %v5578_v34 = vld [vmem:[%s6977_s2 + $0x142] ss:$2 sm:$0xff]  ;;  %v5453_v53 = vld [vmem:[%s6977_s2 + $0x171] ss:$2 sm:$0xff] }
  0x62   : > { %v1622_v19 = vpack.c.bf16 %v5577_v11, %v5576_v10  ;;  %v5387_v32 = vld [vmem:[%s6977_s2 + $0x150] ss:$2 sm:$0xff]  ;;  %vm5157_vm11 = vmand %vm5155_vm8, %vm5156_vm9 }
  0x63   : > { %vm5158_vm12 = vmor %vm5157_vm11, %vm5154_vm10 }
  0x69   : > { %5496 = vmatmul.msk.bf16.gmra.mxu0 %vm947_vm1, %v915_v41  ;;  %v759_v41 = vpack.c.bf16 %v5381_v36, %v5380_v35  ;;  %v5579_v35 = vld [vmem:[%s6977_s2 + $0x152] ss:$2 sm:$0xff] }
  0x6a   : > { %5556 = vmatmul.msk.bf16.vlgmr.msrb.gmra.mxu3 %vm947_vm1, %v782_v42  ;;  %5528 = vmatmul.msk.bf16.gmra.mxu1 %vm947_vm1, %v754_v43  ;;  %v1620_v42 = vpack.c.bf16 %v5573_v38, %v5572_v37  ;;  %v6148_v43 = vld [vmem:[#allocation11 + $0x50] sm:$0xff] }
  0x6b   : > { %5624 = vmatmul.msk.bf16.gmra.mxu2 %vm947_vm1, %v1615_v44  ;;  %2247 = vmatpush.bf16.msrb.mxu3 %v2238_v46  ;;  %v6144_v44 = vld [vmem:[#allocation11 + $0x30] sm:$0xff]  ;;  %v5446_v46 = vld [vmem:[%s6977_s2 + $0x101] ss:$2 sm:$0xff] }
  0x6c   : > { %3403 = vmatpush.bf16.msrb.mxu2 %v6148_v43  ;;  %2992 = vmatpush.bf16.msrb.mxu0 %v6144_v44  ;;  %v921_v54 = vpack.c.bf16 %v5447_v47, %v5446_v46  ;;  %v1623_v43 = vpack.c.bf16 %v5579_v35, %v5578_v34 }
  0x79   : > { %5497 = vmatmul.msk.bf16.gmra.mxu0 %vm947_vm1, %v916_v55  ;;  %v2109_v55 = vpack.c.bf16 %v5659_v49, %v5658_v48 }
  0x7a   : > { %5557 = vmatmul.msk.bf16.gmra.mxu3 %vm947_vm1, %v783_v56  ;;  %5529 = vmatmul.msk.bf16.gmra.mxu1 %vm947_vm1, %v755_v57  ;;  %v760_v57 = vpack.c.bf16 %v5383_v51, %v5382_v50 }
  0x7b   : > { %5625 = vmatmul.msk.bf16.gmra.mxu2 %vm947_vm1, %v1616_v58 }
  0x89   : > { %5498 = vmatmul.msk.bf16.gmra.mxu0 %vm947_vm1, %v917_v3  ;;  %v5448_v3 = vld [vmem:[%s6977_s2 + $0x121] ss:$2 sm:$0xff] }
  0x8a   : > { %5652 = vmatmul.msk.bf16.vlgmr.msra.gmra.mxu3 %vm947_vm1, %v1643_v4  ;;  %5530 = vmatmul.msk.bf16.gmra.mxu1 %vm947_vm1, %v756_v5  ;;  %v5449_v4 = vld [vmem:[%s6977_s2 + $0x131] ss:$2 sm:$0xff] }
  0x8b   : > { %5626 = vmatmul.msk.bf16.gmra.mxu2 %vm947_vm1, %v1617_v6  ;;  %v5660_v5 = vld [vmem:[%s6977_s2 + $0x63] ss:$2 sm:$0xff]  ;;  %v5661_v6 = vld [vmem:[%s6977_s2 + $0x73] ss:$2 sm:$0xff]  ;;  %v922_v12 = vpack.c.bf16 %v5449_v4, %v5448_v3 }
  0x8c   : > { %v2110_v13 = vpack.c.bf16 %v5661_v6, %v5660_v5 }
  0x99   : > { %5499 = vmatmul.msk.bf16.gmra.mxu0 %vm947_vm1, %v918_v15 }
  0x9a   : > { %5653 = vmatmul.msk.bf16.gmra.mxu3 %vm947_vm1, %v1644_v16  ;;  %5531 = vmatmul.msk.bf16.gmra.mxu1 %vm947_vm1, %v757_v17  ;;  %v761_v16 = vpack.c.bf16 %v5385_v8, %v5384_v7 }
  0x9b   : > { %5627 = vmatmul.msk.bf16.gmra.mxu2 %vm947_vm1, %v1618_v18 }
  0xa9   : > { %5500 = vmatmul.msk.bf16.gmra.mxu0 %vm947_vm1, %v919_v27  ;;  %v5450_v27 = vld [vmem:[%s6977_s2 + $0x141] ss:$2 sm:$0xff] }
  0xaa   : > { %5718 = vmatmul.msk.bf16.vlgmr.msrb.gmra.mxu3 %vm947_vm1, %v2107_v28  ;;  %5532 = vmatmul.msk.bf16.gmra.mxu1 %vm947_vm1, %v758_v29  ;;  %v5451_v28 = vld [vmem:[%s6977_s2 + $0x151] ss:$2 sm:$0xff] }
  0xab   : > { %5628 = vmatmul.msk.bf16.gmra.mxu2 %vm947_vm1, %v1619_v30  ;;  %v5662_v29 = vld [vmem:[%s6977_s2 + $0x83] ss:$2 sm:$0xff]  ;;  %v5663_v30 = vld [vmem:[%s6977_s2 + $0x93] ss:$2 sm:$0xff]  ;;  %v923_v36 = vpack.c.bf16 %v5451_v28, %v5450_v27 }
  0xac   : > { %v2111_v37 = vpack.c.bf16 %v5663_v30, %v5662_v29 }
  0xb9   : > { %5501 = vmatmul.msk.bf16.gmra.mxu0 %vm947_vm1, %v920_v39 }
  0xba   : > { %5719 = vmatmul.msk.bf16.gmra.mxu3 %vm947_vm1, %v2108_v40  ;;  %5533 = vmatmul.msk.bf16.gmra.mxu1 %vm947_vm1, %v759_v41  ;;  %v762_v40 = vpack.c.bf16 %v5387_v32, %v5386_v31 }
  0xbb   : > { %5629 = vmatmul.msk.bf16.gmra.mxu2 %vm947_vm1, %v1620_v42 }
  0xc6   : > { %v1057_v56 = vpop.f32.mrf.mxu0 }
  0xc7   : > { %v1325_v58 = vpop.f32.mrf.mxu1 }
  0xc8   : > { %v1326_v60 = vadd.f32 %v1325_v58, %v1057_v56  ;;  %v5388_v56 = vld [vmem:[%s6977_s2 + $0x160] ss:$2 sm:$0xff] }
  0xc9   : > { %5502 = vmatmul.msk.bf16.gmra.mxu0 %vm947_vm1, %v921_v54  ;;  %v5664_v54 = vld [vmem:[%s6977_s2 + $0xa3] ss:$2 sm:$0xff] }
  0xca   : > { %5720 = vmatmul.msk.bf16.gmra.mxu3 %vm947_vm1, %v2109_v55  ;;  %5534 = vmatmul.msk.bf16.gmra.mxu1 %vm947_vm1, %v760_v57  ;;  %v5665_v55 = vld [vmem:[%s6977_s2 + $0xb3] ss:$2 sm:$0xff]  ;;  %v5389_v57 = vld [vmem:[%s6977_s2 + $0x170] ss:$2 sm:$0xff] }
  0xcb   : > { %5630 = vmatmul.msk.bf16.gmra.mxu2 %vm947_vm1, %v1621_v59  ;;  %v5580_v59 = vld [vmem:[%s6977_s2 + $0x162] ss:$2 sm:$0xff]  ;;  %v763_v3 = vpack.c.bf16 %v5389_v57, %v5388_v56 }
  0xcd   : > { %v1207_v61 = vpop.f32.mrf.mxu3 }
  0xce   : > { %v1755_v62 = vpop.f32.mrf.mxu2  ;;  %v1059_v63 = vpop.f32.mrf.mxu0 }
  0xcf   : > { %v7091_v0 = vadd.f32 %v1755_v62, %v1326_v60  ;;  %v1327_v1 = vpop.f32.mrf.mxu1  ;;  %v5581_v60 = vld [vmem:[%s6977_s2 + $0x172] ss:$2 sm:$0xff] }
  0xd0   : > { %v1328_v2 = vadd.f32 %v1327_v1, %v1059_v63  ;;  %v924_v63 = vpack.c.bf16 %v5453_v53, %v5452_v52  ;;  %v2112_v1 = vpack.c.bf16 %v5665_v55, %v5664_v54  ;;  %v1624_v6 = vpack.c.bf16 %v5581_v60, %v5580_v59  ;;  %v5584_v53 = vld [vmem:[%s6977_s2 + $0x1a2] ss:$2 sm:$0xff]  ;;  %v5585_v54 = vld [vmem:[%s6977_s2 + $0x1b2] ss:$2 sm:$0xff] }
  0xd5   : > { %v1209_v9 = vpop.f32.mrf.mxu3 }
  0xd6   : > { %v1757_v14 = vpop.f32.mrf.mxu2  ;;  %v1062_v15 = vpop.f32.mrf.mxu0 }
  0xd7   : > { %v7101_v17 = vadd.f32 %v1757_v14, %v1328_v2  ;;  %v1330_v18 = vpop.f32.mrf.mxu1 }
  0xd8   : > { %v1331_v20 = vadd.f32 %v1330_v18, %v1062_v15  ;;  %v5454_v15 = vld [vmem:[%s6977_s2 + $0x181] ss:$2 sm:$0xff] }
  0xd9   : > { %5503 = vmatmul.msk.bf16.gmra.mxu0 %vm947_vm1, %v922_v12  ;;  %v5666_v18 = vld [vmem:[%s6977_s2 + $0xc3] ss:$2 sm:$0xff] }
  0xda   : > { %5721 = vmatmul.msk.bf16.gmra.mxu3 %vm947_vm1, %v2110_v13  ;;  %5535 = vmatmul.msk.bf16.gmra.mxu1 %vm947_vm1, %v761_v16  ;;  %v5455_v16 = vld [vmem:[%s6977_s2 + $0x191] ss:$2 sm:$0xff] }
  0xdb   : > { %5631 = vmatmul.msk.bf16.gmra.mxu2 %vm947_vm1, %v1622_v19  ;;  %v5667_v19 = vld [vmem:[%s6977_s2 + $0xd3] ss:$2 sm:$0xff]  ;;  %v925_v28 = vpack.c.bf16 %v5455_v16, %v5454_v15  ;;  %v5394_v15 = vld [vmem:[%s6977_s2 + $0x1c0] ss:$2 sm:$0xff]  ;;  %v5395_v16 = vld [vmem:[%s6977_s2 + $0x1d0] ss:$2 sm:$0xff] }
  0xdc   : > { %v2113_v29 = vpack.c.bf16 %v5667_v19, %v5666_v18  ;;  %v5586_v19 = vld [vmem:[%s6977_s2 + $0x1c2] ss:$2 sm:$0xff] }
  0xdd   : > { %v1212_v21 = vpop.f32.mrf.mxu3 }
  0xde   : > { %v1760_v22 = vpop.f32.mrf.mxu2  ;;  %v1064_v23 = vpop.f32.mrf.mxu0 }
  0xdf   : > { %v7107_v24 = vadd.f32 %v1760_v22, %v1331_v20  ;;  %v1332_v25 = vpop.f32.mrf.mxu1  ;;  %v5390_v20 = vld [vmem:[%s6977_s2 + $0x180] ss:$2 sm:$0xff]  ;;  %v5391_v22 = vld [vmem:[%s6977_s2 + $0x190] ss:$2 sm:$0xff] }
  0xe0   : > { %v1333_v26 = vadd.f32 %v1332_v25, %v1064_v23  ;;  %v5582_v25 = vld [vmem:[%s6977_s2 + $0x182] ss:$2 sm:$0xff]  ;;  %v764_v31 = vpack.c.bf16 %v5391_v22, %v5390_v20  ;;  %v5587_v20 = vld [vmem:[%s6977_s2 + $0x1d2] ss:$2 sm:$0xff] }
  0xe5   : > { %v1214_v33 = vpop.f32.mrf.mxu3 }
  0xe6   : > { %v1762_v38 = vpop.f32.mrf.mxu2  ;;  %v1067_v39 = vpop.f32.mrf.mxu0 }
  0xe7   : > { %v7117_v41 = vadd.f32 %v1762_v38, %v1333_v26  ;;  %v1335_v42 = vpop.f32.mrf.mxu1  ;;  %v5583_v26 = vld [vmem:[%s6977_s2 + $0x192] ss:$2 sm:$0xff] }
  0xe8   : > { %v1336_v44 = vadd.f32 %v1335_v42, %v1067_v39  ;;  %v1625_v35 = vpack.c.bf16 %v5583_v26, %v5582_v25 }
  0xe9   : > { %5504 = vmatmul.msk.bf16.gmra.mxu0 %vm947_vm1, %v923_v36 }
  0xea   : > { %5722 = vmatmul.msk.bf16.gmra.mxu3 %vm947_vm1, %v2111_v37  ;;  %5536 = vmatmul.msk.bf16.gmra.mxu1 %vm947_vm1, %v762_v40 }
  0xeb   : > { %5632 = vmatmul.msk.bf16.gmra.mxu2 %vm947_vm1, %v1623_v43 }
  0xed   : > { %v1475_v45 = vpop.f32.mrf.mxu3 }
  0xee   : > { %v1476_v46 = vadd.f32 %v1475_v45, %v1207_v61  ;;  %v1765_v47 = vpop.f32.mrf.mxu2  ;;  %v1069_v48 = vpop.f32.mrf.mxu0  ;;  %v5457_v45 = vld [vmem:[%s6977_s2 + $0x1b1] ss:$2 sm:$0xff] }
  0xef   : > { %v7123_v49 = vadd.f32 %v1765_v47, %v1336_v44  ;;  %v1337_v50 = vpop.f32.mrf.mxu1  ;;  %v5456_v44 = vld [vmem:[%s6977_s2 + $0x1a1] ss:$2 sm:$0xff] }
  0xf0   : > { %v1338_v51 = vadd.f32 %v1337_v50, %v1069_v48  ;;  %v5668_v47 = vld [vmem:[%s6977_s2 + $0xe3] ss:$2 sm:$0xff]  ;;  %v5669_v48 = vld [vmem:[%s6977_s2 + $0xf3] ss:$2 sm:$0xff]  ;;  %v5392_v50 = vld [vmem:[%s6977_s2 + $0x1a0] ss:$2 sm:$0xff]  ;;  %v926_v56 = vpack.c.bf16 %v5457_v45, %v5456_v44 }
  0xf5   : > { %v1477_v58 = vpop.f32.mrf.mxu3 }
  0xf6   : > { %v1478_v62 = vadd.f32 %v1477_v58, %v1209_v9  ;;  %v1767_v2 = vpop.f32.mrf.mxu2  ;;  %v1072_v61 = vpop.f32.mrf.mxu0 }
  0xf7   : > { %v7133_v4 = vadd.f32 %v1767_v2, %v1338_v51  ;;  %v1340_v5 = vpop.f32.mrf.mxu1  ;;  %v5393_v51 = vld [vmem:[%s6977_s2 + $0x1b0] ss:$2 sm:$0xff] }
  0xf8   : > { %v1341_v7 = vadd.f32 %v1340_v5, %v1072_v61  ;;  %v765_v59 = vpack.c.bf16 %v5393_v51, %v5392_v50  ;;  %v5672_v50 = vld [vmem:[%s6977_s2 + $0x123] ss:$2 sm:$0xff] }
  0xf9   : > { %5505 = vmatmul.msk.bf16.gmra.mxu0 %vm947_vm1, %v924_v63 }
  0xfa   : > { %5723 = vmatmul.msk.bf16.gmra.mxu3 %vm947_vm1, %v2112_v1  ;;  %5537 = vmatmul.msk.bf16.gmra.mxu1 %vm947_vm1, %v763_v3  ;;  %v1626_v1 = vpack.c.bf16 %v5585_v54, %v5584_v53  ;;  %v5397_v53 = vld [vmem:[%s6977_s2 + $0x1f0] ss:$2 sm:$0xff] }
  0xfb   : > { %5633 = vmatmul.msk.bf16.gmra.mxu2 %vm947_vm1, %v1624_v6 }
  0xfd   : > { %v1480_v8 = vpop.f32.mrf.mxu3 }
  0xfe   : > { %v1481_v9 = vadd.f32 %v1480_v8, %v1212_v21  ;;  %v1770_v10 = vpop.f32.mrf.mxu2  ;;  %v1074_v11 = vpop.f32.mrf.mxu0 }
  0xff   : > { %v7139_v12 = vadd.f32 %v1770_v10, %v1341_v7  ;;  %v1342_v13 = vpop.f32.mrf.mxu1  ;;  %v5458_v10 = vld [vmem:[%s6977_s2 + $0x1c1] ss:$2 sm:$0xff] }
 0x100   : > { %v1343_v14 = vadd.f32 %v1342_v13, %v1074_v11  ;;  %v5459_v11 = vld [vmem:[%s6977_s2 + $0x1d1] ss:$2 sm:$0xff] }
 0x101   : > { %v5670_v13 = vld [vmem:[%s6977_s2 + $0x103] ss:$2 sm:$0xff] }
 0x105   : > { %v1482_v23 = vpop.f32.mrf.mxu3 }
 0x106   : > { %v1483_v27 = vadd.f32 %v1482_v23, %v1214_v33  ;;  %v1772_v30 = vpop.f32.mrf.mxu2  ;;  %v1077_v21 = vpop.f32.mrf.mxu0  ;;  %v927_v23 = vpack.c.bf16 %v5459_v11, %v5458_v10 }
 0x107   : > { %v7149_v32 = vadd.f32 %v1772_v30, %v1343_v14  ;;  %v1345_v34 = vpop.f32.mrf.mxu1  ;;  %v5671_v14 = vld [vmem:[%s6977_s2 + $0x113] ss:$2 sm:$0xff] }
 0x108   : > { %v1346_v36 = vadd.f32 %v1345_v34, %v1077_v21  ;;  %v1627_v21 = vpack.c.bf16 %v5587_v20, %v5586_v19 }
 0x109   : > { %5506 = vmatmul.msk.bf16.gmra.mxu0 %vm947_vm1, %v925_v28  ;;  %v766_v28 = vpack.c.bf16 %v5395_v16, %v5394_v15  ;;  %v6143_v15 = vld [vmem:[#allocation11 + $0x28] sm:$0xff] }
 0x10a   : > { %5724 = vmatmul.msk.bf16.gmra.mxu3 %vm947_vm1, %v2113_v29  ;;  %5538 = vmatmul.msk.bf16.gmra.mxu1 %vm947_vm1, %v764_v31  ;;  %v6139_v16 = vld [vmem:[#allocation11 + $0x8] sm:$0xff] }
 0x10b   : > { %5634 = vmatmul.msk.bf16.gmra.mxu2 %vm947_vm1, %v1625_v35  ;;  %2993 = vmatpush.bf16.msrb.mxu0 %v6143_v15  ;;  %v5592_v15 = vld [vmem:[%s6977_s2 + $0x222] ss:$2 sm:$0xff] }
 0x10c   : > { %3154 = vmatpush.bf16.msrb.mxu1 %v6139_v16  ;;  %v5593_v16 = vld [vmem:[%s6977_s2 + $0x232] ss:$2 sm:$0xff] }
 0x10d   : > { %v1905_v33 = vpop.f32.mrf.mxu3 }
 0x10e   : > { %v7155_v37 = vadd.f32 %v1905_v33, %v1476_v46  ;;  %v1775_v38 = vpop.f32.mrf.mxu2  ;;  %v1079_v39 = vpop.f32.mrf.mxu0  ;;  %v2114_v46 = vpack.c.bf16 %v5669_v48, %v5668_v47  ;;  %v5460_v47 = vld [vmem:[%s6977_s2 + $0x1e1] ss:$2 sm:$0xff]  ;;  %v5461_v48 = vld [vmem:[%s6977_s2 + $0x1f1] ss:$2 sm:$0xff] }
 0x10f   : > { %v7157_v40 = vadd.f32 %v1775_v38, %v1346_v36  ;;  %v1347_v42 = vpop.f32.mrf.mxu1  ;;  %v7198_v36 = vld [vmem:[#allocation10] ss:$0 sm:$0xff] }
 0x110   : > { %v1348_v43 = vadd.f32 %v1347_v42, %v1079_v39 }
 0x115   : > { %v1907_v52 = vpop.f32.mrf.mxu3 }
 0x116   : > { %v7167_v55 = vadd.f32 %v1907_v52, %v1478_v62  ;;  %v1777_v57 = vpop.f32.mrf.mxu2  ;;  %v1082_v58 = vpop.f32.mrf.mxu0  ;;  %v5396_v52 = vld [vmem:[%s6977_s2 + $0x1e0] ss:$2 sm:$0xff] }
 0x117   : > { %v7169_v60 = vadd.f32 %v1777_v57, %v1348_v43  ;;  %v1350_v63 = vpop.f32.mrf.mxu1 }
 0x118   : > { %v1351_v2 = vadd.f32 %v1350_v63, %v1082_v58  ;;  %v928_v58 = vpack.c.bf16 %v5461_v48, %v5460_v47 }
 0x119   : > { %5507 = vmatmul.msk.bf16.gmra.mxu0 %vm947_vm1, %v926_v56  ;;  %v5588_v56 = vld [vmem:[%s6977_s2 + $0x1e2] ss:$2 sm:$0xff] }
 0x11a   : > { %5725 = vmatmul.msk.bf16.gmra.mxu3 %vm947_vm1, %v2114_v46  ;;  %5539 = vmatmul.msk.bf16.gmra.mxu1 %vm947_vm1, %v765_v59  ;;  %v5589_v46 = vld [vmem:[%s6977_s2 + $0x1f2] ss:$2 sm:$0xff] }
 0x11b   : > { %5635 = vmatmul.msk.bf16.gmra.mxu2 %vm947_vm1, %v1626_v1 }
 0x11d   : > { %v1910_v62 = vpop.f32.mrf.mxu3 }
 0x11e   : > { %v7175_v61 = vadd.f32 %v1910_v62, %v1481_v9  ;;  %v1780_v3 = vpop.f32.mrf.mxu2  ;;  %v1084_v5 = vpop.f32.mrf.mxu0  ;;  %v2115_v9 = vpack.c.bf16 %v5671_v14, %v5670_v13  ;;  %v6147_v14 = vld [vmem:[#allocation11 + $0x48] sm:$0xff] }
 0x11f   : > { %v7177_v6 = vadd.f32 %v1780_v3, %v1351_v2  ;;  %v1352_v7 = vpop.f32.mrf.mxu1  ;;  %v767_v2 = vpack.c.bf16 %v5397_v53, %v5396_v52  ;;  %3404 = vmatpush.bf16.msrb.mxu2 %v6147_v14  ;;  %v5401_v14 = vld [vmem:[%s6977_s2 + $0x230] ss:$2 sm:$0xff] }
 0x120   : > { %v1353_v8 = vadd.f32 %v1352_v7, %v1084_v5  ;;  %v1628_v7 = vpack.c.bf16 %v5589_v46, %v5588_v56 }
 0x125   : > { %v1912_v18 = vpop.f32.mrf.mxu3 }
 0x126   : > { %v7187_v22 = vadd.f32 %v1912_v18, %v1483_v27  ;;  %v1782_v25 = vpop.f32.mrf.mxu2  ;;  %v1087_v26 = vpop.f32.mrf.mxu0  ;;  %v7195_v27 = vld [vmem:[#allocation8] ss:$0 sm:$0xff] }
 0x127   : > { %v7189_v29 = vadd.f32 %v1782_v25, %v1353_v8  ;;  %v1355_v30 = vpop.f32.mrf.mxu1 }
 0x128   : > { %v1356_v31 = vadd.f32 %v1355_v30, %v1087_v26  ;;  %v5462_v26 = vld [vmem:[%s6977_s2 + $0x201] ss:$2 sm:$0xff] }
 0x129   : > { %5508 = vmatmul.msk.bf16.gmra.mxu0 %vm947_vm1, %v927_v23  ;;  %v5674_v30 = vld [vmem:[%s6977_s2 + $0x143] ss:$2 sm:$0xff] }
 0x12a   : > { %5726 = vmatmul.msk.bf16.gmra.mxu3 %vm947_vm1, %v2115_v9  ;;  %5540 = vmatmul.msk.bf16.gmra.mxu1 %vm947_vm1, %v766_v28  ;;  %v5463_v28 = vld [vmem:[%s6977_s2 + $0x211] ss:$2 sm:$0xff] }
 0x12b   : > { %5636 = vmatmul.msk.bf16.gmra.mxu2 %vm947_vm1, %v1627_v21  ;;  %v5675_v21 = vld [vmem:[%s6977_s2 + $0x153] ss:$2 sm:$0xff] }
 0x12d   : > { %v2249_v34 = vpop.f32.mrf.mxu3 }
 0x12e   : > { %v2409_v35 = vadd.f32 %v2249_v34, %v7091_v0  ;;  %v1785_v33 = vpop.f32.mrf.mxu2  ;;  %v1089_v38 = vpop.f32.mrf.mxu0  ;;  %v5673_v0 = vld [vmem:[%s6977_s2 + $0x133] ss:$2 sm:$0xff]  ;;  %v5398_v34 = vld [vmem:[%s6977_s2 + $0x200] ss:$2 sm:$0xff] }
 0x12f   : > { %v7200_v39 = vadd.f32 %v1785_v33, %v1356_v31  ;;  %v1357_v43 = vpop.f32.mrf.mxu1  ;;  %v2116_v59 = vpack.c.bf16 %v5673_v0, %v5672_v50 }
 0x130   : > { %v2477_v42 = vmul.f32 %v7195_v27, %v2409_v35  ;;  %v1358_v44 = vadd.f32 %v1357_v43, %v1089_v38  ;;  %v5399_v35 = vld [vmem:[%s6977_s2 + $0x210] ss:$2 sm:$0xff] }
 0x131   : > { %v5590_v38 = vld [vmem:[%s6977_s2 + $0x202] ss:$2 sm:$0xff]  ;;  %v768_v50 = vpack.c.bf16 %v5399_v35, %v5398_v34 }
 0x132   : > { %v2545_v45 = vadd.f32 %v7198_v36, %v2477_v42  ;;  %v5591_v42 = vld [vmem:[%s6977_s2 + $0x212] ss:$2 sm:$0xff] }
 0x133   : > { %v1629_v53 = vpack.c.bf16 %v5591_v42, %v5590_v38  ;;  %v6161_v38 = vld [vmem:[#allocation16 + $0x58] sm:$0xff] }
 0x134   : > { %v2609_v51 = vmax.f32 %v2545_v45, 0.0  ;;  %v2117_v45 = vpack.c.bf16 %v5675_v21, %v5674_v30  ;;  %v1630_v21 = vpack.c.bf16 %v5593_v16, %v5592_v15  ;;  %3935 = vmatpush.bf16.msra.mxu3 %v6161_v38  ;;  %v5597_v38 = vld [vmem:[%s6977_s2 + $0x272] ss:$2 sm:$0xff] }
 0x135   : > { %v2251_v54 = vpop.f32.mrf.mxu3 }
 0x136   : > { %2674 = vst.msk [vmem:[#allocation2] sm:$0xff] %vm2673_vm2, %v2609_v51  ;;  %v2410_v57 = vadd.f32 %v2251_v54, %v7101_v17  ;;  %v1787_v63 = vpop.f32.mrf.mxu2  ;;  %v1092_v1 = vpop.f32.mrf.mxu0 }
 0x137   : > { %v7214_v62 = vadd.f32 %v1787_v63, %v1358_v44  ;;  %v1360_v5 = vpop.f32.mrf.mxu1  ;;  %v929_v44 = vpack.c.bf16 %v5463_v28, %v5462_v26 }
 0x138   : > { %v2478_v3 = vmul.f32 %v7195_v27, %v2410_v57  ;;  %v1361_v8 = vadd.f32 %v1360_v5, %v1092_v1 }
 0x139   : > { %5509 = vmatmul.msk.bf16.gmra.mxu0 %vm947_vm1, %v928_v58 }
 0x13a   : > { %v2546_v10 = vadd.f32 %v7198_v36, %v2478_v3  ;;  %5727 = vmatmul.msk.bf16.gmra.mxu3 %vm947_vm1, %v2116_v59  ;;  %5541 = vmatmul.msk.bf16.gmra.mxu1 %vm947_vm1, %v767_v2 }
 0x13b   : > { %5637 = vmatmul.msk.bf16.gmra.mxu2 %vm947_vm1, %v1628_v7  ;;  %v5464_v7 = vld [vmem:[%s6977_s2 + $0x221] ss:$2 sm:$0xff] }
 0x13c   : > { %v2610_v17 = vmax.f32 %v2546_v10, 0.0  ;;  %v5676_v10 = vld [vmem:[%s6977_s2 + $0x163] ss:$2 sm:$0xff] }
 0x13d   : > { %v2254_v11 = vpop.f32.mrf.mxu3 }
 0x13e   : > { %2675 = vst.msk [vmem:[#allocation2 + $0x8] sm:$0xff] %vm2673_vm2, %v2610_v17  ;;  %v2411_v13 = vadd.f32 %v2254_v11, %v7107_v24  ;;  %v1790_v18 = vpop.f32.mrf.mxu2  ;;  %v1094_v19 = vpop.f32.mrf.mxu0  ;;  %v5677_v17 = vld [vmem:[%s6977_s2 + $0x173] ss:$2 sm:$0xff] }
 0x13f   : > { %v7224_v20 = vadd.f32 %v1790_v18, %v1361_v8  ;;  %v1362_v9 = vpop.f32.mrf.mxu1  ;;  %v5465_v8 = vld [vmem:[%s6977_s2 + $0x231] ss:$2 sm:$0xff] }
 0x140   : > { %v2479_v23 = vmul.f32 %v7195_v27, %v2411_v13  ;;  %v1363_v25 = vadd.f32 %v1362_v9, %v1094_v19  ;;  %v5400_v13 = vld [vmem:[%s6977_s2 + $0x220] ss:$2 sm:$0xff]  ;;  %v930_v19 = vpack.c.bf16 %v5465_v8, %v5464_v7 }
 0x142   : > { %v2547_v24 = vadd.f32 %v7198_v36, %v2479_v23  ;;  %v2118_v23 = vpack.c.bf16 %v5677_v17, %v5676_v10 }
 0x144   : > { %v2611_v31 = vmax.f32 %v2547_v24, 0.0  ;;  %v769_v24 = vpack.c.bf16 %v5401_v14, %v5400_v13 }
 0x145   : > { %v2256_v33 = vpop.f32.mrf.mxu3 }
 0x146   : > { %2676 = vst.msk [vmem:[#allocation2 + $0x10] sm:$0xff] %vm2673_vm2, %v2611_v31  ;;  %v2412_v43 = vadd.f32 %v2256_v33, %v7117_v41  ;;  %v1792_v47 = vpop.f32.mrf.mxu2  ;;  %v1097_v48 = vpop.f32.mrf.mxu0 }
 0x147   : > { %v7238_v0 = vadd.f32 %v1792_v47, %v1363_v25  ;;  %v1365_v52 = vpop.f32.mrf.mxu1 }
 0x148   : > { %v2480_v51 = vmul.f32 %v7195_v27, %v2412_v43  ;;  %v1366_v54 = vadd.f32 %v1365_v52, %v1097_v48  ;;  %v5467_v52 = vld [vmem:[%s6977_s2 + $0x251] ss:$2 sm:$0xff] }
 0x149   : > { %5510 = vmatmul.msk.bf16.gmra.mxu0 %vm947_vm1, %v929_v44 }
 0x14a   : > { %v2548_v56 = vadd.f32 %v7198_v36, %v2480_v51  ;;  %5728 = vmatmul.msk.bf16.gmra.mxu3 %vm947_vm1, %v2117_v45  ;;  %5542 = vmatmul.msk.bf16.gmra.mxu1 %vm947_vm1, %v768_v50  ;;  %v5466_v51 = vld [vmem:[%s6977_s2 + $0x241] ss:$2 sm:$0xff] }
 0x14b   : > { %5638 = vmatmul.msk.bf16.gmra.mxu2 %vm947_vm1, %v1629_v53  ;;  %v5678_v53 = vld [vmem:[%s6977_s2 + $0x183] ss:$2 sm:$0xff] }
 0x14c   : > { %v2612_v41 = vmax.f32 %v2548_v56, 0.0  ;;  %v5402_v56 = vld [vmem:[%s6977_s2 + $0x240] ss:$2 sm:$0xff] }
 0x14d   : > { %v2259_v46 = vpop.f32.mrf.mxu3 }
 0x14e   : > { %2677 = vst.msk [vmem:[#allocation2 + $0x18] sm:$0xff] %vm2673_vm2, %v2612_v41  ;;  %v2413_v57 = vadd.f32 %v2259_v46, %v7123_v49  ;;  %v1795_v58 = vpop.f32.mrf.mxu2  ;;  %v1099_v59 = vpop.f32.mrf.mxu0  ;;  %v5403_v41 = vld [vmem:[%s6977_s2 + $0x250] ss:$2 sm:$0xff] }
 0x14f   : > { %v7248_v63 = vadd.f32 %v1795_v58, %v1366_v54  ;;  %v1367_v2 = vpop.f32.mrf.mxu1  ;;  %v5679_v54 = vld [vmem:[%s6977_s2 + $0x193] ss:$2 sm:$0xff]  ;;  %v5595_v58 = vld [vmem:[%s6977_s2 + $0x252] ss:$2 sm:$0xff]  ;;  %v770_v7 = vpack.c.bf16 %v5403_v41, %v5402_v56 }
 0x150   : > { %v2481_v1 = vmul.f32 %v7195_v27, %v2413_v57  ;;  %v1368_v3 = vadd.f32 %v1367_v2, %v1099_v59  ;;  %v5594_v57 = vld [vmem:[%s6977_s2 + $0x242] ss:$2 sm:$0xff]  ;;  %v2119_v2 = vpack.c.bf16 %v5679_v54, %v5678_v53 }
 0x152   : > { %v2549_v5 = vadd.f32 %v7198_v36, %v2481_v1  ;;  %v931_v1 = vpack.c.bf16 %v5467_v52, %v5466_v51 }
 0x154   : > { %v2613_v11 = vmax.f32 %v2549_v5, 0.0 }
 0x155   : > { %v2261_v49 = vpop.f32.mrf.mxu3 }
 0x156   : > { %2678 = vst.msk [vmem:[#allocation2 + $0x20] sm:$0xff] %vm2673_vm2, %v2613_v11  ;;  %v2414_v18 = vadd.f32 %v2261_v49, %v7133_v4  ;;  %v1797_v9 = vpop.f32.mrf.mxu2  ;;  %v1102_v25 = vpop.f32.mrf.mxu0  ;;  %v1631_v11 = vpack.c.bf16 %v5595_v58, %v5594_v57 }
 0x157   : > { %v7262_v26 = vadd.f32 %v1797_v9, %v1368_v3  ;;  %v1370_v30 = vpop.f32.mrf.mxu1 }
 0x158   : > { %v2482_v28 = vmul.f32 %v7195_v27, %v2414_v18  ;;  %v1371_v31 = vadd.f32 %v1370_v30, %v1102_v25  ;;  %v5469_v30 = vld [vmem:[%s6977_s2 + $0x271] ss:$2 sm:$0xff] }
 0x159   : > { %5511 = vmatmul.msk.bf16.gmra.mxu0 %vm947_vm1, %v930_v19 }
 0x15a   : > { %v2550_v34 = vadd.f32 %v7198_v36, %v2482_v28  ;;  %5729 = vmatmul.msk.bf16.gmra.mxu3 %vm947_vm1, %v2118_v23  ;;  %5543 = vmatmul.msk.bf16.gmra.mxu1 %vm947_vm1, %v769_v24  ;;  %v5468_v28 = vld [vmem:[%s6977_s2 + $0x261] ss:$2 sm:$0xff] }
 0x15b   : > { %5639 = vmatmul.msk.bf16.gmra.mxu2 %vm947_vm1, %v1630_v21  ;;  %v5680_v21 = vld [vmem:[%s6977_s2 + $0x1a3] ss:$2 sm:$0xff] }
 0x15c   : > { %v2614_v4 = vmax.f32 %v2550_v34, 0.0 }
 0x15d   : > { %v2264_v35 = vpop.f32.mrf.mxu3 }
 0x15e   : > { %2679 = vst.msk [vmem:[#allocation2 + $0x28] sm:$0xff] %vm2673_vm2, %v2614_v4  ;;  %v2415_v33 = vadd.f32 %v2264_v35, %v7139_v12  ;;  %v1800_v42 = vpop.f32.mrf.mxu2  ;;  %v1104_v43 = vpop.f32.mrf.mxu0  ;;  %v5404_v4 = vld [vmem:[%s6977_s2 + $0x260] ss:$2 sm:$0xff]  ;;  %v5405_v35 = vld [vmem:[%s6977_s2 + $0x270] ss:$2 sm:$0xff] }
 0x15f   : > { %v7272_v44 = vadd.f32 %v1800_v42, %v1371_v31  ;;  %v1372_v47 = vpop.f32.mrf.mxu1  ;;  %v5681_v31 = vld [vmem:[%s6977_s2 + $0x1b3] ss:$2 sm:$0xff] }
 0x160   : > { %v2483_v45 = vmul.f32 %v7195_v27, %v2415_v33  ;;  %v1373_v48 = vadd.f32 %v1372_v47, %v1104_v43  ;;  %v5596_v33 = vld [vmem:[%s6977_s2 + $0x262] ss:$2 sm:$0xff]  ;;  %v932_v43 = vpack.c.bf16 %v5469_v30, %v5468_v28 }
 0x161   : > { %v1632_v54 = vpack.c.bf16 %v5597_v38, %v5596_v33 }
 0x162   : > { %v2551_v50 = vadd.f32 %v7198_v36, %v2483_v45  ;;  %v2120_v45 = vpack.c.bf16 %v5681_v31, %v5680_v21 }
 0x164   : > { %v2615_v12 = vmax.f32 %v2551_v50, 0.0  ;;  %v771_v50 = vpack.c.bf16 %v5405_v35, %v5404_v4 }
 0x165   : > { %v2266_v46 = vpop.f32.mrf.mxu3 }
 0x166   : > { %2680 = vst.msk [vmem:[#allocation2 + $0x30] sm:$0xff] %vm2673_vm2, %v2615_v12  ;;  %v2416_v59 = vadd.f32 %v2266_v46, %v7149_v32  ;;  %v1802_v3 = vpop.f32.mrf.mxu2  ;;  %v1107_v5 = vpop.f32.mrf.mxu0 }
 0x167   : > { %v7286_v8 = vadd.f32 %v1802_v3, %v1373_v48  ;;  %v1375_v17 = vpop.f32.mrf.mxu1 }
 0x168   : > { %v2484_v10 = vmul.f32 %v7195_v27, %v2416_v59  ;;  %v1376_v13 = vadd.f32 %v1375_v17, %v1107_v5  ;;  %v5682_v17 = vld [vmem:[%s6977_s2 + $0x1c3] ss:$2 sm:$0xff] }
 0x169   : > { %5512 = vmatmul.msk.bf16.gmra.mxu0 %vm947_vm1, %v931_v1 }
 0x16a   : > { %v2552_v14 = vadd.f32 %v7198_v36, %v2484_v10  ;;  %5730 = vmatmul.msk.bf16.gmra.mxu3 %vm947_vm1, %v2119_v2  ;;  %5544 = vmatmul.msk.bf16.gmra.mxu1 %vm947_vm1, %v770_v7  ;;  %v5470_v7 = vld [vmem:[%s6977_s2 + $0x281] ss:$2 sm:$0xff]  ;;  %v5471_v10 = vld [vmem:[%s6977_s2 + $0x291] ss:$2 sm:$0xff] }
 0x16b   : > { %5640 = vmatmul.msk.bf16.gmra.mxu2 %vm947_vm1, %v1631_v11  ;;  %v5683_v11 = vld [vmem:[%s6977_s2 + $0x1d3] ss:$2 sm:$0xff] }
 0x16c   : > { %v2616_v32 = vmax.f32 %v2552_v14, 0.0  ;;  %v5406_v14 = vld [vmem:[%s6977_s2 + $0x280] ss:$2 sm:$0xff] }
 0x16d   : > { %v2269_v49 = vpop.f32.mrf.mxu3 }
 0x16e   : > { %2681 = vst.msk [vmem:[#allocation2 + $0x38] sm:$0xff] %vm2673_vm2, %v2616_v32  ;;  %v2417_v15 = vadd.f32 %v2269_v49, %v7157_v40  ;;  %v1805_v16 = vpop.f32.mrf.mxu2  ;;  %v1109_v18 = vpop.f32.mrf.mxu0  ;;  %v5407_v32 = vld [vmem:[%s6977_s2 + $0x290] ss:$2 sm:$0xff] }
 0x16f   : > { %v7296_v19 = vadd.f32 %v1805_v16, %v1376_v13  ;;  %v1377_v9 = vpop.f32.mrf.mxu1  ;;  %v5598_v49 = vld [vmem:[%s6977_s2 + $0x282] ss:$2 sm:$0xff] }
 0x170   : > { %v2485_v23 = vmul.f32 %v7195_v27, %v2417_v15  ;;  %v1378_v25 = vadd.f32 %v1377_v9, %v1109_v18  ;;  %v5599_v15 = vld [vmem:[%s6977_s2 + $0x292] ss:$2 sm:$0xff]  ;;  %v933_v18 = vpack.c.bf16 %v5471_v10, %v5470_v7 }
 0x171   : > { %v1633_v31 = vpack.c.bf16 %v5599_v15, %v5598_v49 }
 0x172   : > { %v2553_v24 = vadd.f32 %v7198_v36, %v2485_v23  ;;  %v2121_v23 = vpack.c.bf16 %v5683_v11, %v5682_v17 }
 0x174   : > { %v2617_v34 = vmax.f32 %v2553_v24, 0.0  ;;  %v772_v24 = vpack.c.bf16 %v5407_v32, %v5406_v14 }
 0x175   : > { %v2271_v40 = vpop.f32.mrf.mxu3 }
 0x176   : > { %2682 = vst.msk [vmem:[#allocation2 + $0x40] sm:$0xff] %vm2673_vm2, %v2617_v34  ;;  %v2418_v42 = vadd.f32 %v2271_v40, %v7169_v60  ;;  %v1807_v47 = vpop.f32.mrf.mxu2  ;;  %v1112_v48 = vpop.f32.mrf.mxu0 }
 0x177   : > { %v7310_v51 = vadd.f32 %v1807_v47, %v1378_v25  ;;  %v1380_v53 = vpop.f32.mrf.mxu1 }
 0x178   : > { %v2486_v52 = vmul.f32 %v7195_v27, %v2418_v42  ;;  %v1381_v12 = vadd.f32 %v1380_v53, %v1112_v48  ;;  %v5684_v53 = vld [vmem:[%s6977_s2 + $0x1e3] ss:$2 sm:$0xff] }
 0x179   : > { %5513 = vmatmul.msk.bf16.gmra.mxu0 %vm947_vm1, %v932_v43 }
 0x17a   : > { %v2554_v56 = vadd.f32 %v7198_v36, %v2486_v52  ;;  %5731 = vmatmul.msk.bf16.gmra.mxu3 %vm947_vm1, %v2120_v45  ;;  %5545 = vmatmul.msk.bf16.gmra.mxu1 %vm947_vm1, %v771_v50  ;;  %v5472_v50 = vld [vmem:[%s6977_s2 + $0x2a1] ss:$2 sm:$0xff]  ;;  %v5473_v52 = vld [vmem:[%s6977_s2 + $0x2b1] ss:$2 sm:$0xff] }
 0x17b   : > { %5641 = vmatmul.msk.bf16.gmra.mxu2 %vm947_vm1, %v1632_v54  ;;  %v5685_v54 = vld [vmem:[%s6977_s2 + $0x1f3] ss:$2 sm:$0xff] }
 0x17c   : > { %v2618_v60 = vmax.f32 %v2554_v56, 0.0  ;;  %v5408_v56 = vld [vmem:[%s6977_s2 + $0x2a0] ss:$2 sm:$0xff] }
 0x17d   : > { %v2274_v41 = vpop.f32.mrf.mxu3 }
 0x17e   : > { %2683 = vst.msk [vmem:[#allocation2 + $0x48] sm:$0xff] %vm2673_vm2, %v2618_v60  ;;  %v2419_v46 = vadd.f32 %v2274_v41, %v7177_v6  ;;  %v1810_v57 = vpop.f32.mrf.mxu2  ;;  %v1114_v58 = vpop.f32.mrf.mxu0  ;;  %v5409_v60 = vld [vmem:[%s6977_s2 + $0x2b0] ss:$2 sm:$0xff] }
 0x17f   : > { %v7320_v59 = vadd.f32 %v1810_v57, %v1381_v12  ;;  %v1382_v2 = vpop.f32.mrf.mxu1  ;;  %v5600_v41 = vld [vmem:[%s6977_s2 + $0x2a2] ss:$2 sm:$0xff] }
 0x180   : > { %v2487_v1 = vmul.f32 %v7195_v27, %v2419_v46  ;;  %v1383_v3 = vadd.f32 %v1382_v2, %v1114_v58  ;;  %v5601_v46 = vld [vmem:[%s6977_s2 + $0x2b2] ss:$2 sm:$0xff]  ;;  %v934_v58 = vpack.c.bf16 %v5473_v52, %v5472_v50 }
 0x181   : > { %v1634_v11 = vpack.c.bf16 %v5601_v46, %v5600_v41 }
 0x182   : > { %v2555_v5 = vadd.f32 %v7198_v36, %v2487_v1  ;;  %v2122_v1 = vpack.c.bf16 %v5685_v54, %v5684_v53 }
 0x184   : > { %v2619_v13 = vmax.f32 %v2555_v5, 0.0  ;;  %v773_v5 = vpack.c.bf16 %v5409_v60, %v5408_v56 }
 0x185   : > { %v2276_v6 = vpop.f32.mrf.mxu3 }
 0x186   : > { %2684 = vst.msk [vmem:[#allocation2 + $0x50] sm:$0xff] %vm2673_vm2, %v2619_v13  ;;  %v2420_v16 = vadd.f32 %v2276_v6, %v7189_v29  ;;  %v1812_v9 = vpop.f32.mrf.mxu2  ;;  %v1117_v25 = vpop.f32.mrf.mxu0 }
 0x187   : > { %v7334_v28 = vadd.f32 %v1812_v9, %v1383_v3  ;;  %v1385_v21 = vpop.f32.mrf.mxu1 }
 0x188   : > { %v2488_v30 = vmul.f32 %v7195_v27, %v2420_v16  ;;  %v1386_v34 = vadd.f32 %v1385_v21, %v1117_v25  ;;  %v5686_v21 = vld [vmem:[%s6977_s2 + $0x203] ss:$2 sm:$0xff] }
 0x189   : > { %5514 = vmatmul.msk.bf16.gmra.mxu0 %vm947_vm1, %v933_v18 }
 0x18a   : > { %v2556_v4 = vadd.f32 %v7198_v36, %v2488_v30  ;;  %5732 = vmatmul.msk.bf16.gmra.mxu3 %vm947_vm1, %v2121_v23  ;;  %5546 = vmatmul.msk.bf16.gmra.mxu1 %vm947_vm1, %v772_v24  ;;  %v5474_v24 = vld [vmem:[%s6977_s2 + $0x2c1] ss:$2 sm:$0xff]  ;;  %v5475_v30 = vld [vmem:[%s6977_s2 + $0x2d1] ss:$2 sm:$0xff] }
 0x18b   : > { %5642 = vmatmul.msk.bf16.gmra.mxu2 %vm947_vm1, %v1633_v31  ;;  %v5687_v31 = vld [vmem:[%s6977_s2 + $0x213] ss:$2 sm:$0xff] }
 0x18c   : > { %v2620_v29 = vmax.f32 %v2556_v4, 0.0  ;;  %v5410_v4 = vld [vmem:[%s6977_s2 + $0x2c0] ss:$2 sm:$0xff] }
 0x18d   : > { %v2279_v35 = vpop.f32.mrf.mxu3 }
 0x18e   : > { %2685 = vst.msk [vmem:[#allocation2 + $0x58] sm:$0xff] %vm2673_vm2, %v2620_v29  ;;  %v2421_v40 = vadd.f32 %v2279_v35, %v7200_v39  ;;  %v1815_v33 = vpop.f32.mrf.mxu2  ;;  %v1119_v38 = vpop.f32.mrf.mxu0  ;;  %v5411_v29 = vld [vmem:[%s6977_s2 + $0x2d0] ss:$2 sm:$0xff] }
 0x18f   : > { %v7344_v42 = vadd.f32 %v1815_v33, %v1386_v34  ;;  %v1387_v45 = vpop.f32.mrf.mxu1  ;;  %v5602_v35 = vld [vmem:[%s6977_s2 + $0x2c2] ss:$2 sm:$0xff] }
 0x190   : > { %v2489_v43 = vmul.f32 %v7195_v27, %v2421_v40  ;;  %v1388_v47 = vadd.f32 %v1387_v45, %v1119_v38  ;;  %v5603_v40 = vld [vmem:[%s6977_s2 + $0x2d2] ss:$2 sm:$0xff]  ;;  %v935_v38 = vpack.c.bf16 %v5475_v30, %v5474_v24 }
 0x191   : > { %v1635_v54 = vpack.c.bf16 %v5603_v40, %v5602_v35 }
 0x192   : > { %v2557_v48 = vadd.f32 %v7198_v36, %v2489_v43  ;;  %v2123_v43 = vpack.c.bf16 %v5687_v31, %v5686_v21  ;;  %v6138_v31 = vld [vmem:[#allocation11] sm:$0xff] }
 0x193   : > { %3155 = vmatpush.bf16.msrb.mxu1 %v6138_v31  ;;  %v5480_v31 = vld [vmem:[%s6977_s2 + $0x321] ss:$2 sm:$0xff] }
 0x194   : > { %v2621_v12 = vmax.f32 %v2557_v48, 0.0  ;;  %v774_v48 = vpack.c.bf16 %v5411_v29, %v5410_v4 }
 0x195   : > { %v2281_v39 = vpop.f32.mrf.mxu3 }
 0x196   : > { %2686 = vst.msk [vmem:[#allocation2 + $0x60] sm:$0xff] %vm2673_vm2, %v2621_v12  ;;  %v2422_v57 = vadd.f32 %v2281_v39, %v7214_v62  ;;  %v1817_v2 = vpop.f32.mrf.mxu2  ;;  %v1122_v3 = vpop.f32.mrf.mxu0 }
 0x197   : > { %v7358_v7 = vadd.f32 %v1817_v2, %v1388_v47  ;;  %v1390_v17 = vpop.f32.mrf.mxu1 }
 0x198   : > { %v2490_v10 = vmul.f32 %v7195_v27, %v2422_v57  ;;  %v1391_v13 = vadd.f32 %v1390_v17, %v1122_v3  ;;  %v5688_v17 = vld [vmem:[%s6977_s2 + $0x223] ss:$2 sm:$0xff] }
 0x199   : > { %5515 = vmatmul.msk.bf16.gmra.mxu0 %vm947_vm1, %v934_v58 }
 0x19a   : > { %v2558_v14 = vadd.f32 %v7198_v36, %v2490_v10  ;;  %5733 = vmatmul.msk.bf16.gmra.mxu3 %vm947_vm1, %v2122_v1  ;;  %5547 = vmatmul.msk.bf16.gmra.mxu1 %vm947_vm1, %v773_v5  ;;  %v5476_v5 = vld [vmem:[%s6977_s2 + $0x2e1] ss:$2 sm:$0xff]  ;;  %v5477_v10 = vld [vmem:[%s6977_s2 + $0x2f1] ss:$2 sm:$0xff] }
 0x19b   : > { %5643 = vmatmul.msk.bf16.gmra.mxu2 %vm947_vm1, %v1634_v11  ;;  %v5689_v11 = vld [vmem:[%s6977_s2 + $0x233] ss:$2 sm:$0xff] }
 0x19c   : > { %v2622_v62 = vmax.f32 %v2558_v14, 0.0  ;;  %v5412_v14 = vld [vmem:[%s6977_s2 + $0x2e0] ss:$2 sm:$0xff] }
 0x19d   : > { %v2284_v32 = vpop.f32.mrf.mxu3 }
 0x19e   : > { %2687 = vst.msk [vmem:[#allocation2 + $0x68] sm:$0xff] %vm2673_vm2, %v2622_v62  ;;  %v2423_v6 = vadd.f32 %v2284_v32, %v7224_v20  ;;  %v1820_v49 = vpop.f32.mrf.mxu2  ;;  %v1124_v15 = vpop.f32.mrf.mxu0  ;;  %v5413_v62 = vld [vmem:[%s6977_s2 + $0x2f0] ss:$2 sm:$0xff] }
 0x19f   : > { %v7368_v16 = vadd.f32 %v1820_v49, %v1391_v13  ;;  %v1392_v23 = vpop.f32.mrf.mxu1  ;;  %v5604_v32 = vld [vmem:[%s6977_s2 + $0x2e2] ss:$2 sm:$0xff]  ;;  %v775_v21 = vpack.c.bf16 %v5413_v62, %v5412_v14 }
 0x1a0   : > { %v2491_v18 = vmul.f32 %v7195_v27, %v2423_v6  ;;  %v1393_v9 = vadd.f32 %v1392_v23, %v1124_v15  ;;  %v5605_v6 = vld [vmem:[%s6977_s2 + $0x2f2] ss:$2 sm:$0xff]  ;;  %v936_v15 = vpack.c.bf16 %v5477_v10, %v5476_v5 }
 0x1a1   : > { %v6160_v23 = vld [vmem:[#allocation16 + $0x50] sm:$0xff] }
 0x1a2   : > { %v2559_v25 = vadd.f32 %v7198_v36, %v2491_v18  ;;  %v2124_v18 = vpack.c.bf16 %v5689_v11, %v5688_v17  ;;  %3936 = vmatpush.bf16.msra.mxu3 %v6160_v23 }
 0x1a4   : > { %v2623_v34 = vmax.f32 %v2559_v25, 0.0  ;;  %v6142_v25 = vld [vmem:[#allocation11 + $0x20] sm:$0xff] }
 0x1a5   : > { %v2286_v20 = vpop.f32.mrf.mxu3  ;;  %2994 = vmatpush.bf16.msrb.mxu0 %v6142_v25 }
 0x1a6   : > { %2688 = vst.msk [vmem:[#allocation2 + $0x70] sm:$0xff] %vm2673_vm2, %v2623_v34  ;;  %v2424_v33 = vadd.f32 %v2286_v20, %v7238_v0  ;;  %v1822_v45 = vpop.f32.mrf.mxu2  ;;  %v1127_v47 = vpop.f32.mrf.mxu0  ;;  %v1636_v20 = vpack.c.bf16 %v5605_v6, %v5604_v32 }
 0x1a7   : > { %v7382_v50 = vadd.f32 %v1822_v45, %v1393_v9  ;;  %v1395_v53 = vpop.f32.mrf.mxu1  ;;  %v6146_v9 = vld [vmem:[#allocation11 + $0x40] sm:$0xff] }
 0x1a8   : > { %v2492_v52 = vmul.f32 %v7195_v27, %v2424_v33  ;;  %v1396_v12 = vadd.f32 %v1395_v53, %v1127_v47  ;;  %3405 = vmatpush.bf16.msrb.mxu2 %v6146_v9 }
 0x1a9   : > { %5516 = vmatmul.msk.bf16.gmra.mxu0 %vm947_vm1, %v935_v38 }
 0x1aa   : > { %v2560_v56 = vadd.f32 %v7198_v36, %v2492_v52  ;;  %5734 = vmatmul.msk.bf16.gmra.mxu3 %vm947_vm1, %v2123_v43  ;;  %5548 = vmatmul.msk.bf16.gmra.mxu1 %vm947_vm1, %v774_v48 }
 0x1ab   : > { %5644 = vmatmul.msk.bf16.gmra.mxu2 %vm947_vm1, %v1635_v54 }
 0x1ac   : > { %v2624_v0 = vmax.f32 %v2560_v56, 0.0  ;;  %v5479_v56 = vld [vmem:[%s6977_s2 + $0x311] ss:$2 sm:$0xff] }
 0x1ad   : > { %v2289_v60 = vpop.f32.mrf.mxu3 }
 0x1ae   : > { %2689 = vst.msk [vmem:[#allocation2 + $0x78] sm:$0xff] %vm2673_vm2, %v2624_v0  ;;  %v2425_v39 = vadd.f32 %v2289_v60, %v7248_v63  ;;  %v1825_v41 = vpop.f32.mrf.mxu2  ;;  %v1129_v46 = vpop.f32.mrf.mxu0  ;;  %v5690_v0 = vld [vmem:[%s6977_s2 + $0x243] ss:$2 sm:$0xff]  ;;  %v5691_v60 = vld [vmem:[%s6977_s2 + $0x253] ss:$2 sm:$0xff] }
 0x1af   : > { %v7392_v57 = vadd.f32 %v1825_v41, %v1396_v12  ;;  %v1397_v1 = vpop.f32.mrf.mxu1  ;;  %v5478_v12 = vld [vmem:[%s6977_s2 + $0x301] ss:$2 sm:$0xff]  ;;  %v5414_v41 = vld [vmem:[%s6977_s2 + $0x300] ss:$2 sm:$0xff]  ;;  %v2125_v5 = vpack.c.bf16 %v5691_v60, %v5690_v0 }
 0x1b0   : > { %v2493_v58 = vmul.f32 %v7195_v27, %v2425_v39  ;;  %v1398_v2 = vadd.f32 %v1397_v1, %v1129_v46  ;;  %v5415_v46 = vld [vmem:[%s6977_s2 + $0x310] ss:$2 sm:$0xff] }
 0x1b1   : > { %v5607_v1 = vld [vmem:[%s6977_s2 + $0x312] ss:$2 sm:$0xff]  ;;  %v776_v11 = vpack.c.bf16 %v5415_v46, %v5414_v41 }
 0x1b2   : > { %v2561_v3 = vadd.f32 %v7198_v36, %v2493_v58  ;;  %v5606_v58 = vld [vmem:[%s6977_s2 + $0x302] ss:$2 sm:$0xff] }
 0x1b4   : > { %v2625_v13 = vmax.f32 %v2561_v3, 0.0  ;;  %v937_v3 = vpack.c.bf16 %v5479_v56, %v5478_v12 }
 0x1b5   : > { %v2291_v63 = vpop.f32.mrf.mxu3 }
 0x1b6   : > { %2690 = vst.msk [vmem:[#allocation2 + $0x80] sm:$0xff] %vm2673_vm2, %v2625_v13  ;;  %v2426_v49 = vadd.f32 %v2291_v63, %v7262_v26  ;;  %v1827_v24 = vpop.f32.mrf.mxu2  ;;  %v1132_v30 = vpop.f32.mrf.mxu0  ;;  %v1637_v63 = vpack.c.bf16 %v5607_v1, %v5606_v58 }
 0x1b7   : > { %v7406_v34 = vadd.f32 %v1827_v24, %v1398_v2  ;;  %v1400_v29 = vpop.f32.mrf.mxu1 }
 0x1b8   : > { %v2494_v4 = vmul.f32 %v7195_v27, %v2426_v49  ;;  %v1401_v35 = vadd.f32 %v1400_v29, %v1132_v30  ;;  %v5692_v29 = vld [vmem:[%s6977_s2 + $0x263] ss:$2 sm:$0xff] }
 0x1b9   : > { %5517 = vmatmul.msk.bf16.gmra.mxu0 %vm947_vm1, %v936_v15 }
 0x1ba   : > { %v2562_v26 = vadd.f32 %v7198_v36, %v2494_v4  ;;  %5735 = vmatmul.msk.bf16.gmra.mxu3 %vm947_vm1, %v2124_v18  ;;  %5549 = vmatmul.msk.bf16.gmra.mxu1 %vm947_vm1, %v775_v21  ;;  %v5481_v4 = vld [vmem:[%s6977_s2 + $0x331] ss:$2 sm:$0xff] }
 0x1bb   : > { %5645 = vmatmul.msk.bf16.gmra.mxu2 %vm947_vm1, %v1636_v20  ;;  %v5693_v20 = vld [vmem:[%s6977_s2 + $0x273] ss:$2 sm:$0xff] }
 0x1bc   : > { %v2626_v40 = vmax.f32 %v2562_v26, 0.0  ;;  %v5416_v26 = vld [vmem:[%s6977_s2 + $0x320] ss:$2 sm:$0xff] }
 0x1bd   : > { %v2294_v33 = vpop.f32.mrf.mxu3 }
 0x1be   : > { %2691 = vst.msk [vmem:[#allocation2 + $0x88] sm:$0xff] %vm2673_vm2, %v2626_v40  ;;  %v2427_v38 = vadd.f32 %v2294_v33, %v7272_v44  ;;  %v1830_v43 = vpop.f32.mrf.mxu2  ;;  %v1134_v45 = vpop.f32.mrf.mxu0  ;;  %v5417_v40 = vld [vmem:[%s6977_s2 + $0x330] ss:$2 sm:$0xff] }
 0x1bf   : > { %v7416_v47 = vadd.f32 %v1830_v43, %v1401_v35  ;;  %v1402_v52 = vpop.f32.mrf.mxu1  ;;  %v5608_v33 = vld [vmem:[%s6977_s2 + $0x322] ss:$2 sm:$0xff] }
 0x1c0   : > { %v2495_v48 = vmul.f32 %v7195_v27, %v2427_v38  ;;  %v1403_v53 = vadd.f32 %v1402_v52, %v1134_v45  ;;  %v5609_v38 = vld [vmem:[%s6977_s2 + $0x332] ss:$2 sm:$0xff]  ;;  %v938_v45 = vpack.c.bf16 %v5481_v4, %v5480_v31 }
 0x1c1   : > { %v1638_v60 = vpack.c.bf16 %v5609_v38, %v5608_v33 }
 0x1c2   : > { %v2563_v54 = vadd.f32 %v7198_v36, %v2495_v48  ;;  %v2126_v48 = vpack.c.bf16 %v5693_v20, %v5692_v29 }
 0x1c4   : > { %v2627_v39 = vmax.f32 %v2563_v54, 0.0  ;;  %v777_v54 = vpack.c.bf16 %v5417_v40, %v5416_v26 }
 0x1c5   : > { %v2296_v44 = vpop.f32.mrf.mxu3 }
 0x1c6   : > { %2692 = vst.msk [vmem:[#allocation2 + $0x90] sm:$0xff] %vm2673_vm2, %v2627_v39  ;;  %v2428_v2 = vadd.f32 %v2296_v44, %v7286_v8  ;;  %v1832_v10 = vpop.f32.mrf.mxu2  ;;  %v1137_v17 = vpop.f32.mrf.mxu0 }
 0x1c7   : > { %v7430_v13 = vadd.f32 %v1832_v10, %v1403_v53  ;;  %v1405_v62 = vpop.f32.mrf.mxu1 }
 0x1c8   : > { %v2496_v14 = vmul.f32 %v7195_v27, %v2428_v2  ;;  %v1406_v32 = vadd.f32 %v1405_v62, %v1137_v17  ;;  %v5694_v62 = vld [vmem:[%s6977_s2 + $0x283] ss:$2 sm:$0xff] }
 0x1c9   : > { %5518 = vmatmul.msk.bf16.gmra.mxu0 %vm947_vm1, %v937_v3 }
 0x1ca   : > { %v2564_v6 = vadd.f32 %v7198_v36, %v2496_v14  ;;  %5736 = vmatmul.msk.bf16.gmra.mxu3 %vm947_vm1, %v2125_v5  ;;  %5550 = vmatmul.msk.bf16.gmra.mxu1 %vm947_vm1, %v776_v11  ;;  %v5482_v11 = vld [vmem:[%s6977_s2 + $0x341] ss:$2 sm:$0xff]  ;;  %v5483_v14 = vld [vmem:[%s6977_s2 + $0x351] ss:$2 sm:$0xff] }
 0x1cb   : > { %5646 = vmatmul.msk.bf16.gmra.mxu2 %vm947_vm1, %v1637_v63  ;;  %v5695_v63 = vld [vmem:[%s6977_s2 + $0x293] ss:$2 sm:$0xff] }
 0x1cc   : > { %v2628_v8 = vmax.f32 %v2564_v6, 0.0  ;;  %v5418_v6 = vld [vmem:[%s6977_s2 + $0x340] ss:$2 sm:$0xff] }
 0x1cd   : > { %v2299_v49 = vpop.f32.mrf.mxu3 }
 0x1ce   : > { %2693 = vst.msk [vmem:[#allocation2 + $0x98] sm:$0xff] %vm2673_vm2, %v2628_v8  ;;  %v2429_v15 = vadd.f32 %v2299_v49, %v7296_v19  ;;  %v1835_v18 = vpop.f32.mrf.mxu2  ;;  %v1139_v23 = vpop.f32.mrf.mxu0  ;;  %v5419_v8 = vld [vmem:[%s6977_s2 + $0x350] ss:$2 sm:$0xff] }
 0x1cf   : > { %v7440_v9 = vadd.f32 %v1835_v18, %v1406_v32  ;;  %v1407_v24 = vpop.f32.mrf.mxu1  ;;  %v5610_v49 = vld [vmem:[%s6977_s2 + $0x342] ss:$2 sm:$0xff] }
 0x1d0   : > { %v2497_v25 = vmul.f32 %v7195_v27, %v2429_v15  ;;  %v1408_v30 = vadd.f32 %v1407_v24, %v1139_v23  ;;  %v5611_v15 = vld [vmem:[%s6977_s2 + $0x352] ss:$2 sm:$0xff]  ;;  %v939_v23 = vpack.c.bf16 %v5483_v14, %v5482_v11 }
 0x1d1   : > { %v1639_v20 = vpack.c.bf16 %v5611_v15, %v5610_v49  ;;  %v7514_v15 = vld [vmem:[#allocation8] ss:$0 sm:$0xff] }
 0x1d2   : > { %v2565_v21 = vadd.f32 %v7198_v36, %v2497_v25  ;;  %v2127_v25 = vpack.c.bf16 %v5695_v63, %v5694_v62 }
 0x1d4   : > { %v2629_v35 = vmax.f32 %v2565_v21, 0.0  ;;  %v778_v21 = vpack.c.bf16 %v5419_v8, %v5418_v6 }
 0x1d5   : > { %v2301_v19 = vpop.f32.mrf.mxu3 }
 0x1d6   : > { %2694 = vst.msk [vmem:[#allocation2 + $0xa0] sm:$0xff] %vm2673_vm2, %v2629_v35  ;;  %v2430_v43 = vadd.f32 %v2301_v19, %v7310_v51  ;;  %v1837_v52 = vpop.f32.mrf.mxu2  ;;  %v1142_v53 = vpop.f32.mrf.mxu0 }
 0x1d7   : > { %v7454_v12 = vadd.f32 %v1837_v52, %v1408_v30  ;;  %v1410_v0 = vpop.f32.mrf.mxu1 }
 0x1d8   : > { %v2498_v56 = vmul.f32 %v7195_v27, %v2430_v43  ;;  %v1411_v39 = vadd.f32 %v1410_v0, %v1142_v53  ;;  %v5696_v0 = vld [vmem:[%s6977_s2 + $0x2a3] ss:$2 sm:$0xff] }
 0x1d9   : > { %5519 = vmatmul.msk.bf16.gmra.mxu0 %vm947_vm1, %v938_v45 }
 0x1da   : > { %v2566_v41 = vadd.f32 %v7198_v36, %v2498_v56  ;;  %5737 = vmatmul.msk.bf16.gmra.mxu3 %vm947_vm1, %v2126_v48  ;;  %5551 = vmatmul.msk.bf16.gmra.mxu1 %vm947_vm1, %v777_v54  ;;  %v5484_v54 = vld [vmem:[%s6977_s2 + $0x361] ss:$2 sm:$0xff]  ;;  %v5485_v56 = vld [vmem:[%s6977_s2 + $0x371] ss:$2 sm:$0xff] }
 0x1db   : > { %5647 = vmatmul.msk.bf16.gmra.mxu2 %vm947_vm1, %v1638_v60  ;;  %v5697_v60 = vld [vmem:[%s6977_s2 + $0x2b3] ss:$2 sm:$0xff] }
 0x1dc   : > { %v2630_v51 = vmax.f32 %v2566_v41, 0.0  ;;  %v5420_v41 = vld [vmem:[%s6977_s2 + $0x360] ss:$2 sm:$0xff] }
 0x1dd   : > { %v2304_v46 = vpop.f32.mrf.mxu3 }
 0x1de   : > { %2695 = vst.msk [vmem:[#allocation2 + $0xa8] sm:$0xff] %vm2673_vm2, %v2630_v51  ;;  %v2431_v44 = vadd.f32 %v2304_v46, %v7320_v59  ;;  %v1840_v58 = vpop.f32.mrf.mxu2  ;;  %v1144_v1 = vpop.f32.mrf.mxu0  ;;  %v5421_v51 = vld [vmem:[%s6977_s2 + $0x370] ss:$2 sm:$0xff] }
 0x1df   : > { %v7464_v2 = vadd.f32 %v1840_v58, %v1411_v39  ;;  %v1412_v5 = vpop.f32.mrf.mxu1  ;;  %v5612_v46 = vld [vmem:[%s6977_s2 + $0x362] ss:$2 sm:$0xff] }
 0x1e0   : > { %v2499_v3 = vmul.f32 %v7195_v27, %v2431_v44  ;;  %v1413_v10 = vadd.f32 %v1412_v5, %v1144_v1  ;;  %v5613_v44 = vld [vmem:[%s6977_s2 + $0x372] ss:$2 sm:$0xff]  ;;  %v940_v1 = vpack.c.bf16 %v5485_v56, %v5484_v54 }
 0x1e1   : > { %v1640_v63 = vpack.c.bf16 %v5613_v44, %v5612_v46 }
 0x1e2   : > { %v2567_v17 = vadd.f32 %v7198_v36, %v2499_v3  ;;  %v2128_v3 = vpack.c.bf16 %v5697_v60, %v5696_v0 }
 0x1e4   : > { %v2631_v32 = vmax.f32 %v2567_v17, 0.0  ;;  %v779_v17 = vpack.c.bf16 %v5421_v51, %v5420_v41 }
 0x1e5   : > { %v2306_v59 = vpop.f32.mrf.mxu3 }
 0x1e6   : > { %2696 = vst.msk [vmem:[#allocation2 + $0xb0] sm:$0xff] %vm2673_vm2, %v2631_v32  ;;  %v2432_v18 = vadd.f32 %v2306_v59, %v7334_v28  ;;  %v1842_v24 = vpop.f32.mrf.mxu2  ;;  %v1147_v30 = vpop.f32.mrf.mxu0 }
 0x1e7   : > { %v7478_v31 = vadd.f32 %v1842_v24, %v1413_v10  ;;  %v1415_v29 = vpop.f32.mrf.mxu1  ;;  %v7517_v24 = vld [vmem:[#allocation10] ss:$0 sm:$0xff] }
 0x1e8   : > { %v2500_v4 = vmul.f32 %v7195_v27, %v2432_v18  ;;  %v1416_v35 = vadd.f32 %v1415_v29, %v1147_v30  ;;  %v5699_v29 = vld [vmem:[%s6977_s2 + $0x2d3] ss:$2 sm:$0xff] }
 0x1e9   : > { %5520 = vmatmul.msk.bf16.gmra.mxu0 %vm947_vm1, %v939_v23 }
 0x1ea   : > { %v2568_v26 = vadd.f32 %v7198_v36, %v2500_v4  ;;  %5738 = vmatmul.msk.bf16.gmra.mxu3 %vm947_vm1, %v2127_v25  ;;  %5552 = vmatmul.msk.bf16.gmra.mxu1 %vm947_vm1, %v778_v21  ;;  %v5486_v21 = vld [vmem:[%s6977_s2 + $0x381] ss:$2 sm:$0xff]  ;;  %v5487_v4 = vld [vmem:[%s6977_s2 + $0x391] ss:$2 sm:$0xff] }
 0x1eb   : > { %5648 = vmatmul.msk.bf16.gmra.mxu2 %vm947_vm1, %v1639_v20 }
 0x1ec   : > { %v2632_v28 = vmax.f32 %v2568_v26, 0.0  ;;  %v5423_v26 = vld [vmem:[%s6977_s2 + $0x390] ss:$2 sm:$0xff] }
 0x1ed   : > { %v2309_v40 = vpop.f32.mrf.mxu3 }
 0x1ee   : > { %2697 = vst.msk [vmem:[#allocation2 + $0xb8] sm:$0xff] %vm2673_vm2, %v2632_v28  ;;  %v2433_v19 = vadd.f32 %v2309_v40, %v7344_v42  ;;  %v1845_v33 = vpop.f32.mrf.mxu2  ;;  %v1149_v38 = vpop.f32.mrf.mxu0  ;;  %v5614_v40 = vld [vmem:[%s6977_s2 + $0x382] ss:$2 sm:$0xff] }
 0x1ef   : > { %v7488_v43 = vadd.f32 %v1845_v33, %v1416_v35  ;;  %v1417_v48 = vpop.f32.mrf.mxu1  ;;  %v5422_v35 = vld [vmem:[%s6977_s2 + $0x380] ss:$2 sm:$0xff] }
 0x1f0   : > { %v2501_v45 = vmul.f32 %v7195_v27, %v2433_v19  ;;  %v1418_v52 = vadd.f32 %v1417_v48, %v1149_v38  ;;  %v5615_v19 = vld [vmem:[%s6977_s2 + $0x392] ss:$2 sm:$0xff]  ;;  %v941_v38 = vpack.c.bf16 %v5487_v4, %v5486_v21  ;;  %v780_v54 = vpack.c.bf16 %v5423_v26, %v5422_v35 }
 0x1f1   : > { %v6159_v48 = vld [vmem:[#allocation16 + $0x48] sm:$0xff] }
 0x1f2   : > { %v2569_v53 = vadd.f32 %v7198_v36, %v2501_v45  ;;  %3937 = vmatpush.bf16.msra.mxu3 %v6159_v48 }
 0x1f4   : > { %v2633_v39 = vmax.f32 %v2569_v53, 0.0 }
 0x1f5   : > { %v2311_v42 = vpop.f32.mrf.mxu3 }
 0x1f6   : > { %2698 = vst.msk [vmem:[#allocation2 + $0xc0] sm:$0xff] %vm2673_vm2, %v2633_v39  ;;  %v2434_v58 = vadd.f32 %v2311_v42, %v7358_v7  ;;  %v1847_v5 = vpop.f32.mrf.mxu2  ;;  %v1152_v10 = vpop.f32.mrf.mxu0  ;;  %v1641_v39 = vpack.c.bf16 %v5615_v19, %v5614_v40 }
 0x1f7   : > { %v7502_v11 = vadd.f32 %v1847_v5, %v1418_v52  ;;  %v1420_v62 = vpop.f32.mrf.mxu1 }
 0x1f8   : > { %v2502_v14 = vmul.f32 %v7195_v27, %v2434_v58  ;;  %v1421_v32 = vadd.f32 %v1420_v62, %v1152_v10  ;;  %v5489_v62 = vld [vmem:[%s6977_s2 + $0x3b1] ss:$2 sm:$0xff] }
 0x1f9   : > { %5521 = vmatmul.msk.bf16.gmra.mxu0 %vm947_vm1, %v940_v1 }
 0x1fa   : > { %v2570_v6 = vadd.f32 %v7198_v36, %v2502_v14  ;;  %5739 = vmatmul.msk.bf16.gmra.mxu3 %vm947_vm1, %v2128_v3  ;;  %5553 = vmatmul.msk.bf16.gmra.mxu1 %vm947_vm1, %v779_v17  ;;  %v5488_v14 = vld [vmem:[%s6977_s2 + $0x3a1] ss:$2 sm:$0xff] }
 0x1fb   : > { %5649 = vmatmul.msk.bf16.gmra.mxu2 %vm947_vm1, %v1640_v63  ;;  %v5700_v63 = vld [vmem:[%s6977_s2 + $0x2e3] ss:$2 sm:$0xff] }
 0x1fc   : > { %v2634_v7 = vmax.f32 %v2570_v6, 0.0 }
 0x1fd   : > { %v2314_v8 = vpop.f32.mrf.mxu3 }
 0x1fe   : > { %2699 = vst.msk [vmem:[#allocation2 + $0xc8] sm:$0xff] %vm2673_vm2, %v2634_v7  ;;  %v2435_v27 = vadd.f32 %v2314_v8, %v7368_v16  ;;  %v1850_v36 = vpop.f32.mrf.mxu2  ;;  %v1154_v59 = vpop.f32.mrf.mxu0  ;;  %v5698_v16 = vld [vmem:[%s6977_s2 + $0x2c3] ss:$2 sm:$0xff]  ;;  %v5424_v7 = vld [vmem:[%s6977_s2 + $0x3a0] ss:$2 sm:$0xff] }
 0x1ff   : > { %v7512_v49 = vadd.f32 %v1850_v36, %v1421_v32  ;;  %v1422_v23 = vpop.f32.mrf.mxu1  ;;  %v2129_v45 = vpack.c.bf16 %v5699_v29, %v5698_v16  ;;  %v5701_v32 = vld [vmem:[%s6977_s2 + $0x2f3] ss:$2 sm:$0xff]  ;;  %v5425_v8 = vld [vmem:[%s6977_s2 + $0x3b0] ss:$2 sm:$0xff] }
 0x200   : > { %v2503_v18 = vmul.f32 %v7514_v15, %v2435_v27  ;;  %v1423_v25 = vadd.f32 %v1422_v23, %v1154_v59  ;;  %v5616_v27 = vld [vmem:[%s6977_s2 + $0x3a2] ss:$2 sm:$0xff]  ;;  %v5617_v36 = vld [vmem:[%s6977_s2 + $0x3b2] ss:$2 sm:$0xff]  ;;  %v2130_v23 = vpack.c.bf16 %v5701_v32, %v5700_v63  ;;  %v781_v21 = vpack.c.bf16 %v5425_v8, %v5424_v7 }
 0x201   : > { %v3238_v32 = vld [vmem:[#allocation2 + $0x2] ss:$2 sm:$0xff] }
 0x202   : > { %v2571_v30 = vadd.f32 %v7517_v24, %v2503_v18  ;;  %v942_v18 = vpack.c.bf16 %v5489_v62, %v5488_v14  ;;  %v2739_v14 = vld [vmem:[#allocation2] ss:$2 sm:$0xff] }
 0x204   : > { %v2635_v20 = vmax.f32 %v2571_v30, 0.0 }
 0x205   : > { %v2316_v28 = vpop.f32.mrf.mxu3 }
 0x206   : > { %2700 = vst.msk [vmem:[#allocation2 + $0xd0] sm:$0xff] %vm2673_vm2, %v2635_v20  ;;  %v2436_v33 = vadd.f32 %v2316_v28, %v7382_v50  ;;  %v1852_v52 = vpop.f32.mrf.mxu2  ;;  %v1157_v53 = vpop.f32.mrf.mxu0  ;;  %v1642_v20 = vpack.c.bf16 %v5617_v36, %v5616_v27 }
 0x207   : > { %v7530_v56 = vadd.f32 %v1852_v52, %v1423_v25  ;;  %v1425_v60 = vpop.f32.mrf.mxu1 }
 0x208   : > { %v2504_v0 = vmul.f32 %v7514_v15, %v2436_v33  ;;  %v1426_v41 = vadd.f32 %v1425_v60, %v1157_v53 }
 0x209   : > { %5522 = vmatmul.msk.bf16.gmra.mxu0 %vm947_vm1, %v941_v38 }
 0x20a   : > { %v2572_v51 = vadd.f32 %v7517_v24, %v2504_v0  ;;  %5740 = vmatmul.msk.bf16.gmra.mxu3 %vm947_vm1, %v2129_v45  ;;  %5554 = vmatmul.msk.bf16.gmra.mxu1 %vm947_vm1, %v780_v54  ;;  %v5702_v54 = vld [vmem:[%s6977_s2 + $0x303] ss:$2 sm:$0xff]  ;;  %v5703_v0 = vld [vmem:[%s6977_s2 + $0x313] ss:$2 sm:$0xff] }
 0x20b   : > { %5650 = vmatmul.msk.bf16.gmra.mxu2 %vm947_vm1, %v1641_v39 }
 0x20c   : > { %v2636_v50 = vmax.f32 %v2572_v51, 0.0 }
 0x20d   : > { %v2319_v42 = vpop.f32.mrf.mxu3 }
 0x20e   : > { %2701 = vst.msk [vmem:[#allocation2 + $0xd8] sm:$0xff] %vm2673_vm2, %v2636_v50  ;;  %v2437_v46 = vadd.f32 %v2319_v42, %v7392_v57  ;;  %v1855_v44 = vpop.f32.mrf.mxu2  ;;  %v1159_v58 = vpop.f32.mrf.mxu0  ;;  %v2741_v50 = vld [vmem:[#allocation2 + $0x10] ss:$2 sm:$0xff] }
 0x20f   : > { %v7540_v1 = vadd.f32 %v1855_v44, %v1426_v41  ;;  %v1427_v5 = vpop.f32.mrf.mxu1  ;;  %v2829_v41 = vld [vmem:[#allocation2 + $0x11] ss:$2 sm:$0xff]  ;;  %v2827_v44 = vld [vmem:[#allocation2 + $0x1] ss:$2 sm:$0xff]  ;;  %v2802_v63 = vpack.c.bf16 %v2741_v50, %v2739_v14 }
 0x210   : > { %v2505_v3 = vmul.f32 %v7514_v15, %v2437_v46  ;;  %v1428_v10 = vadd.f32 %v1427_v5, %v1159_v58  ;;  %v3240_v58 = vld [vmem:[#allocation2 + $0x12] ss:$2 sm:$0xff]  ;;  %v5706_v14 = vld [vmem:[%s6977_s2 + $0x343] ss:$2 sm:$0xff] }
 0x212   : > { %v2573_v17 = vadd.f32 %v7517_v24, %v2505_v3 }
 0x214   : > { %v2637_v6 = vmax.f32 %v2573_v17, 0.0  ;;  %v2890_v17 = vpack.c.bf16 %v2829_v41, %v2827_v44 }
 0x215   : > { %v2321_v57 = vpop.f32.mrf.mxu3 }
 0x216   : > { %2702 = vst.msk [vmem:[#allocation2 + $0xe0] sm:$0xff] %vm2673_vm2, %v2637_v6  ;;  %v2438_v59 = vadd.f32 %v2321_v57, %v7406_v34  ;;  %v1857_v25 = vpop.f32.mrf.mxu2  ;;  %v1162_v30 = vpop.f32.mrf.mxu0 }
 0x217   : > { %v7554_v4 = vadd.f32 %v1857_v25, %v1428_v10  ;;  %v1430_v29 = vpop.f32.mrf.mxu1 }
 0x218   : > { %v2506_v16 = vmul.f32 %v7514_v15, %v2438_v59  ;;  %v1431_v35 = vadd.f32 %v1430_v29, %v1162_v30 }
 0x219   : > { %5523 = vmatmul.msk.bf16.gmra.mxu0 %vm947_vm1, %v942_v18 }
 0x21a   : > { %v2574_v26 = vadd.f32 %v7517_v24, %v2506_v16  ;;  %5741 = vmatmul.msk.bf16.gmra.mxu3 %vm947_vm1, %v2130_v23  ;;  %5555 = vmatmul.msk.bf16.gmra.mxu1 %vm947_vm1, %v781_v21  ;;  %v5704_v21 = vld [vmem:[%s6977_s2 + $0x323] ss:$2 sm:$0xff]  ;;  %v5705_v16 = vld [vmem:[%s6977_s2 + $0x333] ss:$2 sm:$0xff] }
 0x21b   : > { %5651 = vmatmul.msk.bf16.gmra.mxu2 %vm947_vm1, %v1642_v20 }
 0x21c   : > { %v2638_v34 = vmax.f32 %v2574_v26, 0.0 }
 0x21d   : > { %v2324_v28 = vpop.f32.mrf.mxu3 }
 0x21e   : > { %2703 = vst.msk [vmem:[#allocation2 + $0xe8] sm:$0xff] %vm2673_vm2, %v2638_v34  ;;  %v2439_v40 = vadd.f32 %v2324_v28, %v7416_v47  ;;  %v1860_v19 = vpop.f32.mrf.mxu2  ;;  %v1164_v33 = vpop.f32.mrf.mxu0  ;;  %v2131_v47 = vpack.c.bf16 %v5703_v0, %v5702_v54  ;;  %v2745_v34 = vld [vmem:[#allocation2 + $0x30] ss:$2 sm:$0xff]  ;;  %v2743_v54 = vld [vmem:[#allocation2 + $0x20] ss:$2 sm:$0xff] }
 0x21f   : > { %v7564_v38 = vadd.f32 %v1860_v19, %v1431_v35  ;;  %v1432_v48 = vpop.f32.mrf.mxu1  ;;  %v2833_v35 = vld [vmem:[#allocation2 + $0x31] ss:$2 sm:$0xff]  ;;  %v2831_v19 = vld [vmem:[#allocation2 + $0x21] ss:$2 sm:$0xff] }
 0x220   : > { %v2507_v45 = vmul.f32 %v7514_v15, %v2439_v40  ;;  %v1433_v52 = vadd.f32 %v1432_v48, %v1164_v33  ;;  %v3244_v33 = vld [vmem:[#allocation2 + $0x32] ss:$2 sm:$0xff] }
 0x222   : > { %v2575_v53 = vadd.f32 %v7517_v24, %v2507_v45 }
 0x224   : > { %v2639_v60 = vmax.f32 %v2575_v53, 0.0  ;;  %v2891_v53 = vpack.c.bf16 %v2833_v35, %v2831_v19 }
 0x225   : > { %v2326_v39 = vpop.f32.mrf.mxu3 }
 0x226   : > { %2704 = vst.msk [vmem:[#allocation2 + $0xf0] sm:$0xff] %vm2673_vm2, %v2639_v60  ;;  %v2440_v51 = vadd.f32 %v2326_v39, %v7430_v13  ;;  %v1862_v42 = vpop.f32.mrf.mxu2  ;;  %v1167_v46 = vpop.f32.mrf.mxu0  ;;  %v3301_v13 = vpack.c.bf16 %v3240_v58, %v3238_v32  ;;  %v2803_v60 = vpack.c.bf16 %v2745_v34, %v2743_v54  ;;  %v3242_v39 = vld [vmem:[#allocation2 + $0x22] ss:$2 sm:$0xff]  ;;  %v5708_v54 = vld [vmem:[%s6977_s2 + $0x363] ss:$2 sm:$0xff] }
 0x227   : > { %v7572_v3 = vadd.f32 %v1862_v42, %v1433_v52  ;;  %v1435_v10 = vpop.f32.mrf.mxu1 }
 0x228   : > { %v2508_v5 = vmul.f32 %v7514_v15, %v2440_v51  ;;  %v1436_v62 = vadd.f32 %v1435_v10, %v1167_v46 }
 0x229   : > { %5766 = vmatmul.msk.bf16.vlgmr.msrb.gmra.mxu0 %vm2673_vm2, %v2890_v17 }
 0x22a   : > { %v2576_v6 = vadd.f32 %v7517_v24, %v2508_v5  ;;  %5742 = vmatmul.msk.bf16.gmra.mxu3 %vm947_vm1, %v2131_v47  ;;  %5798 = vmatmul.msk.bf16.vlgmr.msrb.gmra.mxu1 %vm2673_vm2, %v2802_v63 }
 0x22b   : > { %5830 = vmatmul.msk.bf16.vlgmr.msrb.gmra.mxu2 %vm2673_vm2, %v3301_v13 }
 0x22c   : > { %v2640_v7 = vmax.f32 %v2576_v6, 0.0  ;;  %v2837_v6 = vld [vmem:[#allocation2 + $0x51] ss:$2 sm:$0xff] }
 0x22d   : > { %v2329_v8 = vpop.f32.mrf.mxu3 }
 0x22e   : > { %2705 = vst.msk [vmem:[#allocation2 + $0xf8] sm:$0xff] %vm2673_vm2, %v2640_v7  ;;  %v2441_v57 = vadd.f32 %v2329_v8, %v7440_v9  ;;  %v1865_v27 = vpop.f32.mrf.mxu2  ;;  %v1169_v36 = vpop.f32.mrf.mxu0  ;;  %v2132_v9 = vpack.c.bf16 %v5705_v16, %v5704_v21  ;;  %v2749_v7 = vld [vmem:[#allocation2 + $0x50] ss:$2 sm:$0xff]  ;;  %v2747_v21 = vld [vmem:[#allocation2 + $0x40] ss:$2 sm:$0xff] }
 0x22f   : > { %v7582_v59 = vadd.f32 %v1865_v27, %v1436_v62  ;;  %v1437_v23 = vpop.f32.mrf.mxu1  ;;  %v5707_v62 = vld [vmem:[%s6977_s2 + $0x353] ss:$2 sm:$0xff] }
 0x230   : > { %v2509_v18 = vmul.f32 %v7514_v15, %v2441_v57  ;;  %v1438_v25 = vadd.f32 %v1437_v23, %v1169_v36  ;;  %v2835_v27 = vld [vmem:[#allocation2 + $0x41] ss:$2 sm:$0xff]  ;;  %v3248_v36 = vld [vmem:[#allocation2 + $0x52] ss:$2 sm:$0xff] }
 0x232   : > { %v2577_v30 = vadd.f32 %v7517_v24, %v2509_v18 }
 0x234   : > { %v2641_v29 = vmax.f32 %v2577_v30, 0.0  ;;  %v2892_v30 = vpack.c.bf16 %v2837_v6, %v2835_v27 }
 0x235   : > { %v2331_v20 = vpop.f32.mrf.mxu3 }
 0x236   : > { %2706 = vst.msk [vmem:[#allocation2 + $0x100] sm:$0xff] %vm2673_vm2, %v2641_v29  ;;  %v2442_v26 = vadd.f32 %v2331_v20, %v7454_v12  ;;  %v1867_v28 = vpop.f32.mrf.mxu2  ;;  %v1172_v40 = vpop.f32.mrf.mxu0  ;;  %v3302_v12 = vpack.c.bf16 %v3244_v33, %v3242_v39  ;;  %v2804_v29 = vpack.c.bf16 %v2749_v7, %v2747_v21  ;;  %v3246_v20 = vld [vmem:[#allocation2 + $0x42] ss:$2 sm:$0xff] }
 0x237   : > { %v7590_v45 = vadd.f32 %v1867_v28, %v1438_v25  ;;  %v1440_v52 = vpop.f32.mrf.mxu1 }
 0x238   : > { %v2510_v48 = vmul.f32 %v7514_v15, %v2442_v26  ;;  %v1441_v0 = vadd.f32 %v1440_v52, %v1172_v40 }
 0x239   : > { %5767 = vmatmul.msk.bf16.gmra.mxu0 %vm2673_vm2, %v2891_v53 }
 0x23a   : > { %v2578_v41 = vadd.f32 %v7517_v24, %v2510_v48  ;;  %5743 = vmatmul.msk.bf16.gmra.mxu3 %vm947_vm1, %v2132_v9  ;;  %5799 = vmatmul.msk.bf16.gmra.mxu1 %vm2673_vm2, %v2803_v60 }
 0x23b   : > { %5831 = vmatmul.msk.bf16.gmra.mxu2 %vm2673_vm2, %v3302_v12 }
 0x23c   : > { %v2642_v51 = vmax.f32 %v2578_v41, 0.0  ;;  %v2841_v41 = vld [vmem:[#allocation2 + $0x71] ss:$2 sm:$0xff] }
 0x23d   : > { %v2334_v47 = vpop.f32.mrf.mxu3 }
 0x23e   : > { %2707 = vst.msk [vmem:[#allocation2 + $0x108] sm:$0xff] %vm2673_vm2, %v2642_v51  ;;  %v2443_v50 = vadd.f32 %v2334_v47, %v7464_v2  ;;  %v1870_v42 = vpop.f32.mrf.mxu2  ;;  %v1174_v46 = vpop.f32.mrf.mxu0  ;;  %v2133_v2 = vpack.c.bf16 %v5707_v62, %v5706_v14  ;;  %v2753_v51 = vld [vmem:[#allocation2 + $0x70] ss:$2 sm:$0xff]  ;;  %v2751_v14 = vld [vmem:[#allocation2 + $0x60] ss:$2 sm:$0xff] }
 0x23f   : > { %v7600_v44 = vadd.f32 %v1870_v42, %v1441_v0  ;;  %v1442_v5 = vpop.f32.mrf.mxu1  ;;  %v5709_v0 = vld [vmem:[%s6977_s2 + $0x373] ss:$2 sm:$0xff] }
 0x240   : > { %v2511_v58 = vmul.f32 %v7514_v15, %v2443_v50  ;;  %v1443_v10 = vadd.f32 %v1442_v5, %v1174_v46  ;;  %v2839_v42 = vld [vmem:[#allocation2 + $0x61] ss:$2 sm:$0xff]  ;;  %v3252_v46 = vld [vmem:[#allocation2 + $0x72] ss:$2 sm:$0xff] }
 0x242   : > { %v2579_v17 = vadd.f32 %v7517_v24, %v2511_v58 }
 0x244   : > { %v2643_v63 = vmax.f32 %v2579_v17, 0.0  ;;  %v2893_v17 = vpack.c.bf16 %v2841_v41, %v2839_v42  ;;  %v3254_v41 = vld [vmem:[#allocation2 + $0x82] ss:$2 sm:$0xff] }
 0x245   : > { %v2336_v32 = vpop.f32.mrf.mxu3 }
 0x246   : > { %2708 = vst.msk [vmem:[#allocation2 + $0x110] sm:$0xff] %vm2673_vm2, %v2643_v63  ;;  %v2444_v13 = vadd.f32 %v2336_v32, %v7478_v31  ;;  %v1872_v8 = vpop.f32.mrf.mxu2  ;;  %v1177_v57 = vpop.f32.mrf.mxu0  ;;  %v3303_v31 = vpack.c.bf16 %v3248_v36, %v3246_v20  ;;  %v2805_v63 = vpack.c.bf16 %v2753_v51, %v2751_v14  ;;  %v3250_v32 = vld [vmem:[#allocation2 + $0x62] ss:$2 sm:$0xff] }
 0x247   : > { %v7608_v18 = vadd.f32 %v1872_v8, %v1443_v10  ;;  %v1445_v25 = vpop.f32.mrf.mxu1  ;;  %v6158_v8 = vld [vmem:[#allocation16 + $0x40] sm:$0xff] }
 0x248   : > { %v2512_v23 = vmul.f32 %v7514_v15, %v2444_v13  ;;  %v1446_v16 = vadd.f32 %v1445_v25, %v1177_v57  ;;  %3938 = vmatpush.bf16.msra.mxu3 %v6158_v8 }
 0x249   : > { %5768 = vmatmul.msk.bf16.gmra.mxu0 %vm2673_vm2, %v2892_v30 }
 0x24a   : > { %v2580_v35 = vadd.f32 %v7517_v24, %v2512_v23  ;;  %5744 = vmatmul.msk.bf16.gmra.mxu3 %vm947_vm1, %v2133_v2  ;;  %5800 = vmatmul.msk.bf16.gmra.mxu1 %vm2673_vm2, %v2804_v29  ;;  %v5711_v29 = vld [vmem:[%s6977_s2 + $0x393] ss:$2 sm:$0xff] }
 0x24b   : > { %5832 = vmatmul.msk.bf16.gmra.mxu2 %vm2673_vm2, %v3303_v31  ;;  %v2845_v31 = vld [vmem:[#allocation2 + $0x91] ss:$2 sm:$0xff] }
 0x24c   : > { %v2644_v26 = vmax.f32 %v2580_v35, 0.0 }
 0x24d   : > { %v2339_v9 = vpop.f32.mrf.mxu3 }
 0x24e   : > { %2709 = vst.msk [vmem:[#allocation2 + $0x118] sm:$0xff] %vm2673_vm2, %v2644_v26  ;;  %v2445_v34 = vadd.f32 %v2339_v9, %v7488_v43  ;;  %v1875_v28 = vpop.f32.mrf.mxu2  ;;  %v1179_v40 = vpop.f32.mrf.mxu0  ;;  %v2134_v43 = vpack.c.bf16 %v5709_v0, %v5708_v54  ;;  %v2757_v9 = vld [vmem:[#allocation2 + $0x90] ss:$2 sm:$0xff]  ;;  %v2755_v0 = vld [vmem:[#allocation2 + $0x80] ss:$2 sm:$0xff] }
 0x24f   : > { %v7618_v19 = vadd.f32 %v1875_v28, %v1446_v16  ;;  %v1447_v48 = vpop.f32.mrf.mxu1  ;;  %v5710_v16 = vld [vmem:[%s6977_s2 + $0x383] ss:$2 sm:$0xff] }
 0x250   : > { %v2513_v33 = vmul.f32 %v7514_v15, %v2445_v34  ;;  %v1448_v52 = vadd.f32 %v1447_v48, %v1179_v40  ;;  %v2135_v26 = vpack.c.bf16 %v5711_v29, %v5710_v16  ;;  %v2843_v40 = vld [vmem:[#allocation2 + $0x81] ss:$2 sm:$0xff]  ;;  %v2759_v16 = vld [vmem:[#allocation2 + $0xa0] ss:$2 sm:$0xff] }
 0x251   : > { %v2894_v54 = vpack.c.bf16 %v2845_v31, %v2843_v40 }
 0x252   : > { %v2581_v53 = vadd.f32 %v7517_v24, %v2513_v33  ;;  %v3256_v33 = vld [vmem:[#allocation2 + $0x92] ss:$2 sm:$0xff] }
 0x254   : > { %v2645_v60 = vmax.f32 %v2581_v53, 0.0 }
 0x255   : > { %v2341_v39 = vpop.f32.mrf.mxu3 }
 0x256   : > { %2710 = vst.msk [vmem:[#allocation2 + $0x120] sm:$0xff] %vm2673_vm2, %v2645_v60  ;;  %v2446_v12 = vadd.f32 %v2341_v39, %v7502_v11  ;;  %v1877_v47 = vpop.f32.mrf.mxu2  ;;  %v1182_v50 = vpop.f32.mrf.mxu0  ;;  %v3304_v11 = vpack.c.bf16 %v3252_v46, %v3250_v32  ;;  %v2806_v39 = vpack.c.bf16 %v2757_v9, %v2755_v0  ;;  %v5714_v0 = vld [vmem:[%s6977_s2 + $0x3c3] ss:$2 sm:$0xff] }
 0x257   : > { %v7626_v58 = vadd.f32 %v1877_v47, %v1448_v52  ;;  %v1450_v10 = vpop.f32.mrf.mxu1 }
 0x258   : > { %v2514_v5 = vmul.f32 %v7514_v15, %v2446_v12  ;;  %v1451_v62 = vadd.f32 %v1450_v10, %v1182_v50 }
 0x259   : > { %5769 = vmatmul.msk.bf16.gmra.mxu0 %vm2673_vm2, %v2893_v17 }
 0x25a   : > { %v2582_v6 = vadd.f32 %v7517_v24, %v2514_v5  ;;  %5745 = vmatmul.msk.bf16.gmra.mxu3 %vm947_vm1, %v2134_v43  ;;  %5801 = vmatmul.msk.bf16.gmra.mxu1 %vm2673_vm2, %v2805_v63  ;;  %v5713_v63 = vld [vmem:[%s6977_s2 + $0x3b3] ss:$2 sm:$0xff] }
 0x25b   : > { %5833 = vmatmul.msk.bf16.gmra.mxu2 %vm2673_vm2, %v3304_v11  ;;  %v2849_v11 = vld [vmem:[#allocation2 + $0xb1] ss:$2 sm:$0xff] }
 0x25c   : > { %v2646_v13 = vmax.f32 %v2582_v6, 0.0 }
 0x25d   : > { %v2344_v2 = vpop.f32.mrf.mxu3 }
 0x25e   : > { %2711 = vst.msk [vmem:[#allocation2 + $0x128] sm:$0xff] %vm2673_vm2, %v2646_v13  ;;  %v2447_v7 = vadd.f32 %v2344_v2, %v7512_v49  ;;  %v1880_v57 = vpop.f32.mrf.mxu2  ;;  %v1184_v27 = vpop.f32.mrf.mxu0  ;;  %v2761_v2 = vld [vmem:[#allocation2 + $0xb0] ss:$2 sm:$0xff] }
 0x25f   : > { %v7636_v36 = vadd.f32 %v1880_v57, %v1451_v62  ;;  %v1452_v25 = vpop.f32.mrf.mxu1  ;;  %v5712_v62 = vld [vmem:[%s6977_s2 + $0x3a3] ss:$2 sm:$0xff] }
 0x260   : > { %v2515_v23 = vmul.f32 %v7514_v15, %v2447_v7  ;;  %v1453_v30 = vadd.f32 %v1452_v25, %v1184_v27  ;;  %v2847_v57 = vld [vmem:[#allocation2 + $0xa1] ss:$2 sm:$0xff]  ;;  %v3260_v27 = vld [vmem:[#allocation2 + $0xb2] ss:$2 sm:$0xff] }
 0x262   : > { %v2583_v21 = vadd.f32 %v7517_v24, %v2515_v23 }
 0x264   : > { %v2647_v20 = vmax.f32 %v2583_v21, 0.0  ;;  %v2895_v21 = vpack.c.bf16 %v2849_v11, %v2847_v57 }
 0x265   : > { %v2346_v35 = vpop.f32.mrf.mxu3 }
 0x266   : > { %2712 = vst.msk [vmem:[#allocation2 + $0x130] sm:$0xff] %vm2673_vm2, %v2647_v20  ;;  %v2448_v49 = vadd.f32 %v2346_v35, %v7530_v56  ;;  %v1882_v34 = vpop.f32.mrf.mxu2  ;;  %v1187_v28 = vpop.f32.mrf.mxu0  ;;  %v3305_v56 = vpack.c.bf16 %v3256_v33, %v3254_v41  ;;  %v2807_v20 = vpack.c.bf16 %v2761_v2, %v2759_v16  ;;  %v3258_v35 = vld [vmem:[#allocation2 + $0xa2] ss:$2 sm:$0xff]  ;;  %v5716_v16 = vld [vmem:[%s6977_s2 + $0x3e3] ss:$2 sm:$0xff] }
 0x267   : > { %v7644_v48 = vadd.f32 %v1882_v34, %v1453_v30  ;;  %v1455_v53 = vpop.f32.mrf.mxu1 }
 0x268   : > { %v2516_v52 = vmul.f32 %v7514_v15, %v2448_v49  ;;  %v1456_v60 = vadd.f32 %v1455_v53, %v1187_v28 }
 0x269   : > { %5770 = vmatmul.msk.bf16.gmra.mxu0 %vm2673_vm2, %v2894_v54 }
 0x26a   : > { %v2584_v12 = vadd.f32 %v7517_v24, %v2516_v52  ;;  %5746 = vmatmul.msk.bf16.gmra.mxu3 %vm947_vm1, %v2135_v26  ;;  %5802 = vmatmul.msk.bf16.gmra.mxu1 %vm2673_vm2, %v2806_v39 }
 0x26b   : > { %5834 = vmatmul.msk.bf16.gmra.mxu2 %vm2673_vm2, %v3305_v56 }
 0x26c   : > { %v2648_v43 = vmax.f32 %v2584_v12, 0.0  ;;  %v2853_v12 = vld [vmem:[#allocation2 + $0xd1] ss:$2 sm:$0xff] }
 0x26d   : > { %v2349_v51 = vpop.f32.mrf.mxu3 }
 0x26e   : > { %2713 = vst.msk [vmem:[#allocation2 + $0x138] sm:$0xff] %vm2673_vm2, %v2648_v43  ;;  %v2449_v47 = vadd.f32 %v2349_v51, %v7540_v1  ;;  %v1885_v50 = vpop.f32.mrf.mxu2  ;;  %v1189_v42 = vpop.f32.mrf.mxu0  ;;  %v2136_v1 = vpack.c.bf16 %v5713_v63, %v5712_v62  ;;  %v2765_v43 = vld [vmem:[#allocation2 + $0xd0] ss:$2 sm:$0xff]  ;;  %v2763_v62 = vld [vmem:[#allocation2 + $0xc0] ss:$2 sm:$0xff] }
 0x26f   : > { %v7654_v46 = vadd.f32 %v1885_v50, %v1456_v60  ;;  %v1457_v10 = vpop.f32.mrf.mxu1  ;;  %v5715_v60 = vld [vmem:[%s6977_s2 + $0x3d3] ss:$2 sm:$0xff] }
 0x270   : > { %v2517_v5 = vmul.f32 %v7514_v15, %v2449_v47  ;;  %v1458_v17 = vadd.f32 %v1457_v10, %v1189_v42  ;;  %v2851_v50 = vld [vmem:[#allocation2 + $0xc1] ss:$2 sm:$0xff]  ;;  %v3264_v42 = vld [vmem:[#allocation2 + $0xd2] ss:$2 sm:$0xff] }
 0x272   : > { %v2585_v14 = vadd.f32 %v7517_v24, %v2517_v5 }
 0x274   : > { %v2649_v32 = vmax.f32 %v2585_v14, 0.0  ;;  %v2896_v14 = vpack.c.bf16 %v2853_v12, %v2851_v50 }
 0x275   : > { %v2351_v6 = vpop.f32.mrf.mxu3 }
 0x276   : > { %2714 = vst.msk [vmem:[#allocation2 + $0x140] sm:$0xff] %vm2673_vm2, %v2649_v32  ;;  %v2450_v13 = vadd.f32 %v2351_v6, %v7554_v4  ;;  %v1887_v7 = vpop.f32.mrf.mxu2  ;;  %v1192_v8 = vpop.f32.mrf.mxu0  ;;  %v3306_v4 = vpack.c.bf16 %v3260_v27, %v3258_v35  ;;  %v2808_v32 = vpack.c.bf16 %v2765_v43, %v2763_v62  ;;  %v3262_v6 = vld [vmem:[#allocation2 + $0xc2] ss:$2 sm:$0xff] }
 0x277   : > { %v7662_v23 = vadd.f32 %v1887_v7, %v1458_v17  ;;  %v1460_v30 = vpop.f32.mrf.mxu1 }
 0x278   : > { %v2518_v25 = vmul.f32 %v7514_v15, %v2450_v13  ;;  %v1461_v29 = vadd.f32 %v1460_v30, %v1192_v8 }
 0x279   : > { %5771 = vmatmul.msk.bf16.gmra.mxu0 %vm2673_vm2, %v2895_v21 }
 0x27a   : > { %v2586_v31 = vadd.f32 %v7517_v24, %v2518_v25  ;;  %5747 = vmatmul.msk.bf16.gmra.mxu3 %vm947_vm1, %v2136_v1  ;;  %5803 = vmatmul.msk.bf16.gmra.mxu1 %vm2673_vm2, %v2807_v20 }
 0x27b   : > { %5835 = vmatmul.msk.bf16.gmra.mxu2 %vm2673_vm2, %v3306_v4 }
 0x27c   : > { %v2650_v49 = vmax.f32 %v2586_v31, 0.0  ;;  %v2857_v31 = vld [vmem:[#allocation2 + $0xf1] ss:$2 sm:$0xff] }
 0x27d   : > { %v2354_v26 = vpop.f32.mrf.mxu3 }
 0x27e   : > { %2715 = vst.msk [vmem:[#allocation2 + $0x148] sm:$0xff] %vm2673_vm2, %v2650_v49  ;;  %v2451_v9 = vadd.f32 %v2354_v26, %v7564_v38  ;;  %v1890_v34 = vpop.f32.mrf.mxu2  ;;  %v1194_v28 = vpop.f32.mrf.mxu0  ;;  %v2137_v38 = vpack.c.bf16 %v5715_v60, %v5714_v0  ;;  %v2769_v49 = vld [vmem:[#allocation2 + $0xf0] ss:$2 sm:$0xff]  ;;  %v2767_v0 = vld [vmem:[#allocation2 + $0xe0] ss:$2 sm:$0xff] }
 0x27f   : > { %v7672_v40 = vadd.f32 %v1890_v34, %v1461_v29  ;;  %v1462_v52 = vpop.f32.mrf.mxu1  ;;  %v5717_v29 = vld [vmem:[%s6977_s2 + $0x3f3] ss:$2 sm:$0x7f]  ;;  %v2855_v34 = vld [vmem:[#allocation2 + $0xe1] ss:$2 sm:$0xff] }
 0x280   : > { %v2519_v33 = vmul.f32 %v7514_v15, %v2451_v9  ;;  %v1463_v53 = vadd.f32 %v1462_v52, %v1194_v28  ;;  %v3268_v28 = vld [vmem:[#allocation2 + $0xf2] ss:$2 sm:$0xff] }
 0x282   : > { %v2587_v54 = vadd.f32 %v7517_v24, %v2519_v33 }
 0x284   : > { %v2651_v39 = vmax.f32 %v2587_v54, 0.0  ;;  %v2897_v54 = vpack.c.bf16 %v2857_v31, %v2855_v34  ;;  %v7726_v34 = vld [vmem:[#allocation14] ss:$0 sm:$0xff] }
 0x285   : > { %v2356_v41 = vpop.f32.mrf.mxu3 }
 0x286   : > { %2716 = vst.msk [vmem:[#allocation2 + $0x150] sm:$0xff] %vm2673_vm2, %v2651_v39  ;;  %v2452_v56 = vadd.f32 %v2356_v41, %v7572_v3  ;;  %v1892_v51 = vpop.f32.mrf.mxu2  ;;  %v1197_v47 = vpop.f32.mrf.mxu0  ;;  %v3307_v3 = vpack.c.bf16 %v3264_v42, %v3262_v6  ;;  %v2809_v39 = vpack.c.bf16 %v2769_v49, %v2767_v0  ;;  %v3266_v41 = vld [vmem:[#allocation2 + $0xe2] ss:$2 sm:$0xff] }
 0x287   : > { %v7680_v5 = vadd.f32 %v1892_v51, %v1463_v53  ;;  %v1465_v17 = vpop.f32.mrf.mxu1 }
 0x288   : > { %v2520_v10 = vmul.f32 %v7514_v15, %v2452_v56  ;;  %v1466_v63 = vadd.f32 %v1465_v17, %v1197_v47 }
 0x289   : > { %5772 = vmatmul.msk.bf16.gmra.mxu0 %vm2673_vm2, %v2896_v14 }
 0x28a   : > { %v2588_v11 = vadd.f32 %v7517_v24, %v2520_v10  ;;  %5748 = vmatmul.msk.bf16.gmra.mxu3 %vm947_vm1, %v2137_v38  ;;  %5804 = vmatmul.msk.bf16.gmra.mxu1 %vm2673_vm2, %v2808_v32  ;;  %v2861_v32 = vld [vmem:[#allocation2 + $0x111] ss:$2 sm:$0xff] }
 0x28b   : > { %5836 = vmatmul.msk.bf16.gmra.mxu2 %vm2673_vm2, %v3307_v3 }
 0x28c   : > { %v2652_v13 = vmax.f32 %v2588_v11, 0.0  ;;  %v2773_v11 = vld [vmem:[#allocation2 + $0x110] ss:$2 sm:$0xff] }
 0x28d   : > { %v2359_v1 = vpop.f32.mrf.mxu3 }
 0x28e   : > { %2717 = vst.msk [vmem:[#allocation2 + $0x158] sm:$0xff] %vm2673_vm2, %v2652_v13  ;;  %v2453_v2 = vadd.f32 %v2359_v1, %v7582_v59  ;;  %v1895_v7 = vpop.f32.mrf.mxu2  ;;  %v1199_v8 = vpop.f32.mrf.mxu0  ;;  %v2138_v59 = vpack.c.bf16 %v5717_v29, %v5716_v16  ;;  %v2859_v13 = vld [vmem:[#allocation2 + $0x101] ss:$2 sm:$0xff]  ;;  %v3272_v1 = vld [vmem:[#allocation2 + $0x112] ss:$2 sm:$0xff] }
 0x28f   : > { %v7690_v57 = vadd.f32 %v1895_v7, %v1466_v63  ;;  %v1467_v25 = vpop.f32.mrf.mxu1 }
 0x290   : > { %v2521_v27 = vmul.f32 %v7514_v15, %v2453_v2  ;;  %v1468_v30 = vadd.f32 %v1467_v25, %v1199_v8  ;;  %v2771_v25 = vld [vmem:[#allocation2 + $0x100] ss:$2 sm:$0xff] }
 0x292   : > { %v2589_v21 = vadd.f32 %v7517_v24, %v2521_v27  ;;  %v2898_v27 = vpack.c.bf16 %v2861_v32, %v2859_v13 }
 0x294   : > { %v2653_v20 = vmax.f32 %v2589_v21, 0.0  ;;  %v3270_v21 = vld [vmem:[#allocation2 + $0x102] ss:$2 sm:$0xff] }
 0x295   : > { %v2361_v35 = vpop.f32.mrf.mxu3  ;;  %v3309_v29 = vpack.c.bf16 %v3272_v1, %v3270_v21 }
 0x296   : > { %2718 = vst.msk [vmem:[#allocation2 + $0x160] sm:$0xff] %vm2673_vm2, %v2653_v20  ;;  %v2454_v4 = vadd.f32 %v2361_v35, %v7590_v45  ;;  %v1897_v26 = vpop.f32.mrf.mxu2  ;;  %v1202_v9 = vpop.f32.mrf.mxu0  ;;  %v3308_v45 = vpack.c.bf16 %v3268_v28, %v3266_v41 }
 0x297   : > { %v7698_v33 = vadd.f32 %v1897_v26, %v1468_v30  ;;  %v1470_v53 = vpop.f32.mrf.mxu1  ;;  %v2810_v30 = vpack.c.bf16 %v2773_v11, %v2771_v25 }
 0x298   : > { %v2522_v52 = vmul.f32 %v7514_v15, %v2454_v4  ;;  %v1471_v60 = vadd.f32 %v1470_v53, %v1202_v9  ;;  %v7723_v4 = vld [vmem:[#allocation13] ss:$0 sm:$0xff] }
 0x299   : > { %5773 = vmatmul.msk.bf16.gmra.mxu0 %vm2673_vm2, %v2897_v54 }
 0x29a   : > { %v2590_v12 = vadd.f32 %v7517_v24, %v2522_v52  ;;  %5749 = vmatmul.msk.bf16.gmra.mxu3 %vm947_vm1, %v2138_v59  ;;  %5805 = vmatmul.msk.bf16.gmra.mxu1 %vm2673_vm2, %v2809_v39 }
 0x29b   : > { %5837 = vmatmul.msk.bf16.gmra.mxu2 %vm2673_vm2, %v3308_v45  ;;  %v2777_v45 = vld [vmem:[#allocation2 + $0x130] ss:$2 sm:$0xff] }
 0x29c   : > { %v2654_v56 = vmax.f32 %v2590_v12, 0.0 }
 0x29d   : > { %v2364_v38 = vpop.f32.mrf.mxu3 }
 0x29e   : > { %2719 = vst.msk [vmem:[#allocation2 + $0x168] sm:$0xff] %vm2673_vm2, %v2654_v56  ;;  %v2455_v43 = vadd.f32 %v2364_v38, %v7600_v44  ;;  %v1900_v51 = vpop.f32.mrf.mxu2  ;;  %v1204_v47 = vpop.f32.mrf.mxu0 }
 0x29f   : > { %v7708_v50 = vadd.f32 %v1900_v51, %v1471_v60  ;;  %v1472_v10 = vpop.f32.mrf.mxu1  ;;  %v3276_v51 = vld [vmem:[#allocation2 + $0x132] ss:$2 sm:$0xff] }
 0x2a0   : > { %v2523_v42 = vmul.f32 %v7514_v15, %v2455_v43  ;;  %v1473_v17 = vadd.f32 %v1472_v10, %v1204_v47  ;;  %v2863_v43 = vld [vmem:[#allocation2 + $0x121] ss:$2 sm:$0xff] }
 0x2a2   : > { %v2591_v14 = vadd.f32 %v7517_v24, %v2523_v42 }
 0x2a4   : > { %v2655_v62 = vmax.f32 %v2591_v14, 0.0  ;;  %v2775_v14 = vld [vmem:[#allocation2 + $0x120] ss:$2 sm:$0xff] }
 0x2a5   : > { %v2366_v63 = vpop.f32.mrf.mxu3 }
 0x2a6   : > { %2720 = vst.msk [vmem:[#allocation2 + $0x170] sm:$0xff] %vm2673_vm2, %v2655_v62  ;;  %v2456_v6 = vadd.f32 %v2366_v63, %v7608_v18  ;;  %v1902_v3 = vpop.f32.mrf.mxu2  ;;  %v2996_v44 = vpop.f32.mrf.mxu0  ;;  %v2811_v62 = vpack.c.bf16 %v2777_v45, %v2775_v14  ;;  %v3274_v63 = vld [vmem:[#allocation2 + $0x122] ss:$2 sm:$0xff] }
 0x2a7   : > { %v7714_v2 = vadd.f32 %v1902_v3, %v1473_v17  ;;  %v3157_v8 = vpop.f32.mrf.mxu1  ;;  %v3278_v45 = vld [vmem:[#allocation2 + $0x142] ss:$2 sm:$0xff] }
 0x2a8   : > { %v2524_v7 = vmul.f32 %v7514_v15, %v2456_v6  ;;  %v3158_v35 = vadd.f32 %v3157_v8, %v2996_v44 }
 0x2a9   : > { %5774 = vmatmul.msk.bf16.gmra.mxu0 %vm2673_vm2, %v2898_v27 }
 0x2aa   : > { %v2592_v16 = vadd.f32 %v7517_v24, %v2524_v7  ;;  %5806 = vmatmul.msk.bf16.gmra.mxu1 %vm2673_vm2, %v2810_v30 }
 0x2ab   : > { %5838 = vmatmul.msk.bf16.gmra.mxu2 %vm2673_vm2, %v3309_v29 }
 0x2ac   : > { %v2656_v18 = vmax.f32 %v2592_v16, 0.0 }
 0x2ad   : > { %v2369_v20 = vpop.f32.mrf.mxu3 }
 0x2ae   : > { %2721 = vst.msk [vmem:[#allocation2 + $0x178] sm:$0xff] %vm2673_vm2, %v2656_v18  ;;  %v2457_v31 = vadd.f32 %v2369_v20, %v7618_v19  ;;  %v3407_v59 = vpop.f32.mrf.mxu2  ;;  %v2998_v49 = vpop.f32.mrf.mxu0  ;;  %v2865_v19 = vld [vmem:[#allocation2 + $0x131] ss:$2 sm:$0xff]  ;;  %v6157_v18 = vld [vmem:[#allocation16 + $0x38] sm:$0xff] }
 0x2af   : > { %v3487_v9 = vadd.f32 %v3407_v59, %v3158_v35  ;;  %v3159_v28 = vpop.f32.mrf.mxu1  ;;  %v2899_v17 = vpack.c.bf16 %v2865_v19, %v2863_v43  ;;  %3939 = vmatpush.bf16.msra.mxu3 %v6157_v18  ;;  %v2869_v59 = vld [vmem:[#allocation2 + $0x151] ss:$2 sm:$0xff] }
 0x2b0   : > { %v2525_v26 = vmul.f32 %v7514_v15, %v2457_v31  ;;  %v3160_v41 = vadd.f32 %v3159_v28, %v2998_v49 }
 0x2b1   : > { %v3523_v53 = vmul.f32 %v7723_v4, %v3487_v9  ;;  %v2781_v9 = vld [vmem:[#allocation2 + $0x150] ss:$2 sm:$0xff] }
 0x2b2   : > { %v2593_v52 = vadd.f32 %v7517_v24, %v2525_v26 }
 0x2b3   : > { %v3559_v0 = vadd.f32 %v7726_v34, %v3523_v53  ;;  %v2867_v53 = vld [vmem:[#allocation2 + $0x141] ss:$2 sm:$0xff] }
 0x2b4   : > { %v2657_v54 = vmax.f32 %v2593_v52, 0.0 }
 0x2b5   : > { %v2371_v60 = vpop.f32.mrf.mxu3  ;;  %v3591_v39 = vmax.f32 %v3559_v0, 0.0 }
 0x2b6   : > { %2722 = vst.msk [vmem:[#allocation2 + $0x180] sm:$0xff] %vm2673_vm2, %v2657_v54  ;;  %v2458_v12 = vadd.f32 %v2371_v60, %v7626_v58  ;;  %v3409_v56 = vpop.f32.mrf.mxu2  ;;  %v3001_v38 = vpop.f32.mrf.mxu0  ;;  %v3310_v58 = vpack.c.bf16 %v3276_v51, %v3274_v63  ;;  %v3280_v54 = vld [vmem:[#allocation2 + $0x152] ss:$2 sm:$0xff] }
 0x2b7   : > { %3624 = vst.msk [vmem:[#allocation3] sm:$0xff] %vm3623_vm3, %v3591_v39  ;;  %v3488_v42 = vadd.f32 %v3409_v56, %v3160_v41  ;;  %v3162_v10 = vpop.f32.mrf.mxu1  ;;  %v2900_v39 = vpack.c.bf16 %v2869_v59, %v2867_v53  ;;  %v2779_v41 = vld [vmem:[#allocation2 + $0x140] ss:$2 sm:$0xff] }
 0x2b8   : > { %v2526_v47 = vmul.f32 %v7514_v15, %v2458_v12  ;;  %v3163_v1 = vadd.f32 %v3162_v10, %v3001_v38  ;;  %v2812_v12 = vpack.c.bf16 %v2781_v9, %v2779_v41  ;;  %v7771_v59 = vld [vmem:[#allocation8] ss:$0 sm:$0xff] }
 0x2b9   : > { %v3524_v6 = vmul.f32 %v7723_v4, %v3488_v42  ;;  %5775 = vmatmul.msk.bf16.gmra.mxu0 %vm2673_vm2, %v2899_v17  ;;  %v3282_v53 = vld [vmem:[#allocation2 + $0x162] ss:$2 sm:$0xff] }
 0x2ba   : > { %v2594_v32 = vadd.f32 %v7517_v24, %v2526_v47  ;;  %5807 = vmatmul.msk.bf16.gmra.mxu1 %vm2673_vm2, %v2811_v62 }
 0x2bb   : > { %v3560_v3 = vadd.f32 %v7726_v34, %v3524_v6  ;;  %5839 = vmatmul.msk.bf16.gmra.mxu2 %vm2673_vm2, %v3310_v58 }
 0x2bc   : > { %v2658_v11 = vmax.f32 %v2594_v32, 0.0 }
 0x2bd   : > { %v2374_v44 = vpop.f32.mrf.mxu3  ;;  %v3592_v13 = vmax.f32 %v3560_v3, 0.0 }
 0x2be   : > { %2723 = vst.msk [vmem:[#allocation2 + $0x188] sm:$0xff] %vm2673_vm2, %v2658_v11  ;;  %v2459_v7 = vadd.f32 %v2374_v44, %v7636_v36  ;;  %v3412_v8 = vpop.f32.mrf.mxu2  ;;  %v3003_v27 = vpop.f32.mrf.mxu0 }
 0x2bf   : > { %3625 = vst.msk [vmem:[#allocation3 + $0x8] sm:$0xff] %vm3623_vm3, %v3592_v13  ;;  %v3489_v30 = vadd.f32 %v3412_v8, %v3163_v1  ;;  %v3164_v21 = vpop.f32.mrf.mxu1  ;;  %v7763_v13 = vld [vmem:[#allocation10] ss:$0 sm:$0xff] }
 0x2c0   : > { %v2527_v25 = vmul.f32 %v7514_v15, %v2459_v7  ;;  %v3165_v49 = vadd.f32 %v3164_v21, %v3003_v27 }
 0x2c1   : > { %v3525_v29 = vmul.f32 %v7723_v4, %v3489_v30 }
 0x2c2   : > { %v2595_v16 = vadd.f32 %v7517_v24, %v2527_v25  ;;  %v2873_v25 = vld [vmem:[#allocation2 + $0x171] ss:$2 sm:$0xff] }
 0x2c3   : > { %v3561_v35 = vadd.f32 %v7726_v34, %v3525_v29 }
 0x2c4   : > { %v2659_v20 = vmax.f32 %v2595_v16, 0.0  ;;  %v2785_v16 = vld [vmem:[#allocation2 + $0x170] ss:$2 sm:$0xff] }
 0x2c5   : > { %v2376_v31 = vpop.f32.mrf.mxu3  ;;  %v3593_v36 = vmax.f32 %v3561_v35, 0.0  ;;  %v3284_v35 = vld [vmem:[#allocation2 + $0x172] ss:$2 sm:$0xff] }
 0x2c6   : > { %2724 = vst.msk [vmem:[#allocation2 + $0x190] sm:$0xff] %vm2673_vm2, %v2659_v20  ;;  %v2460_v26 = vadd.f32 %v2376_v31, %v7644_v48  ;;  %v3414_v28 = vpop.f32.mrf.mxu2  ;;  %v3006_v52 = vpop.f32.mrf.mxu0  ;;  %v3311_v48 = vpack.c.bf16 %v3280_v54, %v3278_v45  ;;  %v3657_v43 = vld [vmem:[#allocation3] ss:$2 sm:$0xff]  ;;  %v3689_v51 = vld [vmem:[#allocation3 + $0x1] ss:$2 sm:$0xff] }
 0x2c7   : > { %3626 = vst.msk [vmem:[#allocation3 + $0x10] sm:$0xff] %vm3623_vm3, %v3593_v36  ;;  %v3490_v60 = vadd.f32 %v3414_v28, %v3165_v49  ;;  %v3167_v19 = vpop.f32.mrf.mxu1  ;;  %v3720_v17 = vmax.f32 %v3657_v43, %v3689_v51  ;;  %v2871_v20 = vld [vmem:[#allocation2 + $0x161] ss:$2 sm:$0xff]  ;;  %v2783_v28 = vld [vmem:[#allocation2 + $0x160] ss:$2 sm:$0xff] }
 0x2c8   : > { %v2528_v0 = vmul.f32 %v7514_v15, %v2460_v26  ;;  %v6156_v31 = vld [vmem:[#allocation16 + $0x30] sm:$0xff]  ;;  %v2901_v9 = vpack.c.bf16 %v2873_v25, %v2871_v20 }
 0x2c9   : > { %v3526_v38 = vmul.f32 %v7723_v4, %v3490_v60  ;;  %5776 = vmatmul.msk.bf16.gmra.mxu0 %vm2673_vm2, %v2900_v39  ;;  %3940 = vmatpush.bf16.msra.mxu3 %v6156_v31 }
 0x2ca   : > { %v2596_v56 = vadd.f32 %v7517_v24, %v2528_v0  ;;  %5808 = vmatmul.msk.bf16.gmra.mxu1 %vm2673_vm2, %v2812_v12  ;;  %v3168_v24 = vadd.f32 %v3167_v19, %v3006_v52  ;;  %v2813_v52 = vpack.c.bf16 %v2785_v16, %v2783_v28  ;;  %v3312_v0 = vpack.c.bf16 %v3284_v35, %v3282_v53 }
 0x2cb   : > { %v3562_v42 = vadd.f32 %v7726_v34, %v3526_v38  ;;  %5840 = vmatmul.msk.bf16.gmra.mxu2 %vm2673_vm2, %v3311_v48 }
 0x2cc   : > { %v2660_v47 = vmax.f32 %v2596_v56, 0.0 }
 0x2cd   : > { %v2379_v10 = vpop.f32.mrf.mxu3  ;;  %v3594_v14 = vmax.f32 %v3562_v42, 0.0 }
 0x2ce   : > { %2725 = vst.msk [vmem:[#allocation2 + $0x198] sm:$0xff] %vm2673_vm2, %v2660_v47  ;;  %v2461_v62 = vadd.f32 %v2379_v10, %v7654_v46  ;;  %v3737_v63 = vld [vmem:[#allocation3 + $0x2] ss:$2 sm:$0xff]  ;;  %v3417_v32 = vpop.f32.mrf.mxu2  ;;  %v3008_v6 = vpop.f32.mrf.mxu0 }
 0x2cf   : > { %v3768_v58 = vmax.f32 %v3720_v17, %v3737_v63  ;;  %3627 = vst.msk [vmem:[#allocation3 + $0x18] sm:$0xff] %vm3623_vm3, %v3594_v14  ;;  %v3491_v3 = vadd.f32 %v3417_v32, %v3168_v24  ;;  %v3169_v44 = vpop.f32.mrf.mxu1 }
 0x2d0   : > { %v2529_v11 = vmul.f32 %v7514_v15, %v2461_v62  ;;  %v3170_v21 = vadd.f32 %v3169_v44, %v3008_v6 }
 0x2d1   : > { %3784 = vst.msk [vmem:[#allocation4] sm:$0xff] %vm3623_vm3, %v3768_v58  ;;  %v3527_v7 = vmul.f32 %v7723_v4, %v3491_v3 }
 0x2d2   : > { %v2597_v1 = vadd.f32 %v7763_v13, %v2529_v11 }
 0x2d3   : > { %v3563_v46 = vadd.f32 %v7726_v34, %v3527_v7 }
 0x2d4   : > { %v2661_v8 = vmax.f32 %v2597_v1, 0.0 }
 0x2d5   : > { %v2381_v27 = vpop.f32.mrf.mxu3  ;;  %v3595_v30 = vmax.f32 %v3563_v46, 0.0  ;;  %v2877_v6 = vld [vmem:[#allocation2 + $0x191] ss:$2 sm:$0xff]  ;;  %v2789_v44 = vld [vmem:[#allocation2 + $0x190] ss:$2 sm:$0xff] }
 0x2d6   : > { %2726 = vst.msk [vmem:[#allocation2 + $0x1a0] sm:$0xff] %vm2673_vm2, %v2661_v8  ;;  %v2462_v15 = vadd.f32 %v2381_v27, %v7662_v23  ;;  %v3419_v29 = vpop.f32.mrf.mxu2  ;;  %v3011_v18 = vpop.f32.mrf.mxu0  ;;  %v3659_v60 = vld [vmem:[#allocation3 + $0x10] ss:$2 sm:$0xff]  ;;  %v3691_v19 = vld [vmem:[#allocation3 + $0x11] ss:$2 sm:$0xff] }
 0x2d7   : > { %3628 = vst.msk [vmem:[#allocation3 + $0x20] sm:$0xff] %vm3623_vm3, %v3595_v30  ;;  %v3492_v49 = vadd.f32 %v3419_v29, %v3170_v21  ;;  %v3172_v26 = vpop.f32.mrf.mxu1  ;;  %v3721_v45 = vmax.f32 %v3659_v60, %v3691_v19  ;;  %v2875_v8 = vld [vmem:[#allocation2 + $0x181] ss:$2 sm:$0xff]  ;;  %v3286_v29 = vld [vmem:[#allocation2 + $0x182] ss:$2 sm:$0xff] }
 0x2d8   : > { %v2530_v36 = vmul.f32 %v7771_v59, %v2462_v15  ;;  %v3173_v38 = vadd.f32 %v3172_v26, %v3011_v18  ;;  %v2902_v21 = vpack.c.bf16 %v2877_v6, %v2875_v8  ;;  %v2787_v15 = vld [vmem:[#allocation2 + $0x180] ss:$2 sm:$0xff] }
 0x2d9   : > { %v3528_v54 = vmul.f32 %v7723_v4, %v3492_v49  ;;  %5777 = vmatmul.msk.bf16.gmra.mxu0 %vm2673_vm2, %v2901_v9  ;;  %v2814_v16 = vpack.c.bf16 %v2789_v44, %v2787_v15 }
 0x2da   : > { %v2598_v23 = vadd.f32 %v7763_v13, %v2530_v36  ;;  %5809 = vmatmul.msk.bf16.gmra.mxu1 %vm2673_vm2, %v2813_v52 }
 0x2db   : > { %v3564_v41 = vadd.f32 %v7726_v34, %v3528_v54  ;;  %5841 = vmatmul.msk.bf16.gmra.mxu2 %vm2673_vm2, %v3312_v0 }
 0x2dc   : > { %v2662_v39 = vmax.f32 %v2598_v23, 0.0 }
 0x2dd   : > { %v2384_v12 = vpop.f32.mrf.mxu3  ;;  %v3596_v56 = vmax.f32 %v3564_v41, 0.0  ;;  %v3288_v46 = vld [vmem:[#allocation2 + $0x192] ss:$2 sm:$0xff] }
 0x2de   : > { %2727 = vst.msk [vmem:[#allocation2 + $0x1a8] sm:$0xff] %vm2673_vm2, %v2662_v39  ;;  %v2463_v48 = vadd.f32 %v2384_v12, %v7672_v40  ;;  %v3739_v43 = vld [vmem:[#allocation3 + $0x12] ss:$2 sm:$0xff]  ;;  %v3422_v51 = vpop.f32.mrf.mxu2  ;;  %v3013_v47 = vpop.f32.mrf.mxu0 }
 0x2df   : > { %v3769_v42 = vmax.f32 %v3721_v45, %v3739_v43  ;;  %3629 = vst.msk [vmem:[#allocation3 + $0x28] sm:$0xff] %vm3623_vm3, %v3596_v56  ;;  %v3493_v17 = vadd.f32 %v3422_v51, %v3173_v38  ;;  %v3174_v14 = vpop.f32.mrf.mxu1  ;;  %v6167_v56 = vld [vmem:[#allocation16 + $0x88] sm:$0xff] }
 0x2e0   : > { %v2531_v10 = vmul.f32 %v7771_v59, %v2463_v48  ;;  %v3175_v11 = vadd.f32 %v3174_v14, %v3013_v47  ;;  %4190 = vmatpush.bf16.msra.mxu0 %v6167_v56 }
 0x2e1   : > { %3785 = vst.msk [vmem:[#allocation4 + $0x8] sm:$0xff] %vm3623_vm3, %v3769_v42  ;;  %v3529_v62 = vmul.f32 %v7723_v4, %v3493_v17 }
 0x2e2   : > { %v2599_v24 = vadd.f32 %v7763_v13, %v2531_v10 }
 0x2e3   : > { %v3565_v32 = vadd.f32 %v7726_v34, %v3529_v62 }
 0x2e4   : > { %v2663_v63 = vmax.f32 %v2599_v24, 0.0 }
 0x2e5   : > { %v2386_v40 = vpop.f32.mrf.mxu3  ;;  %v3597_v58 = vmax.f32 %v3565_v32, 0.0  ;;  %v2879_v24 = vld [vmem:[#allocation2 + $0x1a1] ss:$2 sm:$0xff]  ;;  %v2791_v6 = vld [vmem:[#allocation2 + $0x1a0] ss:$2 sm:$0xff] }
 0x2e6   : > { %2728 = vst.msk [vmem:[#allocation2 + $0x1b0] sm:$0xff] %vm2673_vm2, %v2663_v63  ;;  %v2464_v3 = vadd.f32 %v2386_v40, %v7680_v5  ;;  %v3424_v1 = vpop.f32.mrf.mxu2  ;;  %v3016_v7 = vpop.f32.mrf.mxu0  ;;  %v3313_v5 = vpack.c.bf16 %v3288_v46, %v3286_v29  ;;  %v3661_v35 = vld [vmem:[#allocation3 + $0x20] ss:$2 sm:$0xff]  ;;  %v3693_v31 = vld [vmem:[#allocation3 + $0x21] ss:$2 sm:$0xff] }
 0x2e7   : > { %3630 = vst.msk [vmem:[#allocation3 + $0x30] sm:$0xff] %vm3623_vm3, %v3597_v58  ;;  %v3494_v25 = vadd.f32 %v3424_v1, %v3175_v11  ;;  %v3177_v30 = vpop.f32.mrf.mxu1  ;;  %v3722_v9 = vmax.f32 %v3661_v35, %v3693_v31 }
 0x2e8   : > { %v2532_v27 = vmul.f32 %v7771_v59, %v2464_v3  ;;  %v3178_v52 = vadd.f32 %v3177_v30, %v3016_v7  ;;  %v3836_v11 = vld [vmem:[#allocation4 + $0x1] sm:$0xff] }
 0x2e9   : > { %v3530_v20 = vmul.f32 %v7723_v4, %v3494_v25  ;;  %5778 = vmatmul.msk.bf16.gmra.mxu0 %vm2673_vm2, %v2902_v21 }
 0x2ea   : > { %v2600_v18 = vadd.f32 %v7763_v13, %v2532_v27  ;;  %5810 = vmatmul.msk.bf16.gmra.mxu1 %vm2673_vm2, %v2814_v16 }
 0x2eb   : > { %v3566_v49 = vadd.f32 %v7726_v34, %v3530_v20  ;;  %5842 = vmatmul.msk.bf16.gmra.mxu2 %vm2673_vm2, %v3313_v5 }
 0x2ec   : > { %v2664_v36 = vmax.f32 %v2600_v18, 0.0 }
 0x2ed   : > { %v2389_v26 = vpop.f32.mrf.mxu3  ;;  %v3598_v28 = vmax.f32 %v3566_v49, 0.0  ;;  %v3290_v21 = vld [vmem:[#allocation2 + $0x1a2] ss:$2 sm:$0xff] }
 0x2ee   : > { %2729 = vst.msk [vmem:[#allocation2 + $0x1b8] sm:$0xff] %vm2673_vm2, %v2664_v36  ;;  %v2465_v53 = vadd.f32 %v2389_v26, %v7690_v57  ;;  %v3741_v23 = vld [vmem:[#allocation3 + $0x22] ss:$2 sm:$0xff]  ;;  %v3427_v54 = vpop.f32.mrf.mxu2  ;;  %v3018_v0 = vpop.f32.mrf.mxu0 }
 0x2ef   : > { %v3770_v60 = vmax.f32 %v3722_v9, %v3741_v23  ;;  %3631 = vst.msk [vmem:[#allocation3 + $0x38] sm:$0xff] %vm3623_vm3, %v3598_v28  ;;  %v3495_v39 = vadd.f32 %v3427_v54, %v3178_v52  ;;  %v3179_v41 = vpop.f32.mrf.mxu1 }
 0x2f0   : > { %v2533_v19 = vmul.f32 %v7771_v59, %v2465_v53  ;;  %v3180_v47 = vadd.f32 %v3179_v41, %v3018_v0 }
 0x2f1   : > { %3786 = vst.msk [vmem:[#allocation4 + $0x10] sm:$0xff] %vm3623_vm3, %v3770_v60  ;;  %v3531_v45 = vmul.f32 %v7723_v4, %v3495_v39 }
 0x2f2   : > { %v2601_v12 = vadd.f32 %v7763_v13, %v2533_v19 }
 0x2f3   : > { %v3567_v57 = vadd.f32 %v7726_v34, %v3531_v45 }
 0x2f4   : > { %v2665_v38 = vmax.f32 %v2601_v12, 0.0 }
 0x2f5   : > { %v2391_v48 = vpop.f32.mrf.mxu3  ;;  %v2881_v43 = vld [vmem:[#allocation2 + $0x1b1] ss:$2 sm:$0xff]  ;;  %v3599_v51 = vmax.f32 %v3567_v57, 0.0  ;;  %v2793_v10 = vld [vmem:[#allocation2 + $0x1b0] ss:$2 sm:$0xff] }
 0x2f6   : > { %2730 = vst.msk [vmem:[#allocation2 + $0x1c0] sm:$0xff] %vm2673_vm2, %v2665_v38  ;;  %v2466_v42 = vadd.f32 %v2391_v48, %v7698_v33  ;;  %v3429_v17 = vpop.f32.mrf.mxu2  ;;  %v3021_v14 = vpop.f32.mrf.mxu0  ;;  %v2903_v40 = vpack.c.bf16 %v2881_v43, %v2879_v24  ;;  %v2815_v58 = vpack.c.bf16 %v2793_v10, %v2791_v6  ;;  %v3663_v44 = vld [vmem:[#allocation3 + $0x30] ss:$2 sm:$0xff]  ;;  %v3695_v1 = vld [vmem:[#allocation3 + $0x31] ss:$2 sm:$0xff] }
 0x2f7   : > { %3632 = vst.msk [vmem:[#allocation3 + $0x40] sm:$0xff] %vm3623_vm3, %v3599_v51  ;;  %v3496_v63 = vadd.f32 %v3429_v17, %v3180_v47  ;;  %v3182_v32 = vpop.f32.mrf.mxu1  ;;  %v3723_v25 = vmax.f32 %v3663_v44, %v3695_v1 }
 0x2f8   : > { %v2534_v62 = vmul.f32 %v7771_v59, %v2466_v42  ;;  %v3837_v3 = vld [vmem:[#allocation4 + $0x9] sm:$0xff]  ;;  %v3183_v29 = vadd.f32 %v3182_v32, %v3021_v14 }
 0x2f9   : > { %v3532_v33 = vmul.f32 %v7723_v4, %v3496_v63  ;;  %5779 = vmatmul.msk.bf16.gmra.mxu0 %vm2673_vm2, %v2903_v40  ;;  %v3852_v8 = vpack.c.bf16 %v3837_v3, %v3836_v11 }
 0x2fa   : > { %v2602_v7 = vadd.f32 %v7763_v13, %v2534_v62  ;;  %5811 = vmatmul.msk.bf16.gmra.mxu1 %vm2673_vm2, %v2815_v58 }
 0x2fb   : > { %v3568_v27 = vadd.f32 %v7726_v34, %v3532_v33  ;;  %5870 = vmatmul.msk.bf16.vlgmr.msra.gmra.mxu3 %vm3623_vm3, %v3852_v8 }
 0x2fc   : > { %v2666_v46 = vmax.f32 %v2602_v7, 0.0 }
 0x2fd   : > { %v2394_v30 = vpop.f32.mrf.mxu3  ;;  %v3292_v15 = vld [vmem:[#allocation2 + $0x1b2] ss:$2 sm:$0xff]  ;;  %v3600_v16 = vmax.f32 %v3568_v27, 0.0 }
 0x2fe   : > { %2731 = vst.msk [vmem:[#allocation2 + $0x1c8] sm:$0xff] %vm2673_vm2, %v2666_v46  ;;  %v2467_v18 = vadd.f32 %v2394_v30, %v7708_v50  ;;  %v3314_v20 = vpack.c.bf16 %v3292_v15, %v3290_v21  ;;  %v3743_v5 = vld [vmem:[#allocation3 + $0x32] ss:$2 sm:$0xff]  ;;  %v3432_v35 = vpop.f32.mrf.mxu2  ;;  %v3023_v31 = vpop.f32.mrf.mxu0 }
 0x2ff   : > { %v3771_v36 = vmax.f32 %v3723_v25, %v3743_v5  ;;  %3633 = vst.msk [vmem:[#allocation3 + $0x48] sm:$0xff] %vm3623_vm3, %v3600_v16  ;;  %v3497_v26 = vadd.f32 %v3432_v35, %v3183_v29  ;;  %v3184_v9 = vpop.f32.mrf.mxu1  ;;  %v6166_v27 = vld [vmem:[#allocation16 + $0x80] sm:$0xff] }
 0x300   : > { %v2535_v49 = vmul.f32 %v7771_v59, %v2467_v18  ;;  %5843 = vmatmul.msk.bf16.gmra.mxu2 %vm2673_vm2, %v3314_v20  ;;  %v3185_v0 = vadd.f32 %v3184_v9, %v3023_v31  ;;  %4191 = vmatpush.bf16.msra.mxu0 %v6166_v27 }
 0x301   : > { %3787 = vst.msk [vmem:[#allocation4 + $0x18] sm:$0xff] %vm3623_vm3, %v3771_v36  ;;  %v3533_v52 = vmul.f32 %v7723_v4, %v3497_v26  ;;  %v6165_v36 = vld [vmem:[#allocation16 + $0x78] sm:$0xff] }
 0x302   : > { %v2603_v28 = vadd.f32 %v7763_v13, %v2535_v49 }
 0x303   : > { %v3569_v53 = vadd.f32 %v7726_v34, %v3533_v52 }
 0x304   : > { %v2667_v50 = vmax.f32 %v2603_v28, 0.0  ;;  %4192 = vmatpush.bf16.msra.mxu0 %v6165_v36 }
 0x305   : > { %v2396_v23 = vpop.f32.mrf.mxu3  ;;  %v3601_v54 = vmax.f32 %v3569_v53, 0.0  ;;  %v2795_v1 = vld [vmem:[#allocation2 + $0x1c0] ss:$2 sm:$0xff] }
 0x306   : > { %2732 = vst.msk [vmem:[#allocation2 + $0x1d0] sm:$0xff] %vm2673_vm2, %v2667_v50  ;;  %v2468_v60 = vadd.f32 %v2396_v23, %v7714_v2  ;;  %v3434_v19 = vpop.f32.mrf.mxu2  ;;  %v3026_v39 = vpop.f32.mrf.mxu0  ;;  %v3665_v57 = vld [vmem:[#allocation3 + $0x40] ss:$2 sm:$0xff]  ;;  %v3697_v48 = vld [vmem:[#allocation3 + $0x41] ss:$2 sm:$0xff] }
 0x307   : > { %3634 = vst.msk [vmem:[#allocation3 + $0x50] sm:$0xff] %vm3623_vm3, %v3601_v54  ;;  %v3498_v12 = vadd.f32 %v3434_v19, %v3185_v0  ;;  %v3187_v45 = vpop.f32.mrf.mxu1  ;;  %v3724_v42 = vmax.f32 %v3665_v57, %v3697_v48 }
 0x308   : > { %v2536_v41 = vmul.f32 %v7771_v59, %v2468_v60  ;;  %v3188_v10 = vadd.f32 %v3187_v45, %v3026_v39  ;;  %v3838_v35 = vld [vmem:[#allocation4 + $0x11] sm:$0xff]  ;;  %v6164_v60 = vld [vmem:[#allocation16 + $0x70] sm:$0xff] }
 0x309   : > { %v3534_v38 = vmul.f32 %v7723_v4, %v3498_v12  ;;  %4193 = vmatpush.bf16.msra.mxu0 %v6164_v60 }
 0x30a   : > { %v2604_v56 = vadd.f32 %v7763_v13, %v2536_v41 }
 0x30b   : > { %v3570_v51 = vadd.f32 %v7726_v34, %v3534_v38 }
 0x30c   : > { %v2668_v43 = vmax.f32 %v2604_v56, 0.0 }
 0x30d   : > { %v2399_v47 = vpop.f32.mrf.mxu3  ;;  %v3602_v2 = vmax.f32 %v3570_v51, 0.0  ;;  %v3294_v54 = vld [vmem:[#allocation2 + $0x1c2] ss:$2 sm:$0xff] }
 0x30e   : > { %2733 = vst.msk [vmem:[#allocation2 + $0x1d8] sm:$0xff] %vm2673_vm2, %v2668_v43  ;;  %v2469_v17 = vadd.f32 %v2399_v47, %v7155_v37  ;;  %v3745_v14 = vld [vmem:[#allocation3 + $0x42] ss:$2 sm:$0xff]  ;;  %v3437_v24 = vpop.f32.mrf.mxu2  ;;  %v3028_v62 = vpop.f32.mrf.mxu0  ;;  %v2883_v37 = vld [vmem:[#allocation2 + $0x1c1] ss:$2 sm:$0xff]  ;;  %v6163_v47 = vld [vmem:[#allocation16 + $0x68] sm:$0xff] }
 0x30f   : > { %v3772_v63 = vmax.f32 %v3724_v42, %v3745_v14  ;;  %3635 = vst.msk [vmem:[#allocation3 + $0x58] sm:$0xff] %vm3623_vm3, %v3602_v2  ;;  %v3499_v40 = vadd.f32 %v3437_v24, %v3188_v10  ;;  %v3189_v6 = vpop.f32.mrf.mxu1  ;;  %4194 = vmatpush.bf16.msra.mxu0 %v6163_v47  ;;  %v6162_v14 = vld [vmem:[#allocation16 + $0x60] sm:$0xff] }
 0x310   : > { %v2537_v32 = vmul.f32 %v7771_v59, %v2469_v17  ;;  %v3190_v7 = vadd.f32 %v3189_v6, %v3028_v62 }
 0x311   : > { %3788 = vst.msk [vmem:[#allocation4 + $0x20] sm:$0xff] %vm3623_vm3, %v3772_v63  ;;  %v3535_v11 = vmul.f32 %v7723_v4, %v3499_v40 }
 0x312   : > { %v2605_v58 = vadd.f32 %v7763_v13, %v2537_v32 }
 0x313   : > { %v3571_v44 = vadd.f32 %v7726_v34, %v3535_v11  ;;  %4195 = vmatpush.bf16.msra.mxu0 %v6162_v14 }
 0x314   : > { %v2669_v3 = vmax.f32 %v2605_v58, 0.0 }
 0x315   : > { %v2401_v33 = vpop.f32.mrf.mxu3  ;;  %v2885_v8 = vld [vmem:[#allocation2 + $0x1d1] ss:$2 sm:$0xff]  ;;  %v2797_v46 = vld [vmem:[#allocation2 + $0x1d0] ss:$2 sm:$0xff]  ;;  %v3603_v25 = vmax.f32 %v3571_v44, 0.0 }
 0x316   : > { %2734 = vst.msk [vmem:[#allocation2 + $0x1e0] sm:$0xff] %vm2673_vm2, %v2669_v3  ;;  %v2470_v30 = vadd.f32 %v2401_v33, %v7167_v55  ;;  %v2904_v21 = vpack.c.bf16 %v2885_v8, %v2883_v37  ;;  %v2816_v15 = vpack.c.bf16 %v2797_v46, %v2795_v1  ;;  %v3439_v16 = vpop.f32.mrf.mxu2  ;;  %v3031_v29 = vpop.f32.mrf.mxu0  ;;  %v3667_v49 = vld [vmem:[#allocation3 + $0x50] ss:$2 sm:$0xff]  ;;  %v3699_v55 = vld [vmem:[#allocation3 + $0x51] ss:$2 sm:$0xff] }
 0x317   : > { %3636 = vst.msk [vmem:[#allocation3 + $0x60] sm:$0xff] %vm3623_vm3, %v3603_v25  ;;  %v3500_v20 = vadd.f32 %v3439_v16, %v3190_v7  ;;  %v3192_v5 = vpop.f32.mrf.mxu1  ;;  %v3725_v53 = vmax.f32 %v3667_v49, %v3699_v55 }
 0x318   : > { %v2538_v18 = vmul.f32 %v7771_v59, %v2470_v30  ;;  %5780 = vmatmul.msk.bf16.gmra.mxu0 %vm2673_vm2, %v2904_v21  ;;  %5812 = vmatmul.msk.bf16.gmra.mxu1 %vm2673_vm2, %v2816_v15  ;;  %v3839_v31 = vld [vmem:[#allocation4 + $0x19] sm:$0xff]  ;;  %v3193_v39 = vadd.f32 %v3192_v5, %v3031_v29 }
 0x319   : > { %v3536_v9 = vmul.f32 %v7723_v4, %v3500_v20  ;;  %v3853_v28 = vpack.c.bf16 %v3839_v31, %v3838_v35 }
 0x31a   : > { %v2606_v26 = vadd.f32 %v7763_v13, %v2538_v18 }
 0x31b   : > { %v3572_v50 = vadd.f32 %v7726_v34, %v3536_v9  ;;  %5871 = vmatmul.msk.bf16.gmra.mxu3 %vm3623_vm3, %v3853_v28 }
 0x31c   : > { %v2670_v52 = vmax.f32 %v2606_v26, 0.0 }
 0x31d   : > { %v2404_v23 = vpop.f32.mrf.mxu3  ;;  %v3296_v0 = vld [vmem:[#allocation2 + $0x1d2] ss:$2 sm:$0xff]  ;;  %v3604_v19 = vmax.f32 %v3572_v50, 0.0 }
 0x31e   : > { %2735 = vst.msk [vmem:[#allocation2 + $0x1e8] sm:$0xff] %vm2673_vm2, %v2670_v52  ;;  %v2471_v41 = vadd.f32 %v2404_v23, %v7175_v61  ;;  %v3315_v12 = vpack.c.bf16 %v3296_v0, %v3294_v54  ;;  %v3747_v45 = vld [vmem:[#allocation3 + $0x52] ss:$2 sm:$0xff]  ;;  %v3442_v56 = vpop.f32.mrf.mxu2  ;;  %v3033_v38 = vpop.f32.mrf.mxu0 }
 0x31f   : > { %v3773_v57 = vmax.f32 %v3725_v53, %v3747_v45  ;;  %3637 = vst.msk [vmem:[#allocation3 + $0x68] sm:$0xff] %vm3623_vm3, %v3604_v19  ;;  %v3501_v43 = vadd.f32 %v3442_v56, %v3193_v39  ;;  %v3194_v51 = vpop.f32.mrf.mxu1 }
 0x320   : > { %v2539_v48 = vmul.f32 %v7771_v59, %v2471_v41  ;;  %5844 = vmatmul.msk.bf16.gmra.mxu2 %vm2673_vm2, %v3315_v12  ;;  %v3195_v62 = vadd.f32 %v3194_v51, %v3033_v38 }
 0x321   : > { %3789 = vst.msk [vmem:[#allocation4 + $0x28] sm:$0xff] %vm3623_vm3, %v3773_v57  ;;  %v3537_v61 = vmul.f32 %v7723_v4, %v3501_v43 }
 0x322   : > { %v2607_v42 = vadd.f32 %v7763_v13, %v2539_v48 }
 0x323   : > { %v3573_v10 = vadd.f32 %v7726_v34, %v3537_v61  ;;  %v4092_v61 = vld [vmem:[#allocation4 + $0xa] sm:$0xff] }
 0x324   : > { %v2671_v2 = vmax.f32 %v2607_v42, 0.0 }
 0x325   : > { %v2406_v17 = vpop.f32.mrf.mxu3  ;;  %v3605_v24 = vmax.f32 %v3573_v10, 0.0  ;;  %v2887_v29 = vld [vmem:[#allocation2 + $0x1e1] ss:$2 sm:$0xff]  ;;  %v2799_v18 = vld [vmem:[#allocation2 + $0x1e0] ss:$2 sm:$0xff] }
 0x326   : > { %2736 = vst.msk [vmem:[#allocation2 + $0x1f0] sm:$0xff] %vm2673_vm2, %v2671_v2  ;;  %v2472_v63 = vadd.f32 %v2406_v17, %v7187_v22  ;;  %v3444_v32 = vpop.f32.mrf.mxu2  ;;  %v3036_v40 = vpop.f32.mrf.mxu0  ;;  %v3669_v37 = vld [vmem:[#allocation3 + $0x60] ss:$2 sm:$0xff]  ;;  %v3701_v1 = vld [vmem:[#allocation3 + $0x61] ss:$2 sm:$0xff] }
 0x327   : > { %3638 = vst.msk [vmem:[#allocation3 + $0x70] sm:$0xff] %vm3623_vm3, %v3605_v24  ;;  %v3502_v58 = vadd.f32 %v3444_v32, %v3195_v62  ;;  %v3197_v11 = vpop.f32.mrf.mxu1  ;;  %v3726_v22 = vmax.f32 %v3669_v37, %v3701_v1  ;;  %v4091_v10 = vld [vmem:[#allocation4 + $0x2] sm:$0xff] }
 0x328   : > { %v2540_v6 = vmul.f32 %v7771_v59, %v2472_v63  ;;  %v3198_v46 = vadd.f32 %v3197_v11, %v3036_v40  ;;  %v3840_v23 = vld [vmem:[#allocation4 + $0x21] sm:$0xff]  ;;  %v4107_v24 = vpack.c.bf16 %v4092_v61, %v4091_v10 }
 0x329   : > { %v3538_v44 = vmul.f32 %v7723_v4, %v3502_v58 }
 0x32a   : > { %v2608_v3 = vadd.f32 %v7763_v13, %v2540_v6 }
 0x32b   : > { %v3574_v33 = vadd.f32 %v7726_v34, %v3538_v44 }
 0x32c   : > { %v2672_v7 = vmax.f32 %v2608_v3, 0.0 }
 0x32d   : > { %v3606_v8 = vmax.f32 %v3574_v33, 0.0  ;;  %v3298_v55 = vld [vmem:[#allocation2 + $0x1e2] ss:$2 sm:$0xff] }
 0x32e   : > { %2738 = vst.msk [vmem:[#allocation2 + $0x1f8] sm:$0x7f] %vm2737_vm4, %v2672_v7  ;;  %v3749_v27 = vld [vmem:[#allocation3 + $0x62] ss:$2 sm:$0xff]  ;;  %v3447_v25 = vpop.f32.mrf.mxu2  ;;  %v3038_v30 = vpop.f32.mrf.mxu0 }
 0x32f   : > { %v3774_v59 = vmax.f32 %v3726_v22, %v3749_v27  ;;  %3639 = vst.msk [vmem:[#allocation3 + $0x78] sm:$0xff] %vm3623_vm3, %v3606_v8  ;;  %v3503_v21 = vadd.f32 %v3447_v25, %v3198_v46  ;;  %v3199_v13 = vpop.f32.mrf.mxu1 }
 0x330   : > { %v3200_v31 = vadd.f32 %v3199_v13, %v3038_v30  ;;  %v4094_v30 = vld [vmem:[#allocation4 + $0x1a] sm:$0xff] }
 0x331   : > { %3790 = vst.msk [vmem:[#allocation4 + $0x30] sm:$0xff] %vm3623_vm3, %v3774_v59  ;;  %v3539_v15 = vmul.f32 %v7723_v4, %v3503_v21  ;;  %v4093_v21 = vld [vmem:[#allocation4 + $0x12] sm:$0xff] }
 0x333   : > { %v3575_v16 = vadd.f32 %v7726_v34, %v3539_v15 }
 0x335   : > { %v2889_v20 = vld [vmem:[#allocation2 + $0x1f1] ss:$2 sm:$0x7f]  ;;  %v2801_v5 = vld [vmem:[#allocation2 + $0x1f0] ss:$2 sm:$0x7f] }
 0x336   : > { %v3607_v35 = vmax.f32 %v3575_v16, 0.0  ;;  %v2905_v36 = vpack.c.bf16 %v2889_v20, %v2887_v29  ;;  %v2817_v49 = vpack.c.bf16 %v2801_v5, %v2799_v18  ;;  %v3300_v26 = vld [vmem:[#allocation2 + $0x1f2] ss:$2 sm:$0x7f]  ;;  %v3449_v9 = vpop.f32.mrf.mxu2  ;;  %v3041_v28 = vpop.f32.mrf.mxu0  ;;  %v3703_v39 = vld [vmem:[#allocation3 + $0x71] ss:$2 sm:$0xff]  ;;  %v4108_v16 = vpack.c.bf16 %v4094_v30, %v4093_v21 }
 0x337   : > { %v3316_v52 = vpack.c.bf16 %v3300_v26, %v3298_v55  ;;  %v3504_v50 = vadd.f32 %v3449_v9, %v3200_v31  ;;  %v3202_v53 = vpop.f32.mrf.mxu1  ;;  %v3671_v19 = vld [vmem:[#allocation3 + $0x70] ss:$2 sm:$0xff] }
 0x338   : > { %3640 = vst.msk [vmem:[#allocation3 + $0x80] sm:$0xff] %vm3623_vm3, %v3607_v35  ;;  %5781 = vmatmul.msk.bf16.gmra.mxu0 %vm2673_vm2, %v2905_v36  ;;  %5813 = vmatmul.msk.bf16.gmra.mxu1 %vm2673_vm2, %v2817_v49  ;;  %v3841_v54 = vld [vmem:[#allocation4 + $0x29] sm:$0xff]  ;;  %v3727_v12 = vmax.f32 %v3671_v19, %v3703_v39  ;;  %v3203_v56 = vadd.f32 %v3202_v53, %v3041_v28 }
 0x339   : > { %5845 = vmatmul.msk.bf16.gmra.mxu2 %vm2673_vm2, %v3316_v52  ;;  %v3540_v0 = vmul.f32 %v7723_v4, %v3504_v50  ;;  %v3854_v60 = vpack.c.bf16 %v3841_v54, %v3840_v23 }
 0x33b   : > { %v3576_v41 = vadd.f32 %v7726_v34, %v3540_v0  ;;  %5872 = vmatmul.msk.bf16.gmra.mxu3 %vm3623_vm3, %v3854_v60 }
 0x33d   : > { %v3608_v45 = vmax.f32 %v3576_v41, 0.0  ;;  %v4096_v41 = vld [vmem:[#allocation4 + $0x2a] sm:$0xff] }
 0x33e   : > { %v3452_v57 = vpop.f32.mrf.mxu2  ;;  %v3043_v48 = vpop.f32.mrf.mxu0 }
 0x33f   : > { %v3751_v38 = vld [vmem:[#allocation3 + $0x72] ss:$2 sm:$0xff]  ;;  %3641 = vst.msk [vmem:[#allocation3 + $0x88] sm:$0xff] %vm3623_vm3, %v3608_v45  ;;  %v3505_v51 = vadd.f32 %v3452_v57, %v3203_v56  ;;  %v3204_v47 = vpop.f32.mrf.mxu1  ;;  %v4095_v45 = vld [vmem:[#allocation4 + $0x22] sm:$0xff] }
 0x340   : > { %v3775_v43 = vmax.f32 %v3727_v12, %v3751_v38  ;;  %v3205_v14 = vadd.f32 %v3204_v47, %v3043_v48  ;;  %v4109_v57 = vpack.c.bf16 %v4096_v41, %v4095_v45 }
 0x341   : > { %v3541_v42 = vmul.f32 %v7723_v4, %v3505_v51  ;;  %v6155_v51 = vld [vmem:[#allocation16 + $0x28] sm:$0xff] }
 0x342   : > { %3791 = vst.msk [vmem:[#allocation4 + $0x38] sm:$0xff] %vm3623_vm3, %v3775_v43  ;;  %4044 = vmatpush.bf16.msrb.mxu3 %v6155_v51 }
 0x343   : > { %v3577_v2 = vadd.f32 %v7726_v34, %v3541_v42 }
 0x345   : > { %v3609_v17 = vmax.f32 %v3577_v2, 0.0 }
 0x346   : > { %v3454_v62 = vpop.f32.mrf.mxu2  ;;  %v3046_v63 = vpop.f32.mrf.mxu0  ;;  %v3673_v58 = vld [vmem:[#allocation3 + $0x80] ss:$2 sm:$0xff]  ;;  %v3705_v11 = vld [vmem:[#allocation3 + $0x81] ss:$2 sm:$0xff] }
 0x347   : > { %3642 = vst.msk [vmem:[#allocation3 + $0x90] sm:$0xff] %vm3623_vm3, %v3609_v17  ;;  %v3506_v32 = vadd.f32 %v3454_v62, %v3205_v14  ;;  %v3207_v40 = vpop.f32.mrf.mxu1  ;;  %v3728_v44 = vmax.f32 %v3673_v58, %v3705_v11  ;;  %v7904_v58 = vld [vmem:[#allocation13] ss:$0 sm:$0xff] }
 0x348   : > { %5934 = vmatmul.msk.bf16.vlgmr.msra.gmra.mxu0 %vm3623_vm3, %v4107_v24  ;;  %v3208_v1 = vadd.f32 %v3207_v40, %v3046_v63 }
 0x349   : > { %v3542_v6 = vmul.f32 %v7723_v4, %v3506_v32  ;;  %v3842_v35 = vld [vmem:[#allocation4 + $0x31] sm:$0xff] }
 0x34b   : > { %v3578_v3 = vadd.f32 %v7726_v34, %v3542_v6 }
 0x34d   : > { %v3610_v37 = vmax.f32 %v3578_v3, 0.0 }
 0x34e   : > { %v3753_v7 = vld [vmem:[#allocation3 + $0x82] ss:$2 sm:$0xff]  ;;  %v3457_v33 = vpop.f32.mrf.mxu2  ;;  %v3048_v22 = vpop.f32.mrf.mxu0 }
 0x34f   : > { %v3776_v8 = vmax.f32 %v3728_v44, %v3753_v7  ;;  %3643 = vst.msk [vmem:[#allocation3 + $0x98] sm:$0xff] %vm3623_vm3, %v3610_v37  ;;  %v3507_v46 = vadd.f32 %v3457_v33, %v3208_v1  ;;  %v3209_v27 = vpop.f32.mrf.mxu1  ;;  %v4097_v1 = vld [vmem:[#allocation4 + $0x32] sm:$0xff] }
 0x350   : > { %v3210_v15 = vadd.f32 %v3209_v27, %v3048_v22 }
 0x351   : > { %3792 = vst.msk [vmem:[#allocation4 + $0x40] sm:$0xff] %vm3623_vm3, %v3776_v8  ;;  %v3543_v25 = vmul.f32 %v7723_v4, %v3507_v46 }
 0x353   : > { %v3579_v59 = vadd.f32 %v7726_v34, %v3543_v25 }
 0x355   : > { %v3611_v13 = vmax.f32 %v3579_v59, 0.0 }
 0x356   : > { %v3459_v29 = vpop.f32.mrf.mxu2  ;;  %v3051_v18 = vpop.f32.mrf.mxu0  ;;  %v3675_v55 = vld [vmem:[#allocation3 + $0x90] ss:$2 sm:$0xff]  ;;  %v3707_v26 = vld [vmem:[#allocation3 + $0x91] ss:$2 sm:$0xff] }
 0x357   : > { %3644 = vst.msk [vmem:[#allocation3 + $0xa0] sm:$0xff] %vm3623_vm3, %v3611_v13  ;;  %v3508_v20 = vadd.f32 %v3459_v29, %v3210_v15  ;;  %v3212_v5 = vpop.f32.mrf.mxu1  ;;  %v3729_v28 = vmax.f32 %v3675_v55, %v3707_v26  ;;  %v7911_v15 = vld [vmem:[#allocation14] ss:$0 sm:$0xff] }
 0x358   : > { %5935 = vmatmul.msk.bf16.gmra.mxu0 %vm3623_vm3, %v4108_v16  ;;  %v3843_v31 = vld [vmem:[#allocation4 + $0x39] sm:$0xff]  ;;  %v3213_v50 = vadd.f32 %v3212_v5, %v3051_v18  ;;  %v6154_v16 = vld [vmem:[#allocation16 + $0x20] sm:$0xff] }
 0x359   : > { %v3544_v36 = vmul.f32 %v7723_v4, %v3508_v20  ;;  %v3855_v49 = vpack.c.bf16 %v3843_v31, %v3842_v35  ;;  %v4098_v44 = vld [vmem:[#allocation4 + $0x3a] sm:$0xff]  ;;  %4045 = vmatpush.bf16.msrb.mxu3 %v6154_v16 }
 0x35a   : > { %v4110_v22 = vpack.c.bf16 %v4098_v44, %v4097_v1 }
 0x35b   : > { %v3580_v9 = vadd.f32 %v7726_v34, %v3544_v36  ;;  %5873 = vmatmul.msk.bf16.gmra.mxu3 %vm3623_vm3, %v3855_v49  ;;  %v6198_v36 = vld [vmem:[#allocation20 + $0xf4] sm:$0xf]  ;;  %v6002_v49 = vld [vmem:[#allocation20 + $0xf8] sm:$0xf0] }
 0x35c   : > { %v6005_v55 = vor.u32 %v6198_v36, %v6002_v49  ;;  %v5992_v36 = vld [vmem:[#allocation20 + $0xe0] sm:$0xf]  ;;  %v6197_v49 = vld [vmem:[#allocation20 + $0xe4] sm:$0xf0] }
 0x35d   : > { %v3612_v52 = vmax.f32 %v3580_v9, 0.0 }
 0x35e   : > { %v3755_v53 = vld [vmem:[#allocation3 + $0x92] ss:$2 sm:$0xff]  ;;  %v3462_v23 = vpop.f32.mrf.mxu2  ;;  %v3053_v54 = vpop.f32.mrf.mxu0  ;;  %4535 = vmatpush.bf16.msra.mxu2 %v6005_v55 }
 0x35f   : > { %v3777_v0 = vmax.f32 %v3729_v28, %v3755_v53  ;;  %3645 = vst.msk [vmem:[#allocation3 + $0xa8] sm:$0xff] %vm3623_vm3, %v3612_v52  ;;  %v3509_v60 = vadd.f32 %v3462_v23, %v3213_v50  ;;  %v3214_v19 = vpop.f32.mrf.mxu1  ;;  %v6151_v55 = vld [vmem:[#allocation16 + $0x8] sm:$0xff] }
 0x360   : > { %v3215_v38 = vadd.f32 %v3214_v19, %v3053_v54 }
 0x361   : > { %3793 = vst.msk [vmem:[#allocation4 + $0x48] sm:$0xff] %vm3623_vm3, %v3777_v0  ;;  %v3545_v39 = vmul.f32 %v7723_v4, %v3509_v60 }
 0x363   : > { %v3581_v12 = vadd.f32 %v7726_v34, %v3545_v39 }
 0x365   : > { %v3613_v56 = vmax.f32 %v3581_v12, 0.0 }
 0x366   : > { %v3464_v48 = vpop.f32.mrf.mxu2  ;;  %v3056_v47 = vpop.f32.mrf.mxu0  ;;  %v3677_v2 = vld [vmem:[#allocation3 + $0xa0] ss:$2 sm:$0xff]  ;;  %v3709_v10 = vld [vmem:[#allocation3 + $0xa1] ss:$2 sm:$0xff] }
 0x367   : > { %3646 = vst.msk [vmem:[#allocation3 + $0xb0] sm:$0xff] %vm3623_vm3, %v3613_v56  ;;  %v3510_v43 = vadd.f32 %v3464_v48, %v3215_v38  ;;  %v3217_v42 = vpop.f32.mrf.mxu1  ;;  %v3730_v14 = vmax.f32 %v3677_v2, %v3709_v10  ;;  %v6199_v2 = vld [vmem:[#allocation20 + $0xf4] sm:$0xf0] }
 0x368   : > { %5936 = vmatmul.msk.bf16.gmra.mxu0 %vm3623_vm3, %v4109_v57  ;;  %v3218_v62 = vadd.f32 %v3217_v42, %v3056_v47  ;;  %v3844_v27 = vld [vmem:[#allocation4 + $0x41] sm:$0xff] }
 0x369   : > { %v3546_v61 = vmul.f32 %v7723_v4, %v3510_v43  ;;  %v4099_v50 = vld [vmem:[#allocation4 + $0x42] sm:$0xff] }
 0x36a   : > { %v6153_v42 = vld [vmem:[#allocation16 + $0x18] sm:$0xff] }
 0x36b   : > { %v3582_v17 = vadd.f32 %v7726_v34, %v3546_v61  ;;  %v6000_v61 = vld [vmem:[#allocation20 + $0xf0] sm:$0xf]  ;;  %4046 = vmatpush.bf16.msrb.mxu3 %v6153_v42 }
 0x36c   : > { %v6001_v10 = vor.u32 %v6199_v2, %v6000_v61 }
 0x36d   : > { %v3614_v24 = vmax.f32 %v3582_v17, 0.0 }
 0x36e   : > { %v3757_v63 = vld [vmem:[#allocation3 + $0xa2] ss:$2 sm:$0xff]  ;;  %v3467_v32 = vpop.f32.mrf.mxu2  ;;  %v3058_v11 = vpop.f32.mrf.mxu0  ;;  %4486 = vmatpush.bf16.msra.mxu1 %v6001_v10 }
 0x36f   : > { %v3778_v40 = vmax.f32 %v3730_v14, %v3757_v63  ;;  %3647 = vst.msk [vmem:[#allocation3 + $0xb8] sm:$0xff] %vm3623_vm3, %v3614_v24  ;;  %v3511_v6 = vadd.f32 %v3467_v32, %v3218_v62  ;;  %v3219_v3 = vpop.f32.mrf.mxu1  ;;  %v6152_v14 = vld [vmem:[#allocation16 + $0x10] sm:$0xff] }
 0x370   : > { %v3220_v33 = vadd.f32 %v3219_v3, %v3058_v11  ;;  %4047 = vmatpush.bf16.msrb.mxu3 %v6152_v14 }
 0x371   : > { %3794 = vst.msk [vmem:[#allocation4 + $0x50] sm:$0xff] %vm3623_vm3, %v3778_v40  ;;  %v3547_v4 = vmul.f32 %v7904_v58, %v3511_v6 }
 0x373   : > { %v3583_v37 = vadd.f32 %v7726_v34, %v3547_v4 }
 0x374   : > { %4048 = vmatpush.bf16.msrb.mxu3 %v6151_v55 }
 0x375   : > { %v3615_v7 = vmax.f32 %v3583_v37, 0.0 }
 0x376   : > { %v3469_v8 = vpop.f32.mrf.mxu2  ;;  %v3679_v21 = vld [vmem:[#allocation3 + $0xb0] ss:$2 sm:$0xff]  ;;  %v3711_v13 = vld [vmem:[#allocation3 + $0xb1] ss:$2 sm:$0xff]  ;;  %v3061_v29 = vpop.f32.mrf.mxu0 }
 0x377   : > { %3648 = vst.msk [vmem:[#allocation3 + $0xc0] sm:$0xff] %vm3623_vm3, %v3615_v7  ;;  %v3512_v46 = vadd.f32 %v3469_v8, %v3220_v33  ;;  %v3222_v18 = vpop.f32.mrf.mxu1  ;;  %v3731_v20 = vmax.f32 %v3679_v21, %v3711_v13  ;;  %v6196_v21 = vld [vmem:[#allocation20 + $0xe4] sm:$0xf]  ;;  %v5994_v13 = vld [vmem:[#allocation20 + $0xe8] sm:$0xf0] }
 0x378   : > { %5937 = vmatmul.msk.bf16.gmra.mxu0 %vm3623_vm3, %v4110_v22  ;;  %v3845_v25 = vld [vmem:[#allocation4 + $0x49] sm:$0xff]  ;;  %v3223_v26 = vadd.f32 %v3222_v18, %v3061_v29  ;;  %v5997_v16 = vor.u32 %v6196_v21, %v5994_v13  ;;  %v3800_v13 = vld [vmem:[#allocation4] sm:$0xff] }
 0x379   : > { %v3548_v30 = vmul.f32 %v7904_v58, %v3512_v46  ;;  %v3856_v59 = vpack.c.bf16 %v3845_v25, %v3844_v27  ;;  %v4100_v28 = vld [vmem:[#allocation4 + $0x4a] sm:$0xff] }
 0x37a   : > { %v4111_v23 = vpack.c.bf16 %v4100_v28, %v4099_v50  ;;  %4536 = vmatpush.bf16.msra.mxu2 %v5997_v16  ;;  %v3801_v21 = vld [vmem:[#allocation4 + $0x8] sm:$0xff] }
 0x37b   : > { %v3584_v34 = vadd.f32 %v7911_v15, %v3548_v30  ;;  %5874 = vmatmul.msk.bf16.gmra.mxu3 %vm3623_vm3, %v3856_v59 }
 0x37d   : > { %v3616_v5 = vmax.f32 %v3584_v34, 0.0 }
 0x37e   : > { %v3759_v35 = vld [vmem:[#allocation3 + $0xb2] ss:$2 sm:$0xff]  ;;  %v3063_v54 = vpop.f32.mrf.mxu0 }
 0x37f   : > { %v3779_v31 = vmax.f32 %v3731_v20, %v3759_v35  ;;  %3649 = vst.msk [vmem:[#allocation3 + $0xc8] sm:$0xff] %vm3623_vm3, %v3616_v5  ;;  %v3224_v0 = vpop.f32.mrf.mxu1 }
 0x380   : > { %v3225_v19 = vadd.f32 %v3224_v0, %v3063_v54  ;;  %v6150_v54 = vld [vmem:[#allocation16] sm:$0xff] }
 0x381   : > { %3795 = vst.msk [vmem:[#allocation4 + $0x58] sm:$0xff] %vm3623_vm3, %v3779_v31  ;;  %4049 = vmatpush.bf16.msrb.mxu3 %v6150_v54  ;;  %v5962_v54 = vld [vmem:[#allocation20 + $0xa8] sm:$0xf0] }
 0x383   : > { %v3472_v9 = vpop.f32.mrf.mxu2 }
 0x384   : > { %v3513_v52 = vadd.f32 %v3472_v9, %v3223_v26  ;;  %v5993_v26 = vor.u32 %v6197_v49, %v5992_v36  ;;  %v6191_v36 = vld [vmem:[#allocation20 + $0xb4] sm:$0xf0]  ;;  %v3802_v49 = vld [vmem:[#allocation4 + $0x10] sm:$0xff] }
 0x386   : > { %v3549_v53 = vmul.f32 %v7904_v58, %v3513_v52  ;;  %v3681_v56 = vld [vmem:[#allocation3 + $0xc0] ss:$2 sm:$0xff]  ;;  %v3713_v38 = vld [vmem:[#allocation3 + $0xc1] ss:$2 sm:$0xff]  ;;  %4487 = vmatpush.bf16.msra.mxu1 %v5993_v26 }
 0x387   : > { %v3732_v48 = vmax.f32 %v3681_v56, %v3713_v38 }
 0x388   : > { %v3585_v60 = vadd.f32 %v7911_v15, %v3549_v53  ;;  %5938 = vmatmul.msk.bf16.gmra.mxu0 %vm3623_vm3, %v4111_v23  ;;  %v3846_v17 = vld [vmem:[#allocation4 + $0x51] sm:$0xff]  ;;  %v5986_v23 = vld [vmem:[#allocation20 + $0xd8] sm:$0xf0] }
 0x389   : > { %v4101_v32 = vld [vmem:[#allocation4 + $0x52] sm:$0xff] }
 0x38a   : > { %v3617_v39 = vmax.f32 %v3585_v60, 0.0  ;;  %v6194_v53 = vld [vmem:[#allocation20 + $0xd4] sm:$0xf] }
 0x38b   : > { %v3474_v41 = vpop.f32.mrf.mxu2 }
 0x38c   : > { %3650 = vst.msk [vmem:[#allocation3 + $0xd0] sm:$0xff] %vm3623_vm3, %v3617_v39  ;;  %v3514_v12 = vadd.f32 %v3474_v41, %v3225_v19  ;;  %v5989_v19 = vor.u32 %v6194_v53, %v5986_v23  ;;  %v6188_v23 = vld [vmem:[#allocation20 + $0xa4] sm:$0xf] }
 0x38e   : > { %v3550_v45 = vmul.f32 %v7904_v58, %v3514_v12  ;;  %4537 = vmatpush.bf16.msra.mxu2 %v5989_v19  ;;  %v6189_v19 = vld [vmem:[#allocation20 + $0xa4] sm:$0xf0] }
 0x390   : > { %v3586_v57 = vadd.f32 %v7911_v15, %v3550_v45 }
 0x392   : > { %v3618_v43 = vmax.f32 %v3586_v57, 0.0  ;;  %v5984_v57 = vld [vmem:[#allocation20 + $0xd0] sm:$0xf] }
 0x393   : > { %v3761_v51 = vld [vmem:[#allocation3 + $0xc2] ss:$2 sm:$0xff] }
 0x394   : > { %v3780_v47 = vmax.f32 %v3732_v48, %v3761_v51  ;;  %3651 = vst.msk [vmem:[#allocation3 + $0xd8] sm:$0xff] %vm3623_vm3, %v3618_v43  ;;  %v6195_v48 = vld [vmem:[#allocation20 + $0xd4] sm:$0xf0] }
 0x395   : > { %v3066_v24 = vpop.f32.mrf.mxu0  ;;  %v3227_v62 = vpop.f32.mrf.mxu1 }
 0x396   : > { %3796 = vst.msk [vmem:[#allocation4 + $0x60] sm:$0xff] %vm3623_vm3, %v3780_v47  ;;  %v3228_v11 = vadd.f32 %v3227_v62, %v3066_v24  ;;  %v5985_v47 = vor.u32 %v6195_v48, %v5984_v57  ;;  %v3809_v48 = vld [vmem:[#allocation4 + $0x48] sm:$0xff] }
 0x398   : > { %4488 = vmatpush.bf16.msra.mxu1 %v5985_v47 }
 0x39b   : > { %v3683_v25 = vld [vmem:[#allocation3 + $0xd0] ss:$2 sm:$0xff]  ;;  %v3715_v59 = vld [vmem:[#allocation3 + $0xd1] ss:$2 sm:$0xff] }
 0x39c   : > { %v3733_v29 = vmax.f32 %v3683_v25, %v3715_v59  ;;  %v6193_v25 = vld [vmem:[#allocation20 + $0xc4] sm:$0xf0]  ;;  %v7946_v59 = vpop.f32.mrf.mxu3 }
 0x39d   : > { %v3847_v63 = vld [vmem:[#allocation4 + $0x59] sm:$0xff]  ;;  %v3068_v1 = vpop.f32.mrf.mxu0  ;;  %v3229_v7 = vpop.f32.mrf.mxu1 }
 0x39e   : > { %v4102_v40 = vld [vmem:[#allocation4 + $0x5a] sm:$0xff]  ;;  %v3857_v6 = vpack.c.bf16 %v3847_v63, %v3846_v17  ;;  %v3230_v22 = vadd.f32 %v3229_v7, %v3068_v1 }
 0x39f   : > { %v4112_v4 = vpack.c.bf16 %v4102_v40, %v4101_v32 }
 0x3a0   : > { %5875 = vmatmul.msk.bf16.gmra.mxu3 %vm3623_vm3, %v3857_v6 }
 0x3a1   : > { %5939 = vmatmul.msk.bf16.gmra.mxu0 %vm3623_vm3, %v4112_v4 }
 0x3a3   : > { %v3477_v3 = vpop.f32.mrf.mxu2 }
 0x3a4   : > { %v3515_v44 = vadd.f32 %v3477_v3, %v3228_v11  ;;  %v6192_v3 = vld [vmem:[#allocation20 + $0xc4] sm:$0xf]  ;;  %v7949_v16 = vpop.f32.mrf.mxu3 }
 0x3a6   : > { %v3551_v37 = vmul.f32 %v7904_v58, %v3515_v44  ;;  %v5978_v44 = vld [vmem:[#allocation20 + $0xc8] sm:$0xf0] }
 0x3a8   : > { %v3587_v33 = vadd.f32 %v7911_v15, %v3551_v37  ;;  %v5981_v37 = vor.u32 %v6192_v3, %v5978_v44 }
 0x3aa   : > { %v3619_v8 = vmax.f32 %v3587_v33, 0.0  ;;  %4538 = vmatpush.bf16.msra.mxu2 %v5981_v37 }
 0x3ab   : > { %v3479_v46 = vpop.f32.mrf.mxu2 }
 0x3ac   : > { %3652 = vst.msk [vmem:[#allocation3 + $0xe0] sm:$0xff] %vm3623_vm3, %v3619_v8  ;;  %v3516_v27 = vadd.f32 %v3479_v46, %v3230_v22 }
 0x3ae   : > { %v3552_v30 = vmul.f32 %v7904_v58, %v3516_v27  ;;  %v5976_v27 = vld [vmem:[#allocation20 + $0xc0] sm:$0xf] }
 0x3b0   : > { %v3588_v34 = vadd.f32 %v7911_v15, %v3552_v30  ;;  %v5977_v30 = vor.u32 %v6193_v25, %v5976_v27 }
 0x3b2   : > { %v3620_v18 = vmax.f32 %v3588_v34, 0.0  ;;  %4489 = vmatpush.bf16.msra.mxu1 %v5977_v30  ;;  %v3816_v34 = vpack.c.bf16 %v3801_v21, %v3800_v13  ;;  %v6048_v30 = vld [vmem:[#allocation20 + $0x50] sm:$0xf]  ;;  %v6179_v21 = vld [vmem:[#allocation20 + $0x54] sm:$0xf0] }
 0x3b3   : > { %v3763_v20 = vld [vmem:[#allocation3 + $0xd2] ss:$2 sm:$0xff] }
 0x3b4   : > { %v3781_v5 = vmax.f32 %v3733_v29, %v3763_v20  ;;  %3653 = vst.msk [vmem:[#allocation3 + $0xe8] sm:$0xff] %vm3623_vm3, %v3620_v18  ;;  %v6190_v29 = vld [vmem:[#allocation20 + $0xb4] sm:$0xf]  ;;  %v5970_v18 = vld [vmem:[#allocation20 + $0xb8] sm:$0xf0] }
 0x3b5   : > { %v3071_v35 = vpop.f32.mrf.mxu0  ;;  %v3232_v31 = vpop.f32.mrf.mxu1  ;;  %v5973_v20 = vor.u32 %v6190_v29, %v5970_v18  ;;  %v6178_v13 = vld [vmem:[#allocation20 + $0x54] sm:$0xf]  ;;  %v6050_v29 = vld [vmem:[#allocation20 + $0x58] sm:$0xf0] }
 0x3b6   : > { %3797 = vst.msk [vmem:[#allocation4 + $0x68] sm:$0xff] %vm3623_vm3, %v3781_v5  ;;  %v3233_v9 = vadd.f32 %v3232_v31, %v3071_v35  ;;  %v7951_v5 = vpop.f32.mrf.mxu3  ;;  %v3803_v35 = vld [vmem:[#allocation4 + $0x18] sm:$0xff]  ;;  %v5968_v31 = vld [vmem:[#allocation20 + $0xb0] sm:$0xf]  ;;  %v6053_v18 = vor.u32 %v6178_v13, %v6050_v29 }
 0x3b7   : > { %4539 = vmatpush.bf16.msra.mxu2 %v5973_v20  ;;  %v5969_v55 = vor.u32 %v6191_v36, %v5968_v31  ;;  %v3817_v26 = vpack.c.bf16 %v3803_v35, %v3802_v49  ;;  %v6040_v35 = vld [vmem:[#allocation20 + $0x40] sm:$0xf]  ;;  %v6177_v31 = vld [vmem:[#allocation20 + $0x44] sm:$0xf0]  ;;  %v6176_v36 = vld [vmem:[#allocation20 + $0x44] sm:$0xf] }
 0x3b8   : > { %v6041_v49 = vor.u32 %v6177_v31, %v6040_v35  ;;  %v7987_v13 = vld [vmem:[#allocation17] ss:$0 sm:$0xff]  ;;  %v7989_v29 = vld [vmem:[#allocation19] ss:$0 sm:$0xff] }
 0x3b9   : > { %4490 = vmatpush.bf16.msra.mxu1 %v5969_v55  ;;  %v6042_v55 = vld [vmem:[#allocation20 + $0x48] sm:$0xf0] }
 0x3bb   : > { %v3685_v43 = vld [vmem:[#allocation3 + $0xe0] ss:$2 sm:$0xff]  ;;  %v3717_v51 = vld [vmem:[#allocation3 + $0xe1] ss:$2 sm:$0xff] }
 0x3bc   : > { %v3482_v28 = vpop.f32.mrf.mxu2  ;;  %v3734_v61 = vmax.f32 %v3685_v43, %v3717_v51  ;;  %v3808_v43 = vld [vmem:[#allocation4 + $0x40] sm:$0xff] }
 0x3bd   : > { %v3517_v52 = vadd.f32 %v3482_v28, %v3233_v9  ;;  %v3073_v0 = vpop.f32.mrf.mxu0  ;;  %v3234_v60 = vpop.f32.mrf.mxu1  ;;  %v3848_v62 = vld [vmem:[#allocation4 + $0x61] sm:$0xff]  ;;  %v3820_v51 = vpack.c.bf16 %v3809_v48, %v3808_v43 }
 0x3be   : > { %v3235_v12 = vadd.f32 %v3234_v60, %v3073_v0  ;;  %v4103_v63 = vld [vmem:[#allocation4 + $0x62] sm:$0xff]  ;;  %v7954_v9 = vpop.f32.mrf.mxu3  ;;  %v5965_v60 = vor.u32 %v6188_v23, %v5962_v54  ;;  %v6174_v23 = vld [vmem:[#allocation20 + $0x34] sm:$0xf]  ;;  %v6034_v54 = vld [vmem:[#allocation20 + $0x38] sm:$0xf0] }
 0x3bf   : > { %v3553_v50 = vmul.f32 %v7904_v58, %v3517_v52  ;;  %v3805_v52 = vld [vmem:[#allocation4 + $0x28] sm:$0xff]  ;;  %v5960_v0 = vld [vmem:[#allocation20 + $0xa0] sm:$0xf] }
 0x3c0   : > { %4540 = vmatpush.bf16.msra.mxu2 %v5965_v60  ;;  %v3813_v37 = vld [vmem:[#allocation4 + $0x68] sm:$0xff] }
 0x3c1   : > { %v3589_v39 = vadd.f32 %v7911_v15, %v3553_v50  ;;  %v3804_v50 = vld [vmem:[#allocation4 + $0x20] sm:$0xff] }
 0x3c2   : > { %v3818_v53 = vpack.c.bf16 %v3805_v52, %v3804_v50  ;;  %v6032_v52 = vld [vmem:[#allocation20 + $0x30] sm:$0xf]  ;;  %v6175_v50 = vld [vmem:[#allocation20 + $0x34] sm:$0xf0] }
 0x3c3   : > { %v3621_v41 = vmax.f32 %v3589_v39, 0.0  ;;  %v5961_v39 = vor.u32 %v6189_v19, %v5960_v0  ;;  %v6037_v0 = vor.u32 %v6174_v23, %v6034_v54 }
 0x3c4   : > { %v3484_v45 = vpop.f32.mrf.mxu2 }
 0x3c5   : > { %3654 = vst.msk [vmem:[#allocation3 + $0xf0] sm:$0xff] %vm3623_vm3, %v3621_v41  ;;  %v3518_v56 = vadd.f32 %v3484_v45, %v3235_v12  ;;  %4491 = vmatpush.bf16.msra.mxu1 %v5961_v39  ;;  %v3807_v12 = vld [vmem:[#allocation4 + $0x38] sm:$0xff]  ;;  %v4197_v60 = vpop.f32.mrf.mxu0 }
 0x3c6   : > { %v7956_v28 = vpop.f32.mrf.mxu3 }
 0x3c7   : > { %v3554_v38 = vmul.f32 %v7904_v58, %v3518_v56  ;;  %v3806_v56 = vld [vmem:[#allocation4 + $0x30] sm:$0xff] }
 0x3c9   : > { %v3590_v42 = vadd.f32 %v7911_v15, %v3554_v38  ;;  %v3819_v38 = vpack.c.bf16 %v3807_v12, %v3806_v56  ;;  %v6024_v12 = vld [vmem:[#allocation20 + $0x20] sm:$0xf]  ;;  %v6173_v56 = vld [vmem:[#allocation20 + $0x24] sm:$0xf0] }
 0x3ca   : > { %v6025_v43 = vor.u32 %v6173_v56, %v6024_v12 }
 0x3cb   : > { %v3622_v2 = vmax.f32 %v3590_v42, 0.0  ;;  %v6186_v42 = vld [vmem:[#allocation20 + $0x94] sm:$0xf] }
 0x3cc   : > { %v3765_v10 = vld [vmem:[#allocation3 + $0xe2] ss:$2 sm:$0xff] }
 0x3cd   : > { %v3782_v17 = vmax.f32 %v3734_v61, %v3765_v10  ;;  %3656 = vst.msk [vmem:[#allocation3 + $0xf8] sm:$0x7f] %vm3655_vm5, %v3622_v2  ;;  %v5954_v61 = vld [vmem:[#allocation20 + $0x98] sm:$0xf0] }
 0x3ce   : > { %v7959_v41 = vpop.f32.mrf.mxu3  ;;  %v5957_v2 = vor.u32 %v6186_v42, %v5954_v61  ;;  %v6184_v61 = vld [vmem:[#allocation20 + $0x84] sm:$0xf] }
 0x3cf   : > { %3798 = vst.msk [vmem:[#allocation4 + $0x70] sm:$0xff] %vm3623_vm3, %v3782_v17  ;;  %v3811_v17 = vld [vmem:[#allocation4 + $0x58] sm:$0xff] }
 0x3d0   : > { %4541 = vmatpush.bf16.msra.mxu2 %v5957_v2  ;;  %v5946_v2 = vld [vmem:[#allocation20 + $0x88] sm:$0xf0] }
 0x3d4   : > { %v3687_v14 = vld [vmem:[#allocation3 + $0xf0] ss:$2 sm:$0x7f]  ;;  %v3719_v24 = vld [vmem:[#allocation3 + $0xf1] ss:$2 sm:$0x7f] }
 0x3d5   : > { %v3735_v58 = vmax.f32 %v3687_v14, %v3719_v24  ;;  %v3767_v32 = vld [vmem:[#allocation3 + $0xf2] ss:$2 sm:$0x7f] }
 0x3d6   : > { %v3849_v40 = vld [vmem:[#allocation4 + $0x69] sm:$0xff] }
 0x3d7   : > { %v4104_v6 = vld [vmem:[#allocation4 + $0x6a] sm:$0xff]  ;;  %v3783_v4 = vmax.f32 %v3735_v58, %v3767_v32  ;;  %v3858_v15 = vpack.c.bf16 %v3849_v40, %v3848_v62  ;;  %v6187_v58 = vld [vmem:[#allocation20 + $0x94] sm:$0xf0] }
 0x3d8   : > { %v4113_v11 = vpack.c.bf16 %v4104_v6, %v4103_v63  ;;  %v3810_v14 = vld [vmem:[#allocation4 + $0x50] sm:$0xff]  ;;  %v6183_v6 = vld [vmem:[#allocation20 + $0x74] sm:$0xf0] }
 0x3d9   : > { %3799 = vst.msk [vmem:[#allocation4 + $0x78] sm:$0x7f] %vm3655_vm5, %v3783_v4  ;;  %5876 = vmatmul.msk.bf16.gmra.mxu3 %vm3623_vm3, %v3858_v15  ;;  %v5952_v24 = vld [vmem:[#allocation20 + $0x90] sm:$0xf]  ;;  %v3821_v62 = vpack.c.bf16 %v3811_v17, %v3810_v14  ;;  %v6182_v4 = vld [vmem:[#allocation20 + $0x74] sm:$0xf]  ;;  %v5949_v14 = vor.u32 %v6184_v61, %v5946_v2 }
 0x3da   : > { %5940 = vmatmul.msk.bf16.gmra.mxu0 %vm3623_vm3, %v4113_v11  ;;  %v5953_v63 = vor.u32 %v6187_v58, %v5952_v24  ;;  %v6064_v40 = vld [vmem:[#allocation20 + $0x70] sm:$0xf]  ;;  %v6066_v11 = vld [vmem:[#allocation20 + $0x78] sm:$0xf0]  ;;  %v6171_v58 = vld [vmem:[#allocation20 + $0x14] sm:$0xf0] }
 0x3db   : > { %v6065_v15 = vor.u32 %v6183_v6, %v6064_v40  ;;  %v6069_v3 = vor.u32 %v6182_v4, %v6066_v11  ;;  %v3814_v48 = vld [vmem:[#allocation4 + $0x70] sm:$0xff]  ;;  %4542 = vmatpush.bf16.msra.mxu2 %v5949_v14  ;;  %v6018_v40 = vld [vmem:[#allocation20 + $0x18] sm:$0xf0]  ;;  %v6169_v11 = vld [vmem:[#allocation20 + $0x4] sm:$0xf0] }
 0x3dc   : > { %4492 = vmatpush.bf16.msra.mxu1 %v5953_v63  ;;  %v6016_v24 = vld [vmem:[#allocation20 + $0x10] sm:$0xf]  ;;  %v6212_v14 = vld [vmem:[#allocation20 + $0x164] sm:$0xf] }
 0x3dd   : > { %4664 = vmatpush.bf16.msra.mxu3 %v6065_v15  ;;  %4713 = vmatpush.bf16.msrb.mxu0 %v6069_v3  ;;  %v6017_v63 = vor.u32 %v6171_v58, %v6016_v24  ;;  %v6008_v15 = vld [vmem:[#allocation20] sm:$0xf]  ;;  %v6168_v3 = vld [vmem:[#allocation20 + $0x4] sm:$0xf]  ;;  %v6122_v24 = vld [vmem:[#allocation20 + $0x168] sm:$0xf0] }
 0x3de   : > { %v7961_v45 = vpop.f32.mrf.mxu3  ;;  %v6125_v58 = vor.u32 %v6212_v14, %v6122_v24 }
 0x3e0   : > { %v3850_v1 = vld [vmem:[#allocation4 + $0x71] sm:$0xff]  ;;  %v3851_v7 = vld [vmem:[#allocation4 + $0x79] sm:$0x1f] }
 0x3e1   : > { %v4105_v33 = vld [vmem:[#allocation4 + $0x72] sm:$0xff]  ;;  %v4106_v22 = vld [vmem:[#allocation4 + $0x7a] sm:$0x1f]  ;;  %v3859_v8 = vpack.c.bf16 %v3851_v7, %v3850_v1  ;;  %v6056_v1 = vld [vmem:[#allocation20 + $0x60] sm:$0xf] }
 0x3e2   : > { %v4114_v46 = vpack.c.bf16 %v4106_v22, %v4105_v33  ;;  %v6181_v7 = vld [vmem:[#allocation20 + $0x64] sm:$0xf0]  ;;  %v6180_v33 = vld [vmem:[#allocation20 + $0x64] sm:$0xf]  ;;  %v3815_v39 = vld [vmem:[#allocation4 + $0x78] sm:$0x1f] }
 0x3e3   : > { %v3812_v22 = vld [vmem:[#allocation4 + $0x60] sm:$0xff]  ;;  %v3823_v42 = vpack.c.bf16 %v3815_v39, %v3814_v48 }
 0x3e4   : > { %v3822_v27 = vpack.c.bf16 %v3813_v37, %v3812_v22  ;;  %v4199_v37 = vpop.f32.mrf.mxu0  ;;  %v6185_v22 = vld [vmem:[#allocation20 + $0x84] sm:$0xf0] }
 0x3e6   : > { %v7964_v57 = vpop.f32.mrf.mxu3 }
 0x3e9   : > { %5877 = vmatmul.msk.bf16.gmra.mxu3 %vm3623_vm3, %v3859_v8  ;;  %v6057_v8 = vor.u32 %v6181_v7, %v6056_v1  ;;  %v6009_v1 = vor.u32 %v6169_v11, %v6008_v15  ;;  %v6010_v7 = vld [vmem:[#allocation20 + $0x8] sm:$0xf0] }
 0x3ea   : > { %5941 = vmatmul.msk.bf16.gmra.mxu0 %vm3623_vm3, %v4114_v46  ;;  %v6058_v46 = vld [vmem:[#allocation20 + $0x68] sm:$0xf0] }
 0x3eb   : > { %v6061_v25 = vor.u32 %v6180_v33, %v6058_v46  ;;  %4665 = vmatpush.bf16.msra.mxu3 %v6057_v8  ;;  %v5944_v33 = vld [vmem:[#allocation20 + $0x80] sm:$0xf]  ;;  %v6013_v8 = vor.u32 %v6168_v3, %v6010_v7 }
 0x3ec   : > { %v5945_v46 = vor.u32 %v6185_v22, %v5944_v33  ;;  %v6120_v7 = vld [vmem:[#allocation20 + $0x160] sm:$0xf]  ;;  %v6213_v33 = vld [vmem:[#allocation20 + $0x164] sm:$0xf0] }
 0x3ed   : > { %4714 = vmatpush.bf16.msrb.mxu0 %v6061_v25  ;;  %v4202_v25 = vpop.f32.mrf.mxu0 }
 0x3ee   : > { %4493 = vmatpush.bf16.msra.mxu1 %v5945_v46 }
 0x3f1   : > { %4715 = vmatpush.bf16.msrb.mxu0 %v6053_v18 }
 0x3f5   : > { %v4204_v35 = vpop.f32.mrf.mxu0 }
 0x3f9   : > { %5902 = vmatmul.msk.bf16.vlgmr.msrb.gmra.mxu3 %vm3623_vm3, %v3816_v34  ;;  %v6049_v34 = vor.u32 %v6179_v21, %v6048_v30 }
 0x3fb   : > { %4666 = vmatpush.bf16.msra.mxu3 %v6049_v34 }
 0x3fd   : > { %v4207_v54 = vpop.f32.mrf.mxu0 }
 0x3fe   : > { %v7966_v47 = vpop.f32.mrf.mxu3 }
 0x3ff   : > { %4667 = vmatpush.bf16.msra.mxu3 %v6041_v49 }
 0x406   : > { %v7969_v10 = vpop.f32.mrf.mxu3 }
 0x409   : > { %5903 = vmatmul.msk.bf16.gmra.mxu3 %vm3623_vm3, %v3817_v26  ;;  %v6045_v26 = vor.u32 %v6176_v36, %v6042_v55 }
 0x40b   : > { %4716 = vmatpush.bf16.msrb.mxu0 %v6045_v26 }
 0x40f   : > { %4717 = vmatpush.bf16.msrb.mxu0 %v6037_v0 }
 0x419   : > { %5904 = vmatmul.msk.bf16.gmra.mxu3 %vm3623_vm3, %v3818_v53  ;;  %v6033_v53 = vor.u32 %v6175_v50, %v6032_v52  ;;  %v6214_v52 = vld [vmem:[#allocation20 + $0x174] sm:$0xf]  ;;  %v6130_v50 = vld [vmem:[#allocation20 + $0x178] sm:$0xf0] }
 0x41b   : > { %4668 = vmatpush.bf16.msra.mxu3 %v6033_v53  ;;  %v6133_v53 = vor.u32 %v6214_v52, %v6130_v50 }
 0x41d   : > { %4932 = vmatpush.bf16.msrb.mxu2 %v6133_v53 }
 0x41f   : > { %4669 = vmatpush.bf16.msra.mxu3 %v6025_v43 }
 0x421   : > { %4933 = vmatpush.bf16.msrb.mxu2 %v6125_v58 }
 0x423   : > { %v7972_v32 = vpop.f32.mrf.mxu3  ;;  %4670 = vmatpush.bf16.msra.mxu3 %v6017_v63 }
 0x427   : > { %4671 = vmatpush.bf16.msra.mxu3 %v6009_v1 }
 0x429   : > { %5905 = vmatmul.msk.bf16.gmra.mxu3 %vm3623_vm3, %v3819_v38  ;;  %v6172_v38 = vld [vmem:[#allocation20 + $0x24] sm:$0xf] }
 0x42b   : > { %v7974_v44 = vpop.f32.mrf.mxu3 }
 0x439   : > { %5906 = vmatmul.msk.bf16.gmra.mxu3 %vm3623_vm3, %v3820_v51  ;;  %v6026_v51 = vld [vmem:[#allocation20 + $0x28] sm:$0xf0] }
 0x43a   : > { %v6029_v17 = vor.u32 %v6172_v38, %v6026_v51  ;;  %v6128_v38 = vld [vmem:[#allocation20 + $0x170] sm:$0xf] }
 0x43c   : > { %4718 = vmatpush.bf16.msrb.mxu0 %v6029_v17  ;;  %v4209_v17 = vpop.f32.mrf.mxu0 }
 0x444   : > { %v4212_v22 = vpop.f32.mrf.mxu0 }
 0x449   : > { %5907 = vmatmul.msk.bf16.gmra.mxu3 %vm3623_vm3, %v3821_v62  ;;  %v6170_v62 = vld [vmem:[#allocation20 + $0x14] sm:$0xf] }
 0x44a   : > { %v6021_v6 = vor.u32 %v6170_v62, %v6018_v40 }
 0x44c   : > { %4719 = vmatpush.bf16.msrb.mxu0 %v6021_v6 }
 0x450   : > { %4720 = vmatpush.bf16.msrb.mxu0 %v6013_v8  ;;  %v6121_v8 = vor.u32 %v6213_v33, %v6120_v7 }
 0x459   : > { %5908 = vmatmul.msk.bf16.gmra.mxu3 %vm3623_vm3, %v3822_v27 }
 0x45c   : > { %v7977_v20 = vpop.f32.mrf.mxu3 }
 0x464   : > { %v7979_v19 = vpop.f32.mrf.mxu3 }
 0x469   : > { %5909 = vmatmul.msk.bf16.gmra.mxu3 %vm3623_vm3, %v3823_v42 }
 0x46c   : > { %v7982_v4 = vpop.f32.mrf.mxu3 }
 0x474   : > { %v7984_v27 = vpop.f32.mrf.mxu3 }
 0x47c   : > { %v4051_v30 = vpop.f32.mrf.mxu3 }
 0x47d   : > { %v4052_v21 = vadd.f32 %v4051_v30, %v7946_v59 }
 0x47f   : > { %v4237_v34 = vadd.f32 %v4197_v60, %v4052_v21 }
 0x481   : > { %v4257_v18 = vmul.f32 %v7987_v13, %v4237_v34 }
 0x483   : > { %v4277_v31 = vadd.f32 %v7989_v29, %v4257_v18  ;;  %v6210_v18 = vld [vmem:[#allocation20 + $0x154] sm:$0xf] }
 0x484   : > { %v4053_v36 = vpop.f32.mrf.mxu3 }
 0x485   : > { %v4293_v49 = vmax.f32 %v4277_v31, 0.0  ;;  %v4054_v55 = vadd.f32 %v4053_v36, %v7949_v16  ;;  %v6215_v16 = vld [vmem:[#allocation20 + $0x174] sm:$0xf0] }
 0x486   : > { %v6129_v48 = vor.u32 %v6215_v16, %v6128_v38 }
 0x487   : > { %4309 = vst [vmem:[#allocation5] sm:$0xff] %v4293_v49  ;;  %v4238_v26 = vadd.f32 %v4199_v37, %v4054_v55 }
 0x488   : > { %4883 = vmatpush.bf16.msrb.mxu1 %v6129_v48 }
 0x489   : > { %v4258_v59 = vmul.f32 %v7987_v13, %v4238_v26 }
 0x48b   : > { %v4278_v23 = vadd.f32 %v7989_v29, %v4258_v59 }
 0x48c   : > { %v4056_v0 = vpop.f32.mrf.mxu3  ;;  %4884 = vmatpush.bf16.msrb.mxu1 %v6121_v8  ;;  %v6206_v8 = vld [vmem:[#allocation20 + $0x134] sm:$0xf] }
 0x48d   : > { %v4294_v60 = vmax.f32 %v4278_v23, 0.0  ;;  %v4057_v39 = vadd.f32 %v4056_v0, %v7951_v5  ;;  %v6112_v0 = vld [vmem:[#allocation20 + $0x150] sm:$0xf] }
 0x48f   : > { %4310 = vst [vmem:[#allocation5 + $0x8] sm:$0xff] %v4294_v60  ;;  %v4239_v12 = vadd.f32 %v4202_v25, %v4057_v39  ;;  %v4341_v56 = vpack.c.bf16 %v4294_v60, %v4293_v49  ;;  %v4214_v49 = vpop.f32.mrf.mxu0  ;;  %v6211_v60 = vld [vmem:[#allocation20 + $0x154] sm:$0xf0] }
 0x490   : > { %v6113_v39 = vor.u32 %v6211_v60, %v6112_v0  ;;  %v6204_v0 = vld [vmem:[#allocation20 + $0x124] sm:$0xf]  ;;  %v6090_v60 = vld [vmem:[#allocation20 + $0x128] sm:$0xf0] }
 0x491   : > { %v4259_v43 = vmul.f32 %v7987_v13, %v4239_v12  ;;  %4672 = vmatmul.bf16.vlgmr.msra.gmra.mxu3 %v4341_v56  ;;  %4721 = vmatmul.bf16.vlgmr.msrb.gmra.mxu0 %v4341_v56 }
 0x492   : > { %4885 = vmatpush.bf16.msrb.mxu1 %v6113_v39 }
 0x493   : > { %v4279_v51 = vadd.f32 %v7989_v29, %v4259_v43 }
 0x494   : > { %v4058_v42 = vpop.f32.mrf.mxu3 }
 0x495   : > { %v4295_v61 = vmax.f32 %v4279_v51, 0.0  ;;  %v4059_v2 = vadd.f32 %v4058_v42, %v7954_v9  ;;  %v6208_v51 = vld [vmem:[#allocation20 + $0x144] sm:$0xf]  ;;  %v6106_v42 = vld [vmem:[#allocation20 + $0x148] sm:$0xf0] }
 0x496   : > { %v4365_v11 = vld [vmem:[#allocation5 + $0x1] sm:$0xff] }
 0x497   : > { %4311 = vst [vmem:[#allocation5 + $0x10] sm:$0xff] %v4295_v61  ;;  %v4240_v5 = vadd.f32 %v4204_v35, %v4059_v2  ;;  %v6114_v35 = vld [vmem:[#allocation20 + $0x158] sm:$0xf0]  ;;  %v4217_v38 = vpop.f32.mrf.mxu0 }
 0x498   : > { %v6117_v31 = vor.u32 %v6210_v18, %v6114_v35 }
 0x499   : > { %v4260_v62 = vmul.f32 %v7987_v13, %v4240_v5 }
 0x49a   : > { %4934 = vmatpush.bf16.msrb.mxu2 %v6117_v31 }
 0x49b   : > { %v4280_v63 = vadd.f32 %v7989_v29, %v4260_v62 }
 0x49c   : > { %v4061_v40 = vpop.f32.mrf.mxu3 }
 0x49d   : > { %v4296_v6 = vmax.f32 %v4280_v63, 0.0  ;;  %v4062_v15 = vadd.f32 %v4061_v40, %v7956_v28 }
 0x49e   : > { %v4366_v3 = vld [vmem:[#allocation5 + $0x9] sm:$0xff] }
 0x49f   : > { %4312 = vst [vmem:[#allocation5 + $0x18] sm:$0xff] %v4296_v6  ;;  %v4241_v37 = vadd.f32 %v4207_v54, %v4062_v15  ;;  %v4381_v9 = vpack.c.bf16 %v4366_v3, %v4365_v11  ;;  %v4342_v1 = vpack.c.bf16 %v4296_v6, %v4295_v61  ;;  %v6109_v61 = vor.u32 %v6208_v51, %v6106_v42  ;;  %v4219_v58 = vpop.f32.mrf.mxu0  ;;  %v6104_v15 = vld [vmem:[#allocation20 + $0x140] sm:$0xf]  ;;  %v6209_v11 = vld [vmem:[#allocation20 + $0x144] sm:$0xf0] }
 0x4a0   : > { %v6105_v3 = vor.u32 %v6209_v11, %v6104_v15 }
 0x4a1   : > { %v4261_v46 = vmul.f32 %v7987_v13, %v4241_v37  ;;  %4494 = vmatmul.bf16.vlgmr.msra.gmra.mxu1 %v4381_v9  ;;  %4543 = vmatmul.bf16.vlgmr.msra.gmra.mxu2 %v4381_v9 }
 0x4a2   : > { %4677 = vmatmul.bf16.gmra.mxu3 %v4342_v1  ;;  %4726 = vmatmul.bf16.gmra.mxu0 %v4342_v1 }
 0x4a3   : > { %v4281_v25 = vadd.f32 %v7989_v29, %v4261_v46  ;;  %4935 = vmatpush.bf16.msrb.mxu2 %v6109_v61  ;;  %4886 = vmatpush.bf16.msrb.mxu1 %v6105_v3  ;;  %v6098_v46 = vld [vmem:[#allocation20 + $0x138] sm:$0xf0] }
 0x4a4   : > { %v4063_v28 = vpop.f32.mrf.mxu3 }
 0x4a5   : > { %v4297_v30 = vmax.f32 %v4281_v25, 0.0  ;;  %v4064_v21 = vadd.f32 %v4063_v28, %v7959_v41  ;;  %v6101_v25 = vor.u32 %v6206_v8, %v6098_v46 }
 0x4a6   : > { %v4367_v53 = vld [vmem:[#allocation5 + $0x11] sm:$0xff] }
 0x4a7   : > { %4313 = vst [vmem:[#allocation5 + $0x20] sm:$0xff] %v4297_v30  ;;  %v4242_v34 = vadd.f32 %v4209_v17, %v4064_v21  ;;  %v4222_v33 = vpop.f32.mrf.mxu0  ;;  %4936 = vmatpush.bf16.msrb.mxu2 %v6101_v25 }
 0x4a9   : > { %v4262_v36 = vmul.f32 %v7987_v13, %v4242_v34 }
 0x4ab   : > { %v4282_v55 = vadd.f32 %v7989_v29, %v4262_v36 }
 0x4ac   : > { %v4066_v26 = vpop.f32.mrf.mxu3 }
 0x4ad   : > { %v4298_v52 = vmax.f32 %v4282_v55, 0.0  ;;  %v4067_v50 = vadd.f32 %v4066_v26, %v7961_v45  ;;  %v6096_v55 = vld [vmem:[#allocation20 + $0x130] sm:$0xf]  ;;  %v6207_v26 = vld [vmem:[#allocation20 + $0x134] sm:$0xf0] }
 0x4ae   : > { %v4368_v59 = vld [vmem:[#allocation5 + $0x19] sm:$0xff] }
 0x4af   : > { %4314 = vst [vmem:[#allocation5 + $0x28] sm:$0xff] %v4298_v52  ;;  %v4243_v23 = vadd.f32 %v4212_v22, %v4067_v50  ;;  %v4382_v41 = vpack.c.bf16 %v4368_v59, %v4367_v53  ;;  %v4343_v54 = vpack.c.bf16 %v4298_v52, %v4297_v30  ;;  %v4224_v52 = vpop.f32.mrf.mxu0  ;;  %v6097_v50 = vor.u32 %v6207_v26, %v6096_v55 }
 0x4b1   : > { %v4263_v12 = vmul.f32 %v7987_v13, %v4243_v23  ;;  %4499 = vmatmul.bf16.gmra.mxu1 %v4382_v41  ;;  %4548 = vmatmul.bf16.gmra.mxu2 %v4382_v41 }
 0x4b2   : > { %4682 = vmatmul.bf16.gmra.mxu3 %v4343_v54  ;;  %4731 = vmatmul.bf16.gmra.mxu0 %v4343_v54 }
 0x4b3   : > { %v4283_v56 = vadd.f32 %v7989_v29, %v4263_v12  ;;  %4887 = vmatpush.bf16.msrb.mxu1 %v6097_v50  ;;  %v6093_v12 = vor.u32 %v6204_v0, %v6090_v60 }
 0x4b4   : > { %v4068_v45 = vpop.f32.mrf.mxu3 }
 0x4b5   : > { %v4299_v16 = vmax.f32 %v4283_v56, 0.0  ;;  %v4069_v48 = vadd.f32 %v4068_v45, %v7964_v57  ;;  %4937 = vmatpush.bf16.msrb.mxu2 %v6093_v12  ;;  %v4763_v12 = vld [vmem:[#allocation5 + $0xa] sm:$0xff] }
 0x4b6   : > { %v4369_v62 = vld [vmem:[#allocation5 + $0x21] sm:$0xff] }
 0x4b7   : > { %4315 = vst [vmem:[#allocation5 + $0x30] sm:$0xff] %v4299_v16  ;;  %v4244_v43 = vadd.f32 %v4214_v49, %v4069_v48  ;;  %v4227_v39 = vpop.f32.mrf.mxu0 }
 0x4b9   : > { %v4264_v2 = vmul.f32 %v7987_v13, %v4244_v43 }
 0x4bb   : > { %v4284_v17 = vadd.f32 %v7989_v29, %v4264_v2  ;;  %v6088_v2 = vld [vmem:[#allocation20 + $0x120] sm:$0xf] }
 0x4bc   : > { %v4071_v5 = vpop.f32.mrf.mxu3 }
 0x4bd   : > { %v4300_v14 = vmax.f32 %v4284_v17, 0.0  ;;  %v4072_v24 = vadd.f32 %v4071_v5, %v7966_v47  ;;  %v6205_v17 = vld [vmem:[#allocation20 + $0x124] sm:$0xf0] }
 0x4be   : > { %v4370_v63 = vld [vmem:[#allocation5 + $0x29] sm:$0xff]  ;;  %v6089_v5 = vor.u32 %v6205_v17, %v6088_v2 }
 0x4bf   : > { %4316 = vst [vmem:[#allocation5 + $0x38] sm:$0xff] %v4300_v14  ;;  %v4245_v40 = vadd.f32 %v4217_v38, %v4072_v24  ;;  %v4383_v57 = vpack.c.bf16 %v4370_v63, %v4369_v62  ;;  %v4344_v6 = vpack.c.bf16 %v4300_v14, %v4299_v16  ;;  %v6202_v24 = vld [vmem:[#allocation20 + $0x114] sm:$0xf]  ;;  %v6080_v62 = vld [vmem:[#allocation20 + $0x110] sm:$0xf]  ;;  %v4229_v63 = vpop.f32.mrf.mxu0 }
 0x4c0   : > { %4888 = vmatpush.bf16.msrb.mxu1 %v6089_v5  ;;  %v4767_v17 = vld [vmem:[#allocation5 + $0x2a] sm:$0xff] }
 0x4c1   : > { %v4265_v37 = vmul.f32 %v7987_v13, %v4245_v40  ;;  %4504 = vmatmul.bf16.gmra.mxu1 %v4383_v57  ;;  %4553 = vmatmul.bf16.gmra.mxu2 %v4383_v57  ;;  %v6203_v40 = vld [vmem:[#allocation20 + $0x114] sm:$0xf0] }
 0x4c2   : > { %4687 = vmatmul.bf16.gmra.mxu3 %v4344_v6  ;;  %4736 = vmatmul.bf16.gmra.mxu0 %v4344_v6  ;;  %v6081_v6 = vor.u32 %v6203_v40, %v6080_v62 }
 0x4c3   : > { %v4285_v9 = vadd.f32 %v7989_v29, %v4265_v37 }
 0x4c4   : > { %v4073_v47 = vpop.f32.mrf.mxu3  ;;  %4889 = vmatpush.bf16.msrb.mxu1 %v6081_v6 }
 0x4c5   : > { %v4301_v1 = vmax.f32 %v4285_v9, 0.0  ;;  %v4074_v7 = vadd.f32 %v4073_v47, %v7969_v10 }
 0x4c6   : > { %v4371_v35 = vld [vmem:[#allocation5 + $0x31] sm:$0xff] }
 0x4c7   : > { %4317 = vst [vmem:[#allocation5 + $0x40] sm:$0xff] %v4301_v1  ;;  %v4246_v22 = vadd.f32 %v4219_v58, %v4074_v7  ;;  %v6082_v58 = vld [vmem:[#allocation20 + $0x118] sm:$0xf0] }
 0x4c9   : > { %v4266_v28 = vmul.f32 %v7987_v13, %v4246_v22 }
 0x4cb   : > { %v4286_v30 = vadd.f32 %v7989_v29, %v4266_v28 }
 0x4cc   : > { %v4076_v21 = vpop.f32.mrf.mxu3 }
 0x4cd   : > { %v4302_v34 = vmax.f32 %v4286_v30, 0.0  ;;  %v4077_v18 = vadd.f32 %v4076_v21, %v7972_v32  ;;  %v6200_v21 = vld [vmem:[#allocation20 + $0x104] sm:$0xf] }
 0x4ce   : > { %v4372_v31 = vld [vmem:[#allocation5 + $0x39] sm:$0xff] }
 0x4cf   : > { %4318 = vst [vmem:[#allocation5 + $0x48] sm:$0xff] %v4302_v34  ;;  %v4247_v36 = vadd.f32 %v4222_v33, %v4077_v18  ;;  %v4384_v10 = vpack.c.bf16 %v4372_v31, %v4371_v35  ;;  %v4345_v49 = vpack.c.bf16 %v4302_v34, %v4301_v1  ;;  %v4232_v1 = vpop.f32.mrf.mxu0  ;;  %v6074_v34 = vld [vmem:[#allocation20 + $0x108] sm:$0xf0]  ;;  %v6072_v18 = vld [vmem:[#allocation20 + $0x100] sm:$0xf] }
 0x4d0   : > { %v6077_v35 = vor.u32 %v6200_v21, %v6074_v34  ;;  %v6201_v31 = vld [vmem:[#allocation20 + $0x104] sm:$0xf0] }
 0x4d1   : > { %v4267_v53 = vmul.f32 %v7987_v13, %v4247_v36  ;;  %4509 = vmatmul.bf16.gmra.mxu1 %v4384_v10  ;;  %4558 = vmatmul.bf16.gmra.mxu2 %v4384_v10 }
 0x4d2   : > { %4692 = vmatmul.bf16.gmra.mxu3 %v4345_v49  ;;  %4741 = vmatmul.bf16.gmra.mxu0 %v4345_v49 }
 0x4d3   : > { %v4287_v59 = vadd.f32 %v7989_v29, %v4267_v53 }
 0x4d4   : > { %v4078_v32 = vpop.f32.mrf.mxu3 }
 0x4d5   : > { %v4303_v23 = vmax.f32 %v4287_v59, 0.0  ;;  %v4079_v41 = vadd.f32 %v4078_v32, %v7974_v44 }
 0x4d6   : > { %v4373_v43 = vld [vmem:[#allocation5 + $0x41] sm:$0xff] }
 0x4d7   : > { %4319 = vst [vmem:[#allocation5 + $0x50] sm:$0xff] %v4303_v23  ;;  %v4248_v54 = vadd.f32 %v4224_v52, %v4079_v41  ;;  %v4234_v26 = vpop.f32.mrf.mxu0 }
 0x4d9   : > { %v4268_v56 = vmul.f32 %v7987_v13, %v4248_v54 }
 0x4db   : > { %v4288_v38 = vadd.f32 %v7989_v29, %v4268_v56 }
 0x4dc   : > { %v4081_v45 = vpop.f32.mrf.mxu3 }
 0x4dd   : > { %v4304_v16 = vmax.f32 %v4288_v38, 0.0  ;;  %v4082_v48 = vadd.f32 %v4081_v45, %v7977_v20  ;;  %v6085_v20 = vor.u32 %v6202_v24, %v6082_v58 }
 0x4de   : > { %v4374_v51 = vld [vmem:[#allocation5 + $0x49] sm:$0xff] }
 0x4df   : > { %4320 = vst [vmem:[#allocation5 + $0x58] sm:$0xff] %v4304_v16  ;;  %v4249_v42 = vadd.f32 %v4227_v39, %v4082_v48  ;;  %v4385_v44 = vpack.c.bf16 %v4374_v51, %v4373_v43  ;;  %v4346_v61 = vpack.c.bf16 %v4304_v16, %v4303_v23  ;;  %4938 = vmatpush.bf16.msrb.mxu2 %v6085_v20  ;;  %v4765_v48 = vld [vmem:[#allocation5 + $0x1a] sm:$0xff]  ;;  %v4764_v51 = vld [vmem:[#allocation5 + $0x12] sm:$0xff] }
 0x4e0   : > { %v4769_v20 = vld [vmem:[#allocation5 + $0x3a] sm:$0xff] }
 0x4e1   : > { %v4269_v14 = vmul.f32 %v7987_v13, %v4249_v42  ;;  %4514 = vmatmul.bf16.gmra.mxu1 %v4385_v44  ;;  %4563 = vmatmul.bf16.gmra.mxu2 %v4385_v44  ;;  %v4779_v42 = vpack.c.bf16 %v4765_v48, %v4764_v51  ;;  %v5051_v51 = vld [vmem:[#allocation23] sm:$0x3] }
 0x4e2   : > { %4697 = vmatmul.bf16.gmra.mxu3 %v4346_v61  ;;  %4746 = vmatmul.bf16.gmra.mxu0 %v4346_v61 }
 0x4e3   : > { %v4289_v57 = vadd.f32 %v7989_v29, %v4269_v14  ;;  %4939 = vmatpush.bf16.msrb.mxu2 %v6077_v35  ;;  %v4766_v14 = vld [vmem:[#allocation5 + $0x22] sm:$0xff] }
 0x4e4   : > { %v4083_v15 = vpop.f32.mrf.mxu3  ;;  %v4780_v24 = vpack.c.bf16 %v4767_v17, %v4766_v14  ;;  %v8107_v14 = vperm.slane %v5051_v51, 0 }
 0x4e5   : > { %v4305_v11 = vmax.f32 %v4289_v57, 0.0  ;;  %v4084_v3 = vadd.f32 %v4083_v15, %v7979_v19  ;;  %v4768_v57 = vld [vmem:[#allocation5 + $0x32] sm:$0xff] }
 0x4e6   : > { %v4375_v8 = vld [vmem:[#allocation5 + $0x51] sm:$0xff]  ;;  %v4781_v6 = vpack.c.bf16 %v4769_v20, %v4768_v57 }
 0x4e7   : > { %4321 = vst [vmem:[#allocation5 + $0x60] sm:$0xff] %v4305_v11  ;;  %v4250_v37 = vadd.f32 %v4229_v63, %v4084_v3 }
 0x4e9   : > { %v4270_v9 = vmul.f32 %v7987_v13, %v4250_v37  ;;  %v4771_v37 = vld [vmem:[#allocation5 + $0x4a] sm:$0xff] }
 0x4eb   : > { %v4290_v47 = vadd.f32 %v7989_v29, %v4270_v9 }
 0x4ec   : > { %v4086_v7 = vpop.f32.mrf.mxu3 }
 0x4ed   : > { %v4306_v33 = vmax.f32 %v4290_v47, 0.0  ;;  %v4087_v22 = vadd.f32 %v4086_v7, %v7982_v4  ;;  %v6073_v4 = vor.u32 %v6201_v31, %v6072_v18  ;;  %v4770_v47 = vld [vmem:[#allocation5 + $0x42] sm:$0xff] }
 0x4ee   : > { %v4376_v46 = vld [vmem:[#allocation5 + $0x59] sm:$0xff] }
 0x4ef   : > { %4322 = vst [vmem:[#allocation5 + $0x68] sm:$0xff] %v4306_v33  ;;  %v4251_v25 = vadd.f32 %v4232_v1, %v4087_v22  ;;  %v4386_v28 = vpack.c.bf16 %v4376_v46, %v4375_v8  ;;  %v4347_v30 = vpack.c.bf16 %v4306_v33, %v4305_v11  ;;  %4890 = vmatpush.bf16.msrb.mxu1 %v6073_v4  ;;  %v4773_v8 = vld [vmem:[#allocation5 + $0x5a] sm:$0xff] }
 0x4f0   : > { %v4782_v1 = vpack.c.bf16 %v4771_v37, %v4770_v47  ;;  %v8112_v37 = vperm.slane %v5051_v51, 1 }
 0x4f1   : > { %v4271_v19 = vmul.f32 %v7987_v13, %v4251_v25  ;;  %4519 = vmatmul.bf16.gmra.mxu1 %v4386_v28  ;;  %4568 = vmatmul.bf16.gmra.mxu2 %v4386_v28  ;;  %v4772_v25 = vld [vmem:[#allocation5 + $0x52] sm:$0xff] }
 0x4f2   : > { %4702 = vmatmul.bf16.gmra.mxu3 %v4347_v30  ;;  %4751 = vmatmul.bf16.gmra.mxu0 %v4347_v30  ;;  %v4783_v28 = vpack.c.bf16 %v4773_v8, %v4772_v25 }
 0x4f3   : > { %v4291_v36 = vadd.f32 %v7989_v29, %v4271_v19 }
 0x4f4   : > { %v4088_v10 = vpop.f32.mrf.mxu3 }
 0x4f5   : > { %v4307_v49 = vmax.f32 %v4291_v36, 0.0  ;;  %v4089_v55 = vadd.f32 %v4088_v10, %v7984_v27 }
 0x4f6   : > { %v4377_v32 = vld [vmem:[#allocation5 + $0x61] sm:$0xff] }
 0x4f7   : > { %4323 = vst [vmem:[#allocation5 + $0x70] sm:$0xff] %v4307_v49  ;;  %v4252_v52 = vadd.f32 %v4234_v26, %v4089_v55  ;;  %v4774_v35 = vld [vmem:[#allocation5 + $0x62] sm:$0xff] }
 0x4f9   : > { %v4272_v50 = vmul.f32 %v7987_v13, %v4252_v52 }
 0x4fb   : > { %v4292_v53 = vadd.f32 %v7989_v29, %v4272_v50  ;;  %v4762_v29 = vld [vmem:[#allocation5 + $0x2] sm:$0xff] }
 0x4fc   : > { %v4778_v56 = vpack.c.bf16 %v4763_v12, %v4762_v29 }
 0x4fd   : > { %v4308_v59 = vmax.f32 %v4292_v53, 0.0 }
 0x4fe   : > { %v4378_v23 = vld [vmem:[#allocation5 + $0x69] sm:$0xff] }
 0x4ff   : > { %4324 = vst [vmem:[#allocation5 + $0x78] sm:$0x1f] %v4308_v59  ;;  %v4387_v41 = vpack.c.bf16 %v4378_v23, %v4377_v32  ;;  %v4775_v34 = vld [vmem:[#allocation5 + $0x6a] sm:$0xff] }
 0x500   : > { %v4784_v31 = vpack.c.bf16 %v4775_v34, %v4774_v35 }
 0x501   : > { %4524 = vmatmul.bf16.gmra.mxu1 %v4387_v41  ;;  %4573 = vmatmul.bf16.gmra.mxu2 %v4387_v41 }
 0x506   : > { %v4340_v54 = vld [vmem:[#allocation5 + $0x78] sm:$0x7] }
 0x507   : > { %v4348_v0 = vpack.c.bf16 %v4340_v54, %v4307_v49  ;;  %v4379_v27 = vld [vmem:[#allocation5 + $0x71] sm:$0xff]  ;;  %v4380_v60 = vld [vmem:[#allocation5 + $0x79] sm:$0x7] }
 0x508   : > { %v4388_v39 = vpack.c.bf16 %v4380_v60, %v4379_v27  ;;  %v4776_v52 = vld [vmem:[#allocation5 + $0x72] sm:$0xff]  ;;  %v4777_v50 = vld [vmem:[#allocation5 + $0x7a] sm:$0x7]  ;;  %v5013_v60 = vld [vmem:[#allocation22] sm:$0x3] }
 0x509   : > { %4707 = vmatmul.bf16.gmra.mxu3 %v4348_v0  ;;  %4756 = vmatmul.bf16.gmra.mxu0 %v4348_v0  ;;  %v4785_v59 = vpack.c.bf16 %v4777_v50, %v4776_v52  ;;  %v8103_v48 = vperm.slane %v5013_v60, 0 }
 0x50e   : > { %v4722_v10 = vpop.f32.mrf.mxu0 }
 0x511   : > { %4529 = vmatmul.bf16.gmra.mxu1 %v4388_v39  ;;  %4578 = vmatmul.bf16.gmra.mxu2 %v4388_v39 }
 0x514   : > { %v4673_v36 = vpop.f32.mrf.mxu3 }
 0x516   : > { %v4724_v32 = vpop.f32.mrf.mxu0 }
 0x51c   : > { %v4675_v55 = vpop.f32.mrf.mxu3 }
 0x51e   : > { %v8038_v13 = vpop.f32.mrf.mxu1 }
 0x51f   : > { %v4727_v0 = vpop.f32.mrf.mxu0  ;;  %v4674_v39 = vadd.f32 %v4673_v36, %v8038_v13 }
 0x521   : > { %4891 = vmatmul.bf16.vlgmr.msrb.gmra.mxu1 %v4778_v56  ;;  %4940 = vmatmul.bf16.vlgmr.msrb.gmra.mxu2 %v4778_v56 }
 0x524   : > { %v8040_v38 = vpop.f32.mrf.mxu2 }
 0x525   : > { %v4678_v23 = vpop.f32.mrf.mxu3 }
 0x526   : > { %v8042_v45 = vpop.f32.mrf.mxu1 }
 0x527   : > { %v4729_v20 = vpop.f32.mrf.mxu0 }
 0x52c   : > { %v8044_v16 = vpop.f32.mrf.mxu2 }
 0x52d   : > { %v4680_v12 = vpop.f32.mrf.mxu3  ;;  %v4725_v34 = vadd.f32 %v4724_v32, %v8044_v16 }
 0x52e   : > { %v8046_v43 = vpop.f32.mrf.mxu1 }
 0x52f   : > { %v4732_v50 = vpop.f32.mrf.mxu0 }
 0x531   : > { %4896 = vmatmul.bf16.gmra.mxu1 %v4779_v42  ;;  %4945 = vmatmul.bf16.gmra.mxu2 %v4779_v42  ;;  %v4723_v42 = vadd.f32 %v4722_v10, %v8040_v38  ;;  %v4679_v10 = vadd.f32 %v4678_v23, %v8046_v43 }
 0x534   : > { %v8048_v44 = vpop.f32.mrf.mxu2 }
 0x535   : > { %v4683_v38 = vpop.f32.mrf.mxu3 }
 0x536   : > { %v8050_v61 = vpop.f32.mrf.mxu1 }
 0x53c   : > { %v8052_v2 = vpop.f32.mrf.mxu2 }
 0x53e   : > { %v8054_v5 = vpop.f32.mrf.mxu1 }
 0x541   : > { %4901 = vmatmul.bf16.gmra.mxu1 %v4780_v24  ;;  %4950 = vmatmul.bf16.gmra.mxu2 %v4780_v24  ;;  %v8109_v24 = vperm.slane %v5013_v60, 1 }
 0x544   : > { %v8056_v58 = vpop.f32.mrf.mxu2 }
 0x546   : > { %v8058_v62 = vpop.f32.mrf.mxu1 }
 0x54c   : > { %v8060_v63 = vpop.f32.mrf.mxu2 }
 0x54e   : > { %v8062_v40 = vpop.f32.mrf.mxu1 }
 0x551   : > { %4906 = vmatmul.bf16.gmra.mxu1 %v4781_v6  ;;  %4955 = vmatmul.bf16.gmra.mxu2 %v4781_v6  ;;  %v4676_v6 = vadd.f32 %v4675_v55, %v8042_v45 }
 0x554   : > { %v8064_v15 = vpop.f32.mrf.mxu2 }
 0x556   : > { %v8066_v11 = vpop.f32.mrf.mxu1 }
 0x55c   : > { %v8068_v3 = vpop.f32.mrf.mxu2 }
 0x55e   : > { %v8070_v9 = vpop.f32.mrf.mxu1 }
 0x561   : > { %4911 = vmatmul.bf16.gmra.mxu1 %v4782_v1  ;;  %4960 = vmatmul.bf16.gmra.mxu2 %v4782_v1 }
 0x564   : > { %v8072_v7 = vpop.f32.mrf.mxu2 }
 0x566   : > { %v8074_v33 = vpop.f32.mrf.mxu1 }
 0x56c   : > { %v8076_v22 = vpop.f32.mrf.mxu2 }
 0x56e   : > { %v8078_v46 = vpop.f32.mrf.mxu1 }
 0x571   : > { %4916 = vmatmul.bf16.gmra.mxu1 %v4783_v28  ;;  %4965 = vmatmul.bf16.gmra.mxu2 %v4783_v28 }
 0x574   : > { %v8080_v30 = vpop.f32.mrf.mxu2 }
 0x576   : > { %v8082_v19 = vpop.f32.mrf.mxu1 }
 0x57c   : > { %v8084_v21 = vpop.f32.mrf.mxu2 }
 0x57e   : > { %v8086_v18 = vpop.f32.mrf.mxu1 }
 0x581   : > { %4921 = vmatmul.bf16.gmra.mxu1 %v4784_v31  ;;  %4970 = vmatmul.bf16.gmra.mxu2 %v4784_v31 }
 0x584   : > { %v8088_v4 = vpop.f32.mrf.mxu2 }
 0x586   : > { %v8090_v49 = vpop.f32.mrf.mxu1 }
 0x58c   : > { %v8092_v26 = vpop.f32.mrf.mxu2 }
 0x58e   : > { %v8094_v53 = vpop.f32.mrf.mxu1 }
 0x591   : > { %4926 = vmatmul.bf16.gmra.mxu1 %v4785_v59  ;;  %4975 = vmatmul.bf16.gmra.mxu2 %v4785_v59 }
 0x594   : > { %v8096_v41 = vpop.f32.mrf.mxu2 }
 0x596   : > { %v8098_v54 = vpop.f32.mrf.mxu1 }
 0x59c   : > { %v8100_v27 = vpop.f32.mrf.mxu2 }
 0x59e   : > { %v4892_v29 = vpop.f32.mrf.mxu1 }
 0x59f   : > { %v4981_v56 = vadd.f32 %v4892_v29, %v4674_v39  ;;  %v4685_v29 = vpop.f32.mrf.mxu3 }
 0x5a1   : > { %v5019_v17 = vmul.f32 %v8103_v48, %v4981_v56  ;;  %v4728_v56 = vadd.f32 %v4727_v0, %v8048_v44  ;;  %v4730_v0 = vadd.f32 %v4729_v20, %v8052_v2 }
 0x5a3   : > { %v5057_v1 = vadd.f32 %v8107_v14, %v5019_v17  ;;  %v4681_v17 = vadd.f32 %v4680_v12, %v8050_v61 }
 0x5a4   : > { %v4941_v57 = vpop.f32.mrf.mxu2 }
 0x5a5   : > { %v4982_v13 = vadd.f32 %v4941_v57, %v4723_v42  ;;  %v5089_v35 = vmax.f32 %v5057_v1, 0.0 }
 0x5a6   : > { %v4894_v47 = vpop.f32.mrf.mxu1 }
 0x5a7   : > { %v5020_v8 = vmul.f32 %v8109_v24, %v4982_v13  ;;  %v4983_v25 = vadd.f32 %v4894_v47, %v4676_v6  ;;  %v4688_v61 = vpop.f32.mrf.mxu3 }
 0x5a9   : > { %v5058_v28 = vadd.f32 %v8112_v37, %v5020_v8  ;;  %v5021_v36 = vmul.f32 %v8103_v48, %v4983_v25  ;;  %v4734_v25 = vpop.f32.mrf.mxu0 }
 0x5ab   : > { %v5090_v31 = vmax.f32 %v5058_v28, 0.0  ;;  %v5059_v16 = vadd.f32 %v8107_v14, %v5021_v36 }
 0x5ac   : > { %v4943_v45 = vpop.f32.mrf.mxu2 }
 0x5ad   : > { %v5121_v55 = vpack.c.bf16 %v5090_v31, %v5089_v35  ;;  %v4984_v52 = vadd.f32 %v4943_v45, %v4725_v34  ;;  %v5091_v51 = vmax.f32 %v5059_v16, 0.0  ;;  %v4684_v31 = vadd.f32 %v4683_v38, %v8054_v5 }
 0x5ae   : > { %v4897_v59 = vpop.f32.mrf.mxu1  ;;  %v4733_v16 = vadd.f32 %v4732_v50, %v8056_v58  ;;  %v4686_v38 = vadd.f32 %v4685_v29, %v8058_v62  ;;  %v4735_v50 = vadd.f32 %v4734_v25, %v8060_v63 }
 0x5af   : > { %5137 = vst [vmem:[%s8123_s24] sm:$0xff] %v5121_v55  ;;  %v5022_v32 = vmul.f32 %v8109_v24, %v4984_v52  ;;  %v4985_v60 = vadd.f32 %v4897_v59, %v4679_v10 }
 0x5b1   : > { %v5060_v39 = vadd.f32 %v8112_v37, %v5022_v32  ;;  %v5023_v43 = vmul.f32 %v8103_v48, %v4985_v60  ;;  %v4737_v20 = vpop.f32.mrf.mxu0 }
 0x5b2   : > { %v4738_v25 = vadd.f32 %v4737_v20, %v8064_v15 }
 0x5b3   : > { %v5092_v42 = vmax.f32 %v5060_v39, 0.0  ;;  %v5061_v47 = vadd.f32 %v8107_v14, %v5023_v43 }
 0x5b4   : > { %v4946_v23 = vpop.f32.mrf.mxu2 }
 0x5b5   : > { %v5122_v57 = vpack.c.bf16 %v5092_v42, %v5091_v51  ;;  %v4986_v6 = vadd.f32 %v4946_v23, %v4728_v56  ;;  %v5093_v28 = vmax.f32 %v5061_v47, 0.0  ;;  %v4690_v42 = vpop.f32.mrf.mxu3 }
 0x5b6   : > { %v4899_v13 = vpop.f32.mrf.mxu1 }
 0x5b7   : > { %5138 = vst [vmem:[%s8123_s24 + $0x8] sm:$0xff] %v5122_v57  ;;  %v5024_v1 = vmul.f32 %v8109_v24, %v4986_v6  ;;  %v4987_v8 = vadd.f32 %v4899_v13, %v4681_v17 }
 0x5b9   : > { %v5062_v44 = vadd.f32 %v8112_v37, %v5024_v1  ;;  %v5025_v35 = vmul.f32 %v8103_v48, %v4987_v8  ;;  %v4739_v62 = vpop.f32.mrf.mxu0  ;;  %v4689_v1 = vadd.f32 %v4688_v61, %v8062_v40  ;;  %v4691_v61 = vadd.f32 %v4690_v42, %v8066_v11 }
 0x5bb   : > { %v5094_v34 = vmax.f32 %v5062_v44, 0.0  ;;  %v5063_v55 = vadd.f32 %v8107_v14, %v5025_v35 }
 0x5bc   : > { %v4948_v12 = vpop.f32.mrf.mxu2 }
 0x5bd   : > { %v5123_v36 = vpack.c.bf16 %v5094_v34, %v5093_v28  ;;  %v4988_v45 = vadd.f32 %v4948_v12, %v4730_v0  ;;  %v5095_v32 = vmax.f32 %v5063_v55, 0.0  ;;  %v4693_v12 = vpop.f32.mrf.mxu3 }
 0x5be   : > { %v4902_v10 = vpop.f32.mrf.mxu1 }
 0x5bf   : > { %5139 = vst [vmem:[%s8123_s24 + $0x10] sm:$0xff] %v5123_v36  ;;  %v5026_v52 = vmul.f32 %v8109_v24, %v4988_v45  ;;  %v4989_v59 = vadd.f32 %v4902_v10, %v4684_v31 }
 0x5c1   : > { %v5064_v2 = vadd.f32 %v8112_v37, %v5026_v52  ;;  %v5027_v39 = vmul.f32 %v8103_v48, %v4989_v59  ;;  %v4742_v52 = vpop.f32.mrf.mxu0 }
 0x5c3   : > { %v5096_v60 = vmax.f32 %v5064_v2, 0.0  ;;  %v5065_v23 = vadd.f32 %v8107_v14, %v5027_v39 }
 0x5c4   : > { %v4951_v5 = vpop.f32.mrf.mxu2 }
 0x5c5   : > { %v5124_v56 = vpack.c.bf16 %v5096_v60, %v5095_v32  ;;  %v4990_v51 = vadd.f32 %v4951_v5, %v4733_v16  ;;  %v5097_v6 = vmax.f32 %v5065_v23, 0.0  ;;  %v4695_v20 = vpop.f32.mrf.mxu3  ;;  %v4740_v60 = vadd.f32 %v4739_v62, %v8068_v3 }
 0x5c6   : > { %v4904_v43 = vpop.f32.mrf.mxu1 }
 0x5c7   : > { %5140 = vst [vmem:[%s8123_s24 + $0x18] sm:$0xff] %v5124_v56  ;;  %v5028_v17 = vmul.f32 %v8109_v24, %v4990_v51  ;;  %v4991_v57 = vadd.f32 %v4904_v43, %v4686_v38  ;;  %v4694_v56 = vadd.f32 %v4693_v12, %v8070_v9 }
 0x5c9   : > { %v5066_v58 = vadd.f32 %v8112_v37, %v5028_v17  ;;  %v5029_v47 = vmul.f32 %v8103_v48, %v4991_v57 }
 0x5cb   : > { %v5098_v13 = vmax.f32 %v5066_v58, 0.0  ;;  %v5067_v28 = vadd.f32 %v8107_v14, %v5029_v47  ;;  %v4744_v58 = vpop.f32.mrf.mxu0 }
 0x5cc   : > { %v4953_v29 = vpop.f32.mrf.mxu2  ;;  %v4745_v12 = vadd.f32 %v4744_v58, %v8076_v22 }
 0x5cd   : > { %v5125_v8 = vpack.c.bf16 %v5098_v13, %v5097_v6  ;;  %v4992_v44 = vadd.f32 %v4953_v29, %v4735_v50  ;;  %v5099_v31 = vmax.f32 %v5067_v28, 0.0  ;;  %v4743_v50 = vadd.f32 %v4742_v52, %v8072_v7  ;;  %v4698_v9 = vpop.f32.mrf.mxu3 }
 0x5ce   : > { %v4907_v0 = vpop.f32.mrf.mxu1  ;;  %v4696_v29 = vadd.f32 %v4695_v20, %v8074_v33 }
 0x5cf   : > { %5141 = vst [vmem:[%s8123_s24 + $0x20] sm:$0xff] %v5125_v8  ;;  %v5030_v34 = vmul.f32 %v8109_v24, %v4992_v44  ;;  %v4993_v35 = vadd.f32 %v4907_v0, %v4689_v1 }
 0x5d1   : > { %v5068_v63 = vadd.f32 %v8112_v37, %v5030_v34  ;;  %v5031_v45 = vmul.f32 %v8103_v48, %v4993_v35 }
 0x5d3   : > { %v5100_v36 = vmax.f32 %v5068_v63, 0.0  ;;  %v5069_v2 = vadd.f32 %v8107_v14, %v5031_v45  ;;  %v4747_v35 = vpop.f32.mrf.mxu0 }
 0x5d4   : > { %v4956_v40 = vpop.f32.mrf.mxu2 }
 0x5d5   : > { %v5126_v10 = vpack.c.bf16 %v5100_v36, %v5099_v31  ;;  %v4994_v55 = vadd.f32 %v4956_v40, %v4738_v25  ;;  %v5101_v39 = vmax.f32 %v5069_v2, 0.0  ;;  %v4699_v36 = vadd.f32 %v4698_v9, %v8078_v46 }
 0x5d6   : > { %v4909_v59 = vpop.f32.mrf.mxu1  ;;  %v4748_v2 = vadd.f32 %v4747_v35, %v8080_v30 }
 0x5d7   : > { %5142 = vst [vmem:[%s8123_s24 + $0x28] sm:$0xff] %v5126_v10  ;;  %v5032_v16 = vmul.f32 %v8109_v24, %v4994_v55  ;;  %v4995_v32 = vadd.f32 %v4909_v59, %v4691_v61  ;;  %v4700_v61 = vpop.f32.mrf.mxu3 }
 0x5d9   : > { %v5070_v15 = vadd.f32 %v8112_v37, %v5032_v16  ;;  %v5033_v11 = vmul.f32 %v8103_v48, %v4995_v32 }
 0x5db   : > { %v5102_v5 = vmax.f32 %v5070_v15, 0.0  ;;  %v5071_v23 = vadd.f32 %v8107_v14, %v5033_v11  ;;  %v4749_v46 = vpop.f32.mrf.mxu0 }
 0x5dc   : > { %v4958_v38 = vpop.f32.mrf.mxu2 }
 0x5dd   : > { %v5127_v51 = vpack.c.bf16 %v5102_v5, %v5101_v39  ;;  %v4996_v42 = vadd.f32 %v4958_v38, %v4740_v60  ;;  %v5103_v6 = vmax.f32 %v5071_v23, 0.0  ;;  %v4701_v60 = vadd.f32 %v4700_v61, %v8082_v19 }
 0x5de   : > { %v4912_v43 = vpop.f32.mrf.mxu1 }
 0x5df   : > { %5143 = vst [vmem:[%s8123_s24 + $0x30] sm:$0xff] %v5127_v51  ;;  %v5034_v17 = vmul.f32 %v8109_v24, %v4996_v42  ;;  %v4997_v57 = vadd.f32 %v4912_v43, %v4694_v56  ;;  %v4703_v42 = vpop.f32.mrf.mxu3  ;;  %v4750_v43 = vadd.f32 %v4749_v46, %v8084_v21 }
 0x5e0   : > { %v4704_v58 = vadd.f32 %v4703_v42, %v8086_v18 }
 0x5e1   : > { %v5072_v3 = vadd.f32 %v8112_v37, %v5034_v17  ;;  %v5035_v47 = vmul.f32 %v8103_v48, %v4997_v57 }
 0x5e3   : > { %v5104_v13 = vmax.f32 %v5072_v3, 0.0  ;;  %v5073_v0 = vadd.f32 %v8107_v14, %v5035_v47 }
 0x5e4   : > { %v4961_v62 = vpop.f32.mrf.mxu2 }
 0x5e5   : > { %v5128_v1 = vpack.c.bf16 %v5104_v13, %v5103_v6  ;;  %v4998_v8 = vadd.f32 %v4961_v62, %v4743_v50  ;;  %v5105_v63 = vmax.f32 %v5073_v0, 0.0  ;;  %v4752_v6 = vpop.f32.mrf.mxu0 }
 0x5e6   : > { %v4914_v44 = vpop.f32.mrf.mxu1 }
 0x5e7   : > { %5144 = vst [vmem:[%s8123_s24 + $0x38] sm:$0xff] %v5128_v1  ;;  %v5036_v28 = vmul.f32 %v8109_v24, %v4998_v8  ;;  %v4999_v34 = vadd.f32 %v4914_v44, %v4696_v29  ;;  %v4705_v29 = vpop.f32.mrf.mxu3  ;;  %v4753_v1 = vadd.f32 %v4752_v6, %v8088_v4 }
 0x5e9   : > { %v5074_v7 = vadd.f32 %v8112_v37, %v5036_v28  ;;  %v5037_v31 = vmul.f32 %v8103_v48, %v4999_v34  ;;  %v4706_v28 = vadd.f32 %v4705_v29, %v8090_v49 }
 0x5eb   : > { %v5106_v25 = vmax.f32 %v5074_v7, 0.0  ;;  %v5075_v55 = vadd.f32 %v8107_v14, %v5037_v31 }
 0x5ec   : > { %v4963_v33 = vpop.f32.mrf.mxu2 }
 0x5ed   : > { %v5129_v45 = vpack.c.bf16 %v5106_v25, %v5105_v63  ;;  %v5000_v40 = vadd.f32 %v4963_v33, %v4745_v12  ;;  %v5107_v16 = vmax.f32 %v5075_v55, 0.0  ;;  %v4754_v31 = vpop.f32.mrf.mxu0 }
 0x5ee   : > { %v4917_v10 = vpop.f32.mrf.mxu1 }
 0x5ef   : > { %5145 = vst [vmem:[%s8123_s24 + $0x40] sm:$0xff] %v5129_v45  ;;  %v5038_v52 = vmul.f32 %v8109_v24, %v5000_v40  ;;  %v5001_v59 = vadd.f32 %v4917_v10, %v4699_v36  ;;  %v4708_v33 = vpop.f32.mrf.mxu3  ;;  %v4755_v36 = vadd.f32 %v4754_v31, %v8092_v26 }
 0x5f0   : > { %v4709_v10 = vadd.f32 %v4708_v33, %v8094_v53 }
 0x5f1   : > { %v5076_v22 = vadd.f32 %v8112_v37, %v5038_v52  ;;  %v5039_v15 = vmul.f32 %v8103_v48, %v5001_v59 }
 0x5f3   : > { %v5108_v32 = vmax.f32 %v5076_v22, 0.0  ;;  %v5077_v38 = vadd.f32 %v8107_v14, %v5039_v15 }
 0x5f4   : > { %v4966_v20 = vpop.f32.mrf.mxu2 }
 0x5f5   : > { %v5130_v39 = vpack.c.bf16 %v5108_v32, %v5107_v16  ;;  %v5002_v5 = vadd.f32 %v4966_v20, %v4748_v2  ;;  %v5109_v23 = vmax.f32 %v5077_v38, 0.0  ;;  %v4757_v32 = vpop.f32.mrf.mxu0 }
 0x5f6   : > { %v4919_v11 = vpop.f32.mrf.mxu1  ;;  %v4758_v15 = vadd.f32 %v4757_v32, %v8096_v41 }
 0x5f7   : > { %5146 = vst [vmem:[%s8123_s24 + $0x48] sm:$0xff] %v5130_v39  ;;  %v5040_v56 = vmul.f32 %v8109_v24, %v5002_v5  ;;  %v5003_v51 = vadd.f32 %v4919_v11, %v4701_v60  ;;  %v4710_v53 = vpop.f32.mrf.mxu3 }
 0x5f8   : > { %v4711_v5 = vadd.f32 %v4710_v53, %v8098_v54 }
 0x5f9   : > { %v5078_v30 = vadd.f32 %v8112_v37, %v5040_v56  ;;  %v5041_v57 = vmul.f32 %v8103_v48, %v5003_v51 }
 0x5fb   : > { %v5110_v17 = vmax.f32 %v5078_v30, 0.0  ;;  %v5079_v47 = vadd.f32 %v8107_v14, %v5041_v57 }
 0x5fc   : > { %v4968_v19 = vpop.f32.mrf.mxu2 }
 0x5fd   : > { %v5131_v3 = vpack.c.bf16 %v5110_v17, %v5109_v23  ;;  %v5004_v50 = vadd.f32 %v4968_v19, %v4750_v43  ;;  %v5111_v8 = vmax.f32 %v5079_v47, 0.0  ;;  %v4759_v43 = vpop.f32.mrf.mxu0  ;;  %v5159_v47 = vld [vmem:[%s8123_s24 + $0x78] sm:$0x33] }
 0x5fe   : > { %v4922_v13 = vpop.f32.mrf.mxu1  ;;  %v4760_v23 = vadd.f32 %v4759_v43, %v8100_v27 }
 0x5ff   : > { %5147 = vst [vmem:[%s8123_s24 + $0x50] sm:$0xff] %v5131_v3  ;;  %v5042_v9 = vmul.f32 %v8109_v24, %v5004_v50  ;;  %v5005_v62 = vadd.f32 %v4922_v13, %v4704_v58 }
 0x601   : > { %v5080_v21 = vadd.f32 %v8112_v37, %v5042_v9  ;;  %v5043_v18 = vmul.f32 %v8103_v48, %v5005_v62 }
 0x603   : > { %v5112_v44 = vmax.f32 %v5080_v21, 0.0  ;;  %v5081_v12 = vadd.f32 %v8107_v14, %v5043_v18 }
 0x604   : > { %v4971_v0 = vpop.f32.mrf.mxu2 }
 0x605   : > { %v5132_v34 = vpack.c.bf16 %v5112_v44, %v5111_v8  ;;  %v5006_v7 = vadd.f32 %v4971_v0, %v4753_v1  ;;  %v5113_v45 = vmax.f32 %v5081_v12, 0.0 }
 0x606   : > { %v4924_v35 = vpop.f32.mrf.mxu1 }
 0x607   : > { %5148 = vst [vmem:[%s8123_s24 + $0x58] sm:$0xff] %v5132_v34  ;;  %v5044_v63 = vmul.f32 %v8109_v24, %v5006_v7  ;;  %v5007_v25 = vadd.f32 %v4924_v35, %v4706_v28 }
 0x609   : > { %v5082_v4 = vadd.f32 %v8112_v37, %v5044_v63  ;;  %v5045_v49 = vmul.f32 %v8103_v48, %v5007_v25 }
 0x60b   : > { %v5114_v40 = vmax.f32 %v5082_v4, 0.0  ;;  %v5083_v22 = vadd.f32 %v8107_v14, %v5045_v49 }
 0x60c   : > { %v4973_v61 = vpop.f32.mrf.mxu2 }
 0x60d   : > { %v5133_v55 = vpack.c.bf16 %v5114_v40, %v5113_v45  ;;  %v5008_v52 = vadd.f32 %v4973_v61, %v4755_v36  ;;  %v5115_v46 = vmax.f32 %v5083_v22, 0.0 }
 0x60e   : > { %v4927_v59 = vpop.f32.mrf.mxu1 }
 0x60f   : > { %5149 = vst [vmem:[%s8123_s24 + $0x60] sm:$0xff] %v5133_v55  ;;  %v5046_v2 = vmul.f32 %v8109_v24, %v5008_v52  ;;  %v5009_v16 = vadd.f32 %v4927_v59, %v4709_v10 }
 0x611   : > { %v5084_v26 = vadd.f32 %v8112_v37, %v5046_v2  ;;  %v5047_v60 = vmul.f32 %v8103_v48, %v5009_v16 }
 0x613   : > { %v5116_v20 = vmax.f32 %v5084_v26, 0.0  ;;  %v5085_v51 = vadd.f32 %v8107_v14, %v5047_v60 }
 0x614   : > { %v4976_v39 = vpop.f32.mrf.mxu2 }
 0x615   : > { %v5134_v11 = vpack.c.bf16 %v5116_v20, %v5115_v46  ;;  %v5010_v38 = vadd.f32 %v4976_v39, %v4758_v15  ;;  %v5117_v17 = vmax.f32 %v5085_v51, 0.0 }
 0x616   : > { %v4929_v56 = vpop.f32.mrf.mxu1 }
 0x617   : > { %5150 = vst [vmem:[%s8123_s24 + $0x68] sm:$0xff] %v5134_v11  ;;  %v5048_v42 = vmul.f32 %v8109_v24, %v5010_v38  ;;  %v5011_v30 = vadd.f32 %v4929_v56, %v4711_v5 }
 0x619   : > { %v5086_v41 = vadd.f32 %v8112_v37, %v5048_v42  ;;  %v5049_v19 = vmul.f32 %v8103_v48, %v5011_v30 }
 0x61b   : > { %v5118_v57 = vmax.f32 %v5086_v41, 0.0  ;;  %v5087_v50 = vadd.f32 %v8107_v14, %v5049_v19 }
 0x61c   : > { %v4978_v54 = vpop.f32.mrf.mxu2 }
 0x61d   : > { %v5135_v58 = vpack.c.bf16 %v5118_v57, %v5117_v17  ;;  %v5012_v3 = vadd.f32 %v4978_v54, %v4760_v23  ;;  %v5119_v13 = vmax.f32 %v5087_v50, 0.0 }
 0x61f   : > { %5151 = vst [vmem:[%s8123_s24 + $0x70] sm:$0xff] %v5135_v58  ;;  %v5050_v6 = vmul.f32 %v8109_v24, %v5012_v3 }
 0x621   : > { %v5088_v27 = vadd.f32 %v8112_v37, %v5050_v6 }
 0x623   : > { %v5120_v48 = vmax.f32 %v5088_v27, 0.0 }
 0x625   : > { %v5136_v9 = vpack.c.bf16 %v5120_v48, %v5119_v13 }
 0x627   : > { %v5160_v62 = vsel %vm5158_vm12, %v5136_v9, %v5159_v47 }
 0x628   : > { %5161 = vst [vmem:[%s8123_s24 + $0x78] sm:$0x33] %v5160_v62 }
 0x629 PF: > { %s30_s25 = sadd.s32 1, %s6760_s25  }
 0x62a   : > { %p27_p7 = scmp.ge.s32.totalorder %s30_s25, 4  }
 0x62c   :  { %29 = sbr.rel (!%p27_p7) target bundleno = 10 (0xa), region = 557 }
 0x631   :  { %5183 = vsyncpa [#allocation7], 1 }
 0x632   :  { %5185 = vsyncpa [#allocation7 + $0x1], 1 }
 0x633   :  { %5186 = vsyncpa [#allocation9], 1 }
 0x634   :  { %5187 = vsyncpa [#allocation12], 1 }
 0x635   :  { %5188 = vsyncpa [#allocation15], 1 }
 0x636   :  { %5189 = vsyncpa [#allocation18], 1 }
 0x637   :  { %5190 = vsyncpa [#allocation21], 1 }
 0x638   :  { %5191 = vsyncpa [#allocation24], 1 }

// kernel: net_forward.3
= control target key start
LH: loop header
LB: loop body
LE: loop exit
PB: predicated region body
PF: predicated region fallthrough
CT: control target
= control target key end

     0   :  { %s8022_s0 = inlined_call_operand.vmem [shape: bf16[2,31488], index: 0, kind: input, shape index: {}]   ;;  %s8023_s1 = inlined_call_operand.hbm [shape: bf16[48,31488], index: 1, kind: input, shape index: {}]   ;;  %s8024_s2 = inlined_call_operand.hbm [shape: f32[1,48], index: 2, kind: input, shape index: {}]   ;;  %s8025_s3 = inlined_call_operand.hbm [shape: f32[1,48], index: 3, kind: input, shape index: {}]   ;;  %s8026_s4 = inlined_call_operand.vmem [shape: f32[48,10], index: 4, kind: input, shape index: {}]   ;;  %s8027_s5 = inlined_call_operand.hbm [shape: f32[1,10], index: 5, kind: input, shape index: {}]   ;;  %s8028_s6 = inlined_call_operand.hbm [shape: f32[1,10], index: 6, kind: input, shape index: {}]   ;;  %s8029_s7 = inlined_call_operand.hbm [shape: f32[2,10], index: 7, kind: output, shape index: {}]  }
   0x1   :  { %8031 = sst [smem:[#allocation17_spill]] %s8024_s2 }
   0x2   :  { %8032 = sst [smem:[#allocation18_spill]] %s8025_s3 }
   0x3   :  { %8033 = sst [smem:[#allocation19_spill]] %s8027_s5 }
   0x4   :  { %12 = vsyncpa [#allocation4], 0 }
   0x5   :  { %14 = vsyncpa [#allocation4 + $0x1], 0 }
   0x6   :  { %15 = vsyncpa [#allocation7], 0 }
   0x7   :  { %16 = vsyncpa [#allocation10], 0 }
   0x8   :  { %17 = vsyncpa [#allocation5], 0  ;;  %s6973_s24 = smov 0   ;;  %s6975_s25 = smov 0  }
   0x9   :  { %s6977_s26 = smov 0   ;;  %s6979_s27 = smov 0  }
   0xa   :  { %s6981_s28 = smov 0   ;;  %s6983_s29 = smov 0  }
   0xb LB: > { %s8030_s30 = sadd.s32 4294967295, %s6922_s29   ;;  %p83_p0 = scmp.ne.s32.totalorder %s6906_s25, %s6902_s24  ;;  %s6922_s29 = sphi %s6983_s29, %s23_s29   ;;  %s6918_s28 = sphi %s6981_s28, %s8046_s28   ;;  %s6914_s27 = sphi %s6979_s27, %s8045_s27   ;;  %s6910_s26 = sphi %s6977_s26, %s8044_s26   ;;  %s6906_s25 = sphi %s6975_s25, %s8043_s25   ;;  %s6902_s24 = sphi %s6973_s24, %s8042_s24  }
   0xc   : > { %p7005_p1 = scmp.eq.s32.totalorder %s8030_s30, 0  ;;  %p4704_p2 = scmp.ge.s32.totalorder %s6922_s29, 1 }
   0xd   : > { %p225_p3 = scmp.lt.s32.totalorder %s6922_s29, 3  ;;  %s8036_s2 = sld [smem:[#allocation17_spill]] }
   0xe   : > { %p7013_p4 = por %p7005_p1, %p83_p0  ;;  %s6924_s14 = smov [#allocation6]  }
   0xf   : > { %p7020_p5 = pnand %p4704_p2, %p225_p3  ;;  %s239_s15 = sshll.u32 %s6924_s14, 4  ;;  %s240_s15 = int_to_ptr.vmem [resolvable:$true] %s239_s15 }
  0x10   : > { %s8038_s5 = sld [smem:[#allocation19_spill]]  ;;  %s6925_s23 = smov [#allocation9]  }
  0x11   : > { %p6593_p6 = pneg %p7020_p5  ;;  %s8040_s3 = sld [smem:[#allocation18_spill]] }
  0x12   : > { %s266_s24 = sshll.u32 %s6925_s23, 4  ;;  %s276_s14 = sshll.u32 %s8028_s6, 4  ;;  %s267_s24 = int_to_ptr.vmem [resolvable:$true] %s266_s24  ;;  %s277_s14 = int_to_ptr.hbm [resolvable:$true] %s276_s14 }
  0x13   : > { %s237_s12 = sshll.u32 %s8036_s2, 4  ;;  %p7031_p7 = pnand %p6593_p6, %p7005_p1  ;;  %s238_s12 = int_to_ptr.hbm [resolvable:$true] %s237_s12 }
  0x14   : > { %s6926_s16 = smov [#allocation8]   ;;  %s70_s20 = sadd.s32 1, %s6910_s26 }
  0x15   : > { %6596 = dma.hbm_to_vmem [thread:$0]  (!%p7031_p7), %s238_s12, 16, %s240_s15, [#allocation7]  }
  0x16   : > { %s264_s18 = sshll.u32 %s8038_s5, 4  ;;  %s251_s17 = sshll.u32 %s6926_s16, 4  ;;  %s265_s18 = int_to_ptr.hbm [resolvable:$true] %s264_s18  ;;  %s252_s17 = int_to_ptr.vmem [resolvable:$true] %s251_s17 }
  0x17   : > { %s249_s22 = sshll.u32 %s8040_s3, 4  ;;  %s6927_s12 = smov [#allocation11]   ;;  %s250_s22 = int_to_ptr.hbm [resolvable:$true] %s249_s22 }
  0x18   : > { %6602 = dma.hbm_to_vmem [thread:$0]  (!%p7031_p7), %s265_s18, 16, %s267_s24, [#allocation10]  }
  0x19   : > { %6599 = dma.hbm_to_vmem [thread:$0]  (!%p7031_p7), %s250_s22, 16, %s252_s17, [#allocation7]  }
  0x1a   : > { %s278_s15 = sshll.u32 %s6927_s12, 4  ;;  %s32_s18 = sadd.s32 1, %s6918_s28  ;;  %s279_s15 = int_to_ptr.vmem [resolvable:$true] %s278_s15 }
  0x1b   : > { %6605 = dma.hbm_to_vmem [thread:$0]  (!%p7031_p7), %s277_s14, 16, %s279_s15, [#allocation10]  }
  0x1c   : > { %p33_p8 = scmp.ge.s32.totalorder %s32_s18, 2  ;;  %p77_p9 = scmp.ne.s32.totalorder %s6910_s26, %s6906_s25 }
  0x1d   : > { %p78_p10 = scmp.eq.s32.totalorder %s6922_s29, 0  ;;  %p6614_p11 = scmp.lt.s32.totalorder %s6922_s29, 2 }
  0x1e   : > { %s8048_s18 = smov (%p33_p8, %s32_s18), 0  ;;  %s301_s21 = sand.u32 1, %s6910_s26  }
  0x1f   : > { %p79_p12 = por %p78_p10, %p77_p9  ;;  %s67_s23 = ssub.s32 %s6918_s28, %s8048_s18 }
  0x20   : > { %p68_p13 = scmp.eq.s32.totalorder %s67_s23, 0  ;;  %s6569_s22 = smul.u32 2952, %s301_s21 }
  0x21   : > { %s6199_s24 = smul.u32 492, %s6918_s28  ;;  %p6607_p0 = pnand %p6614_p11, %p79_p12 }
  0x22   : > { %s7062_s10 = scalar_select %p68_p13, %s6910_s26, %s70_s20  }
  0x23   : > { %s310_s14 = scalar_lea.hbm %s8023_s1, %s6199_s24  ;;  %s305_s17 = scalar_lea.vmem [#allocation3], %s6569_s22 }
  0x24   : > { %s311_s16 = sshll.u32 %s310_s14, 4  ;;  %s313_s12 = sshll.u32 %s305_s17, 4  ;;  %s312_s16 = int_to_ptr.hbm [resolvable:$true] %s311_s16  ;;  %s314_s12 = int_to_ptr.vmem [resolvable:$true] %s313_s12 }
  0x25   : > { %s302_s15 = scalar_lea.sflag [#allocation4], %s301_s21  ;;  %s6928_s30 = smov 15744  }
  0x26   : > { %s6929_s2 = smov 7872   ;;  %s6930_s3 = smov 492  }
  0x27   : > { %6609 = dma.hbm_to_vmem [thread:$0]  (!%p6607_p0), %s312_s16, 47232, %s314_s12, %s302_s15, %s6928_s30, %s6929_s2, %s6930_s3  }
  0x28   : > { %325 = sbr.rel (%p7020_p5) target bundleno = 1095 (0x447), region = 48  ;;  %s327_s20 = sand.u32 (!%p7020_p5), 1, %s6906_s25  }
  0x29   : > { %s6570_s23 = smul.u32 (!%p7020_p5), 2952, %s327_s20  ;;  %s328_s5 = scalar_lea.sflag (!%p7020_p5), [#allocation4], %s327_s20 }
  0x2b   : > { %s7070_s19 = scalar_lea.vmem (!%p7020_p5), [#allocation3], %s6570_s23 }
  0x2d   : > { %6885 = dma.done.wait (%p7013_p4), %s328_s5, 47232  }
  0x2e   : > { %6887 = vsyncadd (%p7013_p4), %s328_s5, 4294920064 }
  0x2f   : > { %6889 = dma.done.wait (%p7005_p1), [#allocation7], 32  }
  0x30   : > { %6891 = vsyncadd (%p7005_p1), [#allocation7], 4294967264 }
  0x31   : > { %6893 = dma.done.wait (%p7005_p1), [#allocation10], 32  }
  0x32   : > { %6895 = vsyncadd (%p7005_p1), [#allocation10], 4294967264  ;;  %s386_s2 = smul.u32 123, %s6914_s27  ;;  %p4716_p3 = scmp.ne.s32.totalorder %s6914_s27, 0 }
  0x34   : > { %p389_p2 = scmp.lt.s32.totalorder %s386_s2, 245  ;;  %400 = sbr.rel (%p4716_p3) target bundleno = 59 (0x3b), region = 72 }
  0x36   : > { %s8050_s2 = smov (!%p389_p2, %s386_s2), 245 }
  0x37   : > { %s7088_s5 = scalar_lea.vmem %s8022_s0, %s8050_s2 }
  0x39   : > { %vm401_vm0 = vcmask 386048   ;;  %v6931_v0 = vmov 0.0  }
  0x3a   : > { %402 = vst.msk [vmem:[#allocation2] sm:$0x3] %vm401_vm0, %v6931_v0 }
  0x3b PF: > { %v5703_v1 = vld [vmem:[%s7070_s19 + $0x7b0] sm:$0xf]  ;;  %v6507_v2 = vld [vmem:[%s7070_s19 + $0x998] sm:$0xf0]  ;;  %v6446_v3 = vld [vmem:[%s7070_s19 + $0x7b4] sm:$0xf] }
  0x3c   : > { %v5704_v4 = vor.u32 %v6507_v2, %v5703_v1  ;;  %v5705_v5 = vld [vmem:[%s7070_s19 + $0x99c] sm:$0xf0]  ;;  %v5711_v6 = vld [vmem:[%s7070_s19 + $0x7b8] sm:$0xf]  ;;  %v6508_v7 = vld [vmem:[%s7070_s19 + $0x9a0] sm:$0xf0] }
  0x3d   : > { %v5708_v8 = vor.u32 %v6446_v3, %v5705_v5  ;;  %v5712_v9 = vor.u32 %v6508_v7, %v5711_v6  ;;  %v6447_v10 = vld [vmem:[%s7070_s19 + $0x7bc] sm:$0xf]  ;;  %v5713_v11 = vld [vmem:[%s7070_s19 + $0x9a4] sm:$0xf0]  ;;  %v5211_v13 = vld [vmem:[%s7070_s19 + $0x3d8] sm:$0xf] }
  0x3e   : > { %2923 = vmatpush.bf16.xpose.msra.mxu0 %v5704_v4  ;;  %v5716_v12 = vor.u32 %v6447_v10, %v5713_v11  ;;  %v6384_v14 = vld [vmem:[%s7070_s19 + $0x5c0] sm:$0xf0]  ;;  %v6323_v15 = vld [vmem:[%s7070_s19 + $0x3dc] sm:$0xf]  ;;  %v5213_v16 = vld [vmem:[%s7070_s19 + $0x5c4] sm:$0xf0] }
  0x3f   : > { %2936 = vmatpush.bf16.xpose.msra.mxu1 %v5708_v8  ;;  %2949 = vmatpush.bf16.xpose.msra.mxu2 %v5712_v9  ;;  %v5219_v17 = vld [vmem:[%s7070_s19 + $0x3e0] sm:$0xf]  ;;  %v6385_v18 = vld [vmem:[%s7070_s19 + $0x5c8] sm:$0xf0]  ;;  %v6324_v19 = vld [vmem:[%s7070_s19 + $0x3e4] sm:$0xf]  ;;  %v5212_v21 = vor.u32 %v6384_v14, %v5211_v13  ;;  %v5216_v22 = vor.u32 %v6323_v15, %v5213_v16 }
  0x40   : > { %2962 = vmatpush.bf16.xpose.msra.mxu3 %v5716_v12  ;;  %v5221_v20 = vld [vmem:[%s7070_s19 + $0x5cc] sm:$0xf0]  ;;  %v5220_v23 = vor.u32 %v6385_v18, %v5219_v17  ;;  %v4719_v26 = vld [vmem:[%s7070_s19] sm:$0xf]  ;;  %v6261_v27 = vld [vmem:[%s7070_s19 + $0x1e8] sm:$0xf0] }
  0x41   : > { %v5224_v24 = vor.u32 %v6324_v19, %v5221_v20  ;;  %v404_v25 = vld [vmem:[%s7088_s5] sm:$0xff]  ;;  %v6200_v28 = vld [vmem:[%s7070_s19 + $0x4] sm:$0xf]  ;;  %v4727_v30 = vld [vmem:[%s7070_s19 + $0x8] sm:$0xf]  ;;  %v4720_v37 = vor.u32 %v6261_v27, %v4719_v26  ;;  %vm4518_vm1 = vcmask 386048  }
  0x42   : > { %793 = vst [vmem:[#allocation1] ss:$9 sm:$0xff] %v404_v25  ;;  %v4721_v29 = vld [vmem:[%s7070_s19 + $0x1ec] sm:$0xf0]  ;;  %v6262_v31 = vld [vmem:[%s7070_s19 + $0x1f0] sm:$0xf0] }
  0x43   : > { %v5719_v32 = vld [vmem:[%s7070_s19 + $0x7c0] sm:$0xf]  ;;  %v6509_v33 = vld [vmem:[%s7070_s19 + $0x9a8] sm:$0xf0]  ;;  %v6448_v34 = vld [vmem:[%s7070_s19 + $0x7c4] sm:$0xf]  ;;  %v4724_v41 = vor.u32 %v6200_v28, %v4721_v29  ;;  %v4728_v42 = vor.u32 %v6262_v31, %v4727_v30 }
  0x44   : > { %v5721_v35 = vld [vmem:[%s7070_s19 + $0x9ac] sm:$0xf0]  ;;  %v5727_v36 = vld [vmem:[%s7070_s19 + $0x7c8] sm:$0xf]  ;;  %v6510_v38 = vld [vmem:[%s7070_s19 + $0x9b0] sm:$0xf0]  ;;  %v5720_v45 = vor.u32 %v6509_v33, %v5719_v32 }
  0x45   : > { %v6201_v39 = vld [vmem:[%s7070_s19 + $0xc] sm:$0xf]  ;;  %v4729_v40 = vld [vmem:[%s7070_s19 + $0x1f4] sm:$0xf0]  ;;  %v5724_v46 = vor.u32 %v6448_v34, %v5721_v35  ;;  %v5728_v47 = vor.u32 %v6510_v38, %v5727_v36  ;;  %v5227_v50 = vld [vmem:[%s7070_s19 + $0x3e8] sm:$0xf] }
  0x46   : > { %2924 = vmatpush.bf16.xpose.msra.mxu0 %v5212_v21  ;;  %v6449_v43 = vld [vmem:[%s7070_s19 + $0x7cc] sm:$0xf]  ;;  %v5729_v44 = vld [vmem:[%s7070_s19 + $0x9b4] sm:$0xf0]  ;;  %v4732_v48 = vor.u32 %v6201_v39, %v4729_v40  ;;  %v6386_v51 = vld [vmem:[%s7070_s19 + $0x5d0] sm:$0xf0] }
  0x47   : > { %2937 = vmatpush.bf16.xpose.msra.mxu1 %v5216_v22  ;;  %2950 = vmatpush.bf16.xpose.msra.mxu2 %v5220_v23  ;;  %v5732_v49 = vor.u32 %v6449_v43, %v5729_v44  ;;  %v6325_v52 = vld [vmem:[%s7070_s19 + $0x3ec] sm:$0xf]  ;;  %v5229_v53 = vld [vmem:[%s7070_s19 + $0x5d4] sm:$0xf0]  ;;  %v5235_v54 = vld [vmem:[%s7070_s19 + $0x3f0] sm:$0xf]  ;;  %v5228_v61 = vor.u32 %v6386_v51, %v5227_v50 }
  0x48   : > { %2963 = vmatpush.bf16.xpose.msra.mxu3 %v5224_v24  ;;  %v6387_v56 = vld [vmem:[%s7070_s19 + $0x5d8] sm:$0xf0]  ;;  %v6326_v57 = vld [vmem:[%s7070_s19 + $0x3f4] sm:$0xf]  ;;  %v5237_v60 = vld [vmem:[%s7070_s19 + $0x5dc] sm:$0xf0]  ;;  %v5232_v62 = vor.u32 %v6325_v52, %v5229_v53 }
  0x49   : > { %v794_v55 = vld [vmem:[#allocation1] sm:$0xff]  ;;  %v796_v58 = vld [vmem:[#allocation1 + $0x12] sm:$0xff]  ;;  %v795_v59 = vld [vmem:[#allocation1 + $0x9] sm:$0xff]  ;;  %v5236_v63 = vor.u32 %v6387_v56, %v5235_v54  ;;  %v5240_v1 = vor.u32 %v6326_v57, %v5237_v60  ;;  %p6193_p1 = scmp.ne.s32.totalorder %s6914_s27, 1 }
  0x4a   : > { %v797_v0 = vld [vmem:[#allocation1 + $0x1b] sm:$0xff]  ;;  %v6263_v3 = vld [vmem:[%s7070_s19 + $0x1f8] sm:$0xf0]  ;;  %v4737_v5 = vld [vmem:[%s7070_s19 + $0x1fc] sm:$0xf0] }
  0x4b   : > { %v4735_v2 = vld [vmem:[%s7070_s19 + $0x10] sm:$0xf]  ;;  %v6202_v4 = vld [vmem:[%s7070_s19 + $0x14] sm:$0xf]  ;;  %v4743_v6 = vld [vmem:[%s7070_s19 + $0x18] sm:$0xf] }
  0x4c   : > { %v6264_v7 = vld [vmem:[%s7070_s19 + $0x200] sm:$0xf0]  ;;  %v5735_v8 = vld [vmem:[%s7070_s19 + $0x7d0] sm:$0xf]  ;;  %v6511_v14 = vld [vmem:[%s7070_s19 + $0x9b8] sm:$0xf0]  ;;  %v4736_v19 = vor.u32 %v6263_v3, %v4735_v2  ;;  %v4740_v20 = vor.u32 %v6202_v4, %v4737_v5 }
  0x4d   : > { %v798_v9 = vld [vmem:[#allocation1 + $0x24] sm:$0xff]  ;;  %v800_v10 = vld [vmem:[#allocation1 + $0x36] sm:$0xff]  ;;  %v799_v11 = vld [vmem:[#allocation1 + $0x2d] sm:$0xff]  ;;  %v4744_v23 = vor.u32 %v6264_v7, %v4743_v6  ;;  %v5736_v24 = vor.u32 %v6511_v14, %v5735_v8 }
  0x4e   : > { %2925 = vmatpush.bf16.xpose.msra.mxu0 %v4720_v37  ;;  %v801_v12 = vld [vmem:[#allocation1 + $0x3f] sm:$0xff]  ;;  %v405_v13 = vld [vmem:[%s7088_s5 + $0x8] sm:$0xff]  ;;  %v4745_v22 = vld [vmem:[%s7070_s19 + $0x204] sm:$0xf0] }
  0x4f   : > { %2938 = vmatpush.bf16.xpose.msra.mxu1 %v4724_v41  ;;  %2951 = vmatpush.bf16.xpose.msra.mxu2 %v4728_v42  ;;  %v6450_v15 = vld [vmem:[%s7070_s19 + $0x7d4] sm:$0xf]  ;;  %803 = vst [vmem:[#allocation1] ss:$9 sm:$0xff] %v405_v13  ;;  %v5737_v16 = vld [vmem:[%s7070_s19 + $0x9bc] sm:$0xf0] }
  0x50   : > { %2964 = vmatpush.bf16.xpose.msra.mxu3 %v4732_v48  ;;  %v5743_v17 = vld [vmem:[%s7070_s19 + $0x7d8] sm:$0xf]  ;;  %v6512_v18 = vld [vmem:[%s7070_s19 + $0x9c0] sm:$0xf0]  ;;  %v6203_v21 = vld [vmem:[%s7070_s19 + $0x1c] sm:$0xf]  ;;  %v5740_v27 = vor.u32 %v6450_v15, %v5737_v16 }
  0x51   : > { %v6451_v25 = vld [vmem:[%s7070_s19 + $0x7dc] sm:$0xf]  ;;  %v5745_v26 = vld [vmem:[%s7070_s19 + $0x9c4] sm:$0xf0]  ;;  %v5744_v28 = vor.u32 %v6512_v18, %v5743_v17  ;;  %v4748_v29 = vor.u32 %v6203_v21, %v4745_v22  ;;  %v5243_v31 = vld [vmem:[%s7070_s19 + $0x3f8] sm:$0xf] }
  0x52   : > { %v5748_v30 = vor.u32 %v6451_v25, %v5745_v26  ;;  %v6388_v32 = vld [vmem:[%s7070_s19 + $0x5e0] sm:$0xf0]  ;;  %v6327_v33 = vld [vmem:[%s7070_s19 + $0x3fc] sm:$0xf]  ;;  %v5245_v34 = vld [vmem:[%s7070_s19 + $0x5e4] sm:$0xf0] }
  0x53   : > { %v5251_v35 = vld [vmem:[%s7070_s19 + $0x400] sm:$0xf]  ;;  %v6389_v36 = vld [vmem:[%s7070_s19 + $0x5e8] sm:$0xf0]  ;;  %v5244_v37 = vor.u32 %v6388_v32, %v5243_v31  ;;  %v6328_v38 = vld [vmem:[%s7070_s19 + $0x404] sm:$0xf]  ;;  %v5248_v40 = vor.u32 %v6327_v33, %v5245_v34 }
  0x54   : > { %v5253_v39 = vld [vmem:[%s7070_s19 + $0x5ec] sm:$0xf0]  ;;  %v5252_v41 = vor.u32 %v6389_v36, %v5251_v35  ;;  %v4751_v43 = vld [vmem:[%s7070_s19 + $0x20] sm:$0xf]  ;;  %v6265_v44 = vld [vmem:[%s7070_s19 + $0x208] sm:$0xf0] }
  0x55   : > { %2926 = vmatmul.bf16.vlgmr.msra.gmra.mxu0 %v794_v55  ;;  %v5256_v42 = vor.u32 %v6328_v38, %v5253_v39  ;;  %v6266_v48 = vld [vmem:[%s7070_s19 + $0x210] sm:$0xf0]  ;;  %v6513_v50 = vld [vmem:[%s7070_s19 + $0x9c8] sm:$0xf0]  ;;  %v6452_v51 = vld [vmem:[%s7070_s19 + $0x7e4] sm:$0xf]  ;;  %v4752_v54 = vor.u32 %v6265_v44, %v4751_v43 }
  0x56   : > { %2975 = vmatpush.bf16.xpose.msrb.mxu0 %v5720_v45  ;;  %2952 = vmatmul.bf16.vlgmr.msra.gmra.mxu2 %v796_v58  ;;  %v6204_v45 = vld [vmem:[%s7070_s19 + $0x24] sm:$0xf]  ;;  %v5753_v52 = vld [vmem:[%s7070_s19 + $0x9cc] sm:$0xf0]  ;;  %v5759_v53 = vld [vmem:[%s7070_s19 + $0x7e8] sm:$0xf] }
  0x57   : > { %2988 = vmatpush.bf16.xpose.msrb.mxu1 %v5724_v46  ;;  %3001 = vmatpush.bf16.xpose.msrb.mxu2 %v5728_v47  ;;  %v4753_v46 = vld [vmem:[%s7070_s19 + $0x20c] sm:$0xf0]  ;;  %v4759_v47 = vld [vmem:[%s7070_s19 + $0x28] sm:$0xf]  ;;  %v6514_v55 = vld [vmem:[%s7070_s19 + $0x9d0] sm:$0xf0] }
  0x58   : > { %3014 = vmatpush.bf16.xpose.msrb.mxu3 %v5732_v49  ;;  %2939 = vmatmul.bf16.vlgmr.msra.gmra.mxu1 %v795_v59  ;;  %v5751_v49 = vld [vmem:[%s7070_s19 + $0x7e0] sm:$0xf]  ;;  %v6205_v56 = vld [vmem:[%s7070_s19 + $0x2c] sm:$0xf]  ;;  %v4761_v57 = vld [vmem:[%s7070_s19 + $0x214] sm:$0xf0]  ;;  %v4756_v58 = vor.u32 %v6204_v45, %v4753_v46  ;;  %v4760_v59 = vor.u32 %v6266_v48, %v4759_v47 }
  0x59   : > { %2965 = vmatmul.bf16.vlgmr.msra.gmra.mxu3 %v797_v0  ;;  %v6453_v60 = vld [vmem:[%s7070_s19 + $0x7ec] sm:$0xf]  ;;  %v5760_v0 = vor.u32 %v6514_v55, %v5759_v53  ;;  %v5259_v3 = vld [vmem:[%s7070_s19 + $0x408] sm:$0xf]  ;;  %v6390_v4 = vld [vmem:[%s7070_s19 + $0x5f0] sm:$0xf0] }
  0x5a   : > { %v6329_v5 = vld [vmem:[%s7070_s19 + $0x40c] sm:$0xf]  ;;  %v5261_v6 = vld [vmem:[%s7070_s19 + $0x5f4] sm:$0xf0]  ;;  %v5267_v7 = vld [vmem:[%s7070_s19 + $0x410] sm:$0xf]  ;;  %v5260_v17 = vor.u32 %v6390_v4, %v5259_v3 }
  0x5b   : > { %v6391_v8 = vld [vmem:[%s7070_s19 + $0x5f8] sm:$0xf0]  ;;  %v807_v14 = vld [vmem:[#allocation1 + $0x1b] sm:$0xff]  ;;  %v5264_v21 = vor.u32 %v6329_v5, %v5261_v6  ;;  %v5769_v33 = vld [vmem:[%s7070_s19 + $0x9dc] sm:$0xf0] }
  0x5c   : > { %v805_v13 = vld [vmem:[#allocation1 + $0x9] sm:$0xff]  ;;  %v810_v16 = vld [vmem:[#allocation1 + $0x36] sm:$0xff]  ;;  %v5268_v22 = vor.u32 %v6391_v8, %v5267_v7 }
  0x5d   : > { %v808_v15 = vld [vmem:[#allocation1 + $0x24] sm:$0xff]  ;;  %v809_v18 = vld [vmem:[#allocation1 + $0x2d] sm:$0xff]  ;;  %v6393_v53 = vld [vmem:[%s7070_s19 + $0x608] sm:$0xf0] }
  0x5e   : > { %2976 = vmatpush.bf16.xpose.msrb.mxu0 %v5228_v61  ;;  %v5761_v61 = vld [vmem:[%s7070_s19 + $0x9d4] sm:$0xf0]  ;;  %v6267_v25 = vld [vmem:[%s7070_s19 + $0x218] sm:$0xf0]  ;;  %v6206_v26 = vld [vmem:[%s7070_s19 + $0x34] sm:$0xf] }
  0x5f   : > { %2989 = vmatpush.bf16.xpose.msrb.mxu1 %v5232_v62  ;;  %3002 = vmatpush.bf16.xpose.msrb.mxu2 %v5236_v63  ;;  %v5752_v62 = vor.u32 %v6513_v50, %v5751_v49  ;;  %v5756_v63 = vor.u32 %v6452_v51, %v5753_v52  ;;  %v5764_v2 = vor.u32 %v6453_v60, %v5761_v61  ;;  %v6515_v31 = vld [vmem:[%s7070_s19 + $0x9d8] sm:$0xf0]  ;;  %v6454_v32 = vld [vmem:[%s7070_s19 + $0x7f4] sm:$0xf]  ;;  %v5775_v34 = vld [vmem:[%s7070_s19 + $0x7f8] sm:$0xf] }
  0x60   : > { %3015 = vmatpush.bf16.xpose.msrb.mxu3 %v5240_v1  ;;  %v4764_v1 = vor.u32 %v6205_v56, %v4761_v57  ;;  %v6516_v36 = vld [vmem:[%s7070_s19 + $0x9e0] sm:$0xf0]  ;;  %v4777_v38 = vld [vmem:[%s7070_s19 + $0x224] sm:$0xf0]  ;;  %v5772_v44 = vor.u32 %v6454_v32, %v5769_v33  ;;  %v5275_v48 = vld [vmem:[%s7070_s19 + $0x418] sm:$0xf] }
  0x61   : > { %v5776_v45 = vor.u32 %v6516_v36, %v5775_v34  ;;  %v6392_v49 = vld [vmem:[%s7070_s19 + $0x600] sm:$0xf0]  ;;  %v6331_v50 = vld [vmem:[%s7070_s19 + $0x41c] sm:$0xf]  ;;  %v5277_v51 = vld [vmem:[%s7070_s19 + $0x604] sm:$0xf0] }
  0x62   : > { %v5283_v52 = vld [vmem:[%s7070_s19 + $0x420] sm:$0xf]  ;;  %v5285_v55 = vld [vmem:[%s7070_s19 + $0x60c] sm:$0xf0]  ;;  %v5276_v56 = vor.u32 %v6392_v49, %v5275_v48  ;;  %v5280_v57 = vor.u32 %v6331_v50, %v5277_v51  ;;  %v6269_v61 = vld [vmem:[%s7070_s19 + $0x228] sm:$0xf0] }
  0x63   : > { %v4783_v60 = vld [vmem:[%s7070_s19 + $0x40] sm:$0xf]  ;;  %v6517_v3 = vld [vmem:[%s7070_s19 + $0x9e8] sm:$0xf0]  ;;  %v6456_v4 = vld [vmem:[%s7070_s19 + $0x804] sm:$0xf] }
  0x64   : > { %v5785_v5 = vld [vmem:[%s7070_s19 + $0x9ec] sm:$0xf0]  ;;  %v5791_v6 = vld [vmem:[%s7070_s19 + $0x808] sm:$0xf]  ;;  %v4784_v7 = vor.u32 %v6269_v61, %v4783_v60  ;;  %v6518_v8 = vld [vmem:[%s7070_s19 + $0x9f0] sm:$0xf0] }
  0x65   : > { %v6519_v48 = vld [vmem:[%s7070_s19 + $0x9f8] sm:$0xf0]  ;;  %v6458_v49 = vld [vmem:[%s7070_s19 + $0x814] sm:$0xf]  ;;  %v5801_v50 = vld [vmem:[%s7070_s19 + $0x9fc] sm:$0xf0] }
  0x66   : > { %2977 = vmatpush.bf16.xpose.msrb.mxu0 %v4736_v19  ;;  %v811_v19 = vld [vmem:[#allocation1 + $0x3f] sm:$0xff]  ;;  %v5804_v61 = vor.u32 %v6458_v49, %v5801_v50 }
  0x67   : > { %2990 = vmatpush.bf16.xpose.msrb.mxu1 %v4740_v20  ;;  %3003 = vmatpush.bf16.xpose.msrb.mxu2 %v4744_v23  ;;  %v406_v20 = vld [vmem:[%s7088_s5 + $0x10] sm:$0xff]  ;;  %v5807_v51 = vld [vmem:[%s7070_s19 + $0x818] sm:$0xf] }
  0x68   : > { %3016 = vmatpush.bf16.xpose.msrb.mxu3 %v4748_v29  ;;  %v6268_v29 = vld [vmem:[%s7070_s19 + $0x220] sm:$0xf0] }
  0x6d   : > { %2978 = vmatmul.bf16.vlgmr.msrb.gmra.mxu0 %v798_v9  ;;  %v6330_v9 = vld [vmem:[%s7070_s19 + $0x414] sm:$0xf] }
  0x6e   : > { %3027 = vmatpush.bf16.xpose.msra.mxu0 %v5736_v24  ;;  %2991 = vmatmul.bf16.vlgmr.msrb.gmra.mxu1 %v799_v11  ;;  %v804_v11 = vld [vmem:[#allocation1] sm:$0xff] }
  0x6f   : > { %3040 = vmatpush.bf16.xpose.msra.mxu1 %v5740_v27  ;;  %3053 = vmatpush.bf16.xpose.msra.mxu2 %v5744_v28  ;;  %v4767_v24 = vld [vmem:[%s7070_s19 + $0x30] sm:$0xf]  ;;  %v4769_v27 = vld [vmem:[%s7070_s19 + $0x21c] sm:$0xf0]  ;;  %v4775_v28 = vld [vmem:[%s7070_s19 + $0x38] sm:$0xf] }
  0x70   : > { %3066 = vmatpush.bf16.xpose.msra.mxu3 %v5748_v30  ;;  %3004 = vmatmul.bf16.vlgmr.msrb.gmra.mxu2 %v800_v10  ;;  %v5269_v10 = vld [vmem:[%s7070_s19 + $0x5fc] sm:$0xf0]  ;;  %v5767_v30 = vld [vmem:[%s7070_s19 + $0x7f0] sm:$0xf]  ;;  %v4768_v35 = vor.u32 %v6267_v25, %v4767_v24  ;;  %v4772_v39 = vor.u32 %v6206_v26, %v4769_v27  ;;  %v6395_v27 = vld [vmem:[%s7070_s19 + $0x618] sm:$0xf0] }
  0x71   : > { %3017 = vmatmul.bf16.vlgmr.msrb.gmra.mxu3 %v801_v12  ;;  %v806_v12 = vld [vmem:[#allocation1 + $0x12] sm:$0xff]  ;;  %v5272_v23 = vor.u32 %v6330_v9, %v5269_v10  ;;  %v5768_v43 = vor.u32 %v6515_v31, %v5767_v30  ;;  %v4793_v10 = vld [vmem:[%s7070_s19 + $0x234] sm:$0xf0]  ;;  %v5299_v24 = vld [vmem:[%s7070_s19 + $0x430] sm:$0xf] }
  0x72   : > { %813 = vst [vmem:[#allocation1] ss:$9 sm:$0xff] %v406_v20  ;;  %v6209_v9 = vld [vmem:[%s7070_s19 + $0x4c] sm:$0xf]  ;;  %v5291_v20 = vld [vmem:[%s7070_s19 + $0x428] sm:$0xf] }
  0x73   : > { %v6334_v30 = vld [vmem:[%s7070_s19 + $0x434] sm:$0xf]  ;;  %v5301_v31 = vld [vmem:[%s7070_s19 + $0x61c] sm:$0xf0] }
  0x76   : > { %3028 = vmatpush.bf16.xpose.msra.mxu0 %v5244_v37  ;;  %v6207_v37 = vld [vmem:[%s7070_s19 + $0x3c] sm:$0xf] }
  0x77   : > { %3041 = vmatpush.bf16.xpose.msra.mxu1 %v5248_v40  ;;  %3054 = vmatpush.bf16.xpose.msra.mxu2 %v5252_v41  ;;  %v4776_v40 = vor.u32 %v6268_v29, %v4775_v28  ;;  %v6455_v41 = vld [vmem:[%s7070_s19 + $0x7fc] sm:$0xf]  ;;  %v4780_v46 = vor.u32 %v6207_v37, %v4777_v38  ;;  %v407_v37 = vld [vmem:[%s7088_s5 + $0x18] sm:$0xff] }
  0x78   : > { %3067 = vmatpush.bf16.xpose.msra.mxu3 %v5256_v42  ;;  %v5777_v42 = vld [vmem:[%s7070_s19 + $0x9e4] sm:$0xf0] }
  0x79   : > { %v5780_v47 = vor.u32 %v6455_v41, %v5777_v42  ;;  %v814_v25 = vld [vmem:[#allocation1] sm:$0xff]  ;;  %v816_v26 = vld [vmem:[#allocation1 + $0x12] sm:$0xff]  ;;  %v815_v28 = vld [vmem:[#allocation1 + $0x9] sm:$0xff] }
  0x7a   : > { %v817_v29 = vld [vmem:[#allocation1 + $0x1b] sm:$0xff]  ;;  %v818_v32 = vld [vmem:[#allocation1 + $0x24] sm:$0xff] }
  0x7b   : > { %v820_v33 = vld [vmem:[#allocation1 + $0x36] sm:$0xff]  ;;  %v821_v36 = vld [vmem:[#allocation1 + $0x3f] sm:$0xff] }
  0x7c   : > { %v4799_v41 = vld [vmem:[%s7070_s19 + $0x50] sm:$0xf]  ;;  %v6271_v42 = vld [vmem:[%s7070_s19 + $0x238] sm:$0xf0] }
  0x7e   : > { %3029 = vmatpush.bf16.xpose.msra.mxu0 %v4752_v54  ;;  %v6332_v54 = vld [vmem:[%s7070_s19 + $0x424] sm:$0xf] }
  0x7f   : > { %3042 = vmatpush.bf16.xpose.msra.mxu1 %v4756_v58  ;;  %3055 = vmatpush.bf16.xpose.msra.mxu2 %v4760_v59  ;;  %v5284_v58 = vor.u32 %v6393_v53, %v5283_v52  ;;  %v5288_v59 = vor.u32 %v6332_v54, %v5285_v55  ;;  %v4800_v52 = vor.u32 %v6271_v42, %v4799_v41  ;;  %v6520_v53 = vld [vmem:[%s7070_s19 + $0xa00] sm:$0xf0]  ;;  %v6211_v54 = vld [vmem:[%s7070_s19 + $0x5c] sm:$0xf]  ;;  %v4809_v55 = vld [vmem:[%s7070_s19 + $0x244] sm:$0xf0] }
  0x80   : > { %3068 = vmatpush.bf16.xpose.msra.mxu3 %v4764_v1  ;;  %v6270_v1 = vld [vmem:[%s7070_s19 + $0x230] sm:$0xf0]  ;;  %v5331_v41 = vld [vmem:[%s7070_s19 + $0x450] sm:$0xf] }
  0x85   : > { %3030 = vmatmul.bf16.vlgmr.msra.gmra.mxu0 %v804_v11 }
  0x86   : > { %3079 = vmatpush.bf16.xpose.msrb.mxu0 %v5752_v62  ;;  %3056 = vmatmul.bf16.vlgmr.msra.gmra.mxu2 %v806_v12  ;;  %v6208_v62 = vld [vmem:[%s7070_s19 + $0x44] sm:$0xf] }
  0x87   : > { %3092 = vmatpush.bf16.xpose.msrb.mxu1 %v5756_v63  ;;  %3105 = vmatpush.bf16.xpose.msrb.mxu2 %v5760_v0  ;;  %v4785_v63 = vld [vmem:[%s7070_s19 + $0x22c] sm:$0xf0]  ;;  %v4791_v0 = vld [vmem:[%s7070_s19 + $0x48] sm:$0xf] }
  0x88   : > { %3118 = vmatpush.bf16.xpose.msrb.mxu3 %v5764_v2  ;;  %3043 = vmatmul.bf16.vlgmr.msra.gmra.mxu1 %v805_v13  ;;  %v5783_v2 = vld [vmem:[%s7070_s19 + $0x800] sm:$0xf]  ;;  %v4788_v11 = vor.u32 %v6208_v62, %v4785_v63  ;;  %v4792_v12 = vor.u32 %v6270_v1, %v4791_v0  ;;  %v6457_v13 = vld [vmem:[%s7070_s19 + $0x80c] sm:$0xf]  ;;  %v5808_v62 = vor.u32 %v6520_v53, %v5807_v51  ;;  %v5307_v1 = vld [vmem:[%s7070_s19 + $0x438] sm:$0xf] }
  0x89   : > { %3069 = vmatmul.bf16.vlgmr.msra.gmra.mxu3 %v807_v14  ;;  %v5793_v14 = vld [vmem:[%s7070_s19 + $0x9f4] sm:$0xf0]  ;;  %v4812_v63 = vor.u32 %v6211_v54, %v4809_v55 }
  0x8a   : > { %v408_v54 = vld [vmem:[%s7088_s5 + $0x20] sm:$0xff] }
  0x8e   : > { %3080 = vmatpush.bf16.xpose.msrb.mxu0 %v5260_v17  ;;  %v5792_v17 = vor.u32 %v6518_v8, %v5791_v6  ;;  %v6397_v6 = vld [vmem:[%s7070_s19 + $0x628] sm:$0xf0]  ;;  %v5317_v8 = vld [vmem:[%s7070_s19 + $0x62c] sm:$0xf0] }
  0x8f   : > { %3093 = vmatpush.bf16.xpose.msrb.mxu1 %v5264_v21  ;;  %3106 = vmatpush.bf16.xpose.msrb.mxu2 %v5268_v22  ;;  %v6394_v21 = vld [vmem:[%s7070_s19 + $0x610] sm:$0xf0]  ;;  %v6333_v22 = vld [vmem:[%s7070_s19 + $0x42c] sm:$0xf] }
  0x90   : > { %3119 = vmatpush.bf16.xpose.msrb.mxu3 %v5272_v23  ;;  %v5293_v23 = vld [vmem:[%s7070_s19 + $0x614] sm:$0xf0]  ;;  %v5292_v34 = vor.u32 %v6394_v21, %v5291_v20  ;;  %v6521_v20 = vld [vmem:[%s7070_s19 + $0xa08] sm:$0xf0]  ;;  %v6460_v21 = vld [vmem:[%s7070_s19 + $0x824] sm:$0xf] }
  0x91   : > { %v5296_v38 = vor.u32 %v6333_v22, %v5293_v23  ;;  %v5817_v22 = vld [vmem:[%s7070_s19 + $0xa0c] sm:$0xf0]  ;;  %v5823_v23 = vld [vmem:[%s7070_s19 + $0x828] sm:$0xf] }
  0x96   : > { %3081 = vmatpush.bf16.xpose.msrb.mxu0 %v4768_v35  ;;  %v819_v35 = vld [vmem:[#allocation1 + $0x2d] sm:$0xff] }
  0x97   : > { %3094 = vmatpush.bf16.xpose.msrb.mxu1 %v4772_v39  ;;  %3107 = vmatpush.bf16.xpose.msrb.mxu2 %v4776_v40  ;;  %v5300_v39 = vor.u32 %v6395_v27, %v5299_v24  ;;  %823 = vst [vmem:[#allocation1] ss:$9 sm:$0xff] %v407_v37  ;;  %v5304_v40 = vor.u32 %v6334_v30, %v5301_v31  ;;  %v4825_v27 = vld [vmem:[%s7070_s19 + $0x254] sm:$0xf0]  ;;  %v6461_v30 = vld [vmem:[%s7070_s19 + $0x82c] sm:$0xf] }
  0x98   : > { %3120 = vmatpush.bf16.xpose.msrb.mxu3 %v4780_v46  ;;  %v6272_v46 = vld [vmem:[%s7070_s19 + $0x240] sm:$0xf0]  ;;  %v5825_v31 = vld [vmem:[%s7070_s19 + $0xa14] sm:$0xf0]  ;;  %v5323_v37 = vld [vmem:[%s7070_s19 + $0x448] sm:$0xf] }
  0x9d   : > { %3082 = vmatmul.bf16.vlgmr.msrb.gmra.mxu0 %v808_v15  ;;  %v5784_v15 = vor.u32 %v6517_v3, %v5783_v2  ;;  %v6396_v2 = vld [vmem:[%s7070_s19 + $0x620] sm:$0xf0]  ;;  %v6335_v3 = vld [vmem:[%s7070_s19 + $0x43c] sm:$0xf] }
  0x9e   : > { %3131 = vmatpush.bf16.xpose.msra.mxu0 %v5768_v43  ;;  %3108 = vmatmul.bf16.vlgmr.msrb.gmra.mxu2 %v810_v16  ;;  %v5788_v16 = vor.u32 %v6456_v4, %v5785_v5  ;;  %v6210_v43 = vld [vmem:[%s7070_s19 + $0x54] sm:$0xf]  ;;  %v5309_v4 = vld [vmem:[%s7070_s19 + $0x624] sm:$0xf0]  ;;  %v5315_v5 = vld [vmem:[%s7070_s19 + $0x440] sm:$0xf] }
  0x9f   : > { %3144 = vmatpush.bf16.xpose.msra.mxu1 %v5772_v44  ;;  %3157 = vmatpush.bf16.xpose.msra.mxu2 %v5776_v45  ;;  %v4801_v44 = vld [vmem:[%s7070_s19 + $0x23c] sm:$0xf0]  ;;  %v4807_v45 = vld [vmem:[%s7070_s19 + $0x58] sm:$0xf]  ;;  %v830_v50 = vld [vmem:[#allocation1 + $0x36] sm:$0xff] }
  0xa0   : > { %3170 = vmatpush.bf16.xpose.msra.mxu3 %v5780_v47  ;;  %3095 = vmatmul.bf16.vlgmr.msrb.gmra.mxu1 %v809_v18  ;;  %v4796_v18 = vor.u32 %v6209_v9, %v4793_v10  ;;  %v5799_v47 = vld [vmem:[%s7070_s19 + $0x810] sm:$0xf]  ;;  %v5308_v9 = vor.u32 %v6396_v2, %v5307_v1  ;;  %v5312_v10 = vor.u32 %v6335_v3, %v5309_v4  ;;  %v6523_v1 = vld [vmem:[%s7070_s19 + $0xa18] sm:$0xf0]  ;;  %v6462_v2 = vld [vmem:[%s7070_s19 + $0x834] sm:$0xf] }
  0xa1   : > { %3121 = vmatmul.bf16.vlgmr.msrb.gmra.mxu3 %v811_v19  ;;  %v5796_v19 = vor.u32 %v6457_v13, %v5793_v14  ;;  %v5800_v60 = vor.u32 %v6519_v48, %v5799_v47  ;;  %v4815_v13 = vld [vmem:[%s7070_s19 + $0x60] sm:$0xf]  ;;  %v6273_v14 = vld [vmem:[%s7070_s19 + $0x248] sm:$0xf0]  ;;  %v6338_v47 = vld [vmem:[%s7070_s19 + $0x454] sm:$0xf] }
  0xa2   : > { %v4816_v24 = vor.u32 %v6273_v14, %v4815_v13  ;;  %v824_v42 = vld [vmem:[#allocation1] sm:$0xff]  ;;  %v5333_v48 = vld [vmem:[%s7070_s19 + $0x63c] sm:$0xf0] }
  0xa3   : > { %v828_v49 = vld [vmem:[#allocation1 + $0x24] sm:$0xff] }
  0xa4   : > { %v7279_v53 = vld [vmem:[#allocation1 + $0x3f] sm:$0xff]  ;;  %v5833_v3 = vld [vmem:[%s7070_s19 + $0xa1c] sm:$0xf0] }
  0xa5   : > { %v5839_v4 = vld [vmem:[%s7070_s19 + $0x838] sm:$0xf]  ;;  %v5836_v14 = vor.u32 %v6462_v2, %v5833_v3  ;;  %v5363_v3 = vld [vmem:[%s7070_s19 + $0x470] sm:$0xf] }
  0xa6   : > { %3132 = vmatpush.bf16.xpose.msra.mxu0 %v5276_v56  ;;  %v4804_v56 = vor.u32 %v6210_v43, %v4801_v44  ;;  %v826_v43 = vld [vmem:[#allocation1 + $0x12] sm:$0xff]  ;;  %v6399_v44 = vld [vmem:[%s7070_s19 + $0x638] sm:$0xf0]  ;;  %v5357_v2 = vld [vmem:[%s7070_s19 + $0x654] sm:$0xf0] }
  0xa7   : > { %3145 = vmatpush.bf16.xpose.msra.mxu1 %v5280_v57  ;;  %3158 = vmatpush.bf16.xpose.msra.mxu2 %v5284_v58  ;;  %v4808_v57 = vor.u32 %v6272_v46, %v4807_v45  ;;  %v6459_v58 = vld [vmem:[%s7070_s19 + $0x81c] sm:$0xf]  ;;  %v827_v46 = vld [vmem:[#allocation1 + $0x1b] sm:$0xff] }
  0xa8   : > { %3171 = vmatpush.bf16.xpose.msra.mxu3 %v5288_v59  ;;  %v5809_v59 = vld [vmem:[%s7070_s19 + $0xa04] sm:$0xf0]  ;;  %v825_v45 = vld [vmem:[#allocation1 + $0x9] sm:$0xff] }
  0xa9   : > { %v5812_v0 = vor.u32 %v6459_v58, %v5809_v59  ;;  %v4831_v58 = vld [vmem:[%s7070_s19 + $0x70] sm:$0xf]  ;;  %v6275_v59 = vld [vmem:[%s7070_s19 + $0x258] sm:$0xf0] }
  0xae   : > { %3133 = vmatpush.bf16.xpose.msra.mxu0 %v4784_v7  ;;  %v6336_v7 = vld [vmem:[%s7070_s19 + $0x444] sm:$0xf] }
  0xaf   : > { %3146 = vmatpush.bf16.xpose.msra.mxu1 %v4788_v11  ;;  %3159 = vmatpush.bf16.xpose.msra.mxu2 %v4792_v12  ;;  %v5316_v11 = vor.u32 %v6397_v6, %v5315_v5  ;;  %v5320_v12 = vor.u32 %v6336_v7, %v5317_v8  ;;  %v4832_v5 = vor.u32 %v6275_v59, %v4831_v58  ;;  %v6524_v6 = vld [vmem:[%s7070_s19 + $0xa20] sm:$0xf0]  ;;  %v6215_v7 = vld [vmem:[%s7070_s19 + $0x7c] sm:$0xf]  ;;  %v4841_v8 = vld [vmem:[%s7070_s19 + $0x264] sm:$0xf0] }
  0xb0   : > { %3172 = vmatpush.bf16.xpose.msra.mxu3 %v4796_v18  ;;  %v6274_v18 = vld [vmem:[%s7070_s19 + $0x250] sm:$0xf0] }
  0xb5   : > { %3134 = vmatmul.bf16.vlgmr.msra.gmra.mxu0 %v814_v25  ;;  %v6522_v25 = vld [vmem:[%s7070_s19 + $0xa10] sm:$0xf0] }
  0xb6   : > { %3183 = vmatpush.bf16.xpose.msrb.mxu0 %v5784_v15  ;;  %3160 = vmatmul.bf16.vlgmr.msra.gmra.mxu2 %v816_v26  ;;  %v6212_v15 = vld [vmem:[%s7070_s19 + $0x64] sm:$0xf]  ;;  %v6213_v26 = vld [vmem:[%s7070_s19 + $0x6c] sm:$0xf] }
  0xb7   : > { %3196 = vmatpush.bf16.xpose.msrb.mxu1 %v5788_v16  ;;  %3209 = vmatpush.bf16.xpose.msrb.mxu2 %v5792_v17  ;;  %v4817_v16 = vld [vmem:[%s7070_s19 + $0x24c] sm:$0xf0]  ;;  %v4823_v17 = vld [vmem:[%s7070_s19 + $0x68] sm:$0xf] }
  0xb8   : > { %3222 = vmatpush.bf16.xpose.msrb.mxu3 %v5796_v19  ;;  %3147 = vmatmul.bf16.vlgmr.msra.gmra.mxu1 %v815_v28  ;;  %v5815_v19 = vld [vmem:[%s7070_s19 + $0x820] sm:$0xf]  ;;  %v4820_v28 = vor.u32 %v6212_v15, %v4817_v16  ;;  %v5840_v15 = vor.u32 %v6524_v6, %v5839_v4  ;;  %v4844_v16 = vor.u32 %v6215_v7, %v4841_v8  ;;  %v6403_v6 = vld [vmem:[%s7070_s19 + $0x658] sm:$0xf0] }
  0xb9   : > { %3173 = vmatmul.bf16.vlgmr.msra.gmra.mxu3 %v817_v29  ;;  %v4824_v29 = vor.u32 %v6274_v18, %v4823_v17  ;;  %v5339_v18 = vld [vmem:[%s7070_s19 + $0x458] sm:$0xf] }
  0xbe   : > { %3184 = vmatpush.bf16.xpose.msrb.mxu0 %v5292_v34  ;;  %v5824_v34 = vor.u32 %v6522_v25, %v5823_v23  ;;  %v6401_v23 = vld [vmem:[%s7070_s19 + $0x648] sm:$0xf0]  ;;  %v5349_v25 = vld [vmem:[%s7070_s19 + $0x64c] sm:$0xf0] }
  0xbf   : > { %3197 = vmatpush.bf16.xpose.msrb.mxu1 %v5296_v38  ;;  %3210 = vmatpush.bf16.xpose.msrb.mxu2 %v5300_v39  ;;  %v6398_v38 = vld [vmem:[%s7070_s19 + $0x630] sm:$0xf0]  ;;  %v6337_v39 = vld [vmem:[%s7070_s19 + $0x44c] sm:$0xf] }
  0xc0   : > { %3223 = vmatpush.bf16.xpose.msrb.mxu3 %v5304_v40  ;;  %v5325_v40 = vld [vmem:[%s7070_s19 + $0x634] sm:$0xf0]  ;;  %v5324_v51 = vor.u32 %v6398_v38, %v5323_v37  ;;  %v4855_v37 = vld [vmem:[%s7070_s19 + $0x88] sm:$0xf]  ;;  %v6278_v38 = vld [vmem:[%s7070_s19 + $0x270] sm:$0xf0] }
  0xc1   : > { %v5328_v55 = vor.u32 %v6337_v39, %v5325_v40  ;;  %v5847_v39 = vld [vmem:[%s7070_s19 + $0x840] sm:$0xf]  ;;  %v6525_v40 = vld [vmem:[%s7070_s19 + $0xa28] sm:$0xf0] }
  0xc6   : > { %3185 = vmatpush.bf16.xpose.msrb.mxu0 %v4800_v52  ;;  %v829_v52 = vld [vmem:[#allocation1 + $0x2d] sm:$0xff] }
  0xc7   : > { %3198 = vmatpush.bf16.xpose.msrb.mxu1 %v4804_v56  ;;  %3211 = vmatpush.bf16.xpose.msrb.mxu2 %v4808_v57  ;;  %v5332_v56 = vor.u32 %v6399_v44, %v5331_v41  ;;  %833 = vst [vmem:[#allocation1] ss:$9 sm:$0xff] %v408_v54  ;;  %v5336_v57 = vor.u32 %v6338_v47, %v5333_v48  ;;  %v6464_v41 = vld [vmem:[%s7070_s19 + $0x844] sm:$0xf]  ;;  %v4857_v47 = vld [vmem:[%s7070_s19 + $0x274] sm:$0xf0] }
  0xc8   : > { %3224 = vmatpush.bf16.xpose.msrb.mxu3 %v4812_v63  ;;  %v6276_v63 = vld [vmem:[%s7070_s19 + $0x260] sm:$0xf0] }
  0xcd   : > { %3186 = vmatmul.bf16.vlgmr.msrb.gmra.mxu0 %v818_v32  ;;  %v5816_v32 = vor.u32 %v6521_v20, %v5815_v19  ;;  %v6400_v19 = vld [vmem:[%s7070_s19 + $0x640] sm:$0xf0]  ;;  %v6339_v20 = vld [vmem:[%s7070_s19 + $0x45c] sm:$0xf] }
  0xce   : > { %3235 = vmatpush.bf16.xpose.msra.mxu0 %v5800_v60  ;;  %3212 = vmatmul.bf16.vlgmr.msrb.gmra.mxu2 %v820_v33  ;;  %v5820_v33 = vor.u32 %v6460_v21, %v5817_v22  ;;  %v6214_v60 = vld [vmem:[%s7070_s19 + $0x74] sm:$0xf]  ;;  %v5341_v21 = vld [vmem:[%s7070_s19 + $0x644] sm:$0xf0]  ;;  %v5347_v22 = vld [vmem:[%s7070_s19 + $0x460] sm:$0xf] }
  0xcf   : > { %3248 = vmatpush.bf16.xpose.msra.mxu1 %v5804_v61  ;;  %3261 = vmatpush.bf16.xpose.msra.mxu2 %v5808_v62  ;;  %v4833_v61 = vld [vmem:[%s7070_s19 + $0x25c] sm:$0xf0]  ;;  %v4839_v62 = vld [vmem:[%s7070_s19 + $0x78] sm:$0xf] }
  0xd0   : > { %3274 = vmatpush.bf16.xpose.msra.mxu3 %v5812_v0  ;;  %3199 = vmatmul.bf16.vlgmr.msrb.gmra.mxu1 %v819_v35  ;;  %v4828_v35 = vor.u32 %v6213_v26, %v4825_v27  ;;  %v5831_v0 = vld [vmem:[%s7070_s19 + $0x830] sm:$0xf]  ;;  %v5340_v26 = vor.u32 %v6400_v19, %v5339_v18  ;;  %v5344_v27 = vor.u32 %v6339_v20, %v5341_v21  ;;  %v835_v7 = vld [vmem:[#allocation1 + $0x9] sm:$0xff] }
  0xd1   : > { %3225 = vmatmul.bf16.vlgmr.msrb.gmra.mxu3 %v821_v36  ;;  %v5828_v36 = vor.u32 %v6461_v30, %v5825_v31  ;;  %v5832_v13 = vor.u32 %v6523_v1, %v5831_v0  ;;  %v6402_v0 = vld [vmem:[%s7070_s19 + $0x650] sm:$0xf0]  ;;  %v6341_v1 = vld [vmem:[%s7070_s19 + $0x46c] sm:$0xf]  ;;  %v5364_v19 = vor.u32 %v6403_v6, %v5363_v3 }
  0xd2   : > { %v834_v4 = vld [vmem:[#allocation1] sm:$0xff]  ;;  %v5360_v18 = vor.u32 %v6341_v1, %v5357_v2 }
  0xd3   : > { %v837_v8 = vld [vmem:[#allocation1 + $0x1b] sm:$0xff] }
  0xd5   : > { %v2940_v31 = vpop.f32.mrf.mxu1 }
  0xd6   : > { %3236 = vmatpush.bf16.xpose.msra.mxu0 %v5308_v9  ;;  %v4836_v9 = vor.u32 %v6214_v60, %v4833_v61 }
  0xd7   : > { %3249 = vmatpush.bf16.xpose.msra.mxu1 %v5312_v10  ;;  %3262 = vmatpush.bf16.xpose.msra.mxu2 %v5316_v11  ;;  %v4840_v10 = vor.u32 %v6276_v63, %v4839_v62  ;;  %v6463_v11 = vld [vmem:[%s7070_s19 + $0x83c] sm:$0xf]  ;;  %v5355_v63 = vld [vmem:[%s7070_s19 + $0x468] sm:$0xf] }
  0xd8   : > { %3275 = vmatpush.bf16.xpose.msra.mxu3 %v5320_v12  ;;  %v5841_v12 = vld [vmem:[%s7070_s19 + $0xa24] sm:$0xf0] }
  0xd9   : > { %v5844_v17 = vor.u32 %v6463_v11, %v5841_v12  ;;  %v2953_v48 = vpop.f32.mrf.mxu2  ;;  %v5365_v11 = vld [vmem:[%s7070_s19 + $0x65c] sm:$0xf0] }
  0xda   : > { %v7331_v12 = vld [vmem:[#allocation1 + $0x24] sm:$0xff] }
  0xdc   : > { %v2966_v60 = vpop.f32.mrf.mxu3 }
  0xde   : > { %3237 = vmatpush.bf16.xpose.msra.mxu0 %v4816_v24  ;;  %v6340_v24 = vld [vmem:[%s7070_s19 + $0x464] sm:$0xf] }
  0xdf   : > { %3250 = vmatpush.bf16.xpose.msra.mxu1 %v4820_v28  ;;  %3263 = vmatpush.bf16.xpose.msra.mxu2 %v4824_v29  ;;  %v5348_v28 = vor.u32 %v6401_v23, %v5347_v22  ;;  %v2927_v29 = vpop.f32.mrf.mxu0  ;;  %v5352_v30 = vor.u32 %v6340_v24, %v5349_v25 }
  0xe0   : > { %3276 = vmatpush.bf16.xpose.msra.mxu3 %v4828_v35  ;;  %v6216_v35 = vld [vmem:[%s7070_s19 + $0x84] sm:$0xf] }
  0xe4   : > { %v2968_v20 = vpop.f32.mrf.mxu3 }
  0xe5   : > { %3238 = vmatmul.bf16.vlgmr.msra.gmra.mxu0 %v824_v42  ;;  %v5849_v42 = vld [vmem:[%s7070_s19 + $0xa2c] sm:$0xf0] }
  0xe6   : > { %3287 = vmatpush.bf16.xpose.msrb.mxu0 %v5816_v32  ;;  %3264 = vmatmul.bf16.vlgmr.msra.gmra.mxu2 %v826_v43  ;;  %v2941_v32 = vadd.f32 %v2940_v31, %v2927_v29  ;;  %v5855_v43 = vld [vmem:[%s7070_s19 + $0x848] sm:$0xf]  ;;  %v4865_v29 = vld [vmem:[%s7070_s19 + $0x27c] sm:$0xf0]  ;;  %v6280_v31 = vld [vmem:[%s7070_s19 + $0x280] sm:$0xf0] }
  0xe7   : > { %3300 = vmatpush.bf16.xpose.msrb.mxu1 %v5820_v33  ;;  %3313 = vmatpush.bf16.xpose.msrb.mxu2 %v5824_v34  ;;  %v4847_v33 = vld [vmem:[%s7070_s19 + $0x80] sm:$0xf]  ;;  %v6277_v34 = vld [vmem:[%s7070_s19 + $0x268] sm:$0xf0]  ;;  %v2929_v54 = vpop.f32.mrf.mxu0  ;;  %v5881_v20 = vld [vmem:[%s7070_s19 + $0xa4c] sm:$0xf0] }
  0xe8   : > { %3326 = vmatpush.bf16.xpose.msrb.mxu3 %v5828_v36  ;;  %3251 = vmatmul.bf16.vlgmr.msra.gmra.mxu1 %v825_v45  ;;  %v4849_v36 = vld [vmem:[%s7070_s19 + $0x26c] sm:$0xf0]  ;;  %v4848_v44 = vor.u32 %v6277_v34, %v4847_v33  ;;  %v6526_v45 = vld [vmem:[%s7070_s19 + $0xa30] sm:$0xf0]  ;;  %v6527_v33 = vld [vmem:[%s7070_s19 + $0xa38] sm:$0xf0] }
  0xe9   : > { %3277 = vmatmul.bf16.vlgmr.msra.gmra.mxu3 %v827_v46  ;;  %v6217_v46 = vld [vmem:[%s7070_s19 + $0x8c] sm:$0xf]  ;;  %v5856_v58 = vor.u32 %v6526_v45, %v5855_v43  ;;  %v6466_v34 = vld [vmem:[%s7070_s19 + $0x854] sm:$0xf]  ;;  %v6467_v45 = vld [vmem:[%s7070_s19 + $0x85c] sm:$0xf] }
  0xea   : > { %v4860_v59 = vor.u32 %v6217_v46, %v4857_v47  ;;  %v5873_v46 = vld [vmem:[%s7070_s19 + $0xa44] sm:$0xf0] }
  0xeb   : > { %v5876_v54 = vor.u32 %v6467_v45, %v5873_v46 }
  0xee   : > { %3288 = vmatpush.bf16.xpose.msrb.mxu0 %v5324_v51  ;;  %v6465_v51 = vld [vmem:[%s7070_s19 + $0x84c] sm:$0xf] }
  0xef   : > { %3301 = vmatpush.bf16.xpose.msrb.mxu1 %v5328_v55  ;;  %3314 = vmatpush.bf16.xpose.msrb.mxu2 %v5332_v56  ;;  %v5848_v55 = vor.u32 %v6525_v40, %v5847_v39  ;;  %v5852_v56 = vor.u32 %v6464_v41, %v5849_v42  ;;  %v2979_v21 = vpop.f32.mrf.mxu0  ;;  %v6219_v39 = vld [vmem:[%s7070_s19 + $0x9c] sm:$0xf]  ;;  %v4873_v40 = vld [vmem:[%s7070_s19 + $0x284] sm:$0xf0] }
  0xf0   : > { %3327 = vmatpush.bf16.xpose.msrb.mxu3 %v5336_v57  ;;  %v2942_v57 = vpop.f32.mrf.mxu1 }
  0xf1   : > { %v6404_v57 = vld [vmem:[%s7070_s19 + $0x660] sm:$0xf0] }
  0xf6   : > { %3289 = vmatpush.bf16.xpose.msrb.mxu0 %v4832_v5  ;;  %v836_v5 = vld [vmem:[#allocation1 + $0x12] sm:$0xff] }
  0xf7   : > { %3302 = vmatpush.bf16.xpose.msrb.mxu1 %v4836_v9  ;;  %3315 = vmatpush.bf16.xpose.msrb.mxu2 %v4840_v10  ;;  %v6342_v9 = vld [vmem:[%s7070_s19 + $0x474] sm:$0xf]  ;;  %v2955_v10 = vpop.f32.mrf.mxu2  ;;  %v2981_v47 = vpop.f32.mrf.mxu0 }
  0xf8   : > { %3328 = vmatpush.bf16.xpose.msrb.mxu3 %v4844_v16  ;;  %v7337_v16 = vld [vmem:[#allocation1 + $0x3f] sm:$0xff]  ;;  %v5368_v22 = vor.u32 %v6342_v9, %v5365_v11  ;;  %v2992_v24 = vpop.f32.mrf.mxu1  ;;  %v4879_v10 = vld [vmem:[%s7070_s19 + $0xa0] sm:$0xf] }
  0xf9   : > { %v6281_v11 = vld [vmem:[%s7070_s19 + $0x288] sm:$0xf0]  ;;  %v6407_v47 = vld [vmem:[%s7070_s19 + $0x678] sm:$0xf0] }
  0xfd   : > { %3290 = vmatmul.bf16.vlgmr.msrb.gmra.mxu0 %v828_v49  ;;  %v4852_v49 = vor.u32 %v6216_v35, %v4849_v36  ;;  %v5865_v35 = vld [vmem:[%s7070_s19 + $0xa3c] sm:$0xf0]  ;;  %v5871_v36 = vld [vmem:[%s7070_s19 + $0x858] sm:$0xf] }
  0xfe   : > { %3339 = vmatpush.bf16.xpose.msra.mxu0 %v5832_v13  ;;  %3316 = vmatmul.bf16.vlgmr.msrb.gmra.mxu2 %v830_v50  ;;  %v4856_v50 = vor.u32 %v6278_v38, %v4855_v37  ;;  %v7333_v13 = vld [vmem:[#allocation1 + $0x36] sm:$0xff] }
  0xff   : > { %3352 = vmatpush.bf16.xpose.msra.mxu1 %v5836_v14  ;;  %3365 = vmatpush.bf16.xpose.msra.mxu2 %v5840_v15  ;;  %v5356_v14 = vor.u32 %v6402_v0, %v5355_v63  ;;  %v7335_v15 = vld [vmem:[#allocation1 + $0x2d] sm:$0xff]  ;;  %v3005_v41 = vpop.f32.mrf.mxu2  ;;  %v5381_v0 = vld [vmem:[%s7070_s19 + $0x66c] sm:$0xf0] }
 0x100   : > { %3378 = vmatpush.bf16.xpose.msra.mxu3 %v5844_v17  ;;  %3303 = vmatmul.bf16.vlgmr.msrb.gmra.mxu1 %v829_v52  ;;  %v5857_v52 = vld [vmem:[%s7070_s19 + $0xa34] sm:$0xf0]  ;;  %v6528_v38 = vld [vmem:[%s7070_s19 + $0xa40] sm:$0xf0] }
 0x101   : > { %3329 = vmatmul.bf16.vlgmr.msrb.gmra.mxu3 %v7279_v53  ;;  %v2954_v53 = vadd.f32 %v2953_v48, %v2941_v32  ;;  %v5860_v61 = vor.u32 %v6465_v51, %v5857_v52  ;;  %v409_v17 = vld [vmem:[%s7088_s5 + $0x28] sm:$0xff]  ;;  %v5863_v32 = vld [vmem:[%s7070_s19 + $0x850] sm:$0xf]  ;;  %v5872_v51 = vor.u32 %v6528_v38, %v5871_v36  ;;  %v4876_v52 = vor.u32 %v6219_v39, %v4873_v40  ;;  %v5387_v40 = vld [vmem:[%s7070_s19 + $0x488] sm:$0xf] }
 0x102   : > { %843 = vst [vmem:[#allocation1] ss:$9 sm:$0xff] %v409_v17  ;;  %v5864_v48 = vor.u32 %v6527_v33, %v5863_v32  ;;  %v6344_v63 = vld [vmem:[%s7070_s19 + $0x484] sm:$0xf]  ;;  %v3031_v2 = vpop.f32.mrf.mxu0  ;;  %v5879_v17 = vld [vmem:[%s7070_s19 + $0x860] sm:$0xf] }
 0x103   : > { %v2967_v62 = vadd.f32 %v2966_v60, %v2954_v53  ;;  %v3018_v53 = vpop.f32.mrf.mxu3  ;;  %v5379_v60 = vld [vmem:[%s7070_s19 + $0x480] sm:$0xf] }
 0x105   : > { %v2980_v23 = vadd.f32 %v2979_v21, %v2967_v62 }
 0x106   : > { %3340 = vmatpush.bf16.xpose.msra.mxu0 %v5340_v26  ;;  %v4863_v26 = vld [vmem:[%s7070_s19 + $0x90] sm:$0xf] }
 0x107   : > { %3353 = vmatpush.bf16.xpose.msra.mxu1 %v5344_v27  ;;  %3366 = vmatpush.bf16.xpose.msra.mxu2 %v5348_v28  ;;  %v2993_v25 = vadd.f32 %v2992_v24, %v2980_v23  ;;  %v6279_v27 = vld [vmem:[%s7070_s19 + $0x278] sm:$0xf0]  ;;  %v6218_v28 = vld [vmem:[%s7070_s19 + $0x94] sm:$0xf]  ;;  %v3007_v62 = vpop.f32.mrf.mxu2 }
 0x108   : > { %3379 = vmatpush.bf16.xpose.msra.mxu3 %v5352_v30  ;;  %v4871_v30 = vld [vmem:[%s7070_s19 + $0x98] sm:$0xf]  ;;  %v4864_v37 = vor.u32 %v6279_v27, %v4863_v26  ;;  %v4868_v42 = vor.u32 %v6218_v28, %v4865_v29  ;;  %v6530_v23 = vld [vmem:[%s7070_s19 + $0xa50] sm:$0xf0] }
 0x109   : > { %v4872_v43 = vor.u32 %v6280_v31, %v4871_v30  ;;  %v4889_v26 = vld [vmem:[%s7070_s19 + $0x294] sm:$0xf0]  ;;  %v6469_v30 = vld [vmem:[%s7070_s19 + $0x86c] sm:$0xf] }
 0x10a   : > { %v3033_v27 = vpop.f32.mrf.mxu0  ;;  %v5889_v31 = vld [vmem:[%s7070_s19 + $0xa54] sm:$0xf0]  ;;  %v846_v46 = vld [vmem:[#allocation1 + $0x12] sm:$0xff] }
 0x10b   : > { %v5892_v39 = vor.u32 %v6469_v30, %v5889_v31  ;;  %v844_v45 = vld [vmem:[#allocation1] sm:$0xff] }
 0x10e   : > { %3341 = vmatpush.bf16.xpose.msra.mxu0 %v4848_v44  ;;  %v3006_v44 = vadd.f32 %v3005_v41, %v2993_v25  ;;  %v6221_v25 = vld [vmem:[%s7070_s19 + $0xac] sm:$0xf]  ;;  %v6406_v41 = vld [vmem:[%s7070_s19 + $0x670] sm:$0xf0] }
 0x10f   : > { %3354 = vmatpush.bf16.xpose.msra.mxu1 %v4852_v49  ;;  %3367 = vmatpush.bf16.xpose.msra.mxu2 %v4856_v50  ;;  %v5868_v49 = vor.u32 %v6466_v34, %v5865_v35  ;;  %v2994_v50 = vpop.f32.mrf.mxu1  ;;  %v3057_v21 = vpop.f32.mrf.mxu2  ;;  %v4892_v38 = vor.u32 %v6221_v25, %v4889_v26 }
 0x110   : > { %3380 = vmatpush.bf16.xpose.msra.mxu3 %v4860_v59  ;;  %v5373_v59 = vld [vmem:[%s7070_s19 + $0x664] sm:$0xf0] }
 0x111   : > { %v847_v50 = vld [vmem:[#allocation1 + $0x1b] sm:$0xff] }
 0x115   : > { %3342 = vmatmul.bf16.vlgmr.msra.gmra.mxu0 %v834_v4 }
 0x116   : > { %3391 = vmatpush.bf16.xpose.msrb.mxu0 %v5848_v55  ;;  %3368 = vmatmul.bf16.vlgmr.msra.gmra.mxu2 %v836_v5  ;;  %v3019_v55 = vadd.f32 %v3018_v53, %v3006_v44  ;;  %v3020_v5 = vpop.f32.mrf.mxu3  ;;  %v5395_v44 = vld [vmem:[%s7070_s19 + $0x490] sm:$0xf] }
 0x117   : > { %3404 = vmatpush.bf16.xpose.msrb.mxu1 %v5852_v56  ;;  %3417 = vmatpush.bf16.xpose.msrb.mxu2 %v5856_v58  ;;  %v5371_v56 = vld [vmem:[%s7070_s19 + $0x478] sm:$0xf]  ;;  %v6343_v58 = vld [vmem:[%s7070_s19 + $0x47c] sm:$0xf]  ;;  %v5396_v62 = vor.u32 %v6407_v47, %v5395_v44  ;;  %v6222_v5 = vld [vmem:[%s7070_s19 + $0xb4] sm:$0xf] }
 0x118   : > { %3430 = vmatpush.bf16.xpose.msrb.mxu3 %v5860_v61  ;;  %3355 = vmatmul.bf16.vlgmr.msra.gmra.mxu1 %v835_v7  ;;  %v6405_v61 = vld [vmem:[%s7070_s19 + $0x668] sm:$0xf0]  ;;  %v5372_v1 = vor.u32 %v6404_v57, %v5371_v56  ;;  %v5376_v3 = vor.u32 %v6343_v58, %v5373_v59  ;;  %v3032_v6 = vadd.f32 %v3031_v2, %v3019_v55  ;;  %v3044_v7 = vpop.f32.mrf.mxu1  ;;  %v7396_v58 = vld [vmem:[#allocation1 + $0x2d] sm:$0xff] }
 0x119   : > { %3381 = vmatmul.bf16.vlgmr.msra.gmra.mxu3 %v837_v8  ;;  %v5380_v4 = vor.u32 %v6405_v61, %v5379_v60  ;;  %v5384_v8 = vor.u32 %v6344_v63, %v5381_v0  ;;  %v7394_v55 = vld [vmem:[#allocation1 + $0x36] sm:$0xff]  ;;  %v5388_v56 = vor.u32 %v6406_v41, %v5387_v40  ;;  %v7398_v59 = vld [vmem:[#allocation1 + $0x3f] sm:$0xff] }
 0x11a   : > { %v3045_v9 = vadd.f32 %v3044_v7, %v3032_v6  ;;  %v3083_v57 = vpop.f32.mrf.mxu0  ;;  %v410_v60 = vld [vmem:[%s7088_s5 + $0x30] sm:$0xff]  ;;  %v4903_v7 = vld [vmem:[%s7070_s19 + $0xb8] sm:$0xf]  ;;  %v5413_v41 = vld [vmem:[%s7070_s19 + $0x68c] sm:$0xf0] }
 0x11b   : > { %v4897_v6 = vld [vmem:[%s7070_s19 + $0x29c] sm:$0xf0]  ;;  %v6348_v40 = vld [vmem:[%s7070_s19 + $0x4a4] sm:$0xf] }
 0x11c   : > { %v3058_v24 = vadd.f32 %v3057_v21, %v3045_v9  ;;  %v5895_v9 = vld [vmem:[%s7070_s19 + $0x870] sm:$0xf]  ;;  %v4900_v21 = vor.u32 %v6222_v5, %v4897_v6 }
 0x11e   : > { %3392 = vmatpush.bf16.xpose.msrb.mxu0 %v5356_v14  ;;  %v4887_v14 = vld [vmem:[%s7070_s19 + $0xa8] sm:$0xf]  ;;  %v3070_v32 = vpop.f32.mrf.mxu3 }
 0x11f   : > { %3405 = vmatpush.bf16.xpose.msrb.mxu1 %v5360_v18  ;;  %3418 = vmatpush.bf16.xpose.msrb.mxu2 %v5364_v19  ;;  %v6529_v18 = vld [vmem:[%s7070_s19 + $0xa48] sm:$0xf0]  ;;  %v6468_v19 = vld [vmem:[%s7070_s19 + $0x864] sm:$0xf]  ;;  %v3071_v36 = vadd.f32 %v3070_v32, %v3058_v24  ;;  %v5905_v24 = vld [vmem:[%s7070_s19 + $0xa64] sm:$0xf0] }
 0x120   : > { %3431 = vmatpush.bf16.xpose.msrb.mxu3 %v5368_v22  ;;  %v4880_v22 = vor.u32 %v6281_v11, %v4879_v10  ;;  %v3046_v33 = vpop.f32.mrf.mxu1  ;;  %v5880_v34 = vor.u32 %v6529_v18, %v5879_v17  ;;  %v5884_v35 = vor.u32 %v6468_v19, %v5881_v20  ;;  %v6531_v10 = vld [vmem:[%s7070_s19 + $0xa58] sm:$0xf0]  ;;  %v6470_v11 = vld [vmem:[%s7070_s19 + $0x874] sm:$0xf]  ;;  %v6532_v17 = vld [vmem:[%s7070_s19 + $0xa60] sm:$0xf0] }
 0x121   : > { %v3084_v63 = vadd.f32 %v3083_v57, %v3071_v36  ;;  %v6223_v19 = vld [vmem:[%s7070_s19 + $0xbc] sm:$0xf]  ;;  %v4905_v20 = vld [vmem:[%s7070_s19 + $0x2a4] sm:$0xf0]  ;;  %v5896_v27 = vor.u32 %v6531_v10, %v5895_v9  ;;  %v5403_v33 = vld [vmem:[%s7070_s19 + $0x498] sm:$0xf] }
 0x122   : > { %v4908_v31 = vor.u32 %v6223_v19, %v4905_v20  ;;  %v5911_v57 = vld [vmem:[%s7070_s19 + $0x880] sm:$0xf]  ;;  %v6410_v19 = vld [vmem:[%s7070_s19 + $0x690] sm:$0xf0]  ;;  %v6349_v20 = vld [vmem:[%s7070_s19 + $0x4ac] sm:$0xf] }
 0x126   : > { %3393 = vmatpush.bf16.xpose.msrb.mxu0 %v4864_v37  ;;  %v3072_v53 = vpop.f32.mrf.mxu3 }
 0x127   : > { %3406 = vmatpush.bf16.xpose.msrb.mxu1 %v4868_v42  ;;  %3419 = vmatpush.bf16.xpose.msrb.mxu2 %v4872_v43  ;;  %v6345_v42 = vld [vmem:[%s7070_s19 + $0x48c] sm:$0xf]  ;;  %v5389_v43 = vld [vmem:[%s7070_s19 + $0x674] sm:$0xf0]  ;;  %v6224_v53 = vld [vmem:[%s7070_s19 + $0xc4] sm:$0xf] }
 0x128   : > { %3432 = vmatpush.bf16.xpose.msrb.mxu3 %v4876_v52  ;;  %v5397_v52 = vld [vmem:[%s7070_s19 + $0x67c] sm:$0xf0]  ;;  %v5392_v61 = vor.u32 %v6345_v42, %v5389_v43  ;;  %v3096_v0 = vpop.f32.mrf.mxu1 }
 0x129   : > { %v3097_v2 = vadd.f32 %v3096_v0, %v3084_v63  ;;  %v6534_v0 = vld [vmem:[%s7070_s19 + $0xa70] sm:$0xf0] }
 0x12d   : > { %3394 = vmatmul.bf16.vlgmr.msrb.gmra.mxu0 %v7331_v12  ;;  %v6220_v12 = vld [vmem:[%s7070_s19 + $0xa4] sm:$0xf] }
 0x12e   : > { %3443 = vmatpush.bf16.xpose.msra.mxu0 %v5864_v48  ;;  %3420 = vmatmul.bf16.vlgmr.msrb.gmra.mxu2 %v7333_v13  ;;  %v4881_v13 = vld [vmem:[%s7070_s19 + $0x28c] sm:$0xf0]  ;;  %v3059_v48 = vpop.f32.mrf.mxu2  ;;  %v3122_v25 = vpop.f32.mrf.mxu3 }
 0x12f   : > { %3456 = vmatpush.bf16.xpose.msra.mxu1 %v5868_v49  ;;  %3469 = vmatpush.bf16.xpose.msra.mxu2 %v5872_v51  ;;  %v4884_v28 = vor.u32 %v6220_v12, %v4881_v13  ;;  %v845_v49 = vld [vmem:[#allocation1 + $0x9] sm:$0xff] }
 0x130   : > { %3482 = vmatpush.bf16.xpose.msra.mxu3 %v5876_v54  ;;  %3407 = vmatmul.bf16.vlgmr.msrb.gmra.mxu1 %v7335_v15  ;;  %v6282_v15 = vld [vmem:[%s7070_s19 + $0x290] sm:$0xf0]  ;;  %v5897_v12 = vld [vmem:[%s7070_s19 + $0xa5c] sm:$0xf0]  ;;  %v5903_v13 = vld [vmem:[%s7070_s19 + $0x878] sm:$0xf]  ;;  %v3098_v26 = vpop.f32.mrf.mxu1 }
 0x131   : > { %3433 = vmatmul.bf16.vlgmr.msrb.gmra.mxu3 %v7337_v16  ;;  %v5887_v16 = vld [vmem:[%s7070_s19 + $0x868] sm:$0xf]  ;;  %v4888_v29 = vor.u32 %v6282_v15, %v4887_v14  ;;  %v6346_v51 = vld [vmem:[%s7070_s19 + $0x494] sm:$0xf]  ;;  %v5904_v30 = vor.u32 %v6532_v17, %v5903_v13 }
 0x132   : > { %v5888_v37 = vor.u32 %v6530_v23, %v5887_v16  ;;  %v7392_v54 = vld [vmem:[#allocation1 + $0x24] sm:$0xff]  ;;  %v3085_v16 = vpop.f32.mrf.mxu0 }
 0x133   : > { %853 = vst [vmem:[#allocation1] ss:$9 sm:$0xff] %v410_v60  ;;  %v6471_v23 = vld [vmem:[%s7070_s19 + $0x87c] sm:$0xf]  ;;  %v6472_v60 = vld [vmem:[%s7070_s19 + $0x884] sm:$0xf] }
 0x134   : > { %v5908_v32 = vor.u32 %v6471_v23, %v5905_v24  ;;  %v5421_v16 = vld [vmem:[%s7070_s19 + $0x694] sm:$0xf0]  ;;  %v6411_v24 = vld [vmem:[%s7070_s19 + $0x698] sm:$0xf0] }
 0x136   : > { %3444 = vmatpush.bf16.xpose.msra.mxu0 %v5372_v1  ;;  %v5400_v1 = vor.u32 %v6346_v51, %v5397_v52  ;;  %v3109_v14 = vpop.f32.mrf.mxu2  ;;  %v3124_v42 = vpop.f32.mrf.mxu3  ;;  %v4911_v51 = vld [vmem:[%s7070_s19 + $0xc0] sm:$0xf]  ;;  %v6285_v52 = vld [vmem:[%s7070_s19 + $0x2a8] sm:$0xf0] }
 0x137   : > { %3457 = vmatpush.bf16.xpose.msra.mxu1 %v5376_v3  ;;  %3470 = vmatpush.bf16.xpose.msra.mxu2 %v5380_v4  ;;  %v4895_v3 = vld [vmem:[%s7070_s19 + $0xb0] sm:$0xf]  ;;  %v6283_v4 = vld [vmem:[%s7070_s19 + $0x298] sm:$0xf0]  ;;  %v3110_v18 = vadd.f32 %v3109_v14, %v3097_v2  ;;  %v4912_v63 = vor.u32 %v6285_v52, %v4911_v51  ;;  %v6225_v2 = vld [vmem:[%s7070_s19 + $0xcc] sm:$0xf] }
 0x138   : > { %3483 = vmatpush.bf16.xpose.msra.mxu3 %v5384_v8  ;;  %v6284_v8 = vld [vmem:[%s7070_s19 + $0x2a0] sm:$0xf0]  ;;  %v4896_v15 = vor.u32 %v6283_v4, %v4895_v3  ;;  %v3148_v48 = vpop.f32.mrf.mxu1  ;;  %v4921_v3 = vld [vmem:[%s7070_s19 + $0x2b4] sm:$0xf0]  ;;  %v6535_v51 = vld [vmem:[%s7070_s19 + $0xa78] sm:$0xf0] }
 0x139   : > { %v6474_v52 = vld [vmem:[%s7070_s19 + $0x894] sm:$0xf] }
 0x13a   : > { %v3135_v44 = vpop.f32.mrf.mxu0  ;;  %v856_v23 = vld [vmem:[#allocation1 + $0x12] sm:$0xff]  ;;  %v855_v26 = vld [vmem:[#allocation1 + $0x9] sm:$0xff] }
 0x13e   : > { %3445 = vmatpush.bf16.xpose.msra.mxu0 %v4880_v22  ;;  %v4904_v22 = vor.u32 %v6284_v8, %v4903_v7  ;;  %v3111_v36 = vpop.f32.mrf.mxu2  ;;  %v6473_v7 = vld [vmem:[%s7070_s19 + $0x88c] sm:$0xf]  ;;  %v5921_v8 = vld [vmem:[%s7070_s19 + $0xa74] sm:$0xf0]  ;;  %v3174_v9 = vpop.f32.mrf.mxu3 }
 0x13f   : > { %3458 = vmatpush.bf16.xpose.msra.mxu1 %v4884_v28  ;;  %3471 = vmatpush.bf16.xpose.msra.mxu2 %v4888_v29  ;;  %v5900_v28 = vor.u32 %v6470_v11, %v5897_v12  ;;  %v3123_v29 = vadd.f32 %v3122_v25, %v3110_v18  ;;  %v5924_v17 = vor.u32 %v6473_v7, %v5921_v8  ;;  %v5419_v18 = vld [vmem:[%s7070_s19 + $0x4a8] sm:$0xf]  ;;  %v7459_v36 = vld [vmem:[#allocation1 + $0x3f] sm:$0xff] }
 0x140   : > { %3484 = vmatpush.bf16.xpose.msra.mxu3 %v4892_v38  ;;  %v5411_v38 = vld [vmem:[%s7070_s19 + $0x4a0] sm:$0xf]  ;;  %v3150_v10 = vpop.f32.mrf.mxu1 }
 0x141   : > { %v3136_v47 = vadd.f32 %v3135_v44, %v3123_v29  ;;  %v5429_v29 = vld [vmem:[%s7070_s19 + $0x69c] sm:$0xf0]  ;;  %v4927_v44 = vld [vmem:[%s7070_s19 + $0xd0] sm:$0xf]  ;;  %v5435_v10 = vld [vmem:[%s7070_s19 + $0x4b8] sm:$0xf] }
 0x142   : > { %v3137_v4 = vpop.f32.mrf.mxu0 }
 0x145   : > { %3446 = vmatmul.bf16.vlgmr.msra.gmra.mxu0 %v844_v45 }
 0x146   : > { %3495 = vmatpush.bf16.xpose.msrb.mxu0 %v5880_v34  ;;  %3472 = vmatmul.bf16.vlgmr.msra.gmra.mxu2 %v846_v46  ;;  %v6408_v34 = vld [vmem:[%s7070_s19 + $0x680] sm:$0xf0] }
 0x147   : > { %3508 = vmatpush.bf16.xpose.msrb.mxu1 %v5884_v35  ;;  %3521 = vmatpush.bf16.xpose.msrb.mxu2 %v5888_v37  ;;  %v6347_v35 = vld [vmem:[%s7070_s19 + $0x49c] sm:$0xf]  ;;  %v5405_v37 = vld [vmem:[%s7070_s19 + $0x684] sm:$0xf0]  ;;  %v5404_v43 = vor.u32 %v6408_v34, %v5403_v33  ;;  %v5420_v33 = vor.u32 %v6410_v19, %v5419_v18  ;;  %v6352_v18 = vld [vmem:[%s7070_s19 + $0x4c4] sm:$0xf] }
 0x148   : > { %3534 = vmatpush.bf16.xpose.msrb.mxu3 %v5892_v39  ;;  %3459 = vmatmul.bf16.vlgmr.msra.gmra.mxu1 %v845_v49  ;;  %v6409_v39 = vld [vmem:[%s7070_s19 + $0x688] sm:$0xf0]  ;;  %v5408_v45 = vor.u32 %v6347_v35, %v5405_v37  ;;  %v5416_v49 = vor.u32 %v6348_v40, %v5413_v41  ;;  %v7457_v35 = vld [vmem:[#allocation1 + $0x2d] sm:$0xff]  ;;  %v5445_v19 = vld [vmem:[%s7070_s19 + $0x6ac] sm:$0xf0] }
 0x149   : > { %3485 = vmatmul.bf16.vlgmr.msra.gmra.mxu3 %v847_v50  ;;  %v5412_v46 = vor.u32 %v6409_v39, %v5411_v38  ;;  %v3149_v50 = vadd.f32 %v3148_v48, %v3136_v47  ;;  %v411_v37 = vld [vmem:[%s7088_s5 + $0x38] sm:$0xff]  ;;  %v5424_v38 = vor.u32 %v6349_v20, %v5421_v16  ;;  %v4929_v47 = vld [vmem:[%s7070_s19 + $0x2bc] sm:$0xf0]  ;;  %v4935_v48 = vld [vmem:[%s7070_s19 + $0xd8] sm:$0xf] }
 0x14a   : > { %v3187_v34 = vpop.f32.mrf.mxu0 }
 0x14d   : > { %v3200_v41 = vpop.f32.mrf.mxu1 }
 0x14e   : > { %3496 = vmatpush.bf16.xpose.msrb.mxu0 %v5388_v56  ;;  %v6286_v56 = vld [vmem:[%s7070_s19 + $0x2b0] sm:$0xf0] }
 0x14f   : > { %3509 = vmatpush.bf16.xpose.msrb.mxu1 %v5392_v61  ;;  %3522 = vmatpush.bf16.xpose.msrb.mxu2 %v5396_v62  ;;  %v5913_v61 = vld [vmem:[%s7070_s19 + $0xa6c] sm:$0xf0]  ;;  %v3161_v62 = vpop.f32.mrf.mxu2 }
 0x150   : > { %3535 = vmatpush.bf16.xpose.msrb.mxu3 %v5400_v1  ;;  %v3162_v1 = vadd.f32 %v3161_v62, %v3149_v50  ;;  %v5916_v12 = vor.u32 %v6472_v60, %v5913_v61  ;;  %v5927_v50 = vld [vmem:[%s7070_s19 + $0x890] sm:$0xf]  ;;  %v6227_v60 = vld [vmem:[%s7070_s19 + $0xdc] sm:$0xf]  ;;  %v4937_v61 = vld [vmem:[%s7070_s19 + $0x2c4] sm:$0xf0] }
 0x151   : > { %v5928_v4 = vor.u32 %v6535_v51, %v5927_v50  ;;  %v4940_v8 = vor.u32 %v6227_v60, %v4937_v61  ;;  %v6414_v60 = vld [vmem:[%s7070_s19 + $0x6b0] sm:$0xf0]  ;;  %v6353_v61 = vld [vmem:[%s7070_s19 + $0x4cc] sm:$0xf] }
 0x152   : > { %v3175_v13 = vadd.f32 %v3174_v9, %v3162_v1  ;;  %v5937_v1 = vld [vmem:[%s7070_s19 + $0xa84] sm:$0xf0] }
 0x154   : > { %v3188_v40 = vadd.f32 %v3187_v34, %v3175_v13  ;;  %v5943_v34 = vld [vmem:[%s7070_s19 + $0x8a0] sm:$0xf] }
 0x156   : > { %3497 = vmatpush.bf16.xpose.msrb.mxu0 %v4896_v15  ;;  %v4924_v15 = vor.u32 %v6225_v2, %v4921_v3  ;;  %v3202_v3 = vpop.f32.mrf.mxu1 }
 0x157   : > { %3510 = vmatpush.bf16.xpose.msrb.mxu1 %v4900_v21  ;;  %3523 = vmatpush.bf16.xpose.msrb.mxu2 %v4904_v22  ;;  %v5427_v21 = vld [vmem:[%s7070_s19 + $0x4b0] sm:$0xf]  ;;  %v3163_v25 = vpop.f32.mrf.mxu2 }
 0x158   : > { %3536 = vmatpush.bf16.xpose.msrb.mxu3 %v4908_v31  ;;  %v854_v22 = vld [vmem:[#allocation1] sm:$0xff]  ;;  %v5428_v39 = vor.u32 %v6411_v24, %v5427_v21 }
 0x159   : > { %v7453_v31 = vld [vmem:[#allocation1 + $0x24] sm:$0xff] }
 0x15d   : > { %3498 = vmatmul.bf16.vlgmr.msrb.gmra.mxu0 %v7392_v54  ;;  %v4913_v54 = vld [vmem:[%s7070_s19 + $0x2ac] sm:$0xf0] }
 0x15e   : > { %3547 = vmatpush.bf16.xpose.msra.mxu0 %v5896_v27  ;;  %3524 = vmatmul.bf16.vlgmr.msrb.gmra.mxu2 %v7394_v55  ;;  %v4919_v55 = vld [vmem:[%s7070_s19 + $0xc8] sm:$0xf]  ;;  %v4916_v5 = vor.u32 %v6224_v53, %v4913_v54  ;;  %v5929_v53 = vld [vmem:[%s7070_s19 + $0xa7c] sm:$0xf0]  ;;  %v5935_v54 = vld [vmem:[%s7070_s19 + $0x898] sm:$0xf] }
 0x15f   : > { %3560 = vmatpush.bf16.xpose.msra.mxu1 %v5900_v28  ;;  %3573 = vmatpush.bf16.xpose.msra.mxu2 %v5904_v30  ;;  %v4920_v6 = vor.u32 %v6286_v56, %v4919_v55  ;;  %v857_v27 = vld [vmem:[#allocation1 + $0x1b] sm:$0xff]  ;;  %v3176_v30 = vpop.f32.mrf.mxu3  ;;  %v3213_v55 = vpop.f32.mrf.mxu2 }
 0x160   : > { %3586 = vmatpush.bf16.xpose.msra.mxu3 %v5908_v32  ;;  %3511 = vmatmul.bf16.vlgmr.msrb.gmra.mxu1 %v7396_v58  ;;  %v6533_v58 = vld [vmem:[%s7070_s19 + $0xa68] sm:$0xf0]  ;;  %v6350_v28 = vld [vmem:[%s7070_s19 + $0x4b4] sm:$0xf]  ;;  %v6228_v30 = vld [vmem:[%s7070_s19 + $0xe4] sm:$0xf] }
 0x161   : > { %3537 = vmatmul.bf16.vlgmr.msrb.gmra.mxu3 %v7398_v59  ;;  %v5919_v59 = vld [vmem:[%s7070_s19 + $0x888] sm:$0xf]  ;;  %v5912_v11 = vor.u32 %v6533_v58, %v5911_v57  ;;  %v5432_v42 = vor.u32 %v6350_v28, %v5429_v29  ;;  %v6536_v57 = vld [vmem:[%s7070_s19 + $0xa80] sm:$0xf0]  ;;  %v4943_v28 = vld [vmem:[%s7070_s19 + $0xe0] sm:$0xf] }
 0x162   : > { %v5920_v14 = vor.u32 %v6534_v0, %v5919_v59  ;;  %v7455_v32 = vld [vmem:[#allocation1 + $0x36] sm:$0xff]  ;;  %v3189_v59 = vpop.f32.mrf.mxu0  ;;  %v6475_v0 = vld [vmem:[%s7070_s19 + $0x89c] sm:$0xf]  ;;  %v5936_v7 = vor.u32 %v6536_v57, %v5935_v54 }
 0x163   : > { %863 = vst [vmem:[#allocation1] ss:$9 sm:$0xff] %v411_v37  ;;  %v5940_v9 = vor.u32 %v6475_v0, %v5937_v1  ;;  %v6289_v29 = vld [vmem:[%s7070_s19 + $0x2c8] sm:$0xf0]  ;;  %v6476_v37 = vld [vmem:[%s7070_s19 + $0x8a4] sm:$0xf] }
 0x164   : > { %v5453_v59 = vld [vmem:[%s7070_s19 + $0x6b4] sm:$0xf0]  ;;  %v6415_v1 = vld [vmem:[%s7070_s19 + $0x6b8] sm:$0xf0] }
 0x165   : > { %v3252_v25 = vpop.f32.mrf.mxu1 }
 0x166   : > { %3548 = vmatpush.bf16.xpose.msra.mxu0 %v5404_v43  ;;  %v3201_v43 = vadd.f32 %v3200_v41, %v3188_v40  ;;  %v4944_v40 = vor.u32 %v6289_v29, %v4943_v28  ;;  %v6538_v41 = vld [vmem:[%s7070_s19 + $0xa90] sm:$0xf0]  ;;  %v6539_v28 = vld [vmem:[%s7070_s19 + $0xa98] sm:$0xf0] }
 0x167   : > { %3561 = vmatpush.bf16.xpose.msra.mxu1 %v5408_v45  ;;  %3574 = vmatpush.bf16.xpose.msra.mxu2 %v5412_v46  ;;  %v6287_v45 = vld [vmem:[%s7070_s19 + $0x2b8] sm:$0xf0]  ;;  %v6226_v46 = vld [vmem:[%s7070_s19 + $0xd4] sm:$0xf]  ;;  %v3226_v2 = vpop.f32.mrf.mxu3  ;;  %v3215_v13 = vpop.f32.mrf.mxu2 }
 0x168   : > { %3587 = vmatpush.bf16.xpose.msra.mxu3 %v5416_v49  ;;  %v6288_v49 = vld [vmem:[%s7070_s19 + $0x2c0] sm:$0xf0]  ;;  %v4928_v56 = vor.u32 %v6287_v45, %v4927_v44  ;;  %v3214_v58 = vadd.f32 %v3213_v55, %v3201_v43  ;;  %v4932_v62 = vor.u32 %v6226_v46, %v4929_v47  ;;  %v6229_v43 = vld [vmem:[%s7070_s19 + $0xec] sm:$0xf]  ;;  %v4953_v44 = vld [vmem:[%s7070_s19 + $0x2d4] sm:$0xf0] }
 0x169   : > { %v6478_v29 = vld [vmem:[%s7070_s19 + $0x8b4] sm:$0xf] }
 0x16a   : > { %v3239_v21 = vpop.f32.mrf.mxu0  ;;  %v866_v0 = vld [vmem:[#allocation1 + $0x12] sm:$0xff]  ;;  %v865_v3 = vld [vmem:[#allocation1 + $0x9] sm:$0xff]  ;;  %v7520_v13 = vld [vmem:[#allocation1 + $0x3f] sm:$0xff] }
 0x16d   : > { %v3254_v51 = vpop.f32.mrf.mxu1 }
 0x16e   : > { %3549 = vmatpush.bf16.xpose.msra.mxu0 %v4912_v63  ;;  %v4936_v63 = vor.u32 %v6288_v49, %v4935_v48  ;;  %v6477_v48 = vld [vmem:[%s7070_s19 + $0x8ac] sm:$0xf]  ;;  %v5953_v49 = vld [vmem:[%s7070_s19 + $0xa94] sm:$0xf0] }
 0x16f   : > { %3562 = vmatpush.bf16.xpose.msra.mxu1 %v4916_v5  ;;  %3575 = vmatpush.bf16.xpose.msra.mxu2 %v4920_v6  ;;  %v5932_v5 = vor.u32 %v6474_v52, %v5929_v53  ;;  %v3227_v6 = vadd.f32 %v3226_v2, %v3214_v58  ;;  %v3228_v20 = vpop.f32.mrf.mxu3  ;;  %v5956_v57 = vor.u32 %v6477_v48, %v5953_v49  ;;  %v5451_v58 = vld [vmem:[%s7070_s19 + $0x4c8] sm:$0xf]  ;;  %v5467_v51 = vld [vmem:[%s7070_s19 + $0x4d8] sm:$0xf] }
 0x170   : > { %3588 = vmatpush.bf16.xpose.msra.mxu3 %v4924_v15  ;;  %v5443_v15 = vld [vmem:[%s7070_s19 + $0x4c0] sm:$0xf] }
 0x171   : > { %v3240_v24 = vadd.f32 %v3239_v21, %v3227_v6  ;;  %v5461_v6 = vld [vmem:[%s7070_s19 + $0x6bc] sm:$0xf0]  ;;  %v4959_v21 = vld [vmem:[%s7070_s19 + $0xf0] sm:$0xf] }
 0x172   : > { %v3241_v45 = vpop.f32.mrf.mxu0 }
 0x175   : > { %3550 = vmatmul.bf16.vlgmr.msra.gmra.mxu0 %v854_v22 }
 0x176   : > { %3599 = vmatpush.bf16.xpose.msrb.mxu0 %v5912_v11  ;;  %3576 = vmatmul.bf16.vlgmr.msra.gmra.mxu2 %v856_v23  ;;  %v6412_v11 = vld [vmem:[%s7070_s19 + $0x6a0] sm:$0xf0] }
 0x177   : > { %3612 = vmatpush.bf16.xpose.msrb.mxu1 %v5916_v12  ;;  %3625 = vmatpush.bf16.xpose.msrb.mxu2 %v5920_v14  ;;  %v6351_v12 = vld [vmem:[%s7070_s19 + $0x4bc] sm:$0xf]  ;;  %v5437_v14 = vld [vmem:[%s7070_s19 + $0x6a4] sm:$0xf0]  ;;  %v5436_v16 = vor.u32 %v6412_v11, %v5435_v10  ;;  %v3278_v50 = vpop.f32.mrf.mxu3  ;;  %v5452_v10 = vor.u32 %v6414_v60, %v5451_v58  ;;  %v6356_v58 = vld [vmem:[%s7070_s19 + $0x4e4] sm:$0xf] }
 0x178   : > { %3638 = vmatpush.bf16.xpose.msrb.mxu3 %v5924_v17  ;;  %3563 = vmatmul.bf16.vlgmr.msra.gmra.mxu1 %v855_v26  ;;  %v6413_v17 = vld [vmem:[%s7070_s19 + $0x6a8] sm:$0xf0]  ;;  %v5440_v22 = vor.u32 %v6351_v12, %v5437_v14  ;;  %v5448_v26 = vor.u32 %v6352_v18, %v5445_v19  ;;  %v7518_v12 = vld [vmem:[#allocation1 + $0x2d] sm:$0xff]  ;;  %v5477_v60 = vld [vmem:[%s7070_s19 + $0x6cc] sm:$0xf0] }
 0x179   : > { %3589 = vmatmul.bf16.vlgmr.msra.gmra.mxu3 %v857_v27  ;;  %v5444_v23 = vor.u32 %v6413_v17, %v5443_v15  ;;  %v3253_v27 = vadd.f32 %v3252_v25, %v3240_v24  ;;  %v412_v14 = vld [vmem:[%s7088_s5 + $0x40] sm:$0xff]  ;;  %v5456_v15 = vor.u32 %v6353_v61, %v5453_v59  ;;  %v4961_v24 = vld [vmem:[%s7070_s19 + $0x2dc] sm:$0xf0] }
 0x17a   : > { %v3291_v11 = vpop.f32.mrf.mxu0  ;;  %v4967_v25 = vld [vmem:[%s7070_s19 + $0xf8] sm:$0xf] }
 0x17d   : > { %v3304_v19 = vpop.f32.mrf.mxu1 }
 0x17e   : > { %3600 = vmatpush.bf16.xpose.msrb.mxu0 %v5420_v33  ;;  %v6290_v33 = vld [vmem:[%s7070_s19 + $0x2d0] sm:$0xf0] }
 0x17f   : > { %3613 = vmatpush.bf16.xpose.msrb.mxu1 %v5424_v38  ;;  %3626 = vmatpush.bf16.xpose.msrb.mxu2 %v5428_v39  ;;  %v5945_v38 = vld [vmem:[%s7070_s19 + $0xa8c] sm:$0xf0]  ;;  %v3265_v39 = vpop.f32.mrf.mxu2 }
 0x180   : > { %3639 = vmatpush.bf16.xpose.msrb.mxu3 %v5432_v42  ;;  %v3266_v42 = vadd.f32 %v3265_v39, %v3253_v27  ;;  %v5948_v53 = vor.u32 %v6476_v37, %v5945_v38  ;;  %v5959_v27 = vld [vmem:[%s7070_s19 + $0x8b0] sm:$0xf]  ;;  %v6231_v37 = vld [vmem:[%s7070_s19 + $0xfc] sm:$0xf]  ;;  %v4969_v38 = vld [vmem:[%s7070_s19 + $0x2e4] sm:$0xf0] }
 0x181   : > { %v5960_v45 = vor.u32 %v6539_v28, %v5959_v27  ;;  %v4972_v49 = vor.u32 %v6231_v37, %v4969_v38  ;;  %v6418_v37 = vld [vmem:[%s7070_s19 + $0x6d0] sm:$0xf0]  ;;  %v6357_v38 = vld [vmem:[%s7070_s19 + $0x4ec] sm:$0xf] }
 0x182   : > { %v3279_v54 = vadd.f32 %v3278_v50, %v3266_v42  ;;  %v5969_v42 = vld [vmem:[%s7070_s19 + $0xaa4] sm:$0xf0] }
 0x184   : > { %v3292_v18 = vadd.f32 %v3291_v11, %v3279_v54  ;;  %v5975_v11 = vld [vmem:[%s7070_s19 + $0x8c0] sm:$0xf] }
 0x186   : > { %3601 = vmatpush.bf16.xpose.msrb.mxu0 %v4928_v56  ;;  %v4956_v56 = vor.u32 %v6229_v43, %v4953_v44  ;;  %v3306_v44 = vpop.f32.mrf.mxu1 }
 0x187   : > { %3614 = vmatpush.bf16.xpose.msrb.mxu1 %v4932_v62  ;;  %3627 = vmatpush.bf16.xpose.msrb.mxu2 %v4936_v63  ;;  %v5459_v62 = vld [vmem:[%s7070_s19 + $0x4d0] sm:$0xf]  ;;  %v3267_v2 = vpop.f32.mrf.mxu2 }
 0x188   : > { %3640 = vmatpush.bf16.xpose.msrb.mxu3 %v4940_v8  ;;  %v864_v63 = vld [vmem:[#allocation1] sm:$0xff]  ;;  %v5460_v17 = vor.u32 %v6415_v1, %v5459_v62 }
 0x189   : > { %v7514_v8 = vld [vmem:[#allocation1 + $0x24] sm:$0xff] }
 0x18d   : > { %3602 = vmatmul.bf16.vlgmr.msrb.gmra.mxu0 %v7453_v31  ;;  %v4945_v31 = vld [vmem:[%s7070_s19 + $0x2cc] sm:$0xf0] }
 0x18e   : > { %3651 = vmatpush.bf16.xpose.msra.mxu0 %v5928_v4  ;;  %3628 = vmatmul.bf16.vlgmr.msrb.gmra.mxu2 %v7455_v32  ;;  %v4951_v32 = vld [vmem:[%s7070_s19 + $0xe8] sm:$0xf]  ;;  %v4948_v46 = vor.u32 %v6228_v30, %v4945_v31  ;;  %v5961_v30 = vld [vmem:[%s7070_s19 + $0xa9c] sm:$0xf0]  ;;  %v5967_v31 = vld [vmem:[%s7070_s19 + $0x8b8] sm:$0xf] }
 0x18f   : > { %3664 = vmatpush.bf16.xpose.msra.mxu1 %v5932_v5  ;;  %3677 = vmatpush.bf16.xpose.msra.mxu2 %v5936_v7  ;;  %v4952_v47 = vor.u32 %v6290_v33, %v4951_v32  ;;  %v867_v4 = vld [vmem:[#allocation1 + $0x1b] sm:$0xff]  ;;  %v3280_v7 = vpop.f32.mrf.mxu3  ;;  %v3317_v32 = vpop.f32.mrf.mxu2 }
 0x190   : > { %3690 = vmatpush.bf16.xpose.msra.mxu3 %v5940_v9  ;;  %3615 = vmatmul.bf16.vlgmr.msrb.gmra.mxu1 %v7457_v35  ;;  %v6537_v35 = vld [vmem:[%s7070_s19 + $0xa88] sm:$0xf0]  ;;  %v6354_v5 = vld [vmem:[%s7070_s19 + $0x4d4] sm:$0xf]  ;;  %v6232_v7 = vld [vmem:[%s7070_s19 + $0x104] sm:$0xf] }
 0x191   : > { %3641 = vmatmul.bf16.vlgmr.msrb.gmra.mxu3 %v7459_v36  ;;  %v5951_v36 = vld [vmem:[%s7070_s19 + $0x8a8] sm:$0xf]  ;;  %v5944_v52 = vor.u32 %v6537_v35, %v5943_v34  ;;  %v5464_v20 = vor.u32 %v6354_v5, %v5461_v6  ;;  %v6540_v34 = vld [vmem:[%s7070_s19 + $0xaa0] sm:$0xf0]  ;;  %v4975_v5 = vld [vmem:[%s7070_s19 + $0x100] sm:$0xf] }
 0x192   : > { %v5952_v55 = vor.u32 %v6538_v41, %v5951_v36  ;;  %v7516_v9 = vld [vmem:[#allocation1 + $0x36] sm:$0xff]  ;;  %v3293_v36 = vpop.f32.mrf.mxu0  ;;  %v6479_v41 = vld [vmem:[%s7070_s19 + $0x8bc] sm:$0xf]  ;;  %v5968_v48 = vor.u32 %v6540_v34, %v5967_v31 }
 0x193   : > { %873 = vst [vmem:[#allocation1] ss:$9 sm:$0xff] %v412_v14  ;;  %v5972_v50 = vor.u32 %v6479_v41, %v5969_v42  ;;  %v6293_v6 = vld [vmem:[%s7070_s19 + $0x2e8] sm:$0xf0]  ;;  %v6480_v14 = vld [vmem:[%s7070_s19 + $0x8c4] sm:$0xf] }
 0x194   : > { %v5485_v36 = vld [vmem:[%s7070_s19 + $0x6d4] sm:$0xf0]  ;;  %v6419_v42 = vld [vmem:[%s7070_s19 + $0x6d8] sm:$0xf0] }
 0x195   : > { %v3356_v2 = vpop.f32.mrf.mxu1 }
 0x196   : > { %3652 = vmatpush.bf16.xpose.msra.mxu0 %v5436_v16  ;;  %v3305_v16 = vadd.f32 %v3304_v19, %v3292_v18  ;;  %v4976_v18 = vor.u32 %v6293_v6, %v4975_v5  ;;  %v6542_v19 = vld [vmem:[%s7070_s19 + $0xab0] sm:$0xf0]  ;;  %v6543_v5 = vld [vmem:[%s7070_s19 + $0xab8] sm:$0xf0] }
 0x197   : > { %3665 = vmatpush.bf16.xpose.msra.mxu1 %v5440_v22  ;;  %3678 = vmatpush.bf16.xpose.msra.mxu2 %v5444_v23  ;;  %v6291_v22 = vld [vmem:[%s7070_s19 + $0x2d8] sm:$0xf0]  ;;  %v6230_v23 = vld [vmem:[%s7070_s19 + $0xf4] sm:$0xf]  ;;  %v3330_v43 = vpop.f32.mrf.mxu3  ;;  %v3319_v54 = vpop.f32.mrf.mxu2 }
 0x198   : > { %3691 = vmatpush.bf16.xpose.msra.mxu3 %v5448_v26  ;;  %v6292_v26 = vld [vmem:[%s7070_s19 + $0x2e0] sm:$0xf0]  ;;  %v4960_v33 = vor.u32 %v6291_v22, %v4959_v21  ;;  %v3318_v35 = vadd.f32 %v3317_v32, %v3305_v16  ;;  %v4964_v39 = vor.u32 %v6230_v23, %v4961_v24  ;;  %v6233_v16 = vld [vmem:[%s7070_s19 + $0x10c] sm:$0xf]  ;;  %v4985_v21 = vld [vmem:[%s7070_s19 + $0x2f4] sm:$0xf0] }
 0x199   : > { %v6482_v6 = vld [vmem:[%s7070_s19 + $0x8d4] sm:$0xf] }
 0x19a   : > { %v3343_v62 = vpop.f32.mrf.mxu0  ;;  %v876_v41 = vld [vmem:[#allocation1 + $0x12] sm:$0xff]  ;;  %v875_v44 = vld [vmem:[#allocation1 + $0x9] sm:$0xff]  ;;  %v7581_v54 = vld [vmem:[#allocation1 + $0x3f] sm:$0xff] }
 0x19d   : > { %v3358_v28 = vpop.f32.mrf.mxu1 }
 0x19e   : > { %3653 = vmatpush.bf16.xpose.msra.mxu0 %v4944_v40  ;;  %v4968_v40 = vor.u32 %v6292_v26, %v4967_v25  ;;  %v6481_v25 = vld [vmem:[%s7070_s19 + $0x8cc] sm:$0xf]  ;;  %v5985_v26 = vld [vmem:[%s7070_s19 + $0xab4] sm:$0xf0] }
 0x19f   : > { %3666 = vmatpush.bf16.xpose.msra.mxu1 %v4948_v46  ;;  %3679 = vmatpush.bf16.xpose.msra.mxu2 %v4952_v47  ;;  %v5964_v46 = vor.u32 %v6478_v29, %v5961_v30  ;;  %v3331_v47 = vadd.f32 %v3330_v43, %v3318_v35  ;;  %v3332_v61 = vpop.f32.mrf.mxu3  ;;  %v5988_v34 = vor.u32 %v6481_v25, %v5985_v26  ;;  %v5483_v35 = vld [vmem:[%s7070_s19 + $0x4e8] sm:$0xf]  ;;  %v5499_v28 = vld [vmem:[%s7070_s19 + $0x4f8] sm:$0xf] }
 0x1a0   : > { %3692 = vmatpush.bf16.xpose.msra.mxu3 %v4956_v56  ;;  %v5475_v56 = vld [vmem:[%s7070_s19 + $0x4e0] sm:$0xf] }
 0x1a1   : > { %v3344_v1 = vadd.f32 %v3343_v62, %v3331_v47  ;;  %v5493_v47 = vld [vmem:[%s7070_s19 + $0x6dc] sm:$0xf0]  ;;  %v4991_v62 = vld [vmem:[%s7070_s19 + $0x110] sm:$0xf] }
 0x1a2   : > { %v3345_v22 = vpop.f32.mrf.mxu0 }
 0x1a5   : > { %3654 = vmatmul.bf16.vlgmr.msra.gmra.mxu0 %v864_v63 }
 0x1a6   : > { %3703 = vmatpush.bf16.xpose.msrb.mxu0 %v5944_v52  ;;  %3680 = vmatmul.bf16.vlgmr.msra.gmra.mxu2 %v866_v0  ;;  %v6416_v52 = vld [vmem:[%s7070_s19 + $0x6c0] sm:$0xf0] }
 0x1a7   : > { %3716 = vmatpush.bf16.xpose.msrb.mxu1 %v5948_v53  ;;  %3729 = vmatpush.bf16.xpose.msrb.mxu2 %v5952_v55  ;;  %v6355_v53 = vld [vmem:[%s7070_s19 + $0x4dc] sm:$0xf]  ;;  %v5469_v55 = vld [vmem:[%s7070_s19 + $0x6c4] sm:$0xf0]  ;;  %v5468_v59 = vor.u32 %v6416_v52, %v5467_v51  ;;  %v3382_v27 = vpop.f32.mrf.mxu3  ;;  %v5484_v51 = vor.u32 %v6418_v37, %v5483_v35  ;;  %v6360_v35 = vld [vmem:[%s7070_s19 + $0x504] sm:$0xf] }
 0x1a8   : > { %3742 = vmatpush.bf16.xpose.msrb.mxu3 %v5956_v57  ;;  %3667 = vmatmul.bf16.vlgmr.msra.gmra.mxu1 %v865_v3  ;;  %v6417_v57 = vld [vmem:[%s7070_s19 + $0x6c8] sm:$0xf0]  ;;  %v5472_v63 = vor.u32 %v6355_v53, %v5469_v55  ;;  %v5480_v3 = vor.u32 %v6356_v58, %v5477_v60  ;;  %v7579_v53 = vld [vmem:[#allocation1 + $0x2d] sm:$0xff]  ;;  %v5509_v37 = vld [vmem:[%s7070_s19 + $0x6ec] sm:$0xf0] }
 0x1a9   : > { %3693 = vmatmul.bf16.vlgmr.msra.gmra.mxu3 %v867_v4  ;;  %v5476_v0 = vor.u32 %v6417_v57, %v5475_v56  ;;  %v3357_v4 = vadd.f32 %v3356_v2, %v3344_v1  ;;  %v413_v55 = vld [vmem:[%s7088_s5 + $0x48] sm:$0xff]  ;;  %v5488_v56 = vor.u32 %v6357_v38, %v5485_v36 }
 0x1aa   : > { %v3395_v52 = vpop.f32.mrf.mxu0  ;;  %v4993_v1 = vld [vmem:[%s7070_s19 + $0x2fc] sm:$0xf0]  ;;  %v4999_v2 = vld [vmem:[%s7070_s19 + $0x118] sm:$0xf] }
 0x1ad   : > { %v3408_v60 = vpop.f32.mrf.mxu1 }
 0x1ae   : > { %3704 = vmatpush.bf16.xpose.msrb.mxu0 %v5452_v10  ;;  %v6294_v10 = vld [vmem:[%s7070_s19 + $0x2f0] sm:$0xf0] }
 0x1af   : > { %3717 = vmatpush.bf16.xpose.msrb.mxu1 %v5456_v15  ;;  %3730 = vmatpush.bf16.xpose.msrb.mxu2 %v5460_v17  ;;  %v5977_v15 = vld [vmem:[%s7070_s19 + $0xaac] sm:$0xf0]  ;;  %v3369_v17 = vpop.f32.mrf.mxu2 }
 0x1b0   : > { %3743 = vmatpush.bf16.xpose.msrb.mxu3 %v5464_v20  ;;  %v3370_v20 = vadd.f32 %v3369_v17, %v3357_v4  ;;  %v5980_v30 = vor.u32 %v6480_v14, %v5977_v15  ;;  %v5991_v4 = vld [vmem:[%s7070_s19 + $0x8d0] sm:$0xf]  ;;  %v6235_v14 = vld [vmem:[%s7070_s19 + $0x11c] sm:$0xf]  ;;  %v5001_v15 = vld [vmem:[%s7070_s19 + $0x304] sm:$0xf0] }
 0x1b1   : > { %v5992_v22 = vor.u32 %v6543_v5, %v5991_v4  ;;  %v5004_v26 = vor.u32 %v6235_v14, %v5001_v15  ;;  %v6422_v14 = vld [vmem:[%s7070_s19 + $0x6f0] sm:$0xf0]  ;;  %v6361_v15 = vld [vmem:[%s7070_s19 + $0x50c] sm:$0xf] }
 0x1b2   : > { %v3383_v31 = vadd.f32 %v3382_v27, %v3370_v20  ;;  %v6001_v20 = vld [vmem:[%s7070_s19 + $0xac4] sm:$0xf0] }
 0x1b4   : > { %v3396_v58 = vadd.f32 %v3395_v52, %v3383_v31  ;;  %v6007_v52 = vld [vmem:[%s7070_s19 + $0x8e0] sm:$0xf] }
 0x1b6   : > { %3705 = vmatpush.bf16.xpose.msrb.mxu0 %v4960_v33  ;;  %v4988_v33 = vor.u32 %v6233_v16, %v4985_v21  ;;  %v3410_v21 = vpop.f32.mrf.mxu1 }
 0x1b7   : > { %3718 = vmatpush.bf16.xpose.msrb.mxu1 %v4964_v39  ;;  %3731 = vmatpush.bf16.xpose.msrb.mxu2 %v4968_v40  ;;  %v5491_v39 = vld [vmem:[%s7070_s19 + $0x4f0] sm:$0xf]  ;;  %v3371_v43 = vpop.f32.mrf.mxu2 }
 0x1b8   : > { %3744 = vmatpush.bf16.xpose.msrb.mxu3 %v4972_v49  ;;  %v874_v40 = vld [vmem:[#allocation1] sm:$0xff]  ;;  %v5492_v57 = vor.u32 %v6419_v42, %v5491_v39 }
 0x1b9   : > { %v7575_v49 = vld [vmem:[#allocation1 + $0x24] sm:$0xff] }
 0x1bd   : > { %3706 = vmatmul.bf16.vlgmr.msrb.gmra.mxu0 %v7514_v8  ;;  %v4977_v8 = vld [vmem:[%s7070_s19 + $0x2ec] sm:$0xf0] }
 0x1be   : > { %3755 = vmatpush.bf16.xpose.msra.mxu0 %v5960_v45  ;;  %3732 = vmatmul.bf16.vlgmr.msrb.gmra.mxu2 %v7516_v9  ;;  %v4983_v9 = vld [vmem:[%s7070_s19 + $0x108] sm:$0xf]  ;;  %v4980_v23 = vor.u32 %v6232_v7, %v4977_v8  ;;  %v5993_v7 = vld [vmem:[%s7070_s19 + $0xabc] sm:$0xf0]  ;;  %v5999_v8 = vld [vmem:[%s7070_s19 + $0x8d8] sm:$0xf] }
 0x1bf   : > { %3768 = vmatpush.bf16.xpose.msra.mxu1 %v5964_v46  ;;  %3781 = vmatpush.bf16.xpose.msra.mxu2 %v5968_v48  ;;  %v4984_v24 = vor.u32 %v6294_v10, %v4983_v9  ;;  %v877_v45 = vld [vmem:[#allocation1 + $0x1b] sm:$0xff]  ;;  %v3384_v48 = vpop.f32.mrf.mxu3  ;;  %v3421_v9 = vpop.f32.mrf.mxu2 }
 0x1c0   : > { %3794 = vmatpush.bf16.xpose.msra.mxu3 %v5972_v50  ;;  %3719 = vmatmul.bf16.vlgmr.msrb.gmra.mxu1 %v7518_v12  ;;  %v6541_v12 = vld [vmem:[%s7070_s19 + $0xaa8] sm:$0xf0]  ;;  %v6358_v46 = vld [vmem:[%s7070_s19 + $0x4f4] sm:$0xf]  ;;  %v6236_v48 = vld [vmem:[%s7070_s19 + $0x124] sm:$0xf] }
 0x1c1   : > { %3745 = vmatmul.bf16.vlgmr.msrb.gmra.mxu3 %v7520_v13  ;;  %v5983_v13 = vld [vmem:[%s7070_s19 + $0x8c8] sm:$0xf]  ;;  %v5976_v29 = vor.u32 %v6541_v12, %v5975_v11  ;;  %v5496_v61 = vor.u32 %v6358_v46, %v5493_v47  ;;  %v6544_v11 = vld [vmem:[%s7070_s19 + $0xac0] sm:$0xf0]  ;;  %v5007_v46 = vld [vmem:[%s7070_s19 + $0x120] sm:$0xf] }
 0x1c2   : > { %v5984_v32 = vor.u32 %v6542_v19, %v5983_v13  ;;  %v7577_v50 = vld [vmem:[#allocation1 + $0x36] sm:$0xff]  ;;  %v3397_v13 = vpop.f32.mrf.mxu0  ;;  %v6483_v19 = vld [vmem:[%s7070_s19 + $0x8dc] sm:$0xf]  ;;  %v6000_v25 = vor.u32 %v6544_v11, %v5999_v8 }
 0x1c3   : > { %883 = vst [vmem:[#allocation1] ss:$9 sm:$0xff] %v413_v55  ;;  %v6004_v27 = vor.u32 %v6483_v19, %v6001_v20  ;;  %v6297_v47 = vld [vmem:[%s7070_s19 + $0x308] sm:$0xf0]  ;;  %v6484_v55 = vld [vmem:[%s7070_s19 + $0x8e4] sm:$0xf] }
 0x1c4   : > { %v5517_v13 = vld [vmem:[%s7070_s19 + $0x6f4] sm:$0xf0]  ;;  %v6423_v20 = vld [vmem:[%s7070_s19 + $0x6f8] sm:$0xf0] }
 0x1c5   : > { %v3460_v43 = vpop.f32.mrf.mxu1 }
 0x1c6   : > { %3756 = vmatpush.bf16.xpose.msra.mxu0 %v5468_v59  ;;  %v3409_v59 = vadd.f32 %v3408_v60, %v3396_v58  ;;  %v5008_v58 = vor.u32 %v6297_v47, %v5007_v46  ;;  %v6546_v60 = vld [vmem:[%s7070_s19 + $0xad0] sm:$0xf0]  ;;  %v6547_v46 = vld [vmem:[%s7070_s19 + $0xad8] sm:$0xf0] }
 0x1c7   : > { %3769 = vmatpush.bf16.xpose.msra.mxu1 %v5472_v63  ;;  %3782 = vmatpush.bf16.xpose.msra.mxu2 %v5476_v0  ;;  %v6295_v63 = vld [vmem:[%s7070_s19 + $0x2f8] sm:$0xf0]  ;;  %v6234_v0 = vld [vmem:[%s7070_s19 + $0x114] sm:$0xf]  ;;  %v3434_v16 = vpop.f32.mrf.mxu3  ;;  %v3423_v31 = vpop.f32.mrf.mxu2 }
 0x1c8   : > { %3795 = vmatpush.bf16.xpose.msra.mxu3 %v5480_v3  ;;  %v6296_v3 = vld [vmem:[%s7070_s19 + $0x300] sm:$0xf0]  ;;  %v4992_v10 = vor.u32 %v6295_v63, %v4991_v62  ;;  %v3422_v12 = vadd.f32 %v3421_v9, %v3409_v59  ;;  %v4996_v17 = vor.u32 %v6234_v0, %v4993_v1  ;;  %v6237_v59 = vld [vmem:[%s7070_s19 + $0x12c] sm:$0xf]  ;;  %v5017_v62 = vld [vmem:[%s7070_s19 + $0x314] sm:$0xf0] }
 0x1c9   : > { %v6486_v47 = vld [vmem:[%s7070_s19 + $0x8f4] sm:$0xf] }
 0x1ca   : > { %v3447_v39 = vpop.f32.mrf.mxu0  ;;  %v886_v19 = vld [vmem:[#allocation1 + $0x12] sm:$0xff]  ;;  %v885_v21 = vld [vmem:[#allocation1 + $0x9] sm:$0xff]  ;;  %v7642_v31 = vld [vmem:[#allocation1 + $0x3f] sm:$0xff] }
 0x1cd   : > { %v3462_v5 = vpop.f32.mrf.mxu1 }
 0x1ce   : > { %3757 = vmatpush.bf16.xpose.msra.mxu0 %v4976_v18  ;;  %v5000_v18 = vor.u32 %v6296_v3, %v4999_v2  ;;  %v6485_v2 = vld [vmem:[%s7070_s19 + $0x8ec] sm:$0xf]  ;;  %v6017_v3 = vld [vmem:[%s7070_s19 + $0xad4] sm:$0xf0] }
 0x1cf   : > { %3770 = vmatpush.bf16.xpose.msra.mxu1 %v4980_v23  ;;  %3783 = vmatpush.bf16.xpose.msra.mxu2 %v4984_v24  ;;  %v5996_v23 = vor.u32 %v6482_v6, %v5993_v7  ;;  %v3435_v24 = vadd.f32 %v3434_v16, %v3422_v12  ;;  %v3436_v38 = vpop.f32.mrf.mxu3  ;;  %v6020_v11 = vor.u32 %v6485_v2, %v6017_v3  ;;  %v5515_v12 = vld [vmem:[%s7070_s19 + $0x508] sm:$0xf]  ;;  %v5531_v5 = vld [vmem:[%s7070_s19 + $0x518] sm:$0xf] }
 0x1d0   : > { %3796 = vmatpush.bf16.xpose.msra.mxu3 %v4988_v33  ;;  %v5507_v33 = vld [vmem:[%s7070_s19 + $0x500] sm:$0xf] }
 0x1d1   : > { %v3448_v42 = vadd.f32 %v3447_v39, %v3435_v24  ;;  %v5525_v24 = vld [vmem:[%s7070_s19 + $0x6fc] sm:$0xf0]  ;;  %v5023_v39 = vld [vmem:[%s7070_s19 + $0x130] sm:$0xf] }
 0x1d2   : > { %v3449_v63 = vpop.f32.mrf.mxu0 }
 0x1d5   : > { %3758 = vmatmul.bf16.vlgmr.msra.gmra.mxu0 %v874_v40 }
 0x1d6   : > { %3807 = vmatpush.bf16.xpose.msrb.mxu0 %v5976_v29  ;;  %3784 = vmatmul.bf16.vlgmr.msra.gmra.mxu2 %v876_v41  ;;  %v6420_v29 = vld [vmem:[%s7070_s19 + $0x6e0] sm:$0xf0] }
 0x1d7   : > { %3820 = vmatpush.bf16.xpose.msrb.mxu1 %v5980_v30  ;;  %3833 = vmatpush.bf16.xpose.msrb.mxu2 %v5984_v32  ;;  %v6359_v30 = vld [vmem:[%s7070_s19 + $0x4fc] sm:$0xf]  ;;  %v5501_v32 = vld [vmem:[%s7070_s19 + $0x6e4] sm:$0xf0]  ;;  %v5500_v36 = vor.u32 %v6420_v29, %v5499_v28  ;;  %v3486_v4 = vpop.f32.mrf.mxu3  ;;  %v5516_v28 = vor.u32 %v6422_v14, %v5515_v12  ;;  %v6364_v12 = vld [vmem:[%s7070_s19 + $0x524] sm:$0xf] }
 0x1d8   : > { %3846 = vmatpush.bf16.xpose.msrb.mxu3 %v5988_v34  ;;  %3771 = vmatmul.bf16.vlgmr.msra.gmra.mxu1 %v875_v44  ;;  %v6421_v34 = vld [vmem:[%s7070_s19 + $0x6e8] sm:$0xf0]  ;;  %v5504_v40 = vor.u32 %v6359_v30, %v5501_v32  ;;  %v5512_v44 = vor.u32 %v6360_v35, %v5509_v37  ;;  %v7640_v30 = vld [vmem:[#allocation1 + $0x2d] sm:$0xff]  ;;  %v5541_v14 = vld [vmem:[%s7070_s19 + $0x70c] sm:$0xf0] }
 0x1d9   : > { %3797 = vmatmul.bf16.vlgmr.msra.gmra.mxu3 %v877_v45  ;;  %v5508_v41 = vor.u32 %v6421_v34, %v5507_v33  ;;  %v3461_v45 = vadd.f32 %v3460_v43, %v3448_v42  ;;  %v414_v32 = vld [vmem:[%s7088_s5 + $0x50] sm:$0xff]  ;;  %v5520_v33 = vor.u32 %v6361_v15, %v5517_v13  ;;  %v5031_v43 = vld [vmem:[%s7070_s19 + $0x138] sm:$0xf] }
 0x1da   : > { %v3499_v29 = vpop.f32.mrf.mxu0  ;;  %v5025_v42 = vld [vmem:[%s7070_s19 + $0x31c] sm:$0xf0] }
 0x1dd   : > { %v3512_v37 = vpop.f32.mrf.mxu1 }
 0x1de   : > { %3808 = vmatpush.bf16.xpose.msrb.mxu0 %v5484_v51  ;;  %v6298_v51 = vld [vmem:[%s7070_s19 + $0x310] sm:$0xf0] }
 0x1df   : > { %3821 = vmatpush.bf16.xpose.msrb.mxu1 %v5488_v56  ;;  %3834 = vmatpush.bf16.xpose.msrb.mxu2 %v5492_v57  ;;  %v6009_v56 = vld [vmem:[%s7070_s19 + $0xacc] sm:$0xf0]  ;;  %v3473_v57 = vpop.f32.mrf.mxu2 }
 0x1e0   : > { %3847 = vmatpush.bf16.xpose.msrb.mxu3 %v5496_v61  ;;  %v3474_v61 = vadd.f32 %v3473_v57, %v3461_v45  ;;  %v6012_v7 = vor.u32 %v6484_v55, %v6009_v56  ;;  %v6023_v45 = vld [vmem:[%s7070_s19 + $0x8f0] sm:$0xf]  ;;  %v6239_v55 = vld [vmem:[%s7070_s19 + $0x13c] sm:$0xf]  ;;  %v5033_v56 = vld [vmem:[%s7070_s19 + $0x324] sm:$0xf0] }
 0x1e1   : > { %v6024_v63 = vor.u32 %v6547_v46, %v6023_v45  ;;  %v5036_v3 = vor.u32 %v6239_v55, %v5033_v56  ;;  %v6426_v55 = vld [vmem:[%s7070_s19 + $0x710] sm:$0xf0]  ;;  %v6365_v56 = vld [vmem:[%s7070_s19 + $0x52c] sm:$0xf] }
 0x1e2   : > { %v3487_v8 = vadd.f32 %v3486_v4, %v3474_v61  ;;  %v6033_v61 = vld [vmem:[%s7070_s19 + $0xae4] sm:$0xf0] }
 0x1e4   : > { %v3500_v35 = vadd.f32 %v3499_v29, %v3487_v8  ;;  %v6039_v29 = vld [vmem:[%s7070_s19 + $0x900] sm:$0xf] }
 0x1e6   : > { %3809 = vmatpush.bf16.xpose.msrb.mxu0 %v4992_v10  ;;  %v5020_v10 = vor.u32 %v6237_v59, %v5017_v62  ;;  %v3514_v62 = vpop.f32.mrf.mxu1 }
 0x1e7   : > { %3822 = vmatpush.bf16.xpose.msrb.mxu1 %v4996_v17  ;;  %3835 = vmatpush.bf16.xpose.msrb.mxu2 %v5000_v18  ;;  %v5523_v17 = vld [vmem:[%s7070_s19 + $0x510] sm:$0xf]  ;;  %v3475_v16 = vpop.f32.mrf.mxu2 }
 0x1e8   : > { %3848 = vmatpush.bf16.xpose.msrb.mxu3 %v5004_v26  ;;  %v884_v18 = vld [vmem:[#allocation1] sm:$0xff]  ;;  %v5524_v34 = vor.u32 %v6423_v20, %v5523_v17 }
 0x1e9   : > { %v7636_v26 = vld [vmem:[#allocation1 + $0x24] sm:$0xff] }
 0x1ed   : > { %3810 = vmatmul.bf16.vlgmr.msrb.gmra.mxu0 %v7575_v49  ;;  %v5009_v49 = vld [vmem:[%s7070_s19 + $0x30c] sm:$0xf0] }
 0x1ee   : > { %3859 = vmatpush.bf16.xpose.msra.mxu0 %v5992_v22  ;;  %3836 = vmatmul.bf16.vlgmr.msrb.gmra.mxu2 %v7577_v50  ;;  %v5015_v50 = vld [vmem:[%s7070_s19 + $0x128] sm:$0xf]  ;;  %v5012_v0 = vor.u32 %v6236_v48, %v5009_v49  ;;  %v6025_v48 = vld [vmem:[%s7070_s19 + $0xadc] sm:$0xf0]  ;;  %v6031_v49 = vld [vmem:[%s7070_s19 + $0x8f8] sm:$0xf] }
 0x1ef   : > { %3872 = vmatpush.bf16.xpose.msra.mxu1 %v5996_v23  ;;  %3885 = vmatpush.bf16.xpose.msra.mxu2 %v6000_v25  ;;  %v5016_v1 = vor.u32 %v6298_v51, %v5015_v50  ;;  %v887_v22 = vld [vmem:[#allocation1 + $0x1b] sm:$0xff]  ;;  %v3488_v25 = vpop.f32.mrf.mxu3  ;;  %v3525_v50 = vpop.f32.mrf.mxu2 }
 0x1f0   : > { %3898 = vmatpush.bf16.xpose.msra.mxu3 %v6004_v27  ;;  %3823 = vmatmul.bf16.vlgmr.msrb.gmra.mxu1 %v7579_v53  ;;  %v6545_v53 = vld [vmem:[%s7070_s19 + $0xac8] sm:$0xf0]  ;;  %v6362_v23 = vld [vmem:[%s7070_s19 + $0x514] sm:$0xf]  ;;  %v6240_v25 = vld [vmem:[%s7070_s19 + $0x144] sm:$0xf] }
 0x1f1   : > { %3849 = vmatmul.bf16.vlgmr.msrb.gmra.mxu3 %v7581_v54  ;;  %v6015_v54 = vld [vmem:[%s7070_s19 + $0x8e8] sm:$0xf]  ;;  %v6008_v6 = vor.u32 %v6545_v53, %v6007_v52  ;;  %v5528_v38 = vor.u32 %v6362_v23, %v5525_v24  ;;  %v6548_v52 = vld [vmem:[%s7070_s19 + $0xae0] sm:$0xf0]  ;;  %v5039_v23 = vld [vmem:[%s7070_s19 + $0x140] sm:$0xf] }
 0x1f2   : > { %v6016_v9 = vor.u32 %v6546_v60, %v6015_v54  ;;  %v7638_v27 = vld [vmem:[#allocation1 + $0x36] sm:$0xff]  ;;  %v3501_v54 = vpop.f32.mrf.mxu0  ;;  %v6487_v60 = vld [vmem:[%s7070_s19 + $0x8fc] sm:$0xf]  ;;  %v6032_v2 = vor.u32 %v6548_v52, %v6031_v49 }
 0x1f3   : > { %893 = vst [vmem:[#allocation1] ss:$9 sm:$0xff] %v414_v32  ;;  %v6036_v4 = vor.u32 %v6487_v60, %v6033_v61  ;;  %v6301_v24 = vld [vmem:[%s7070_s19 + $0x328] sm:$0xf0]  ;;  %v6488_v32 = vld [vmem:[%s7070_s19 + $0x904] sm:$0xf] }
 0x1f4   : > { %v5549_v54 = vld [vmem:[%s7070_s19 + $0x714] sm:$0xf0]  ;;  %v6427_v61 = vld [vmem:[%s7070_s19 + $0x718] sm:$0xf0] }
 0x1f5   : > { %v3564_v16 = vpop.f32.mrf.mxu1 }
 0x1f6   : > { %3860 = vmatpush.bf16.xpose.msra.mxu0 %v5500_v36  ;;  %v3513_v36 = vadd.f32 %v3512_v37, %v3500_v35  ;;  %v5040_v35 = vor.u32 %v6301_v24, %v5039_v23  ;;  %v6550_v37 = vld [vmem:[%s7070_s19 + $0xaf0] sm:$0xf0]  ;;  %v6551_v23 = vld [vmem:[%s7070_s19 + $0xaf8] sm:$0xf0] }
 0x1f7   : > { %3873 = vmatpush.bf16.xpose.msra.mxu1 %v5504_v40  ;;  %3886 = vmatpush.bf16.xpose.msra.mxu2 %v5508_v41  ;;  %v6299_v40 = vld [vmem:[%s7070_s19 + $0x318] sm:$0xf0]  ;;  %v6238_v41 = vld [vmem:[%s7070_s19 + $0x134] sm:$0xf]  ;;  %v3538_v59 = vpop.f32.mrf.mxu3  ;;  %v3527_v8 = vpop.f32.mrf.mxu2 }
 0x1f8   : > { %3899 = vmatpush.bf16.xpose.msra.mxu3 %v5512_v44  ;;  %v6300_v44 = vld [vmem:[%s7070_s19 + $0x320] sm:$0xf0]  ;;  %v5024_v51 = vor.u32 %v6299_v40, %v5023_v39  ;;  %v3526_v53 = vadd.f32 %v3525_v50, %v3513_v36  ;;  %v5028_v57 = vor.u32 %v6238_v41, %v5025_v42  ;;  %v6241_v36 = vld [vmem:[%s7070_s19 + $0x14c] sm:$0xf]  ;;  %v5049_v39 = vld [vmem:[%s7070_s19 + $0x334] sm:$0xf0] }
 0x1f9   : > { %v6490_v24 = vld [vmem:[%s7070_s19 + $0x914] sm:$0xf] }
 0x1fa   : > { %v3551_v17 = vpop.f32.mrf.mxu0  ;;  %v896_v60 = vld [vmem:[#allocation1 + $0x12] sm:$0xff]  ;;  %v895_v62 = vld [vmem:[#allocation1 + $0x9] sm:$0xff]  ;;  %v7703_v8 = vld [vmem:[#allocation1 + $0x3f] sm:$0xff] }
 0x1fd   : > { %v3566_v46 = vpop.f32.mrf.mxu1 }
 0x1fe   : > { %3861 = vmatpush.bf16.xpose.msra.mxu0 %v5008_v58  ;;  %v5032_v58 = vor.u32 %v6300_v44, %v5031_v43  ;;  %v6489_v43 = vld [vmem:[%s7070_s19 + $0x90c] sm:$0xf]  ;;  %v6049_v44 = vld [vmem:[%s7070_s19 + $0xaf4] sm:$0xf0] }
 0x1ff   : > { %3874 = vmatpush.bf16.xpose.msra.mxu1 %v5012_v0  ;;  %3887 = vmatpush.bf16.xpose.msra.mxu2 %v5016_v1  ;;  %v6028_v0 = vor.u32 %v6486_v47, %v6025_v48  ;;  %v3539_v1 = vadd.f32 %v3538_v59, %v3526_v53  ;;  %v3540_v15 = vpop.f32.mrf.mxu3  ;;  %v6052_v52 = vor.u32 %v6489_v43, %v6049_v44  ;;  %v5547_v53 = vld [vmem:[%s7070_s19 + $0x528] sm:$0xf]  ;;  %v5563_v46 = vld [vmem:[%s7070_s19 + $0x538] sm:$0xf] }
 0x200   : > { %3900 = vmatpush.bf16.xpose.msra.mxu3 %v5020_v10  ;;  %v5539_v10 = vld [vmem:[%s7070_s19 + $0x520] sm:$0xf] }
 0x201   : > { %v3552_v20 = vadd.f32 %v3551_v17, %v3539_v1  ;;  %v5557_v1 = vld [vmem:[%s7070_s19 + $0x71c] sm:$0xf0]  ;;  %v5055_v17 = vld [vmem:[%s7070_s19 + $0x150] sm:$0xf] }
 0x202   : > { %v3553_v40 = vpop.f32.mrf.mxu0 }
 0x205   : > { %3862 = vmatmul.bf16.vlgmr.msra.gmra.mxu0 %v884_v18 }
 0x206   : > { %3911 = vmatpush.bf16.xpose.msrb.mxu0 %v6008_v6  ;;  %3888 = vmatmul.bf16.vlgmr.msra.gmra.mxu2 %v886_v19  ;;  %v6424_v6 = vld [vmem:[%s7070_s19 + $0x700] sm:$0xf0] }
 0x207   : > { %3924 = vmatpush.bf16.xpose.msrb.mxu1 %v6012_v7  ;;  %3937 = vmatpush.bf16.xpose.msrb.mxu2 %v6016_v9  ;;  %v6363_v7 = vld [vmem:[%s7070_s19 + $0x51c] sm:$0xf]  ;;  %v5533_v9 = vld [vmem:[%s7070_s19 + $0x704] sm:$0xf0]  ;;  %v5532_v13 = vor.u32 %v6424_v6, %v5531_v5  ;;  %v3590_v45 = vpop.f32.mrf.mxu3  ;;  %v5548_v5 = vor.u32 %v6426_v55, %v5547_v53  ;;  %v6368_v53 = vld [vmem:[%s7070_s19 + $0x544] sm:$0xf] }
 0x208   : > { %3950 = vmatpush.bf16.xpose.msrb.mxu3 %v6020_v11  ;;  %3875 = vmatmul.bf16.vlgmr.msra.gmra.mxu1 %v885_v21  ;;  %v6425_v11 = vld [vmem:[%s7070_s19 + $0x708] sm:$0xf0]  ;;  %v5536_v18 = vor.u32 %v6363_v7, %v5533_v9  ;;  %v5544_v21 = vor.u32 %v6364_v12, %v5541_v14  ;;  %v7701_v7 = vld [vmem:[#allocation1 + $0x2d] sm:$0xff]  ;;  %v5573_v55 = vld [vmem:[%s7070_s19 + $0x72c] sm:$0xf0] }
 0x209   : > { %3901 = vmatmul.bf16.vlgmr.msra.gmra.mxu3 %v887_v22  ;;  %v5540_v19 = vor.u32 %v6425_v11, %v5539_v10  ;;  %v3565_v22 = vadd.f32 %v3564_v16, %v3552_v20  ;;  %v415_v9 = vld [vmem:[%s7088_s5 + $0x58] sm:$0xff]  ;;  %v5552_v10 = vor.u32 %v6365_v56, %v5549_v54  ;;  %v5057_v20 = vld [vmem:[%s7070_s19 + $0x33c] sm:$0xf0]  ;;  %v5063_v16 = vld [vmem:[%s7070_s19 + $0x158] sm:$0xf] }
 0x20a   : > { %v3603_v6 = vpop.f32.mrf.mxu0 }
 0x20d   : > { %v3616_v14 = vpop.f32.mrf.mxu1 }
 0x20e   : > { %3912 = vmatpush.bf16.xpose.msrb.mxu0 %v5516_v28  ;;  %v6302_v28 = vld [vmem:[%s7070_s19 + $0x330] sm:$0xf0] }
 0x20f   : > { %3925 = vmatpush.bf16.xpose.msrb.mxu1 %v5520_v33  ;;  %3938 = vmatpush.bf16.xpose.msrb.mxu2 %v5524_v34  ;;  %v6041_v33 = vld [vmem:[%s7070_s19 + $0xaec] sm:$0xf0]  ;;  %v3577_v34 = vpop.f32.mrf.mxu2 }
 0x210   : > { %3951 = vmatpush.bf16.xpose.msrb.mxu3 %v5528_v38  ;;  %v3578_v38 = vadd.f32 %v3577_v34, %v3565_v22  ;;  %v6044_v48 = vor.u32 %v6488_v32, %v6041_v33  ;;  %v6055_v22 = vld [vmem:[%s7070_s19 + $0x910] sm:$0xf]  ;;  %v6243_v32 = vld [vmem:[%s7070_s19 + $0x15c] sm:$0xf]  ;;  %v5065_v33 = vld [vmem:[%s7070_s19 + $0x344] sm:$0xf0] }
 0x211   : > { %v6056_v40 = vor.u32 %v6551_v23, %v6055_v22  ;;  %v5068_v44 = vor.u32 %v6243_v32, %v5065_v33  ;;  %v6430_v32 = vld [vmem:[%s7070_s19 + $0x730] sm:$0xf0]  ;;  %v6369_v33 = vld [vmem:[%s7070_s19 + $0x54c] sm:$0xf] }
 0x212   : > { %v3591_v49 = vadd.f32 %v3590_v45, %v3578_v38  ;;  %v6065_v38 = vld [vmem:[%s7070_s19 + $0xb04] sm:$0xf0] }
 0x214   : > { %v3604_v12 = vadd.f32 %v3603_v6, %v3591_v49  ;;  %v6071_v6 = vld [vmem:[%s7070_s19 + $0x920] sm:$0xf] }
 0x216   : > { %3913 = vmatpush.bf16.xpose.msrb.mxu0 %v5024_v51  ;;  %v5052_v51 = vor.u32 %v6241_v36, %v5049_v39  ;;  %v3618_v39 = vpop.f32.mrf.mxu1 }
 0x217   : > { %3926 = vmatpush.bf16.xpose.msrb.mxu1 %v5028_v57  ;;  %3939 = vmatpush.bf16.xpose.msrb.mxu2 %v5032_v58  ;;  %v5555_v57 = vld [vmem:[%s7070_s19 + $0x530] sm:$0xf]  ;;  %v3579_v59 = vpop.f32.mrf.mxu2 }
 0x218   : > { %3952 = vmatpush.bf16.xpose.msrb.mxu3 %v5036_v3  ;;  %v894_v58 = vld [vmem:[#allocation1] sm:$0xff]  ;;  %v5556_v11 = vor.u32 %v6427_v61, %v5555_v57 }
 0x219   : > { %v7697_v3 = vld [vmem:[#allocation1 + $0x24] sm:$0xff] }
 0x21d   : > { %3914 = vmatmul.bf16.vlgmr.msrb.gmra.mxu0 %v7636_v26  ;;  %v5041_v26 = vld [vmem:[%s7070_s19 + $0x32c] sm:$0xf0] }
 0x21e   : > { %3963 = vmatpush.bf16.xpose.msra.mxu0 %v6024_v63  ;;  %3940 = vmatmul.bf16.vlgmr.msrb.gmra.mxu2 %v7638_v27  ;;  %v5047_v27 = vld [vmem:[%s7070_s19 + $0x148] sm:$0xf]  ;;  %v5044_v41 = vor.u32 %v6240_v25, %v5041_v26  ;;  %v6057_v25 = vld [vmem:[%s7070_s19 + $0xafc] sm:$0xf0]  ;;  %v6063_v26 = vld [vmem:[%s7070_s19 + $0x918] sm:$0xf] }
 0x21f   : > { %3976 = vmatpush.bf16.xpose.msra.mxu1 %v6028_v0  ;;  %3989 = vmatpush.bf16.xpose.msra.mxu2 %v6032_v2  ;;  %v5048_v42 = vor.u32 %v6302_v28, %v5047_v27  ;;  %v897_v63 = vld [vmem:[#allocation1 + $0x1b] sm:$0xff]  ;;  %v3592_v2 = vpop.f32.mrf.mxu3  ;;  %v3629_v27 = vpop.f32.mrf.mxu2 }
 0x220   : > { %4002 = vmatpush.bf16.xpose.msra.mxu3 %v6036_v4  ;;  %3927 = vmatmul.bf16.vlgmr.msrb.gmra.mxu1 %v7640_v30  ;;  %v6549_v30 = vld [vmem:[%s7070_s19 + $0xae8] sm:$0xf0]  ;;  %v6366_v0 = vld [vmem:[%s7070_s19 + $0x534] sm:$0xf]  ;;  %v6244_v2 = vld [vmem:[%s7070_s19 + $0x164] sm:$0xf] }
 0x221   : > { %3953 = vmatmul.bf16.vlgmr.msrb.gmra.mxu3 %v7642_v31  ;;  %v6047_v31 = vld [vmem:[%s7070_s19 + $0x908] sm:$0xf]  ;;  %v6040_v47 = vor.u32 %v6549_v30, %v6039_v29  ;;  %v5560_v15 = vor.u32 %v6366_v0, %v5557_v1  ;;  %v6552_v29 = vld [vmem:[%s7070_s19 + $0xb00] sm:$0xf0]  ;;  %v5071_v0 = vld [vmem:[%s7070_s19 + $0x160] sm:$0xf] }
 0x222   : > { %v6048_v50 = vor.u32 %v6550_v37, %v6047_v31  ;;  %v7699_v4 = vld [vmem:[#allocation1 + $0x36] sm:$0xff]  ;;  %v3605_v31 = vpop.f32.mrf.mxu0  ;;  %v6491_v37 = vld [vmem:[%s7070_s19 + $0x91c] sm:$0xf]  ;;  %v6064_v43 = vor.u32 %v6552_v29, %v6063_v26 }
 0x223   : > { %903 = vst [vmem:[#allocation1] ss:$9 sm:$0xff] %v415_v9  ;;  %v6068_v45 = vor.u32 %v6491_v37, %v6065_v38  ;;  %v6305_v1 = vld [vmem:[%s7070_s19 + $0x348] sm:$0xf0]  ;;  %v6492_v9 = vld [vmem:[%s7070_s19 + $0x924] sm:$0xf] }
 0x224   : > { %v5581_v31 = vld [vmem:[%s7070_s19 + $0x734] sm:$0xf0]  ;;  %v6431_v38 = vld [vmem:[%s7070_s19 + $0x738] sm:$0xf0] }
 0x225   : > { %v3668_v59 = vpop.f32.mrf.mxu1 }
 0x226   : > { %3964 = vmatpush.bf16.xpose.msra.mxu0 %v5532_v13  ;;  %v3617_v13 = vadd.f32 %v3616_v14, %v3604_v12  ;;  %v5072_v12 = vor.u32 %v6305_v1, %v5071_v0  ;;  %v6554_v14 = vld [vmem:[%s7070_s19 + $0xb10] sm:$0xf0]  ;;  %v6555_v0 = vld [vmem:[%s7070_s19 + $0xb18] sm:$0xf0] }
 0x227   : > { %3977 = vmatpush.bf16.xpose.msra.mxu1 %v5536_v18  ;;  %3990 = vmatpush.bf16.xpose.msra.mxu2 %v5540_v19  ;;  %v6303_v18 = vld [vmem:[%s7070_s19 + $0x338] sm:$0xf0]  ;;  %v6242_v19 = vld [vmem:[%s7070_s19 + $0x154] sm:$0xf]  ;;  %v3642_v36 = vpop.f32.mrf.mxu3  ;;  %v3631_v49 = vpop.f32.mrf.mxu2 }
 0x228   : > { %4003 = vmatpush.bf16.xpose.msra.mxu3 %v5544_v21  ;;  %v6304_v21 = vld [vmem:[%s7070_s19 + $0x340] sm:$0xf0]  ;;  %v5056_v28 = vor.u32 %v6303_v18, %v5055_v17  ;;  %v3630_v30 = vadd.f32 %v3629_v27, %v3617_v13  ;;  %v5060_v34 = vor.u32 %v6242_v19, %v5057_v20  ;;  %v6245_v13 = vld [vmem:[%s7070_s19 + $0x16c] sm:$0xf]  ;;  %v5081_v17 = vld [vmem:[%s7070_s19 + $0x354] sm:$0xf0] }
 0x229   : > { %v6494_v1 = vld [vmem:[%s7070_s19 + $0x934] sm:$0xf] }
 0x22a   : > { %v3655_v57 = vpop.f32.mrf.mxu0  ;;  %v906_v37 = vld [vmem:[#allocation1 + $0x12] sm:$0xff]  ;;  %v905_v39 = vld [vmem:[#allocation1 + $0x9] sm:$0xff]  ;;  %v7764_v49 = vld [vmem:[#allocation1 + $0x3f] sm:$0xff] }
 0x22d   : > { %v3670_v23 = vpop.f32.mrf.mxu1 }
 0x22e   : > { %3965 = vmatpush.bf16.xpose.msra.mxu0 %v5040_v35  ;;  %v5064_v35 = vor.u32 %v6304_v21, %v5063_v16  ;;  %v6493_v16 = vld [vmem:[%s7070_s19 + $0x92c] sm:$0xf]  ;;  %v6081_v21 = vld [vmem:[%s7070_s19 + $0xb14] sm:$0xf0] }
 0x22f   : > { %3978 = vmatpush.bf16.xpose.msra.mxu1 %v5044_v41  ;;  %3991 = vmatpush.bf16.xpose.msra.mxu2 %v5048_v42  ;;  %v6060_v41 = vor.u32 %v6490_v24, %v6057_v25  ;;  %v3643_v42 = vadd.f32 %v3642_v36, %v3630_v30  ;;  %v3644_v56 = vpop.f32.mrf.mxu3  ;;  %v6084_v29 = vor.u32 %v6493_v16, %v6081_v21  ;;  %v5579_v30 = vld [vmem:[%s7070_s19 + $0x548] sm:$0xf]  ;;  %v5595_v23 = vld [vmem:[%s7070_s19 + $0x558] sm:$0xf] }
 0x230   : > { %4004 = vmatpush.bf16.xpose.msra.mxu3 %v5052_v51  ;;  %v5571_v51 = vld [vmem:[%s7070_s19 + $0x540] sm:$0xf] }
 0x231   : > { %v3656_v61 = vadd.f32 %v3655_v57, %v3643_v42  ;;  %v5589_v42 = vld [vmem:[%s7070_s19 + $0x73c] sm:$0xf0]  ;;  %v5087_v57 = vld [vmem:[%s7070_s19 + $0x170] sm:$0xf] }
 0x232   : > { %v3657_v18 = vpop.f32.mrf.mxu0 }
 0x235   : > { %3966 = vmatmul.bf16.vlgmr.msra.gmra.mxu0 %v894_v58 }
 0x236   : > { %4015 = vmatpush.bf16.xpose.msrb.mxu0 %v6040_v47  ;;  %3992 = vmatmul.bf16.vlgmr.msra.gmra.mxu2 %v896_v60  ;;  %v6428_v47 = vld [vmem:[%s7070_s19 + $0x720] sm:$0xf0] }
 0x237   : > { %4028 = vmatpush.bf16.xpose.msrb.mxu1 %v6044_v48  ;;  %4041 = vmatpush.bf16.xpose.msrb.mxu2 %v6048_v50  ;;  %v6367_v48 = vld [vmem:[%s7070_s19 + $0x53c] sm:$0xf]  ;;  %v5565_v50 = vld [vmem:[%s7070_s19 + $0x724] sm:$0xf0]  ;;  %v5564_v54 = vor.u32 %v6428_v47, %v5563_v46  ;;  %v3694_v22 = vpop.f32.mrf.mxu3  ;;  %v5580_v46 = vor.u32 %v6430_v32, %v5579_v30  ;;  %v6372_v30 = vld [vmem:[%s7070_s19 + $0x564] sm:$0xf] }
 0x238   : > { %4054 = vmatpush.bf16.xpose.msrb.mxu3 %v6052_v52  ;;  %3979 = vmatmul.bf16.vlgmr.msra.gmra.mxu1 %v895_v62  ;;  %v6429_v52 = vld [vmem:[%s7070_s19 + $0x728] sm:$0xf0]  ;;  %v5568_v58 = vor.u32 %v6367_v48, %v5565_v50  ;;  %v5576_v62 = vor.u32 %v6368_v53, %v5573_v55  ;;  %v7762_v48 = vld [vmem:[#allocation1 + $0x2d] sm:$0xff]  ;;  %v5605_v32 = vld [vmem:[%s7070_s19 + $0x74c] sm:$0xf0] }
 0x239   : > { %4005 = vmatmul.bf16.vlgmr.msra.gmra.mxu3 %v897_v63  ;;  %v5572_v60 = vor.u32 %v6429_v52, %v5571_v51  ;;  %v3669_v63 = vadd.f32 %v3668_v59, %v3656_v61  ;;  %v416_v50 = vld [vmem:[%s7088_s5 + $0x60] sm:$0xff]  ;;  %v5584_v51 = vor.u32 %v6369_v33, %v5581_v31  ;;  %v5089_v61 = vld [vmem:[%s7070_s19 + $0x35c] sm:$0xf0] }
 0x23a   : > { %v3707_v47 = vpop.f32.mrf.mxu0  ;;  %v5095_v59 = vld [vmem:[%s7070_s19 + $0x178] sm:$0xf] }
 0x23d   : > { %v3720_v55 = vpop.f32.mrf.mxu1 }
 0x23e   : > { %4016 = vmatpush.bf16.xpose.msrb.mxu0 %v5548_v5  ;;  %v6306_v5 = vld [vmem:[%s7070_s19 + $0x350] sm:$0xf0] }
 0x23f   : > { %4029 = vmatpush.bf16.xpose.msrb.mxu1 %v5552_v10  ;;  %4042 = vmatpush.bf16.xpose.msrb.mxu2 %v5556_v11  ;;  %v6073_v10 = vld [vmem:[%s7070_s19 + $0xb0c] sm:$0xf0]  ;;  %v3681_v11 = vpop.f32.mrf.mxu2 }
 0x240   : > { %4055 = vmatpush.bf16.xpose.msrb.mxu3 %v5560_v15  ;;  %v3682_v15 = vadd.f32 %v3681_v11, %v3669_v63  ;;  %v6076_v25 = vor.u32 %v6492_v9, %v6073_v10  ;;  %v6087_v63 = vld [vmem:[%s7070_s19 + $0x930] sm:$0xf]  ;;  %v6247_v9 = vld [vmem:[%s7070_s19 + $0x17c] sm:$0xf]  ;;  %v5097_v10 = vld [vmem:[%s7070_s19 + $0x364] sm:$0xf0] }
 0x241   : > { %v6088_v18 = vor.u32 %v6555_v0, %v6087_v63  ;;  %v5100_v21 = vor.u32 %v6247_v9, %v5097_v10  ;;  %v6434_v9 = vld [vmem:[%s7070_s19 + $0x750] sm:$0xf0]  ;;  %v6373_v10 = vld [vmem:[%s7070_s19 + $0x56c] sm:$0xf] }
 0x242   : > { %v3695_v26 = vadd.f32 %v3694_v22, %v3682_v15  ;;  %v6097_v15 = vld [vmem:[%s7070_s19 + $0xb24] sm:$0xf0] }
 0x244   : > { %v3708_v53 = vadd.f32 %v3707_v47, %v3695_v26  ;;  %v6103_v47 = vld [vmem:[%s7070_s19 + $0x940] sm:$0xf] }
 0x246   : > { %4017 = vmatpush.bf16.xpose.msrb.mxu0 %v5056_v28  ;;  %v5084_v28 = vor.u32 %v6245_v13, %v5081_v17  ;;  %v3722_v17 = vpop.f32.mrf.mxu1 }
 0x247   : > { %4030 = vmatpush.bf16.xpose.msrb.mxu1 %v5060_v34  ;;  %4043 = vmatpush.bf16.xpose.msrb.mxu2 %v5064_v35  ;;  %v5587_v34 = vld [vmem:[%s7070_s19 + $0x550] sm:$0xf]  ;;  %v3683_v36 = vpop.f32.mrf.mxu2 }
 0x248   : > { %4056 = vmatpush.bf16.xpose.msrb.mxu3 %v5068_v44  ;;  %v904_v35 = vld [vmem:[#allocation1] sm:$0xff]  ;;  %v5588_v52 = vor.u32 %v6431_v38, %v5587_v34 }
 0x249   : > { %v7758_v44 = vld [vmem:[#allocation1 + $0x24] sm:$0xff] }
 0x24d   : > { %4018 = vmatmul.bf16.vlgmr.msrb.gmra.mxu0 %v7697_v3  ;;  %v5073_v3 = vld [vmem:[%s7070_s19 + $0x34c] sm:$0xf0] }
 0x24e   : > { %4067 = vmatpush.bf16.xpose.msra.mxu0 %v6056_v40  ;;  %4044 = vmatmul.bf16.vlgmr.msrb.gmra.mxu2 %v7699_v4  ;;  %v5079_v4 = vld [vmem:[%s7070_s19 + $0x168] sm:$0xf]  ;;  %v5076_v19 = vor.u32 %v6244_v2, %v5073_v3  ;;  %v6089_v2 = vld [vmem:[%s7070_s19 + $0xb1c] sm:$0xf0]  ;;  %v6095_v3 = vld [vmem:[%s7070_s19 + $0x938] sm:$0xf] }
 0x24f   : > { %4080 = vmatpush.bf16.xpose.msra.mxu1 %v6060_v41  ;;  %4093 = vmatpush.bf16.xpose.msra.mxu2 %v6064_v43  ;;  %v5080_v20 = vor.u32 %v6306_v5, %v5079_v4  ;;  %v907_v40 = vld [vmem:[#allocation1 + $0x1b] sm:$0xff]  ;;  %v3696_v43 = vpop.f32.mrf.mxu3  ;;  %v3733_v4 = vpop.f32.mrf.mxu2 }
 0x250   : > { %4106 = vmatpush.bf16.xpose.msra.mxu3 %v6068_v45  ;;  %4031 = vmatmul.bf16.vlgmr.msrb.gmra.mxu1 %v7701_v7  ;;  %v6553_v7 = vld [vmem:[%s7070_s19 + $0xb08] sm:$0xf0]  ;;  %v6370_v41 = vld [vmem:[%s7070_s19 + $0x554] sm:$0xf]  ;;  %v6248_v43 = vld [vmem:[%s7070_s19 + $0x184] sm:$0xf] }
 0x251   : > { %4057 = vmatmul.bf16.vlgmr.msrb.gmra.mxu3 %v7703_v8  ;;  %v6079_v8 = vld [vmem:[%s7070_s19 + $0x928] sm:$0xf]  ;;  %v6072_v24 = vor.u32 %v6553_v7, %v6071_v6  ;;  %v5592_v56 = vor.u32 %v6370_v41, %v5589_v42  ;;  %v6556_v6 = vld [vmem:[%s7070_s19 + $0xb20] sm:$0xf0]  ;;  %v5103_v41 = vld [vmem:[%s7070_s19 + $0x180] sm:$0xf] }
 0x252   : > { %v6080_v27 = vor.u32 %v6554_v14, %v6079_v8  ;;  %v7760_v45 = vld [vmem:[#allocation1 + $0x36] sm:$0xff]  ;;  %v3709_v8 = vpop.f32.mrf.mxu0  ;;  %v6495_v14 = vld [vmem:[%s7070_s19 + $0x93c] sm:$0xf]  ;;  %v6096_v16 = vor.u32 %v6556_v6, %v6095_v3 }
 0x253   : > { %913 = vst [vmem:[#allocation1] ss:$9 sm:$0xff] %v416_v50  ;;  %v6100_v22 = vor.u32 %v6495_v14, %v6097_v15  ;;  %v6309_v42 = vld [vmem:[%s7070_s19 + $0x368] sm:$0xf0]  ;;  %v6496_v50 = vld [vmem:[%s7070_s19 + $0x944] sm:$0xf] }
 0x254   : > { %v5613_v8 = vld [vmem:[%s7070_s19 + $0x754] sm:$0xf0]  ;;  %v6435_v15 = vld [vmem:[%s7070_s19 + $0x758] sm:$0xf0] }
 0x255   : > { %v3772_v36 = vpop.f32.mrf.mxu1 }
 0x256   : > { %4068 = vmatpush.bf16.xpose.msra.mxu0 %v5564_v54  ;;  %v3721_v54 = vadd.f32 %v3720_v55, %v3708_v53  ;;  %v5104_v53 = vor.u32 %v6309_v42, %v5103_v41  ;;  %v6558_v55 = vld [vmem:[%s7070_s19 + $0xb30] sm:$0xf0]  ;;  %v6559_v41 = vld [vmem:[%s7070_s19 + $0xb38] sm:$0xf0] }
 0x257   : > { %4081 = vmatpush.bf16.xpose.msra.mxu1 %v5568_v58  ;;  %4094 = vmatpush.bf16.xpose.msra.mxu2 %v5572_v60  ;;  %v6307_v58 = vld [vmem:[%s7070_s19 + $0x358] sm:$0xf0]  ;;  %v6246_v60 = vld [vmem:[%s7070_s19 + $0x174] sm:$0xf]  ;;  %v3746_v13 = vpop.f32.mrf.mxu3  ;;  %v3735_v26 = vpop.f32.mrf.mxu2 }
 0x258   : > { %4107 = vmatpush.bf16.xpose.msra.mxu3 %v5576_v62  ;;  %v6308_v62 = vld [vmem:[%s7070_s19 + $0x360] sm:$0xf0]  ;;  %v5088_v5 = vor.u32 %v6307_v58, %v5087_v57  ;;  %v3734_v7 = vadd.f32 %v3733_v4, %v3721_v54  ;;  %v5092_v11 = vor.u32 %v6246_v60, %v5089_v61  ;;  %v6249_v54 = vld [vmem:[%s7070_s19 + $0x18c] sm:$0xf]  ;;  %v5113_v57 = vld [vmem:[%s7070_s19 + $0x374] sm:$0xf0] }
 0x259   : > { %v6498_v42 = vld [vmem:[%s7070_s19 + $0x954] sm:$0xf] }
 0x25a   : > { %v3759_v34 = vpop.f32.mrf.mxu0  ;;  %v916_v14 = vld [vmem:[#allocation1 + $0x12] sm:$0xff]  ;;  %v915_v17 = vld [vmem:[#allocation1 + $0x9] sm:$0xff]  ;;  %v7825_v26 = vld [vmem:[#allocation1 + $0x3f] sm:$0xff] }
 0x25d   : > { %v3774_v0 = vpop.f32.mrf.mxu1 }
 0x25e   : > { %4069 = vmatpush.bf16.xpose.msra.mxu0 %v5072_v12  ;;  %v5096_v12 = vor.u32 %v6308_v62, %v5095_v59  ;;  %v6497_v59 = vld [vmem:[%s7070_s19 + $0x94c] sm:$0xf]  ;;  %v6113_v62 = vld [vmem:[%s7070_s19 + $0xb34] sm:$0xf0] }
 0x25f   : > { %4082 = vmatpush.bf16.xpose.msra.mxu1 %v5076_v19  ;;  %4095 = vmatpush.bf16.xpose.msra.mxu2 %v5080_v20  ;;  %v6092_v19 = vor.u32 %v6494_v1, %v6089_v2  ;;  %v3747_v20 = vadd.f32 %v3746_v13, %v3734_v7  ;;  %v3748_v33 = vpop.f32.mrf.mxu3  ;;  %v6116_v6 = vor.u32 %v6497_v59, %v6113_v62  ;;  %v5611_v7 = vld [vmem:[%s7070_s19 + $0x568] sm:$0xf]  ;;  %v5627_v0 = vld [vmem:[%s7070_s19 + $0x578] sm:$0xf] }
 0x260   : > { %4108 = vmatpush.bf16.xpose.msra.mxu3 %v5084_v28  ;;  %v5603_v28 = vld [vmem:[%s7070_s19 + $0x560] sm:$0xf] }
 0x261   : > { %v3760_v38 = vadd.f32 %v3759_v34, %v3747_v20  ;;  %v5621_v20 = vld [vmem:[%s7070_s19 + $0x75c] sm:$0xf0]  ;;  %v5119_v34 = vld [vmem:[%s7070_s19 + $0x190] sm:$0xf] }
 0x262   : > { %v3761_v58 = vpop.f32.mrf.mxu0 }
 0x265   : > { %4070 = vmatmul.bf16.vlgmr.msra.gmra.mxu0 %v904_v35 }
 0x266   : > { %4119 = vmatpush.bf16.xpose.msrb.mxu0 %v6072_v24  ;;  %4096 = vmatmul.bf16.vlgmr.msra.gmra.mxu2 %v906_v37  ;;  %v6432_v24 = vld [vmem:[%s7070_s19 + $0x740] sm:$0xf0] }
 0x267   : > { %4132 = vmatpush.bf16.xpose.msrb.mxu1 %v6076_v25  ;;  %4145 = vmatpush.bf16.xpose.msrb.mxu2 %v6080_v27  ;;  %v6371_v25 = vld [vmem:[%s7070_s19 + $0x55c] sm:$0xf]  ;;  %v5597_v27 = vld [vmem:[%s7070_s19 + $0x744] sm:$0xf0]  ;;  %v5596_v31 = vor.u32 %v6432_v24, %v5595_v23  ;;  %v3798_v63 = vpop.f32.mrf.mxu3  ;;  %v5612_v23 = vor.u32 %v6434_v9, %v5611_v7  ;;  %v6376_v7 = vld [vmem:[%s7070_s19 + $0x584] sm:$0xf] }
 0x268   : > { %4158 = vmatpush.bf16.xpose.msrb.mxu3 %v6084_v29  ;;  %4083 = vmatmul.bf16.vlgmr.msra.gmra.mxu1 %v905_v39  ;;  %v6433_v29 = vld [vmem:[%s7070_s19 + $0x748] sm:$0xf0]  ;;  %v5600_v35 = vor.u32 %v6371_v25, %v5597_v27  ;;  %v5608_v39 = vor.u32 %v6372_v30, %v5605_v32  ;;  %v7823_v25 = vld [vmem:[#allocation1 + $0x2d] sm:$0xff]  ;;  %v5637_v9 = vld [vmem:[%s7070_s19 + $0x76c] sm:$0xf0] }
 0x269   : > { %4109 = vmatmul.bf16.vlgmr.msra.gmra.mxu3 %v907_v40  ;;  %v5604_v37 = vor.u32 %v6433_v29, %v5603_v28  ;;  %v3773_v40 = vadd.f32 %v3772_v36, %v3760_v38  ;;  %v417_v27 = vld [vmem:[%s7088_s5 + $0x68] sm:$0xff]  ;;  %v5616_v28 = vor.u32 %v6373_v10, %v5613_v8 }
 0x26a   : > { %v3811_v24 = vpop.f32.mrf.mxu0  ;;  %v5121_v38 = vld [vmem:[%s7070_s19 + $0x37c] sm:$0xf0]  ;;  %v5127_v36 = vld [vmem:[%s7070_s19 + $0x198] sm:$0xf] }
 0x26d   : > { %v3824_v32 = vpop.f32.mrf.mxu1 }
 0x26e   : > { %4120 = vmatpush.bf16.xpose.msrb.mxu0 %v5580_v46  ;;  %v6310_v46 = vld [vmem:[%s7070_s19 + $0x370] sm:$0xf0] }
 0x26f   : > { %4133 = vmatpush.bf16.xpose.msrb.mxu1 %v5584_v51  ;;  %4146 = vmatpush.bf16.xpose.msrb.mxu2 %v5588_v52  ;;  %v6105_v51 = vld [vmem:[%s7070_s19 + $0xb2c] sm:$0xf0]  ;;  %v3785_v52 = vpop.f32.mrf.mxu2 }
 0x270   : > { %4159 = vmatpush.bf16.xpose.msrb.mxu3 %v5592_v56  ;;  %v3786_v56 = vadd.f32 %v3785_v52, %v3773_v40  ;;  %v6108_v2 = vor.u32 %v6496_v50, %v6105_v51  ;;  %v6119_v40 = vld [vmem:[%s7070_s19 + $0x950] sm:$0xf]  ;;  %v6251_v50 = vld [vmem:[%s7070_s19 + $0x19c] sm:$0xf]  ;;  %v5129_v51 = vld [vmem:[%s7070_s19 + $0x384] sm:$0xf0] }
 0x271   : > { %v6120_v58 = vor.u32 %v6559_v41, %v6119_v40  ;;  %v5132_v62 = vor.u32 %v6251_v50, %v5129_v51  ;;  %v6438_v50 = vld [vmem:[%s7070_s19 + $0x770] sm:$0xf0]  ;;  %v6377_v51 = vld [vmem:[%s7070_s19 + $0x58c] sm:$0xf] }
 0x272   : > { %v3799_v3 = vadd.f32 %v3798_v63, %v3786_v56  ;;  %v6129_v56 = vld [vmem:[%s7070_s19 + $0xb44] sm:$0xf0] }
 0x274   : > { %v3812_v30 = vadd.f32 %v3811_v24, %v3799_v3  ;;  %v6135_v24 = vld [vmem:[%s7070_s19 + $0x960] sm:$0xf] }
 0x276   : > { %4121 = vmatpush.bf16.xpose.msrb.mxu0 %v5088_v5  ;;  %v5116_v5 = vor.u32 %v6249_v54, %v5113_v57  ;;  %v3826_v57 = vpop.f32.mrf.mxu1 }
 0x277   : > { %4134 = vmatpush.bf16.xpose.msrb.mxu1 %v5092_v11  ;;  %4147 = vmatpush.bf16.xpose.msrb.mxu2 %v5096_v12  ;;  %v5619_v11 = vld [vmem:[%s7070_s19 + $0x570] sm:$0xf]  ;;  %v3787_v13 = vpop.f32.mrf.mxu2 }
 0x278   : > { %4160 = vmatpush.bf16.xpose.msrb.mxu3 %v5100_v21  ;;  %v914_v12 = vld [vmem:[#allocation1] sm:$0xff]  ;;  %v5620_v29 = vor.u32 %v6435_v15, %v5619_v11 }
 0x279   : > { %v7819_v21 = vld [vmem:[#allocation1 + $0x24] sm:$0xff] }
 0x27d   : > { %4122 = vmatmul.bf16.vlgmr.msrb.gmra.mxu0 %v7758_v44  ;;  %v5105_v44 = vld [vmem:[%s7070_s19 + $0x36c] sm:$0xf0] }
 0x27e   : > { %4171 = vmatpush.bf16.xpose.msra.mxu0 %v6088_v18  ;;  %4148 = vmatmul.bf16.vlgmr.msrb.gmra.mxu2 %v7760_v45  ;;  %v5111_v45 = vld [vmem:[%s7070_s19 + $0x188] sm:$0xf]  ;;  %v5108_v60 = vor.u32 %v6248_v43, %v5105_v44  ;;  %v6121_v43 = vld [vmem:[%s7070_s19 + $0xb3c] sm:$0xf0]  ;;  %v6127_v44 = vld [vmem:[%s7070_s19 + $0x958] sm:$0xf] }
 0x27f   : > { %4184 = vmatpush.bf16.xpose.msra.mxu1 %v6092_v19  ;;  %4197 = vmatpush.bf16.xpose.msra.mxu2 %v6096_v16  ;;  %v5112_v61 = vor.u32 %v6310_v46, %v5111_v45  ;;  %v917_v18 = vld [vmem:[#allocation1 + $0x1b] sm:$0xff]  ;;  %v3800_v16 = vpop.f32.mrf.mxu3  ;;  %v3837_v45 = vpop.f32.mrf.mxu2 }
 0x280   : > { %4210 = vmatpush.bf16.xpose.msra.mxu3 %v6100_v22  ;;  %4135 = vmatmul.bf16.vlgmr.msrb.gmra.mxu1 %v7762_v48  ;;  %v6557_v48 = vld [vmem:[%s7070_s19 + $0xb28] sm:$0xf0]  ;;  %v6374_v19 = vld [vmem:[%s7070_s19 + $0x574] sm:$0xf]  ;;  %v6252_v16 = vld [vmem:[%s7070_s19 + $0x1a4] sm:$0xf] }
 0x281   : > { %4161 = vmatmul.bf16.vlgmr.msrb.gmra.mxu3 %v7764_v49  ;;  %v6111_v49 = vld [vmem:[%s7070_s19 + $0x948] sm:$0xf]  ;;  %v6104_v1 = vor.u32 %v6557_v48, %v6103_v47  ;;  %v5624_v33 = vor.u32 %v6374_v19, %v5621_v20  ;;  %v6560_v47 = vld [vmem:[%s7070_s19 + $0xb40] sm:$0xf0]  ;;  %v5135_v19 = vld [vmem:[%s7070_s19 + $0x1a0] sm:$0xf] }
 0x282   : > { %v6112_v4 = vor.u32 %v6558_v55, %v6111_v49  ;;  %v7821_v22 = vld [vmem:[#allocation1 + $0x36] sm:$0xff]  ;;  %v3813_v49 = vpop.f32.mrf.mxu0  ;;  %v6499_v55 = vld [vmem:[%s7070_s19 + $0x95c] sm:$0xf]  ;;  %v6128_v59 = vor.u32 %v6560_v47, %v6127_v44 }
 0x283   : > { %923 = vst [vmem:[#allocation1] ss:$9 sm:$0xff] %v417_v27  ;;  %v6132_v63 = vor.u32 %v6499_v55, %v6129_v56  ;;  %v6313_v20 = vld [vmem:[%s7070_s19 + $0x388] sm:$0xf0]  ;;  %v6500_v27 = vld [vmem:[%s7070_s19 + $0x964] sm:$0xf] }
 0x284   : > { %v5645_v49 = vld [vmem:[%s7070_s19 + $0x774] sm:$0xf0]  ;;  %v6439_v56 = vld [vmem:[%s7070_s19 + $0x778] sm:$0xf0] }
 0x285   : > { %v3876_v13 = vpop.f32.mrf.mxu1 }
 0x286   : > { %4172 = vmatpush.bf16.xpose.msra.mxu0 %v5596_v31  ;;  %v3825_v31 = vadd.f32 %v3824_v32, %v3812_v30  ;;  %v5136_v30 = vor.u32 %v6313_v20, %v5135_v19  ;;  %v6562_v32 = vld [vmem:[%s7070_s19 + $0xb50] sm:$0xf0]  ;;  %v6563_v19 = vld [vmem:[%s7070_s19 + $0xb58] sm:$0xf0] }
 0x287   : > { %4185 = vmatpush.bf16.xpose.msra.mxu1 %v5600_v35  ;;  %4198 = vmatpush.bf16.xpose.msra.mxu2 %v5604_v37  ;;  %v6311_v35 = vld [vmem:[%s7070_s19 + $0x378] sm:$0xf0]  ;;  %v6250_v37 = vld [vmem:[%s7070_s19 + $0x194] sm:$0xf]  ;;  %v3850_v54 = vpop.f32.mrf.mxu3  ;;  %v3839_v3 = vpop.f32.mrf.mxu2 }
 0x288   : > { %4211 = vmatpush.bf16.xpose.msra.mxu3 %v5608_v39  ;;  %v6312_v39 = vld [vmem:[%s7070_s19 + $0x380] sm:$0xf0]  ;;  %v5120_v46 = vor.u32 %v6311_v35, %v5119_v34  ;;  %v3838_v48 = vadd.f32 %v3837_v45, %v3825_v31  ;;  %v5124_v52 = vor.u32 %v6250_v37, %v5121_v38  ;;  %v6253_v31 = vld [vmem:[%s7070_s19 + $0x1ac] sm:$0xf]  ;;  %v5145_v34 = vld [vmem:[%s7070_s19 + $0x394] sm:$0xf0] }
 0x289   : > { %v6502_v20 = vld [vmem:[%s7070_s19 + $0x974] sm:$0xf] }
 0x28a   : > { %v3863_v11 = vpop.f32.mrf.mxu0  ;;  %v926_v55 = vld [vmem:[#allocation1 + $0x12] sm:$0xff]  ;;  %v925_v57 = vld [vmem:[#allocation1 + $0x9] sm:$0xff]  ;;  %v7886_v3 = vld [vmem:[#allocation1 + $0x3f] sm:$0xff] }
 0x28d   : > { %v3878_v41 = vpop.f32.mrf.mxu1 }
 0x28e   : > { %4173 = vmatpush.bf16.xpose.msra.mxu0 %v5104_v53  ;;  %v5128_v53 = vor.u32 %v6312_v39, %v5127_v36  ;;  %v6501_v36 = vld [vmem:[%s7070_s19 + $0x96c] sm:$0xf]  ;;  %v6145_v39 = vld [vmem:[%s7070_s19 + $0xb54] sm:$0xf0] }
 0x28f   : > { %4186 = vmatpush.bf16.xpose.msra.mxu1 %v5108_v60  ;;  %4199 = vmatpush.bf16.xpose.msra.mxu2 %v5112_v61  ;;  %v6124_v60 = vor.u32 %v6498_v42, %v6121_v43  ;;  %v3851_v61 = vadd.f32 %v3850_v54, %v3838_v48  ;;  %v3852_v10 = vpop.f32.mrf.mxu3  ;;  %v6148_v47 = vor.u32 %v6501_v36, %v6145_v39  ;;  %v5643_v48 = vld [vmem:[%s7070_s19 + $0x588] sm:$0xf]  ;;  %v5659_v41 = vld [vmem:[%s7070_s19 + $0x598] sm:$0xf] }
 0x290   : > { %4212 = vmatpush.bf16.xpose.msra.mxu3 %v5116_v5  ;;  %v5635_v5 = vld [vmem:[%s7070_s19 + $0x580] sm:$0xf] }
 0x291   : > { %v3864_v15 = vadd.f32 %v3863_v11, %v3851_v61  ;;  %v5653_v61 = vld [vmem:[%s7070_s19 + $0x77c] sm:$0xf0]  ;;  %v5151_v11 = vld [vmem:[%s7070_s19 + $0x1b0] sm:$0xf] }
 0x292   : > { %v3865_v35 = vpop.f32.mrf.mxu0 }
 0x295   : > { %4174 = vmatmul.bf16.vlgmr.msra.gmra.mxu0 %v914_v12 }
 0x296   : > { %4223 = vmatpush.bf16.xpose.msrb.mxu0 %v6104_v1  ;;  %4200 = vmatmul.bf16.vlgmr.msra.gmra.mxu2 %v916_v14  ;;  %v6436_v1 = vld [vmem:[%s7070_s19 + $0x760] sm:$0xf0] }
 0x297   : > { %4236 = vmatpush.bf16.xpose.msrb.mxu1 %v6108_v2  ;;  %4249 = vmatpush.bf16.xpose.msrb.mxu2 %v6112_v4  ;;  %v6375_v2 = vld [vmem:[%s7070_s19 + $0x57c] sm:$0xf]  ;;  %v5629_v4 = vld [vmem:[%s7070_s19 + $0x764] sm:$0xf0]  ;;  %v5628_v8 = vor.u32 %v6436_v1, %v5627_v0  ;;  %v3902_v40 = vpop.f32.mrf.mxu3  ;;  %v5644_v0 = vor.u32 %v6438_v50, %v5643_v48  ;;  %v6380_v48 = vld [vmem:[%s7070_s19 + $0x5a4] sm:$0xf] }
 0x298   : > { %4262 = vmatpush.bf16.xpose.msrb.mxu3 %v6116_v6  ;;  %4187 = vmatmul.bf16.vlgmr.msra.gmra.mxu1 %v915_v17  ;;  %v6437_v6 = vld [vmem:[%s7070_s19 + $0x768] sm:$0xf0]  ;;  %v5632_v12 = vor.u32 %v6375_v2, %v5629_v4  ;;  %v5640_v17 = vor.u32 %v6376_v7, %v5637_v9  ;;  %v7884_v2 = vld [vmem:[#allocation1 + $0x2d] sm:$0xff]  ;;  %v5669_v50 = vld [vmem:[%s7070_s19 + $0x78c] sm:$0xf0] }
 0x299   : > { %4213 = vmatmul.bf16.vlgmr.msra.gmra.mxu3 %v917_v18  ;;  %v5636_v14 = vor.u32 %v6437_v6, %v5635_v5  ;;  %v3877_v18 = vadd.f32 %v3876_v13, %v3864_v15  ;;  %v418_v4 = vld [vmem:[%s7088_s5 + $0x70] sm:$0xff]  ;;  %v5648_v5 = vor.u32 %v6377_v51, %v5645_v49  ;;  %v5159_v13 = vld [vmem:[%s7070_s19 + $0x1b8] sm:$0xf] }
 0x29a   : > { %v3915_v1 = vpop.f32.mrf.mxu0  ;;  %v5153_v15 = vld [vmem:[%s7070_s19 + $0x39c] sm:$0xf0] }
 0x29d   : > { %v3928_v9 = vpop.f32.mrf.mxu1 }
 0x29e   : > { %4224 = vmatpush.bf16.xpose.msrb.mxu0 %v5612_v23  ;;  %v6314_v23 = vld [vmem:[%s7070_s19 + $0x390] sm:$0xf0] }
 0x29f   : > { %4237 = vmatpush.bf16.xpose.msrb.mxu1 %v5616_v28  ;;  %4250 = vmatpush.bf16.xpose.msrb.mxu2 %v5620_v29  ;;  %v6137_v28 = vld [vmem:[%s7070_s19 + $0xb4c] sm:$0xf0]  ;;  %v3889_v29 = vpop.f32.mrf.mxu2 }
 0x2a0   : > { %4263 = vmatpush.bf16.xpose.msrb.mxu3 %v5624_v33  ;;  %v3890_v33 = vadd.f32 %v3889_v29, %v3877_v18  ;;  %v6140_v43 = vor.u32 %v6500_v27, %v6137_v28  ;;  %v6151_v18 = vld [vmem:[%s7070_s19 + $0x970] sm:$0xf]  ;;  %v6255_v27 = vld [vmem:[%s7070_s19 + $0x1bc] sm:$0xf]  ;;  %v5161_v28 = vld [vmem:[%s7070_s19 + $0x3a4] sm:$0xf0] }
 0x2a1   : > { %v6152_v35 = vor.u32 %v6563_v19, %v6151_v18  ;;  %v5164_v39 = vor.u32 %v6255_v27, %v5161_v28 }
 0x2a2   : > { %v3903_v44 = vadd.f32 %v3902_v40, %v3890_v33  ;;  %v6161_v33 = vld [vmem:[%s7070_s19 + $0xb64] sm:$0xf0] }
 0x2a4   : > { %v3916_v7 = vadd.f32 %v3915_v1, %v3903_v44  ;;  %v6167_v1 = vld [vmem:[%s7070_s19 + $0x980] sm:$0xf] }
 0x2a6   : > { %4225 = vmatpush.bf16.xpose.msrb.mxu0 %v5120_v46  ;;  %v5148_v46 = vor.u32 %v6253_v31, %v5145_v34  ;;  %v3930_v34 = vpop.f32.mrf.mxu1 }
 0x2a7   : > { %4238 = vmatpush.bf16.xpose.msrb.mxu1 %v5124_v52  ;;  %4251 = vmatpush.bf16.xpose.msrb.mxu2 %v5128_v53  ;;  %v5651_v52 = vld [vmem:[%s7070_s19 + $0x590] sm:$0xf]  ;;  %v3891_v54 = vpop.f32.mrf.mxu2 }
 0x2a8   : > { %4264 = vmatpush.bf16.xpose.msrb.mxu3 %v5132_v62  ;;  %v924_v53 = vld [vmem:[#allocation1] sm:$0xff]  ;;  %v5652_v6 = vor.u32 %v6439_v56, %v5651_v52 }
 0x2a9   : > { %v7880_v62 = vld [vmem:[#allocation1 + $0x24] sm:$0xff] }
 0x2ad   : > { %4226 = vmatmul.bf16.vlgmr.msrb.gmra.mxu0 %v7819_v21  ;;  %v5137_v21 = vld [vmem:[%s7070_s19 + $0x38c] sm:$0xf0] }
 0x2ae   : > { %4275 = vmatpush.bf16.xpose.msra.mxu0 %v6120_v58  ;;  %4252 = vmatmul.bf16.vlgmr.msrb.gmra.mxu2 %v7821_v22  ;;  %v5143_v22 = vld [vmem:[%s7070_s19 + $0x1a8] sm:$0xf]  ;;  %v5140_v37 = vor.u32 %v6252_v16, %v5137_v21  ;;  %v6153_v16 = vld [vmem:[%s7070_s19 + $0xb5c] sm:$0xf0]  ;;  %v6159_v21 = vld [vmem:[%s7070_s19 + $0x978] sm:$0xf] }
 0x2af   : > { %4288 = vmatpush.bf16.xpose.msra.mxu1 %v6124_v60  ;;  %4301 = vmatpush.bf16.xpose.msra.mxu2 %v6128_v59  ;;  %v5144_v38 = vor.u32 %v6314_v23, %v5143_v22  ;;  %v927_v58 = vld [vmem:[#allocation1 + $0x1b] sm:$0xff]  ;;  %v3904_v59 = vpop.f32.mrf.mxu3  ;;  %v3941_v22 = vpop.f32.mrf.mxu2 }
 0x2b0   : > { %4314 = vmatpush.bf16.xpose.msra.mxu3 %v6132_v63  ;;  %4239 = vmatmul.bf16.vlgmr.msrb.gmra.mxu1 %v7823_v25  ;;  %v6561_v25 = vld [vmem:[%s7070_s19 + $0xb48] sm:$0xf0]  ;;  %v6378_v60 = vld [vmem:[%s7070_s19 + $0x594] sm:$0xf]  ;;  %v6256_v59 = vld [vmem:[%s7070_s19 + $0x1c4] sm:$0xf] }
 0x2b1   : > { %4265 = vmatmul.bf16.vlgmr.msrb.gmra.mxu3 %v7825_v26  ;;  %v6143_v26 = vld [vmem:[%s7070_s19 + $0x968] sm:$0xf]  ;;  %v6136_v42 = vor.u32 %v6561_v25, %v6135_v24  ;;  %v5656_v10 = vor.u32 %v6378_v60, %v5653_v61  ;;  %v6564_v24 = vld [vmem:[%s7070_s19 + $0xb60] sm:$0xf0]  ;;  %v5167_v60 = vld [vmem:[%s7070_s19 + $0x1c0] sm:$0xf] }
 0x2b2   : > { %v6144_v45 = vor.u32 %v6562_v32, %v6143_v26  ;;  %v7882_v63 = vld [vmem:[#allocation1 + $0x36] sm:$0xff]  ;;  %v3917_v26 = vpop.f32.mrf.mxu0  ;;  %v6503_v32 = vld [vmem:[%s7070_s19 + $0x97c] sm:$0xf]  ;;  %v6160_v36 = vor.u32 %v6564_v24, %v6159_v21 }
 0x2b3   : > { %933 = vst [vmem:[#allocation1] ss:$9 sm:$0xff] %v418_v4  ;;  %v6164_v40 = vor.u32 %v6503_v32, %v6161_v33  ;;  %v6317_v61 = vld [vmem:[%s7070_s19 + $0x3a8] sm:$0xf0]  ;;  %v6504_v4 = vld [vmem:[%s7070_s19 + $0x984] sm:$0xf] }
 0x2b4   : > { %v5675_v26 = vld [vmem:[%s7070_s19 + $0x5a8] sm:$0xf]  ;;  %v6381_v32 = vld [vmem:[%s7070_s19 + $0x5ac] sm:$0xf]  ;;  %v5677_v33 = vld [vmem:[%s7070_s19 + $0x794] sm:$0xf0] }
 0x2b5   : > { %v3980_v54 = vpop.f32.mrf.mxu1 }
 0x2b6   : > { %4276 = vmatpush.bf16.xpose.msra.mxu0 %v5628_v8  ;;  %v3929_v8 = vadd.f32 %v3928_v9, %v3916_v7  ;;  %v5168_v7 = vor.u32 %v6317_v61, %v5167_v60  ;;  %v6566_v9 = vld [vmem:[%s7070_s19 + $0xb70] sm:$0xf0]  ;;  %v6567_v60 = vld [vmem:[%s7070_s19 + $0xb78] sm:$0xf0] }
 0x2b7   : > { %4289 = vmatpush.bf16.xpose.msra.mxu1 %v5632_v12  ;;  %4302 = vmatpush.bf16.xpose.msra.mxu2 %v5636_v14  ;;  %v6315_v12 = vld [vmem:[%s7070_s19 + $0x398] sm:$0xf0]  ;;  %v6254_v14 = vld [vmem:[%s7070_s19 + $0x1b4] sm:$0xf]  ;;  %v3954_v31 = vpop.f32.mrf.mxu3  ;;  %v3943_v44 = vpop.f32.mrf.mxu2 }
 0x2b8   : > { %4315 = vmatpush.bf16.xpose.msra.mxu3 %v5640_v17  ;;  %v6316_v17 = vld [vmem:[%s7070_s19 + $0x3a0] sm:$0xf0]  ;;  %v5152_v23 = vor.u32 %v6315_v12, %v5151_v11  ;;  %v3942_v25 = vadd.f32 %v3941_v22, %v3929_v8  ;;  %v5156_v29 = vor.u32 %v6254_v14, %v5153_v15  ;;  %v6257_v8 = vld [vmem:[%s7070_s19 + $0x1cc] sm:$0xf]  ;;  %v5177_v11 = vld [vmem:[%s7070_s19 + $0x3b4] sm:$0xf0] }
 0x2b9   : > { %v6506_v61 = vld [vmem:[%s7070_s19 + $0x994] sm:$0xf] }
 0x2ba   : > { %v3967_v52 = vpop.f32.mrf.mxu0  ;;  %v935_v27 = vld [vmem:[#allocation1 + $0x9] sm:$0xff]  ;;  %v936_v28 = vld [vmem:[#allocation1 + $0x12] sm:$0xff] }
 0x2bb   : > { %v7939_v34 = vld [vmem:[#allocation1 + $0x2d] sm:$0xff] }
 0x2bd   : > { %v3982_v19 = vpop.f32.mrf.mxu1 }
 0x2be   : > { %4277 = vmatpush.bf16.xpose.msra.mxu0 %v5136_v30  ;;  %v5160_v30 = vor.u32 %v6316_v17, %v5159_v13  ;;  %v6505_v13 = vld [vmem:[%s7070_s19 + $0x98c] sm:$0xf]  ;;  %v6177_v17 = vld [vmem:[%s7070_s19 + $0xb74] sm:$0xf0] }
 0x2bf   : > { %4290 = vmatpush.bf16.xpose.msra.mxu1 %v5140_v37  ;;  %4303 = vmatpush.bf16.xpose.msra.mxu2 %v5144_v38  ;;  %v6156_v37 = vor.u32 %v6502_v20, %v6153_v16  ;;  %v3955_v38 = vadd.f32 %v3954_v31, %v3942_v25  ;;  %v3956_v51 = vpop.f32.mrf.mxu3  ;;  %v6180_v24 = vor.u32 %v6505_v13, %v6177_v17  ;;  %v934_v25 = vld [vmem:[#allocation1] sm:$0xff]  ;;  %v6444_v17 = vld [vmem:[%s7070_s19 + $0x7a0] sm:$0xf0] }
 0x2c0   : > { %4316 = vmatpush.bf16.xpose.msra.mxu3 %v5148_v46  ;;  %v5667_v46 = vld [vmem:[%s7070_s19 + $0x5a0] sm:$0xf]  ;;  %v5691_v13 = vld [vmem:[%s7070_s19 + $0x5b8] sm:$0xf] }
 0x2c1   : > { %v3968_v56 = vadd.f32 %v3967_v52, %v3955_v38  ;;  %v7937_v31 = vld [vmem:[#allocation1 + $0x24] sm:$0xff] }
 0x2c2   : > { %v3969_v12 = vpop.f32.mrf.mxu0  ;;  %v7943_v38 = vld [vmem:[#allocation1 + $0x3f] sm:$0xff] }
 0x2c3   : > { %v5183_v52 = vld [vmem:[%s7070_s19 + $0x1d0] sm:$0xf] }
 0x2c5   : > { %4278 = vmatmul.bf16.vlgmr.msra.gmra.mxu0 %v924_v53 }
 0x2c6   : > { %4327 = vmatpush.bf16.xpose.msrb.mxu0 %v6136_v42  ;;  %4304 = vmatmul.bf16.vlgmr.msra.gmra.mxu2 %v926_v55  ;;  %v6440_v42 = vld [vmem:[%s7070_s19 + $0x780] sm:$0xf0] }
 0x2c7   : > { %4340 = vmatpush.bf16.xpose.msrb.mxu1 %v6140_v43  ;;  %4353 = vmatpush.bf16.xpose.msrb.mxu2 %v6144_v45  ;;  %v6379_v43 = vld [vmem:[%s7070_s19 + $0x59c] sm:$0xf]  ;;  %v5661_v45 = vld [vmem:[%s7070_s19 + $0x784] sm:$0xf0]  ;;  %v5660_v49 = vor.u32 %v6440_v42, %v5659_v41  ;;  %v4006_v18 = vpop.f32.mrf.mxu3  ;;  %v6382_v41 = vld [vmem:[%s7070_s19 + $0x5b4] sm:$0xf] }
 0x2c8   : > { %4366 = vmatpush.bf16.xpose.msrb.mxu3 %v6148_v47  ;;  %4291 = vmatmul.bf16.vlgmr.msra.gmra.mxu1 %v925_v57  ;;  %v6441_v47 = vld [vmem:[%s7070_s19 + $0x788] sm:$0xf0]  ;;  %v5664_v53 = vor.u32 %v6379_v43, %v5661_v45  ;;  %v5672_v57 = vor.u32 %v6380_v48, %v5669_v50  ;;  %v5685_v42 = vld [vmem:[%s7070_s19 + $0x79c] sm:$0xf0] }
 0x2c9   : > { %4317 = vmatmul.bf16.vlgmr.msra.gmra.mxu3 %v927_v58  ;;  %v5668_v55 = vor.u32 %v6441_v47, %v5667_v46  ;;  %v3981_v58 = vadd.f32 %v3980_v54, %v3968_v56  ;;  %v5680_v46 = vor.u32 %v6381_v32, %v5677_v33  ;;  %v5688_v51 = vor.u32 %v6382_v41, %v5685_v42  ;;  %v5185_v56 = vld [vmem:[%s7070_s19 + $0x3bc] sm:$0xf0]  ;;  %v5191_v54 = vld [vmem:[%s7070_s19 + $0x1d8] sm:$0xf]  ;;  %v6321_v32 = vld [vmem:[%s7070_s19 + $0x3c8] sm:$0xf0] }
 0x2ca   : > { %v4019_v45 = vpop.f32.mrf.mxu0  ;;  %v6260_v33 = vld [vmem:[%s7070_s19 + $0x1e4] sm:$0xf] }
 0x2cd   : > { %v4032_v50 = vpop.f32.mrf.mxu1 }
 0x2ce   : > { %4328 = vmatpush.bf16.xpose.msrb.mxu0 %v5644_v0  ;;  %v6318_v0 = vld [vmem:[%s7070_s19 + $0x3b0] sm:$0xf0] }
 0x2cf   : > { %4341 = vmatpush.bf16.xpose.msrb.mxu1 %v5648_v5  ;;  %4354 = vmatpush.bf16.xpose.msrb.mxu2 %v5652_v6  ;;  %v6169_v5 = vld [vmem:[%s7070_s19 + $0xb6c] sm:$0xf0]  ;;  %v3993_v6 = vpop.f32.mrf.mxu2  ;;  %v4008_v43 = vpop.f32.mrf.mxu3 }
 0x2d0   : > { %4367 = vmatpush.bf16.xpose.msrb.mxu3 %v5656_v10  ;;  %v3994_v10 = vadd.f32 %v3993_v6, %v3981_v58  ;;  %v6172_v16 = vor.u32 %v6504_v4, %v6169_v5  ;;  %v6183_v58 = vld [vmem:[%s7070_s19 + $0x990] sm:$0xf]  ;;  %v6259_v4 = vld [vmem:[%s7070_s19 + $0x1dc] sm:$0xf]  ;;  %v5193_v5 = vld [vmem:[%s7070_s19 + $0x3c4] sm:$0xf0] }
 0x2d2   : > { %v4007_v21 = vadd.f32 %v4006_v18, %v3994_v10  ;;  %v6383_v18 = vld [vmem:[%s7070_s19 + $0x5bc] sm:$0xf] }
 0x2d4   : > { %v4020_v48 = vadd.f32 %v4019_v45, %v4007_v21  ;;  %v6445_v21 = vld [vmem:[%s7070_s19 + $0x7a8] sm:$0xf0] }
 0x2d5   : > { %v4034_v10 = vpop.f32.mrf.mxu1 }
 0x2d6   : > { %4329 = vmatpush.bf16.xpose.msrb.mxu0 %v5152_v23  ;;  %v5180_v23 = vor.u32 %v6257_v8, %v5177_v11  ;;  %v6184_v8 = vor.u32 %v6567_v60, %v6183_v58 }
 0x2d7   : > { %4342 = vmatpush.bf16.xpose.msrb.mxu1 %v5156_v29  ;;  %4355 = vmatpush.bf16.xpose.msrb.mxu2 %v5160_v30  ;;  %v6442_v29 = vld [vmem:[%s7070_s19 + $0x790] sm:$0xf0] }
 0x2d8   : > { %4368 = vmatpush.bf16.xpose.msrb.mxu3 %v5164_v39  ;;  %v937_v30 = vld [vmem:[#allocation1 + $0x1b] sm:$0xff]  ;;  %v5676_v44 = vor.u32 %v6442_v29, %v5675_v26 }
 0x2d9   : > { %v5683_v39 = vld [vmem:[%s7070_s19 + $0x5b0] sm:$0xf] }
 0x2dd   : > { %4330 = vmatmul.bf16.vlgmr.msrb.gmra.mxu0 %v7880_v62  ;;  %v5169_v62 = vld [vmem:[%s7070_s19 + $0x3ac] sm:$0xf0] }
 0x2de   : > { %4379 = vmatpush.bf16.xpose.msra.mxu0 %v6152_v35  ;;  %4356 = vmatmul.bf16.vlgmr.msrb.gmra.mxu2 %v7882_v63  ;;  %v5175_v63 = vld [vmem:[%s7070_s19 + $0x1c8] sm:$0xf]  ;;  %v5172_v14 = vor.u32 %v6256_v59, %v5169_v62  ;;  %v3995_v35 = vpop.f32.mrf.mxu2  ;;  %v6185_v59 = vld [vmem:[%s7070_s19 + $0xb7c] sm:$0xf0]  ;;  %v6191_v62 = vld [vmem:[%s7070_s19 + $0x998] sm:$0xf] }
 0x2df   : > { %4392 = vmatpush.bf16.xpose.msra.mxu1 %v6156_v37  ;;  %4405 = vmatpush.bf16.xpose.msra.mxu2 %v6160_v36  ;;  %v5176_v15 = vor.u32 %v6318_v0, %v5175_v63  ;;  %v7941_v37 = vld [vmem:[#allocation1 + $0x36] sm:$0xff]  ;;  %v6188_v11 = vor.u32 %v6506_v61, %v6185_v59 }
 0x2e0   : > { %4418 = vmatpush.bf16.xpose.msra.mxu3 %v6164_v40  ;;  %4343 = vmatmul.bf16.vlgmr.msrb.gmra.mxu1 %v7884_v2  ;;  %v6565_v2 = vld [vmem:[%s7070_s19 + $0xb68] sm:$0xf0]  ;;  %v6443_v40 = vld [vmem:[%s7070_s19 + $0x798] sm:$0xf0]  ;;  %v5207_v35 = vld [vmem:[%s7070_s19 + $0x1e8] sm:$0xf] }
 0x2e1   : > { %4369 = vmatmul.bf16.vlgmr.msrb.gmra.mxu3 %v7886_v3  ;;  %v6175_v3 = vld [vmem:[%s7070_s19 + $0x988] sm:$0xf]  ;;  %v6168_v20 = vor.u32 %v6565_v2, %v6167_v1  ;;  %v5684_v47 = vor.u32 %v6443_v40, %v5683_v39  ;;  %v6568_v1 = vld [vmem:[%s7070_s19 + $0xb80] sm:$0xf0] }
 0x2e2   : > { %v6176_v22 = vor.u32 %v6566_v9, %v6175_v3  ;;  %v419_v36 = vld [vmem:[%s7088_s5 + $0x78] sm:$0x7]  ;;  %v4021_v3 = vpop.f32.mrf.mxu0  ;;  %v4058_v9 = vpop.f32.mrf.mxu3 }
 0x2e3   : > { %943 = vst [vmem:[#allocation1] ss:$9 sm:$0xff] %v419_v36  ;;  %v6322_v36 = vld [vmem:[%s7070_s19 + $0x3d0] sm:$0xf0] }
 0x2e5   : > { %v4084_v26 = vpop.f32.mrf.mxu1 }
 0x2e6   : > { %4380 = vmatpush.bf16.xpose.msra.mxu0 %v5660_v49  ;;  %v4033_v49 = vadd.f32 %v4032_v50, %v4020_v48  ;;  %v4045_v63 = vpop.f32.mrf.mxu2 }
 0x2e7   : > { %4393 = vmatpush.bf16.xpose.msra.mxu1 %v5664_v53  ;;  %4406 = vmatpush.bf16.xpose.msra.mxu2 %v5668_v55  ;;  %v6319_v53 = vld [vmem:[%s7070_s19 + $0x3b8] sm:$0xf0]  ;;  %v6258_v55 = vld [vmem:[%s7070_s19 + $0x1d4] sm:$0xf] }
 0x2e8   : > { %4419 = vmatpush.bf16.xpose.msra.mxu3 %v5672_v57  ;;  %v6320_v57 = vld [vmem:[%s7070_s19 + $0x3c0] sm:$0xf0]  ;;  %v5184_v0 = vor.u32 %v6319_v53, %v5183_v52  ;;  %v4046_v2 = vadd.f32 %v4045_v63, %v4033_v49  ;;  %v5188_v6 = vor.u32 %v6258_v55, %v5185_v56 }
 0x2ea   : > { %v4059_v12 = vadd.f32 %v4058_v9, %v4046_v2  ;;  %v946_v48 = vld [vmem:[#allocation1 + $0x12] sm:$0xff] }
 0x2ee   : > { %4381 = vmatpush.bf16.xpose.msra.mxu0 %v5168_v7  ;;  %v5192_v7 = vor.u32 %v6320_v57, %v5191_v54  ;;  %v4047_v19 = vpop.f32.mrf.mxu2 }
 0x2ef   : > { %4394 = vmatpush.bf16.xpose.msra.mxu1 %v5172_v14  ;;  %4407 = vmatpush.bf16.xpose.msra.mxu2 %v5176_v15  ;;  %v6192_v14 = vor.u32 %v6568_v1, %v6191_v62  ;;  %v5196_v15 = vor.u32 %v6259_v4, %v5193_v5 }
 0x2f0   : > { %4420 = vmatpush.bf16.xpose.msra.mxu3 %v5180_v23  ;;  %v5692_v23 = vor.u32 %v6444_v17, %v5691_v13 }
 0x2f5   : > { %4382 = vmatmul.bf16.vlgmr.msra.gmra.mxu0 %v934_v25 }
 0x2f6   : > { %4431 = vmatpush.bf16.xpose.msrb.mxu0 %v6168_v20  ;;  %4395 = vmatmul.bf16.vlgmr.msra.gmra.mxu1 %v935_v27  ;;  %v5693_v20 = vld [vmem:[%s7070_s19 + $0x7a4] sm:$0xf0]  ;;  %v4097_v39 = vpop.f32.mrf.mxu2 }
 0x2f7   : > { %4444 = vmatpush.bf16.xpose.msrb.mxu1 %v6172_v16  ;;  %4457 = vmatpush.bf16.xpose.msrb.mxu2 %v6176_v22  ;;  %v5699_v16 = vld [vmem:[%s7070_s19 + $0x5c0] sm:$0xf]  ;;  %v4060_v22 = vpop.f32.mrf.mxu3  ;;  %v5696_v25 = vor.u32 %v6383_v18, %v5693_v20 }
 0x2f8   : > { %4470 = vmatpush.bf16.xpose.msrb.mxu3 %v6180_v24  ;;  %4408 = vmatmul.bf16.vlgmr.msra.gmra.mxu2 %v936_v28  ;;  %v4071_v24 = vpop.f32.mrf.mxu0  ;;  %v5700_v27 = vor.u32 %v6445_v21, %v5699_v16 }
 0x2f9   : > { %4421 = vmatmul.bf16.vlgmr.msra.gmra.mxu3 %v937_v30  ;;  %v4072_v28 = vadd.f32 %v4071_v24, %v4059_v12  ;;  %v5199_v30 = vld [vmem:[%s7070_s19 + $0x1e0] sm:$0xf] }
 0x2fa   : > { %v5200_v40 = vor.u32 %v6321_v32, %v5199_v30 }
 0x2fb   : > { %v4085_v29 = vadd.f32 %v4084_v26, %v4072_v28 }
 0x2fd   : > { %v4098_v41 = vadd.f32 %v4097_v39, %v4085_v29 }
 0x2fe   : > { %4432 = vmatpush.bf16.xpose.msrb.mxu0 %v5676_v44 }
 0x2ff   : > { %4445 = vmatpush.bf16.xpose.msrb.mxu1 %v5680_v46  ;;  %4458 = vmatpush.bf16.xpose.msrb.mxu2 %v5684_v47  ;;  %v4110_v44 = vpop.f32.mrf.mxu3  ;;  %v944_v46 = vld [vmem:[#allocation1] sm:$0xff]  ;;  %v945_v47 = vld [vmem:[#allocation1 + $0x9] sm:$0xff] }
 0x300   : > { %4471 = vmatpush.bf16.xpose.msrb.mxu3 %v5688_v51  ;;  %v4073_v42 = vpop.f32.mrf.mxu0  ;;  %v4111_v45 = vadd.f32 %v4110_v44, %v4098_v41 }
 0x306   : > { %4433 = vmatpush.bf16.xpose.msrb.mxu0 %v5184_v0 }
 0x307   : > { %4446 = vmatpush.bf16.xpose.msrb.mxu1 %v5188_v6  ;;  %4459 = vmatpush.bf16.xpose.msrb.mxu2 %v5192_v7  ;;  %v4112_v50 = vpop.f32.mrf.mxu3 }
 0x308   : > { %4472 = vmatpush.bf16.xpose.msrb.mxu3 %v5196_v15  ;;  %v4123_v51 = vpop.f32.mrf.mxu0 }
 0x309   : > { %v4124_v49 = vadd.f32 %v4123_v51, %v4111_v45 }
 0x30d   : > { %4434 = vmatmul.bf16.vlgmr.msrb.gmra.mxu0 %v7937_v31  ;;  %v5201_v31 = vld [vmem:[%s7070_s19 + $0x3cc] sm:$0xf0] }
 0x30e   : > { %4483 = vmatpush.bf16.xpose.msra.mxu0 %v6184_v8  ;;  %4447 = vmatmul.bf16.vlgmr.msrb.gmra.mxu1 %v7939_v34  ;;  %v5204_v43 = vor.u32 %v6260_v33, %v5201_v31  ;;  %v5208_v34 = vor.u32 %v6322_v36, %v5207_v35 }
 0x30f   : > { %4496 = vmatpush.bf16.xpose.msra.mxu1 %v6188_v11  ;;  %4509 = vmatpush.bf16.xpose.msra.mxu2 %v6192_v14  ;;  %v4162_v57 = vpop.f32.mrf.mxu3 }
 0x310   : > { %4460 = vmatmul.bf16.vlgmr.msrb.gmra.mxu2 %v7941_v37  ;;  %4473 = vmatmul.bf16.vlgmr.msrb.gmra.mxu3 %v7943_v38  ;;  %v4086_v37 = vpop.f32.mrf.mxu1  ;;  %v4099_v38 = vpop.f32.mrf.mxu2 }
 0x311   : > { %v4125_v54 = vpop.f32.mrf.mxu0 }
 0x316   : > { %4484 = vmatpush.bf16.xpose.msra.mxu0 %v5692_v23 }
 0x317   : > { %4497 = vmatpush.bf16.xpose.msra.mxu1 %v5696_v25  ;;  %4510 = vmatpush.bf16.xpose.msra.mxu2 %v5700_v27  ;;  %v4164_v59 = vpop.f32.mrf.mxu3 }
 0x318   : > { %v4136_v52 = vpop.f32.mrf.mxu1  ;;  %v4149_v55 = vpop.f32.mrf.mxu2 }
 0x319   : > { %v4137_v53 = vadd.f32 %v4136_v52, %v4124_v49  ;;  %v4175_v62 = vpop.f32.mrf.mxu0 }
 0x31b   : > { %v4150_v56 = vadd.f32 %v4149_v55, %v4137_v53 }
 0x31d   : > { %v4163_v60 = vadd.f32 %v4162_v57, %v4150_v56 }
 0x31e   : > { %4485 = vmatpush.bf16.xpose.msra.mxu0 %v5200_v40 }
 0x31f   : > { %4498 = vmatpush.bf16.xpose.msra.mxu1 %v5204_v43  ;;  %4511 = vmatpush.bf16.xpose.msra.mxu2 %v5208_v34  ;;  %v4176_v63 = vadd.f32 %v4175_v62, %v4163_v60  ;;  %v4214_v5 = vpop.f32.mrf.mxu3 }
 0x320   : > { %v4138_v58 = vpop.f32.mrf.mxu1  ;;  %v4151_v61 = vpop.f32.mrf.mxu2 }
 0x321   : > { %v4177_v4 = vpop.f32.mrf.mxu0 }
 0x325   : > { %4486 = vmatmul.bf16.vlgmr.msra.gmra.mxu0 %v944_v46 }
 0x326   : > { %4499 = vmatmul.bf16.vlgmr.msra.gmra.mxu1 %v945_v47  ;;  %4512 = vmatmul.bf16.vlgmr.msra.gmra.mxu2 %v946_v48 }
 0x327   : > { %v4216_v7 = vpop.f32.mrf.mxu3 }
 0x328   : > { %v4188_v0 = vpop.f32.mrf.mxu1  ;;  %v4201_v2 = vpop.f32.mrf.mxu2 }
 0x329   : > { %v4189_v1 = vadd.f32 %v4188_v0, %v4176_v63 }
 0x32a   : > { %v4227_v9 = vpop.f32.mrf.mxu0 }
 0x32b   : > { %v4202_v20 = vadd.f32 %v4201_v2, %v4189_v1 }
 0x32d   : > { %v4215_v23 = vadd.f32 %v4214_v5, %v4202_v20 }
 0x32f   : > { %v4228_v24 = vadd.f32 %v4227_v9, %v4215_v23 }
 0x330   : > { %v4190_v3 = vpop.f32.mrf.mxu1  ;;  %v4203_v6 = vpop.f32.mrf.mxu2 }
 0x332   : > { %v4229_v11 = vpop.f32.mrf.mxu0 }
 0x334   : > { %v4266_v12 = vpop.f32.mrf.mxu3 }
 0x338   : > { %v4240_v10 = vpop.f32.mrf.mxu1  ;;  %v4253_v8 = vpop.f32.mrf.mxu2 }
 0x339   : > { %v4241_v28 = vadd.f32 %v4240_v10, %v4228_v24 }
 0x33b   : > { %v4254_v30 = vadd.f32 %v4253_v8, %v4241_v28  ;;  %v403_v8 = vld [vmem:[#allocation2] sm:$0x3] }
 0x33c   : > { %v4268_v13 = vpop.f32.mrf.mxu3 }
 0x33d   : > { %v4267_v32 = vadd.f32 %v4266_v12, %v4254_v30 }
 0x340   : > { %v4242_v14 = vpop.f32.mrf.mxu1  ;;  %v4255_v15 = vpop.f32.mrf.mxu2 }
 0x342   : > { %v4279_v17 = vpop.f32.mrf.mxu0 }
 0x343   : > { %v4280_v31 = vadd.f32 %v4279_v17, %v4267_v32 }
 0x348   : > { %v4292_v18 = vpop.f32.mrf.mxu1 }
 0x349   : > { %v4305_v19 = vpop.f32.mrf.mxu2  ;;  %v4293_v40 = vadd.f32 %v4292_v18, %v4280_v31 }
 0x34a   : > { %v4281_v16 = vpop.f32.mrf.mxu0 }
 0x34b   : > { %v4306_v41 = vadd.f32 %v4305_v19, %v4293_v40 }
 0x34c   : > { %v4318_v21 = vpop.f32.mrf.mxu3 }
 0x34d   : > { %v4319_v34 = vadd.f32 %v4318_v21, %v4306_v41 }
 0x350   : > { %v4294_v22 = vpop.f32.mrf.mxu1 }
 0x351   : > { %v4307_v25 = vpop.f32.mrf.mxu2 }
 0x354   : > { %v4320_v27 = vpop.f32.mrf.mxu3 }
 0x35a   : > { %v4331_v26 = vpop.f32.mrf.mxu0 }
 0x35b   : > { %v4332_v45 = vadd.f32 %v4331_v26, %v4319_v34 }
 0x35d   : > { %v4344_v29 = vpop.f32.mrf.mxu1 }
 0x35e   : > { %v4345_v38 = vadd.f32 %v4344_v29, %v4332_v45 }
 0x361   : > { %v4357_v33 = vpop.f32.mrf.mxu2 }
 0x362   : > { %v4333_v35 = vpop.f32.mrf.mxu0  ;;  %v4358_v47 = vadd.f32 %v4357_v33, %v4345_v38 }
 0x364   : > { %v4370_v36 = vpop.f32.mrf.mxu3 }
 0x365   : > { %v4346_v39 = vpop.f32.mrf.mxu1  ;;  %v4371_v49 = vadd.f32 %v4370_v36, %v4358_v47 }
 0x369   : > { %v4359_v42 = vpop.f32.mrf.mxu2 }
 0x36c   : > { %v4372_v43 = vpop.f32.mrf.mxu3 }
 0x372   : > { %v4383_v44 = vpop.f32.mrf.mxu0 }
 0x373   : > { %v4396_v37 = vpop.f32.mrf.mxu1  ;;  %v4384_v52 = vadd.f32 %v4383_v44, %v4371_v49 }
 0x375   : > { %v4397_v56 = vadd.f32 %v4396_v37, %v4384_v52 }
 0x37a   : > { %v4385_v48 = vpop.f32.mrf.mxu0 }
 0x37b   : > { %v4409_v46 = vpop.f32.mrf.mxu2  ;;  %v4398_v50 = vpop.f32.mrf.mxu1 }
 0x37c   : > { %v4422_v51 = vpop.f32.mrf.mxu3  ;;  %v4410_v58 = vadd.f32 %v4409_v46, %v4397_v56 }
 0x37e   : > { %v4423_v60 = vadd.f32 %v4422_v51, %v4410_v58 }
 0x383   : > { %v4411_v53 = vpop.f32.mrf.mxu2 }
 0x384   : > { %v4424_v55 = vpop.f32.mrf.mxu3 }
 0x38a   : > { %v4435_v54 = vpop.f32.mrf.mxu0 }
 0x38b   : > { %v4448_v57 = vpop.f32.mrf.mxu1  ;;  %v4436_v59 = vadd.f32 %v4435_v54, %v4423_v60 }
 0x38d   : > { %v4449_v1 = vadd.f32 %v4448_v57, %v4436_v59 }
 0x392   : > { %v4437_v62 = vpop.f32.mrf.mxu0 }
 0x393   : > { %v4461_v61 = vpop.f32.mrf.mxu2  ;;  %v4450_v63 = vpop.f32.mrf.mxu1 }
 0x394   : > { %v4474_v0 = vpop.f32.mrf.mxu3  ;;  %v4462_v2 = vadd.f32 %v4461_v61, %v4449_v1 }
 0x396   : > { %v4475_v3 = vadd.f32 %v4474_v0, %v4462_v2 }
 0x39b   : > { %v4463_v4 = vpop.f32.mrf.mxu2 }
 0x39c   : > { %v4476_v5 = vpop.f32.mrf.mxu3 }
 0x3a2   : > { %v4487_v6 = vpop.f32.mrf.mxu0 }
 0x3a3   : > { %v4500_v7 = vpop.f32.mrf.mxu1  ;;  %v4488_v9 = vadd.f32 %v4487_v6, %v4475_v3 }
 0x3a5   : > { %v4501_v10 = vadd.f32 %v4500_v7, %v4488_v9 }
 0x3a9   : > { %v4513_v11 = vpop.f32.mrf.mxu2 }
 0x3aa   : > { %v4514_v12 = vadd.f32 %v4513_v11, %v4501_v10  ;;  %v4489_v14 = vpop.f32.mrf.mxu0 }
 0x3ab   : > { %v4502_v15 = vpop.f32.mrf.mxu1 }
 0x3ac   : > { %v4517_v13 = vadd.f32 %v4514_v12, %v403_v8 }
 0x3ad   : > { %4523 = sbr.rel (%p6193_p1) target bundleno = 1089 (0x441), region = 76 }
 0x3ae   : > { %4519 = vst.msk [vmem:[#allocation2] sm:$0x3] %vm4518_vm1, %v4517_v13 }
 0x3b1   : > { %v4515_v17 = vpop.f32.mrf.mxu2 }
 0x3b2   : > { %v4541_v18 = vld [vmem:[%s8026_s4 + $0x28] sm:$0xff]  ;;  %v4540_v19 = vld [vmem:[%s8026_s4 + $0x20] sm:$0xff]  ;;  %v4539_v20 = vld [vmem:[%s8026_s4 + $0x18] sm:$0xff]  ;;  %vm4542_vm2 = vcmask 392192   ;;  %vm4576_vm3 = vcmask 74752  }
 0x3b3   : > { %4556 = vmatpush.msra.mxu0 %v4541_v18  ;;  %v6678_v21 = vld [vmem:[#allocation6] ss:$0 sm:$0xff]  ;;  %v6679_v22 = vld [vmem:[#allocation8] ss:$0 sm:$0xff]  ;;  %v4538_v23 = vld [vmem:[%s8026_s4 + $0x10] sm:$0xff] }
 0x3b4   : > { %v4537_v25 = vld [vmem:[%s8026_s4 + $0x8] sm:$0xff]  ;;  %v4536_v28 = vld [vmem:[%s8026_s4] sm:$0xff]  ;;  %v6680_v29 = vld [vmem:[#allocation9] ss:$0 sm:$0xff] }
 0x3b5   : > { %v4524_v16 = vld [vmem:[#allocation2] sm:$0x3]  ;;  %4557 = vmatpush.msra.mxu0 %v4540_v19  ;;  %v6681_v30 = vld [vmem:[#allocation11] ss:$0 sm:$0xff] }
 0x3b6   : > { %v4529_v24 = vmul.f32 %v6678_v21, %v4524_v16 }
 0x3b7   : > { %4558 = vmatpush.msra.mxu0 %v4539_v20 }
 0x3b8   : > { %v4534_v27 = vadd.f32 %v6679_v22, %v4529_v24 }
 0x3b9   : > { %4559 = vmatpush.msra.mxu0 %v4538_v23 }
 0x3ba   : > { %v4535_v26 = vmax.f32 %v4534_v27, 0.0 }
 0x3bb   : > { %4560 = vmatpush.msra.mxu0 %v4537_v25 }
 0x3bd   : > { %4561 = vmatpush.msra.mxu0 %v4536_v28 }
 0x3be   : > { %6194 = vmatmul.msk.f32.vlgmr.msra.gmra.mxu0 %vm4542_vm2, %v4535_v26 }
 0x43b   : > { %v4563_v32 = vpop.f32.mrf.mxu0 }
 0x43c   : > { %v4570_v33 = vmul.f32 %v6680_v29, %v4563_v32 }
 0x43e   : > { %v4575_v31 = vadd.f32 %v6681_v30, %v4570_v33 }
 0x440   : > { %4577 = vst.msk [vmem:[#allocation12] sm:$0x3] %vm4576_vm3, %v4575_v31 }
 0x441 PF: > { %s8041_s15 = sadd.s32 4294967295, %s6922_s29   ;;  %s4588_s19 = sshll.u32 %s8029_s7, 4  ;;  %s4589_s19 = int_to_ptr.hbm [resolvable:$true] %s4588_s19 }
 0x442   : > { %p6619_p4 = scmp.eq.s32.totalorder %s8041_s15, 1  ;;  %s6932_s2 = smov [#allocation12]  }
 0x443   : > { %s4586_s3 = sshll.u32 %s6932_s2, 4  ;;  %s4587_s3 = int_to_ptr.vmem [resolvable:$true] %s4586_s3 }
 0x444   : > { %6590 = dma.vmem_to_hbm [thread:$0]  (%p6619_p4), %s4587_s3, 32, %s4589_s19, [#allocation5]  }
 0x445   : > { %6897 = dma.done.wait (%p6619_p4), [#allocation5], 32  }
 0x446   : > { %6899 = vsyncadd (%p6619_p4), [#allocation5], 4294967264 }
 0x447 PF: > { %s23_s29 = sadd.s32 1, %s6922_s29   ;;  %s8042_s24 = smov %s6906_s25 }
 0x448   : > { %p20_p5 = scmp.ge.s32.totalorder %s23_s29, 4   ;;  %s8043_s25 = smov %s6910_s26 }
 0x449   : > { %s8044_s26 = smov %s7062_s10  ;;  %s8045_s27 = smov %s6918_s28 }
 0x44a   : > { %s8046_s28 = smov %s8048_s18  ;;  %22 = sbr.rel (!%p20_p5) target bundleno = 11 (0xb), region = 113 }
 0x44f   :  { %4602 = vsyncpa [#allocation4], 1 }
 0x450   :  { %4604 = vsyncpa [#allocation4 + $0x1], 1 }
 0x451   :  { %4605 = vsyncpa [#allocation7], 1 }
 0x452   :  { %4606 = vsyncpa [#allocation10], 1 }
 0x453   :  { %4607 = vsyncpa [#allocation5], 1 }
 0x454   :  { %4609 = vsyncpa [#allocation5 + $0x1], 1 }

</bundles_post_ra>
